<compile_context>
chip_gen: v7x
topology: tpu7x:2x2x1
jax: 0.10.0
libtpu: 0.0.40
codegen_flags: <defaults>
</compile_context>

<pallas_src>
import jax
import jax.numpy as jnp
from jax.experimental import pallas as pl
from jax.experimental.pallas import tpu as pltpu

NEG_SLOPE = 0.01   # nn.LeakyReLU default negative_slope
BN_EPS = 1e-5      # nn.BatchNorm2d default eps

H = 116            # input height (fixed by Conv2d(1, 32, (116, 1)))
W = 116            # input width  (fixed by Conv2d(32, 64, (1, 116)))
W_PAD = 128        # width padded to a full lane tile
C1, C2, C3 = 32, 64, 16

B_TILE = 16        # batch elements per grid step
B_PER_CHUNK = 4    # batch elements per conv1 matmul chunk (bounds vreg pressure)


def _leaky(z):
    return jnp.where(z > 0, z, NEG_SLOPE * z)


def static_cnn_kernel(xw_ref, w1_ref, b1_ref, w2_ref, b2_ref, w3_ref, b3_ref,
                      wl1_ref, bl1_ref, wl2_ref, bl2_ref, o_ref, y1s_ref):
    # ---------------- conv1 + bn1 (folded) + LeakyReLU ----------------------
    # xw block: (116, B_TILE*128) bf16, lanes ordered (b_local, w).
    # Wide matmuls over chunks of B_PER_CHUNK elements; per-element (32, 128)
    # slabs are scattered into the y1 scratch with rows ordered (b_local, c).
    n_chunks = B_TILE // B_PER_CHUNK
    chunk_lanes = B_PER_CHUNK * W_PAD
    for ch in range(n_chunks):
        xc = xw_ref[:, pl.ds(ch * chunk_lanes, chunk_lanes)]           # (116, 512) bf16
        y1c = jnp.dot(w1_ref[...], xc,
                      preferred_element_type=jnp.float32)              # (32, 512) f32
        y1c = _leaky(y1c + b1_ref[...])                                # bias (32, 1)
        for bl in range(B_PER_CHUNK):
            bg = ch * B_PER_CHUNK + bl                                 # tile-local batch idx
            slab = y1c[:, bl * W_PAD:(bl + 1) * W_PAD]                 # (32, 128)
            y1s_ref[pl.ds(bg * C1, C1), :] = slab                      # rows [bg*32, bg*32+32)

    # ---------------- conv2 + bn2 (folded) + LeakyReLU -----------------------
    # y2[b, o] = sum_{c, w} y1[b, c, w] * w2[c, w, o]; w2 is zero at w >= 116,
    # which also kills the padded-width garbage in y1.
    acc = jnp.zeros((B_TILE, C2), jnp.float32)
    for c in range(C1):
        yc = y1s_ref[pl.ds(c, B_TILE, stride=C1), :]                   # (B_TILE, 128)
        acc = acc + jnp.dot(yc, w2_ref[c],
                            preferred_element_type=jnp.float32)        # (B_TILE, 64)
    y2 = _leaky(acc + b2_ref[...])

    # ---------------- conv3 (1x1) + bn3 (folded) + LeakyReLU ----------------
    y3 = _leaky(jnp.dot(y2, w3_ref[...],
                        preferred_element_type=jnp.float32) + b3_ref[...])  # (B_TILE, 16)
    # TODO(synk): Dropout(p=0.5) treated as identity (eval-mode semantics).

    # ---------------- attention branch ---------------------------------------
    a1 = _leaky(jnp.dot(y3, wl1_ref[...],
                        preferred_element_type=jnp.float32) + bl1_ref[...])  # (B_TILE, 8)
    a2 = jax.nn.sigmoid(jnp.dot(a1, wl2_ref[...],
                                preferred_element_type=jnp.float32) + bl2_ref[...])

    o_ref[...] = y3 * a2                                               # (B_TILE, 16)


def static_cnn_forward(x_nchw, p):
    """Wrapper: BN folding / layout prep is glue; all compute is in the kernel."""
    B = x_nchw.shape[0]
    x = x_nchw[:, 0, :, :].astype(jnp.float32)                         # (B, 116, 116)

    # Pad batch to a multiple of B_TILE and width to 128, then lay x out as
    # (H, B_pad*128) with lanes ordered (b, w) so conv1 is a wide matmul.
    b_pad = pl.cdiv(B, B_TILE) * B_TILE
    xp = jnp.pad(x, ((0, b_pad - B), (0, 0), (0, W_PAD - W)))          # (Bp, 116, 128)
    xw = jnp.transpose(xp, (1, 0, 2)).reshape(H, b_pad * W_PAD)
    xw = xw.astype(jnp.bfloat16)

    def fold(gamma, beta, mean, var):
        s = gamma / jnp.sqrt(var + BN_EPS)
        return s, beta - s * mean                                      # bn(z) = s*z + t

    s1, t1 = fold(p["bn1_gamma"], p["bn1_beta"], p["bn1_mean"], p["bn1_var"])
    w1 = (s1[:, None] * p["conv1_w"][:, 0, :, 0]).astype(jnp.bfloat16)  # (32, 116)
    b1 = (s1 * p["conv1_b"] + t1)[:, None]                              # (32, 1) f32

    s2, t2 = fold(p["bn2_gamma"], p["bn2_beta"], p["bn2_mean"], p["bn2_var"])
    w2 = s2[:, None, None] * p["conv2_w"][:, :, 0, :]                  # (64, 32, 116)
    w2 = jnp.transpose(w2, (1, 2, 0))                                  # (32, 116, 64)
    w2 = jnp.pad(w2, ((0, 0), (0, W_PAD - W), (0, 0)))                 # (32, 128, 64)
    b2 = (s2 * p["conv2_b"] + t2)[None, :]                             # (1, 64)

    s3, t3 = fold(p["bn3_gamma"], p["bn3_beta"], p["bn3_mean"], p["bn3_var"])
    w3 = (s3[:, None] * p["conv3_w"][:, :, 0, 0]).T                    # (64, 16)
    b3 = (s3 * p["conv3_b"] + t3)[None, :]                             # (1, 16)

    wl1 = p["lin1_w"].T                                                # (16, 8)
    bl1 = p["lin1_b"][None, :]                                         # (1, 8)
    wl2 = p["lin2_w"].T                                                # (8, 16)
    bl2 = p["lin2_b"][None, :]                                         # (1, 16)

    out = pl.pallas_call(
        static_cnn_kernel,
        out_shape=jax.ShapeDtypeStruct((b_pad, C3), jnp.float32),
        grid=(b_pad // B_TILE,),
        in_specs=[
            pl.BlockSpec((H, B_TILE * W_PAD), lambda i: (0, i)),        # x (wide layout)
            pl.BlockSpec((C1, H), lambda i: (0, 0)),                    # w1 (bf16)
            pl.BlockSpec((C1, 1), lambda i: (0, 0)),                    # b1
            pl.BlockSpec((C1, W_PAD, C2), lambda i: (0, 0, 0)),         # w2 (c, w, o)
            pl.BlockSpec((1, C2), lambda i: (0, 0)),                    # b2
            pl.BlockSpec((C2, C3), lambda i: (0, 0)),                   # w3
            pl.BlockSpec((1, C3), lambda i: (0, 0)),                    # b3
            pl.BlockSpec((C3, 8), lambda i: (0, 0)),                    # wl1
            pl.BlockSpec((1, 8), lambda i: (0, 0)),                     # bl1
            pl.BlockSpec((8, C3), lambda i: (0, 0)),                    # wl2
            pl.BlockSpec((1, C3), lambda i: (0, 0)),                    # bl2
        ],
        out_specs=pl.BlockSpec((B_TILE, C3), lambda i: (i, 0)),
        scratch_shapes=[pltpu.VMEM((B_TILE * C1, W_PAD), jnp.float32)],  # y1 staging
        compiler_params=pltpu.CompilerParams(dimension_semantics=("parallel",)),
    )(xw, w1, b1, w2, b2, w3, b3, wl1, bl1, wl2, bl2)
    return out[:B]


def ref_forward(x_nchw, p):
    """Pure-JAX reference mirroring the PyTorch forward (eval-mode BN/dropout)."""
    def bn(z, g, b, m, v, caxis):
        shp = [1] * z.ndim
        shp[caxis] = -1
        return (z - m.reshape(shp)) / jnp.sqrt(v.reshape(shp) + BN_EPS) * g.reshape(shp) + b.reshape(shp)

    x = x_nchw[:, 0]                                                   # (B, 116, 116)
    y1 = jnp.einsum('oh,bhw->bow', p["conv1_w"][:, 0, :, 0], x) + p["conv1_b"][None, :, None]
    y1 = _leaky(bn(y1, p["bn1_gamma"], p["bn1_beta"], p["bn1_mean"], p["bn1_var"], 1))
    y2 = jnp.einsum('ocw,bcw->bo', p["conv2_w"][:, :, 0, :], y1) + p["conv2_b"][None, :]
    y2 = _leaky(bn(y2, p["bn2_gamma"], p["bn2_beta"], p["bn2_mean"], p["bn2_var"], 1))
    y3 = y2 @ p["conv3_w"][:, :, 0, 0].T + p["conv3_b"][None, :]
    y3 = _leaky(bn(y3, p["bn3_gamma"], p["bn3_beta"], p["bn3_mean"], p["bn3_var"], 1))
    a1 = _leaky(y3 @ p["lin1_w"].T + p["lin1_b"][None, :])
    a2 = jax.nn.sigmoid(a1 @ p["lin2_w"].T + p["lin2_b"][None, :])
    return y3 * a2


if __name__ == "__main__":
    B = 2  # spatial dims are fixed at 116x116 by the module's kernel sizes
    key = jax.random.PRNGKey(0)
    ks = iter(jax.random.split(key, 32))
    nk = lambda: next(ks)

    def bn_params(c):
        return (1.0 + 0.1 * jax.random.normal(nk(), (c,), jnp.float32),   # gamma
                0.1 * jax.random.normal(nk(), (c,), jnp.float32),          # beta
                0.1 * jax.random.normal(nk(), (c,), jnp.float32),          # running_mean
                jax.random.uniform(nk(), (c,), jnp.float32, minval=0.5, maxval=1.5))  # running_var

    p = {}
    p["conv1_w"] = 0.05 * jax.random.normal(nk(), (32, 1, 116, 1), jnp.float32)
    p["conv1_b"] = 0.05 * jax.random.normal(nk(), (32,), jnp.float32)
    p["bn1_gamma"], p["bn1_beta"], p["bn1_mean"], p["bn1_var"] = bn_params(32)
    p["conv2_w"] = 0.02 * jax.random.normal(nk(), (64, 32, 1, 116), jnp.float32)
    p["conv2_b"] = 0.05 * jax.random.normal(nk(), (64,), jnp.float32)
    p["bn2_gamma"], p["bn2_beta"], p["bn2_mean"], p["bn2_var"] = bn_params(64)
    p["conv3_w"] = 0.1 * jax.random.normal(nk(), (16, 64, 1, 1), jnp.float32)
    p["conv3_b"] = 0.05 * jax.random.normal(nk(), (16,), jnp.float32)
    p["bn3_gamma"], p["bn3_beta"], p["bn3_mean"], p["bn3_var"] = bn_params(16)
    p["lin1_w"] = 0.2 * jax.random.normal(nk(), (8, 16), jnp.float32)
    p["lin1_b"] = 0.05 * jax.random.normal(nk(), (8,), jnp.float32)
    p["lin2_w"] = 0.2 * jax.random.normal(nk(), (16, 8), jnp.float32)
    p["lin2_b"] = 0.05 * jax.random.normal(nk(), (16,), jnp.float32)

    x = jax.random.normal(nk(), (B, 1, 116, 116), jnp.float32)

    out = jax.block_until_ready(static_cnn_forward(x, p))
    ref = jax.block_until_ready(ref_forward(x, p))

    assert out.shape == (B, 16), out.shape
    if not bool(jnp.allclose(out, ref, rtol=2e-2, atol=2e-2)):
        raise AssertionError(
            f"mismatch: max abs diff = {float(jnp.max(jnp.abs(out - ref)))}")
    print("KERNEL_OK")
</pallas_src>

<mosaic_0001>
module attributes {stable_mosaic.version = 11 : i64} {
  func.func @static_cnn_kernel(%arg0: i32, %arg1: memref<116x2048xbf16, #tpu.memory_space<vmem>>, %arg2: memref<32x116xbf16, #tpu.memory_space<vmem>>, %arg3: memref<32x1xf32, #tpu.memory_space<vmem>>, %arg4: memref<32x128x64xf32, #tpu.memory_space<vmem>>, %arg5: memref<1x64xf32, #tpu.memory_space<vmem>>, %arg6: memref<64x16xf32, #tpu.memory_space<vmem>>, %arg7: memref<1x16xf32, #tpu.memory_space<vmem>>, %arg8: memref<16x8xf32, #tpu.memory_space<vmem>>, %arg9: memref<1x8xf32, #tpu.memory_space<vmem>>, %arg10: memref<8x16xf32, #tpu.memory_space<vmem>>, %arg11: memref<1x16xf32, #tpu.memory_space<vmem>>, %arg12: memref<16x16xf32, #tpu.memory_space<vmem>>, %arg13: memref<512x128xf32, #tpu.memory_space<vmem>>) attributes {dimension_semantics = [#tpu.dimension_semantics<parallel>], iteration_bounds = array<i64: 1>, scalar_prefetch = 0 : i64, scratch_operands = 1 : i64, tpu.core_type = #tpu.core_type<tc>, window_params = [{transform_indices = @transform_0, window_bounds = array<i64: 116, 2048>}, {pipeline_mode = #tpu.pipeline_mode<synchronous>, transform_indices = @transform_1, window_bounds = array<i64: 32, 116>}, {pipeline_mode = #tpu.pipeline_mode<synchronous>, transform_indices = @transform_2, window_bounds = array<i64: 32, 1>}, {pipeline_mode = #tpu.pipeline_mode<synchronous>, transform_indices = @transform_3, window_bounds = array<i64: 32, 128, 64>}, {pipeline_mode = #tpu.pipeline_mode<synchronous>, transform_indices = @transform_4, window_bounds = array<i64: 1, 64>}, {pipeline_mode = #tpu.pipeline_mode<synchronous>, transform_indices = @transform_5, window_bounds = array<i64: 64, 16>}, {pipeline_mode = #tpu.pipeline_mode<synchronous>, transform_indices = @transform_6, window_bounds = array<i64: 1, 16>}, {pipeline_mode = #tpu.pipeline_mode<synchronous>, transform_indices = @transform_7, window_bounds = array<i64: 16, 8>}, {pipeline_mode = #tpu.pipeline_mode<synchronous>, transform_indices = @transform_8, window_bounds = array<i64: 1, 8>}, {pipeline_mode = #tpu.pipeline_mode<synchronous>, transform_indices = @transform_9, window_bounds = array<i64: 8, 16>}, {pipeline_mode = #tpu.pipeline_mode<synchronous>, transform_indices = @transform_10, window_bounds = array<i64: 1, 16>}, {transform_indices = @transform_11, window_bounds = array<i64: 16, 16>}]} {
    %c0 = arith.constant 0 : index
    %c0_0 = arith.constant 0 : index
    %0 = vector.load %arg1[%c0, %c0_0] : memref<116x2048xbf16, #tpu.memory_space<vmem>>, vector<116x512xbf16>
    %c0_1 = arith.constant 0 : index
    %c0_2 = arith.constant 0 : index
    %1 = vector.load %arg2[%c0_1, %c0_2] : memref<32x116xbf16, #tpu.memory_space<vmem>>, vector<32x116xbf16>
    %cst = arith.constant dense<0.000000e+00> : vector<32x512xf32>
    %2 = tpu.matmul %1, %0, %cst {dimension_numbers = #tpu.dot_dimension_numbers<[1], [0], [0], [1], [0, 0, 1, 1], [], []>} : vector<32x116xbf16>, vector<116x512xbf16>, vector<32x512xf32> -> vector<32x512xf32>
    %c0_3 = arith.constant 0 : index
    %c0_4 = arith.constant 0 : index
    %3 = vector.load %arg3[%c0_3, %c0_4] : memref<32x1xf32, #tpu.memory_space<vmem>>, vector<32x1xf32>
    %4 = vector.broadcast %3 : vector<32x1xf32> to vector<32x512xf32>
    %5 = arith.addf %2, %4 : vector<32x512xf32>
    %cst_5 = arith.constant 0.000000e+00 : f32
    %6 = vector.broadcast %cst_5 : f32 to vector<32x512xf32>
    %7 = arith.cmpf ogt, %5, %6 : vector<32x512xf32>
    %cst_6 = arith.constant 0.00999999977 : f32
    %8 = vector.broadcast %cst_6 : f32 to vector<32x512xf32>
    %9 = arith.mulf %8, %5 : vector<32x512xf32>
    %10 = arith.select %7, %5, %9 : vector<32x512xi1>, vector<32x512xf32>
    %11 = vector.extract_strided_slice %10 {offsets = [0, 0], sizes = [32, 128], strides = [1, 1]} : vector<32x512xf32> to vector<32x128xf32>
    %c0_7 = arith.constant 0 : index
    %c0_8 = arith.constant 0 : index
    %12 = vector.load %arg13[%c0_7, %c0_8] : memref<512x128xf32, #tpu.memory_space<vmem>>, vector<32x128xf32>
    tpu.vector_store %arg13[%c0_7, %c0_8], %11 {strides = array<i32>} : memref<512x128xf32, #tpu.memory_space<vmem>>, vector<32x128xf32>,
    %13 = vector.extract_strided_slice %10 {offsets = [0, 128], sizes = [32, 128], strides = [1, 1]} : vector<32x512xf32> to vector<32x128xf32>
    %c32 = arith.constant 32 : index
    %c0_9 = arith.constant 0 : index
    %14 = vector.load %arg13[%c32, %c0_9] : memref<512x128xf32, #tpu.memory_space<vmem>>, vector<32x128xf32>
    tpu.vector_store %arg13[%c32, %c0_9], %13 {strides = array<i32>} : memref<512x128xf32, #tpu.memory_space<vmem>>, vector<32x128xf32>,
    %15 = vector.extract_strided_slice %10 {offsets = [0, 256], sizes = [32, 128], strides = [1, 1]} : vector<32x512xf32> to vector<32x128xf32>
    %c64 = arith.constant 64 : index
    %c0_10 = arith.constant 0 : index
    %16 = vector.load %arg13[%c64, %c0_10] : memref<512x128xf32, #tpu.memory_space<vmem>>, vector<32x128xf32>
    tpu.vector_store %arg13[%c64, %c0_10], %15 {strides = array<i32>} : memref<512x128xf32, #tpu.memory_space<vmem>>, vector<32x128xf32>,
    %17 = vector.extract_strided_slice %10 {offsets = [0, 384], sizes = [32, 128], strides = [1, 1]} : vector<32x512xf32> to vector<32x128xf32>
    %c96 = arith.constant 96 : index
    %c0_11 = arith.constant 0 : index
    %18 = vector.load %arg13[%c96, %c0_11] : memref<512x128xf32, #tpu.memory_space<vmem>>, vector<32x128xf32>
    tpu.vector_store %arg13[%c96, %c0_11], %17 {strides = array<i32>} : memref<512x128xf32, #tpu.memory_space<vmem>>, vector<32x128xf32>,
    %c0_12 = arith.constant 0 : index
    %c512 = arith.constant 512 : index
    %19 = vector.load %arg1[%c0_12, %c512] : memref<116x2048xbf16, #tpu.memory_space<vmem>>, vector<116x512xbf16>
    %c0_13 = arith.constant 0 : index
    %c0_14 = arith.constant 0 : index
    %20 = vector.load %arg2[%c0_13, %c0_14] : memref<32x116xbf16, #tpu.memory_space<vmem>>, vector<32x116xbf16>
    %cst_15 = arith.constant dense<0.000000e+00> : vector<32x512xf32>
    %21 = tpu.matmul %20, %19, %cst_15 {dimension_numbers = #tpu.dot_dimension_numbers<[1], [0], [0], [1], [0, 0, 1, 1], [], []>} : vector<32x116xbf16>, vector<116x512xbf16>, vector<32x512xf32> -> vector<32x512xf32>
    %c0_16 = arith.constant 0 : index
    %c0_17 = arith.constant 0 : index
    %22 = vector.load %arg3[%c0_16, %c0_17] : memref<32x1xf32, #tpu.memory_space<vmem>>, vector<32x1xf32>
    %23 = vector.broadcast %22 : vector<32x1xf32> to vector<32x512xf32>
    %24 = arith.addf %21, %23 : vector<32x512xf32>
    %cst_18 = arith.constant 0.000000e+00 : f32
    %25 = vector.broadcast %cst_18 : f32 to vector<32x512xf32>
    %26 = arith.cmpf ogt, %24, %25 : vector<32x512xf32>
    %cst_19 = arith.constant 0.00999999977 : f32
    %27 = vector.broadcast %cst_19 : f32 to vector<32x512xf32>
    %28 = arith.mulf %27, %24 : vector<32x512xf32>
    %29 = arith.select %26, %24, %28 : vector<32x512xi1>, vector<32x512xf32>
    %30 = vector.extract_strided_slice %29 {offsets = [0, 0], sizes = [32, 128], strides = [1, 1]} : vector<32x512xf32> to vector<32x128xf32>
    %c128 = arith.constant 128 : index
    %c0_20 = arith.constant 0 : index
    %31 = vector.load %arg13[%c128, %c0_20] : memref<512x128xf32, #tpu.memory_space<vmem>>, vector<32x128xf32>
    tpu.vector_store %arg13[%c128, %c0_20], %30 {strides = array<i32>} : memref<512x128xf32, #tpu.memory_space<vmem>>, vector<32x128xf32>,
    %32 = vector.extract_strided_slice %29 {offsets = [0, 128], sizes = [32, 128], strides = [1, 1]} : vector<32x512xf32> to vector<32x128xf32>
    %c160 = arith.constant 160 : index
    %c0_21 = arith.constant 0 : index
    %33 = vector.load %arg13[%c160, %c0_21] : memref<512x128xf32, #tpu.memory_space<vmem>>, vector<32x128xf32>
    tpu.vector_store %arg13[%c160, %c0_21], %32 {strides = array<i32>} : memref<512x128xf32, #tpu.memory_space<vmem>>, vector<32x128xf32>,
    %34 = vector.extract_strided_slice %29 {offsets = [0, 256], sizes = [32, 128], strides = [1, 1]} : vector<32x512xf32> to vector<32x128xf32>
    %c192 = arith.constant 192 : index
    %c0_22 = arith.constant 0 : index
    %35 = vector.load %arg13[%c192, %c0_22] : memref<512x128xf32, #tpu.memory_space<vmem>>, vector<32x128xf32>
    tpu.vector_store %arg13[%c192, %c0_22], %34 {strides = array<i32>} : memref<512x128xf32, #tpu.memory_space<vmem>>, vector<32x128xf32>,
    %36 = vector.extract_strided_slice %29 {offsets = [0, 384], sizes = [32, 128], strides = [1, 1]} : vector<32x512xf32> to vector<32x128xf32>
    %c224 = arith.constant 224 : index
    %c0_23 = arith.constant 0 : index
    %37 = vector.load %arg13[%c224, %c0_23] : memref<512x128xf32, #tpu.memory_space<vmem>>, vector<32x128xf32>
    tpu.vector_store %arg13[%c224, %c0_23], %36 {strides = array<i32>} : memref<512x128xf32, #tpu.memory_space<vmem>>, vector<32x128xf32>,
    %c0_24 = arith.constant 0 : index
    %c1024 = arith.constant 1024 : index
    %38 = vector.load %arg1[%c0_24, %c1024] : memref<116x2048xbf16, #tpu.memory_space<vmem>>, vector<116x512xbf16>
    %c0_25 = arith.constant 0 : index
    %c0_26 = arith.constant 0 : index
    %39 = vector.load %arg2[%c0_25, %c0_26] : memref<32x116xbf16, #tpu.memory_space<vmem>>, vector<32x116xbf16>
    %cst_27 = arith.constant dense<0.000000e+00> : vector<32x512xf32>
    %40 = tpu.matmul %39, %38, %cst_27 {dimension_numbers = #tpu.dot_dimension_numbers<[1], [0], [0], [1], [0, 0, 1, 1], [], []>} : vector<32x116xbf16>, vector<116x512xbf16>, vector<32x512xf32> -> vector<32x512xf32>
    %c0_28 = arith.constant 0 : index
    %c0_29 = arith.constant 0 : index
    %41 = vector.load %arg3[%c0_28, %c0_29] : memref<32x1xf32, #tpu.memory_space<vmem>>, vector<32x1xf32>
    %42 = vector.broadcast %41 : vector<32x1xf32> to vector<32x512xf32>
    %43 = arith.addf %40, %42 : vector<32x512xf32>
    %cst_30 = arith.constant 0.000000e+00 : f32
    %44 = vector.broadcast %cst_30 : f32 to vector<32x512xf32>
    %45 = arith.cmpf ogt, %43, %44 : vector<32x512xf32>
    %cst_31 = arith.constant 0.00999999977 : f32
    %46 = vector.broadcast %cst_31 : f32 to vector<32x512xf32>
    %47 = arith.mulf %46, %43 : vector<32x512xf32>
    %48 = arith.select %45, %43, %47 : vector<32x512xi1>, vector<32x512xf32>
    %49 = vector.extract_strided_slice %48 {offsets = [0, 0], sizes = [32, 128], strides = [1, 1]} : vector<32x512xf32> to vector<32x128xf32>
    %c256 = arith.constant 256 : index
    %c0_32 = arith.constant 0 : index
    %50 = vector.load %arg13[%c256, %c0_32] : memref<512x128xf32, #tpu.memory_space<vmem>>, vector<32x128xf32>
    tpu.vector_store %arg13[%c256, %c0_32], %49 {strides = array<i32>} : memref<512x128xf32, #tpu.memory_space<vmem>>, vector<32x128xf32>,
    %51 = vector.extract_strided_slice %48 {offsets = [0, 128], sizes = [32, 128], strides = [1, 1]} : vector<32x512xf32> to vector<32x128xf32>
    %c288 = arith.constant 288 : index
    %c0_33 = arith.constant 0 : index
    %52 = vector.load %arg13[%c288, %c0_33] : memref<512x128xf32, #tpu.memory_space<vmem>>, vector<32x128xf32>
    tpu.vector_store %arg13[%c288, %c0_33], %51 {strides = array<i32>} : memref<512x128xf32, #tpu.memory_space<vmem>>, vector<32x128xf32>,
    %53 = vector.extract_strided_slice %48 {offsets = [0, 256], sizes = [32, 128], strides = [1, 1]} : vector<32x512xf32> to vector<32x128xf32>
    %c320 = arith.constant 320 : index
    %c0_34 = arith.constant 0 : index
    %54 = vector.load %arg13[%c320, %c0_34] : memref<512x128xf32, #tpu.memory_space<vmem>>, vector<32x128xf32>
    tpu.vector_store %arg13[%c320, %c0_34], %53 {strides = array<i32>} : memref<512x128xf32, #tpu.memory_space<vmem>>, vector<32x128xf32>,
    %55 = vector.extract_strided_slice %48 {offsets = [0, 384], sizes = [32, 128], strides = [1, 1]} : vector<32x512xf32> to vector<32x128xf32>
    %c352 = arith.constant 352 : index
    %c0_35 = arith.constant 0 : index
    %56 = vector.load %arg13[%c352, %c0_35] : memref<512x128xf32, #tpu.memory_space<vmem>>, vector<32x128xf32>
    tpu.vector_store %arg13[%c352, %c0_35], %55 {strides = array<i32>} : memref<512x128xf32, #tpu.memory_space<vmem>>, vector<32x128xf32>,
    %c0_36 = arith.constant 0 : index
    %c1536 = arith.constant 1536 : index
    %57 = vector.load %arg1[%c0_36, %c1536] : memref<116x2048xbf16, #tpu.memory_space<vmem>>, vector<116x512xbf16>
    %c0_37 = arith.constant 0 : index
    %c0_38 = arith.constant 0 : index
    %58 = vector.load %arg2[%c0_37, %c0_38] : memref<32x116xbf16, #tpu.memory_space<vmem>>, vector<32x116xbf16>
    %cst_39 = arith.constant dense<0.000000e+00> : vector<32x512xf32>
    %59 = tpu.matmul %58, %57, %cst_39 {dimension_numbers = #tpu.dot_dimension_numbers<[1], [0], [0], [1], [0, 0, 1, 1], [], []>} : vector<32x116xbf16>, vector<116x512xbf16>, vector<32x512xf32> -> vector<32x512xf32>
    %c0_40 = arith.constant 0 : index
    %c0_41 = arith.constant 0 : index
    %60 = vector.load %arg3[%c0_40, %c0_41] : memref<32x1xf32, #tpu.memory_space<vmem>>, vector<32x1xf32>
    %61 = vector.broadcast %60 : vector<32x1xf32> to vector<32x512xf32>
    %62 = arith.addf %59, %61 : vector<32x512xf32>
    %cst_42 = arith.constant 0.000000e+00 : f32
    %63 = vector.broadcast %cst_42 : f32 to vector<32x512xf32>
    %64 = arith.cmpf ogt, %62, %63 : vector<32x512xf32>
    %cst_43 = arith.constant 0.00999999977 : f32
    %65 = vector.broadcast %cst_43 : f32 to vector<32x512xf32>
    %66 = arith.mulf %65, %62 : vector<32x512xf32>
    %67 = arith.select %64, %62, %66 : vector<32x512xi1>, vector<32x512xf32>
    %68 = vector.extract_strided_slice %67 {offsets = [0, 0], sizes = [32, 128], strides = [1, 1]} : vector<32x512xf32> to vector<32x128xf32>
    %c384 = arith.constant 384 : index
    %c0_44 = arith.constant 0 : index
    %69 = vector.load %arg13[%c384, %c0_44] : memref<512x128xf32, #tpu.memory_space<vmem>>, vector<32x128xf32>
    tpu.vector_store %arg13[%c384, %c0_44], %68 {strides = array<i32>} : memref<512x128xf32, #tpu.memory_space<vmem>>, vector<32x128xf32>,
    %70 = vector.extract_strided_slice %67 {offsets = [0, 128], sizes = [32, 128], strides = [1, 1]} : vector<32x512xf32> to vector<32x128xf32>
    %c416 = arith.constant 416 : index
    %c0_45 = arith.constant 0 : index
    %71 = vector.load %arg13[%c416, %c0_45] : memref<512x128xf32, #tpu.memory_space<vmem>>, vector<32x128xf32>
    tpu.vector_store %arg13[%c416, %c0_45], %70 {strides = array<i32>} : memref<512x128xf32, #tpu.memory_space<vmem>>, vector<32x128xf32>,
    %72 = vector.extract_strided_slice %67 {offsets = [0, 256], sizes = [32, 128], strides = [1, 1]} : vector<32x512xf32> to vector<32x128xf32>
    %c448 = arith.constant 448 : index
    %c0_46 = arith.constant 0 : index
    %73 = vector.load %arg13[%c448, %c0_46] : memref<512x128xf32, #tpu.memory_space<vmem>>, vector<32x128xf32>
    tpu.vector_store %arg13[%c448, %c0_46], %72 {strides = array<i32>} : memref<512x128xf32, #tpu.memory_space<vmem>>, vector<32x128xf32>,
    %74 = vector.extract_strided_slice %67 {offsets = [0, 384], sizes = [32, 128], strides = [1, 1]} : vector<32x512xf32> to vector<32x128xf32>
    %c480 = arith.constant 480 : index
    %c0_47 = arith.constant 0 : index
    %75 = vector.load %arg13[%c480, %c0_47] : memref<512x128xf32, #tpu.memory_space<vmem>>, vector<32x128xf32>
    tpu.vector_store %arg13[%c480, %c0_47], %74 {strides = array<i32>} : memref<512x128xf32, #tpu.memory_space<vmem>>, vector<32x128xf32>,
    %cst_48 = arith.constant 0.000000e+00 : f32
    %76 = vector.broadcast %cst_48 : f32 to vector<16x64xf32>
    %c0_49 = arith.constant 0 : index
    %c0_50 = arith.constant 0 : index
    %77 = tpu.strided_load %arg13[%c0_49, %c0_50] {strides = array<i32: 32, 1>} : memref<512x128xf32, #tpu.memory_space<vmem>>, vector<16x128xf32>
    %c0_51 = arith.constant 0 : index
    %c0_52 = arith.constant 0 : index
    %c0_53 = arith.constant 0 : index
    %78 = vector.load %arg4[%c0_51, %c0_52, %c0_53] : memref<32x128x64xf32, #tpu.memory_space<vmem>>, vector<1x128x64xf32>
    %79 = vector.shape_cast %78 : vector<1x128x64xf32> to vector<128x64xf32>
    %cst_54 = arith.constant dense<0.000000e+00> : vector<16x64xf32>
    %80 = tpu.matmul %77, %79, %cst_54 {dimension_numbers = #tpu.dot_dimension_numbers<[1], [0], [0], [1], [0, 0, 1, 1], [], []>} : vector<16x128xf32>, vector<128x64xf32>, vector<16x64xf32> -> vector<16x64xf32>
    %81 = arith.addf %76, %80 : vector<16x64xf32>
    %c1 = arith.constant 1 : index
    %c0_55 = arith.constant 0 : index
    %82 = tpu.strided_load %arg13[%c1, %c0_55] {strides = array<i32: 32, 1>} : memref<512x128xf32, #tpu.memory_space<vmem>>, vector<16x128xf32>
    %c1_56 = arith.constant 1 : index
    %c0_57 = arith.constant 0 : index
    %c0_58 = arith.constant 0 : index
    %83 = vector.load %arg4[%c1_56, %c0_57, %c0_58] : memref<32x128x64xf32, #tpu.memory_space<vmem>>, vector<1x128x64xf32>
    %84 = vector.shape_cast %83 : vector<1x128x64xf32> to vector<128x64xf32>
    %cst_59 = arith.constant dense<0.000000e+00> : vector<16x64xf32>
    %85 = tpu.matmul %82, %84, %cst_59 {dimension_numbers = #tpu.dot_dimension_numbers<[1], [0], [0], [1], [0, 0, 1, 1], [], []>} : vector<16x128xf32>, vector<128x64xf32>, vector<16x64xf32> -> vector<16x64xf32>
    %86 = arith.addf %81, %85 : vector<16x64xf32>
    %c2 = arith.constant 2 : index
    %c0_60 = arith.constant 0 : index
    %87 = tpu.strided_load %arg13[%c2, %c0_60] {strides = array<i32: 32, 1>} : memref<512x128xf32, #tpu.memory_space<vmem>>, vector<16x128xf32>
    %c2_61 = arith.constant 2 : index
    %c0_62 = arith.constant 0 : index
    %c0_63 = arith.constant 0 : index
    %88 = vector.load %arg4[%c2_61, %c0_62, %c0_63] : memref<32x128x64xf32, #tpu.memory_space<vmem>>, vector<1x128x64xf32>
    %89 = vector.shape_cast %88 : vector<1x128x64xf32> to vector<128x64xf32>
    %cst_64 = arith.constant dense<0.000000e+00> : vector<16x64xf32>
    %90 = tpu.matmul %87, %89, %cst_64 {dimension_numbers = #tpu.dot_dimension_numbers<[1], [0], [0], [1], [0, 0, 1, 1], [], []>} : vector<16x128xf32>, vector<128x64xf32>, vector<16x64xf32> -> vector<16x64xf32>
    %91 = arith.addf %86, %90 : vector<16x64xf32>
    %c3 = arith.constant 3 : index
    %c0_65 = arith.constant 0 : index
    %92 = tpu.strided_load %arg13[%c3, %c0_65] {strides = array<i32: 32, 1>} : memref<512x128xf32, #tpu.memory_space<vmem>>, vector<16x128xf32>
    %c3_66 = arith.constant 3 : index
    %c0_67 = arith.constant 0 : index
    %c0_68 = arith.constant 0 : index
    %93 = vector.load %arg4[%c3_66, %c0_67, %c0_68] : memref<32x128x64xf32, #tpu.memory_space<vmem>>, vector<1x128x64xf32>
    %94 = vector.shape_cast %93 : vector<1x128x64xf32> to vector<128x64xf32>
    %cst_69 = arith.constant dense<0.000000e+00> : vector<16x64xf32>
    %95 = tpu.matmul %92, %94, %cst_69 {dimension_numbers = #tpu.dot_dimension_numbers<[1], [0], [0], [1], [0, 0, 1, 1], [], []>} : vector<16x128xf32>, vector<128x64xf32>, vector<16x64xf32> -> vector<16x64xf32>
    %96 = arith.addf %91, %95 : vector<16x64xf32>
    %c4 = arith.constant 4 : index
    %c0_70 = arith.constant 0 : index
    %97 = tpu.strided_load %arg13[%c4, %c0_70] {strides = array<i32: 32, 1>} : memref<512x128xf32, #tpu.memory_space<vmem>>, vector<16x128xf32>
    %c4_71 = arith.constant 4 : index
    %c0_72 = arith.constant 0 : index
    %c0_73 = arith.constant 0 : index
    %98 = vector.load %arg4[%c4_71, %c0_72, %c0_73] : memref<32x128x64xf32, #tpu.memory_space<vmem>>, vector<1x128x64xf32>
    %99 = vector.shape_cast %98 : vector<1x128x64xf32> to vector<128x64xf32>
    %cst_74 = arith.constant dense<0.000000e+00> : vector<16x64xf32>
    %100 = tpu.matmul %97, %99, %cst_74 {dimension_numbers = #tpu.dot_dimension_numbers<[1], [0], [0], [1], [0, 0, 1, 1], [], []>} : vector<16x128xf32>, vector<128x64xf32>, vector<16x64xf32> -> vector<16x64xf32>
    %101 = arith.addf %96, %100 : vector<16x64xf32>
    %c5 = arith.constant 5 : index
    %c0_75 = arith.constant 0 : index
    %102 = tpu.strided_load %arg13[%c5, %c0_75] {strides = array<i32: 32, 1>} : memref<512x128xf32, #tpu.memory_space<vmem>>, vector<16x128xf32>
    %c5_76 = arith.constant 5 : index
    %c0_77 = arith.constant 0 : index
    %c0_78 = arith.constant 0 : index
    %103 = vector.load %arg4[%c5_76, %c0_77, %c0_78] : memref<32x128x64xf32, #tpu.memory_space<vmem>>, vector<1x128x64xf32>
    %104 = vector.shape_cast %103 : vector<1x128x64xf32> to vector<128x64xf32>
    %cst_79 = arith.constant dense<0.000000e+00> : vector<16x64xf32>
    %105 = tpu.matmul %102, %104, %cst_79 {dimension_numbers = #tpu.dot_dimension_numbers<[1], [0], [0], [1], [0, 0, 1, 1], [], []>} : vector<16x128xf32>, vector<128x64xf32>, vector<16x64xf32> -> vector<16x64xf32>
    %106 = arith.addf %101, %105 : vector<16x64xf32>
    %c6 = arith.constant 6 : index
    %c0_80 = arith.constant 0 : index
    %107 = tpu.strided_load %arg13[%c6, %c0_80] {strides = array<i32: 32, 1>} : memref<512x128xf32, #tpu.memory_space<vmem>>, vector<16x128xf32>
    %c6_81 = arith.constant 6 : index
    %c0_82 = arith.constant 0 : index
    %c0_83 = arith.constant 0 : index
    %108 = vector.load %arg4[%c6_81, %c0_82, %c0_83] : memref<32x128x64xf32, #tpu.memory_space<vmem>>, vector<1x128x64xf32>
    %109 = vector.shape_cast %108 : vector<1x128x64xf32> to vector<128x64xf32>
    %cst_84 = arith.constant dense<0.000000e+00> : vector<16x64xf32>
    %110 = tpu.matmul %107, %109, %cst_84 {dimension_numbers = #tpu.dot_dimension_numbers<[1], [0], [0], [1], [0, 0, 1, 1], [], []>} : vector<16x128xf32>, vector<128x64xf32>, vector<16x64xf32> -> vector<16x64xf32>
    %111 = arith.addf %106, %110 : vector<16x64xf32>
    %c7 = arith.constant 7 : index
    %c0_85 = arith.constant 0 : index
    %112 = tpu.strided_load %arg13[%c7, %c0_85] {strides = array<i32: 32, 1>} : memref<512x128xf32, #tpu.memory_space<vmem>>, vector<16x128xf32>
    %c7_86 = arith.constant 7 : index
    %c0_87 = arith.constant 0 : index
    %c0_88 = arith.constant 0 : index
    %113 = vector.load %arg4[%c7_86, %c0_87, %c0_88] : memref<32x128x64xf32, #tpu.memory_space<vmem>>, vector<1x128x64xf32>
    %114 = vector.shape_cast %113 : vector<1x128x64xf32> to vector<128x64xf32>
    %cst_89 = arith.constant dense<0.000000e+00> : vector<16x64xf32>
    %115 = tpu.matmul %112, %114, %cst_89 {dimension_numbers = #tpu.dot_dimension_numbers<[1], [0], [0], [1], [0, 0, 1, 1], [], []>} : vector<16x128xf32>, vector<128x64xf32>, vector<16x64xf32> -> vector<16x64xf32>
    %116 = arith.addf %111, %115 : vector<16x64xf32>
    %c8 = arith.constant 8 : index
    %c0_90 = arith.constant 0 : index
    %117 = tpu.strided_load %arg13[%c8, %c0_90] {strides = array<i32: 32, 1>} : memref<512x128xf32, #tpu.memory_space<vmem>>, vector<16x128xf32>
    %c8_91 = arith.constant 8 : index
    %c0_92 = arith.constant 0 : index
    %c0_93 = arith.constant 0 : index
    %118 = vector.load %arg4[%c8_91, %c0_92, %c0_93] : memref<32x128x64xf32, #tpu.memory_space<vmem>>, vector<1x128x64xf32>
    %119 = vector.shape_cast %118 : vector<1x128x64xf32> to vector<128x64xf32>
    %cst_94 = arith.constant dense<0.000000e+00> : vector<16x64xf32>
    %120 = tpu.matmul %117, %119, %cst_94 {dimension_numbers = #tpu.dot_dimension_numbers<[1], [0], [0], [1], [0, 0, 1, 1], [], []>} : vector<16x128xf32>, vector<128x64xf32>, vector<16x64xf32> -> vector<16x64xf32>
    %121 = arith.addf %116, %120 : vector<16x64xf32>
    %c9 = arith.constant 9 : index
    %c0_95 = arith.constant 0 : index
    %122 = tpu.strided_load %arg13[%c9, %c0_95] {strides = array<i32: 32, 1>} : memref<512x128xf32, #tpu.memory_space<vmem>>, vector<16x128xf32>
    %c9_96 = arith.constant 9 : index
    %c0_97 = arith.constant 0 : index
    %c0_98 = arith.constant 0 : index
    %123 = vector.load %arg4[%c9_96, %c0_97, %c0_98] : memref<32x128x64xf32, #tpu.memory_space<vmem>>, vector<1x128x64xf32>
    %124 = vector.shape_cast %123 : vector<1x128x64xf32> to vector<128x64xf32>
    %cst_99 = arith.constant dense<0.000000e+00> : vector<16x64xf32>
    %125 = tpu.matmul %122, %124, %cst_99 {dimension_numbers = #tpu.dot_dimension_numbers<[1], [0], [0], [1], [0, 0, 1, 1], [], []>} : vector<16x128xf32>, vector<128x64xf32>, vector<16x64xf32> -> vector<16x64xf32>
    %126 = arith.addf %121, %125 : vector<16x64xf32>
    %c10 = arith.constant 10 : index
    %c0_100 = arith.constant 0 : index
    %127 = tpu.strided_load %arg13[%c10, %c0_100] {strides = array<i32: 32, 1>} : memref<512x128xf32, #tpu.memory_space<vmem>>, vector<16x128xf32>
    %c10_101 = arith.constant 10 : index
    %c0_102 = arith.constant 0 : index
    %c0_103 = arith.constant 0 : index
    %128 = vector.load %arg4[%c10_101, %c0_102, %c0_103] : memref<32x128x64xf32, #tpu.memory_space<vmem>>, vector<1x128x64xf32>
    %129 = vector.shape_cast %128 : vector<1x128x64xf32> to vector<128x64xf32>
    %cst_104 = arith.constant dense<0.000000e+00> : vector<16x64xf32>
    %130 = tpu.matmul %127, %129, %cst_104 {dimension_numbers = #tpu.dot_dimension_numbers<[1], [0], [0], [1], [0, 0, 1, 1], [], []>} : vector<16x128xf32>, vector<128x64xf32>, vector<16x64xf32> -> vector<16x64xf32>
    %131 = arith.addf %126, %130 : vector<16x64xf32>
    %c11 = arith.constant 11 : index
    %c0_105 = arith.constant 0 : index
    %132 = tpu.strided_load %arg13[%c11, %c0_105] {strides = array<i32: 32, 1>} : memref<512x128xf32, #tpu.memory_space<vmem>>, vector<16x128xf32>
    %c11_106 = arith.constant 11 : index
    %c0_107 = arith.constant 0 : index
    %c0_108 = arith.constant 0 : index
    %133 = vector.load %arg4[%c11_106, %c0_107, %c0_108] : memref<32x128x64xf32, #tpu.memory_space<vmem>>, vector<1x128x64xf32>
    %134 = vector.shape_cast %133 : vector<1x128x64xf32> to vector<128x64xf32>
    %cst_109 = arith.constant dense<0.000000e+00> : vector<16x64xf32>
    %135 = tpu.matmul %132, %134, %cst_109 {dimension_numbers = #tpu.dot_dimension_numbers<[1], [0], [0], [1], [0, 0, 1, 1], [], []>} : vector<16x128xf32>, vector<128x64xf32>, vector<16x64xf32> -> vector<16x64xf32>
    %136 = arith.addf %131, %135 : vector<16x64xf32>
    %c12 = arith.constant 12 : index
    %c0_110 = arith.constant 0 : index
    %137 = tpu.strided_load %arg13[%c12, %c0_110] {strides = array<i32: 32, 1>} : memref<512x128xf32, #tpu.memory_space<vmem>>, vector<16x128xf32>
    %c12_111 = arith.constant 12 : index
    %c0_112 = arith.constant 0 : index
    %c0_113 = arith.constant 0 : index
    %138 = vector.load %arg4[%c12_111, %c0_112, %c0_113] : memref<32x128x64xf32, #tpu.memory_space<vmem>>, vector<1x128x64xf32>
    %139 = vector.shape_cast %138 : vector<1x128x64xf32> to vector<128x64xf32>
    %cst_114 = arith.constant dense<0.000000e+00> : vector<16x64xf32>
    %140 = tpu.matmul %137, %139, %cst_114 {dimension_numbers = #tpu.dot_dimension_numbers<[1], [0], [0], [1], [0, 0, 1, 1], [], []>} : vector<16x128xf32>, vector<128x64xf32>, vector<16x64xf32> -> vector<16x64xf32>
    %141 = arith.addf %136, %140 : vector<16x64xf32>
    %c13 = arith.constant 13 : index
    %c0_115 = arith.constant 0 : index
    %142 = tpu.strided_load %arg13[%c13, %c0_115] {strides = array<i32: 32, 1>} : memref<512x128xf32, #tpu.memory_space<vmem>>, vector<16x128xf32>
    %c13_116 = arith.constant 13 : index
    %c0_117 = arith.constant 0 : index
    %c0_118 = arith.constant 0 : index
    %143 = vector.load %arg4[%c13_116, %c0_117, %c0_118] : memref<32x128x64xf32, #tpu.memory_space<vmem>>, vector<1x128x64xf32>
    %144 = vector.shape_cast %143 : vector<1x128x64xf32> to vector<128x64xf32>
    %cst_119 = arith.constant dense<0.000000e+00> : vector<16x64xf32>
    %145 = tpu.matmul %142, %144, %cst_119 {dimension_numbers = #tpu.dot_dimension_numbers<[1], [0], [0], [1], [0, 0, 1, 1], [], []>} : vector<16x128xf32>, vector<128x64xf32>, vector<16x64xf32> -> vector<16x64xf32>
    %146 = arith.addf %141, %145 : vector<16x64xf32>
    %c14 = arith.constant 14 : index
    %c0_120 = arith.constant 0 : index
    %147 = tpu.strided_load %arg13[%c14, %c0_120] {strides = array<i32: 32, 1>} : memref<512x128xf32, #tpu.memory_space<vmem>>, vector<16x128xf32>
    %c14_121 = arith.constant 14 : index
    %c0_122 = arith.constant 0 : index
    %c0_123 = arith.constant 0 : index
    %148 = vector.load %arg4[%c14_121, %c0_122, %c0_123] : memref<32x128x64xf32, #tpu.memory_space<vmem>>, vector<1x128x64xf32>
    %149 = vector.shape_cast %148 : vector<1x128x64xf32> to vector<128x64xf32>
    %cst_124 = arith.constant dense<0.000000e+00> : vector<16x64xf32>
    %150 = tpu.matmul %147, %149, %cst_124 {dimension_numbers = #tpu.dot_dimension_numbers<[1], [0], [0], [1], [0, 0, 1, 1], [], []>} : vector<16x128xf32>, vector<128x64xf32>, vector<16x64xf32> -> vector<16x64xf32>
    %151 = arith.addf %146, %150 : vector<16x64xf32>
    %c15 = arith.constant 15 : index
    %c0_125 = arith.constant 0 : index
    %152 = tpu.strided_load %arg13[%c15, %c0_125] {strides = array<i32: 32, 1>} : memref<512x128xf32, #tpu.memory_space<vmem>>, vector<16x128xf32>
    %c15_126 = arith.constant 15 : index
    %c0_127 = arith.constant 0 : index
    %c0_128 = arith.constant 0 : index
    %153 = vector.load %arg4[%c15_126, %c0_127, %c0_128] : memref<32x128x64xf32, #tpu.memory_space<vmem>>, vector<1x128x64xf32>
    %154 = vector.shape_cast %153 : vector<1x128x64xf32> to vector<128x64xf32>
    %cst_129 = arith.constant dense<0.000000e+00> : vector<16x64xf32>
    %155 = tpu.matmul %152, %154, %cst_129 {dimension_numbers = #tpu.dot_dimension_numbers<[1], [0], [0], [1], [0, 0, 1, 1], [], []>} : vector<16x128xf32>, vector<128x64xf32>, vector<16x64xf32> -> vector<16x64xf32>
    %156 = arith.addf %151, %155 : vector<16x64xf32>
    %c16 = arith.constant 16 : index
    %c0_130 = arith.constant 0 : index
    %157 = tpu.strided_load %arg13[%c16, %c0_130] {strides = array<i32: 32, 1>} : memref<512x128xf32, #tpu.memory_space<vmem>>, vector<16x128xf32>
    %c16_131 = arith.constant 16 : index
    %c0_132 = arith.constant 0 : index
    %c0_133 = arith.constant 0 : index
    %158 = vector.load %arg4[%c16_131, %c0_132, %c0_133] : memref<32x128x64xf32, #tpu.memory_space<vmem>>, vector<1x128x64xf32>
    %159 = vector.shape_cast %158 : vector<1x128x64xf32> to vector<128x64xf32>
    %cst_134 = arith.constant dense<0.000000e+00> : vector<16x64xf32>
    %160 = tpu.matmul %157, %159, %cst_134 {dimension_numbers = #tpu.dot_dimension_numbers<[1], [0], [0], [1], [0, 0, 1, 1], [], []>} : vector<16x128xf32>, vector<128x64xf32>, vector<16x64xf32> -> vector<16x64xf32>
    %161 = arith.addf %156, %160 : vector<16x64xf32>
    %c17 = arith.constant 17 : index
    %c0_135 = arith.constant 0 : index
    %162 = tpu.strided_load %arg13[%c17, %c0_135] {strides = array<i32: 32, 1>} : memref<512x128xf32, #tpu.memory_space<vmem>>, vector<16x128xf32>
    %c17_136 = arith.constant 17 : index
    %c0_137 = arith.constant 0 : index
    %c0_138 = arith.constant 0 : index
    %163 = vector.load %arg4[%c17_136, %c0_137, %c0_138] : memref<32x128x64xf32, #tpu.memory_space<vmem>>, vector<1x128x64xf32>
    %164 = vector.shape_cast %163 : vector<1x128x64xf32> to vector<128x64xf32>
    %cst_139 = arith.constant dense<0.000000e+00> : vector<16x64xf32>
    %165 = tpu.matmul %162, %164, %cst_139 {dimension_numbers = #tpu.dot_dimension_numbers<[1], [0], [0], [1], [0, 0, 1, 1], [], []>} : vector<16x128xf32>, vector<128x64xf32>, vector<16x64xf32> -> vector<16x64xf32>
    %166 = arith.addf %161, %165 : vector<16x64xf32>
    %c18 = arith.constant 18 : index
    %c0_140 = arith.constant 0 : index
    %167 = tpu.strided_load %arg13[%c18, %c0_140] {strides = array<i32: 32, 1>} : memref<512x128xf32, #tpu.memory_space<vmem>>, vector<16x128xf32>
    %c18_141 = arith.constant 18 : index
    %c0_142 = arith.constant 0 : index
    %c0_143 = arith.constant 0 : index
    %168 = vector.load %arg4[%c18_141, %c0_142, %c0_143] : memref<32x128x64xf32, #tpu.memory_space<vmem>>, vector<1x128x64xf32>
    %169 = vector.shape_cast %168 : vector<1x128x64xf32> to vector<128x64xf32>
    %cst_144 = arith.constant dense<0.000000e+00> : vector<16x64xf32>
    %170 = tpu.matmul %167, %169, %cst_144 {dimension_numbers = #tpu.dot_dimension_numbers<[1], [0], [0], [1], [0, 0, 1, 1], [], []>} : vector<16x128xf32>, vector<128x64xf32>, vector<16x64xf32> -> vector<16x64xf32>
    %171 = arith.addf %166, %170 : vector<16x64xf32>
    %c19 = arith.constant 19 : index
    %c0_145 = arith.constant 0 : index
    %172 = tpu.strided_load %arg13[%c19, %c0_145] {strides = array<i32: 32, 1>} : memref<512x128xf32, #tpu.memory_space<vmem>>, vector<16x128xf32>
    %c19_146 = arith.constant 19 : index
    %c0_147 = arith.constant 0 : index
    %c0_148 = arith.constant 0 : index
    %173 = vector.load %arg4[%c19_146, %c0_147, %c0_148] : memref<32x128x64xf32, #tpu.memory_space<vmem>>, vector<1x128x64xf32>
    %174 = vector.shape_cast %173 : vector<1x128x64xf32> to vector<128x64xf32>
    %cst_149 = arith.constant dense<0.000000e+00> : vector<16x64xf32>
    %175 = tpu.matmul %172, %174, %cst_149 {dimension_numbers = #tpu.dot_dimension_numbers<[1], [0], [0], [1], [0, 0, 1, 1], [], []>} : vector<16x128xf32>, vector<128x64xf32>, vector<16x64xf32> -> vector<16x64xf32>
    %176 = arith.addf %171, %175 : vector<16x64xf32>
    %c20 = arith.constant 20 : index
    %c0_150 = arith.constant 0 : index
    %177 = tpu.strided_load %arg13[%c20, %c0_150] {strides = array<i32: 32, 1>} : memref<512x128xf32, #tpu.memory_space<vmem>>, vector<16x128xf32>
    %c20_151 = arith.constant 20 : index
    %c0_152 = arith.constant 0 : index
    %c0_153 = arith.constant 0 : index
    %178 = vector.load %arg4[%c20_151, %c0_152, %c0_153] : memref<32x128x64xf32, #tpu.memory_space<vmem>>, vector<1x128x64xf32>
    %179 = vector.shape_cast %178 : vector<1x128x64xf32> to vector<128x64xf32>
    %cst_154 = arith.constant dense<0.000000e+00> : vector<16x64xf32>
    %180 = tpu.matmul %177, %179, %cst_154 {dimension_numbers = #tpu.dot_dimension_numbers<[1], [0], [0], [1], [0, 0, 1, 1], [], []>} : vector<16x128xf32>, vector<128x64xf32>, vector<16x64xf32> -> vector<16x64xf32>
    %181 = arith.addf %176, %180 : vector<16x64xf32>
    %c21 = arith.constant 21 : index
    %c0_155 = arith.constant 0 : index
    %182 = tpu.strided_load %arg13[%c21, %c0_155] {strides = array<i32: 32, 1>} : memref<512x128xf32, #tpu.memory_space<vmem>>, vector<16x128xf32>
    %c21_156 = arith.constant 21 : index
    %c0_157 = arith.constant 0 : index
    %c0_158 = arith.constant 0 : index
    %183 = vector.load %arg4[%c21_156, %c0_157, %c0_158] : memref<32x128x64xf32, #tpu.memory_space<vmem>>, vector<1x128x64xf32>
    %184 = vector.shape_cast %183 : vector<1x128x64xf32> to vector<128x64xf32>
    %cst_159 = arith.constant dense<0.000000e+00> : vector<16x64xf32>
    %185 = tpu.matmul %182, %184, %cst_159 {dimension_numbers = #tpu.dot_dimension_numbers<[1], [0], [0], [1], [0, 0, 1, 1], [], []>} : vector<16x128xf32>, vector<128x64xf32>, vector<16x64xf32> -> vector<16x64xf32>
    %186 = arith.addf %181, %185 : vector<16x64xf32>
    %c22 = arith.constant 22 : index
    %c0_160 = arith.constant 0 : index
    %187 = tpu.strided_load %arg13[%c22, %c0_160] {strides = array<i32: 32, 1>} : memref<512x128xf32, #tpu.memory_space<vmem>>, vector<16x128xf32>
    %c22_161 = arith.constant 22 : index
    %c0_162 = arith.constant 0 : index
    %c0_163 = arith.constant 0 : index
    %188 = vector.load %arg4[%c22_161, %c0_162, %c0_163] : memref<32x128x64xf32, #tpu.memory_space<vmem>>, vector<1x128x64xf32>
    %189 = vector.shape_cast %188 : vector<1x128x64xf32> to vector<128x64xf32>
    %cst_164 = arith.constant dense<0.000000e+00> : vector<16x64xf32>
    %190 = tpu.matmul %187, %189, %cst_164 {dimension_numbers = #tpu.dot_dimension_numbers<[1], [0], [0], [1], [0, 0, 1, 1], [], []>} : vector<16x128xf32>, vector<128x64xf32>, vector<16x64xf32> -> vector<16x64xf32>
    %191 = arith.addf %186, %190 : vector<16x64xf32>
    %c23 = arith.constant 23 : index
    %c0_165 = arith.constant 0 : index
    %192 = tpu.strided_load %arg13[%c23, %c0_165] {strides = array<i32: 32, 1>} : memref<512x128xf32, #tpu.memory_space<vmem>>, vector<16x128xf32>
    %c23_166 = arith.constant 23 : index
    %c0_167 = arith.constant 0 : index
    %c0_168 = arith.constant 0 : index
    %193 = vector.load %arg4[%c23_166, %c0_167, %c0_168] : memref<32x128x64xf32, #tpu.memory_space<vmem>>, vector<1x128x64xf32>
    %194 = vector.shape_cast %193 : vector<1x128x64xf32> to vector<128x64xf32>
    %cst_169 = arith.constant dense<0.000000e+00> : vector<16x64xf32>
    %195 = tpu.matmul %192, %194, %cst_169 {dimension_numbers = #tpu.dot_dimension_numbers<[1], [0], [0], [1], [0, 0, 1, 1], [], []>} : vector<16x128xf32>, vector<128x64xf32>, vector<16x64xf32> -> vector<16x64xf32>
    %196 = arith.addf %191, %195 : vector<16x64xf32>
    %c24 = arith.constant 24 : index
    %c0_170 = arith.constant 0 : index
    %197 = tpu.strided_load %arg13[%c24, %c0_170] {strides = array<i32: 32, 1>} : memref<512x128xf32, #tpu.memory_space<vmem>>, vector<16x128xf32>
    %c24_171 = arith.constant 24 : index
    %c0_172 = arith.constant 0 : index
    %c0_173 = arith.constant 0 : index
    %198 = vector.load %arg4[%c24_171, %c0_172, %c0_173] : memref<32x128x64xf32, #tpu.memory_space<vmem>>, vector<1x128x64xf32>
    %199 = vector.shape_cast %198 : vector<1x128x64xf32> to vector<128x64xf32>
    %cst_174 = arith.constant dense<0.000000e+00> : vector<16x64xf32>
    %200 = tpu.matmul %197, %199, %cst_174 {dimension_numbers = #tpu.dot_dimension_numbers<[1], [0], [0], [1], [0, 0, 1, 1], [], []>} : vector<16x128xf32>, vector<128x64xf32>, vector<16x64xf32> -> vector<16x64xf32>
    %201 = arith.addf %196, %200 : vector<16x64xf32>
    %c25 = arith.constant 25 : index
    %c0_175 = arith.constant 0 : index
    %202 = tpu.strided_load %arg13[%c25, %c0_175] {strides = array<i32: 32, 1>} : memref<512x128xf32, #tpu.memory_space<vmem>>, vector<16x128xf32>
    %c25_176 = arith.constant 25 : index
    %c0_177 = arith.constant 0 : index
    %c0_178 = arith.constant 0 : index
    %203 = vector.load %arg4[%c25_176, %c0_177, %c0_178] : memref<32x128x64xf32, #tpu.memory_space<vmem>>, vector<1x128x64xf32>
    %204 = vector.shape_cast %203 : vector<1x128x64xf32> to vector<128x64xf32>
    %cst_179 = arith.constant dense<0.000000e+00> : vector<16x64xf32>
    %205 = tpu.matmul %202, %204, %cst_179 {dimension_numbers = #tpu.dot_dimension_numbers<[1], [0], [0], [1], [0, 0, 1, 1], [], []>} : vector<16x128xf32>, vector<128x64xf32>, vector<16x64xf32> -> vector<16x64xf32>
    %206 = arith.addf %201, %205 : vector<16x64xf32>
    %c26 = arith.constant 26 : index
    %c0_180 = arith.constant 0 : index
    %207 = tpu.strided_load %arg13[%c26, %c0_180] {strides = array<i32: 32, 1>} : memref<512x128xf32, #tpu.memory_space<vmem>>, vector<16x128xf32>
    %c26_181 = arith.constant 26 : index
    %c0_182 = arith.constant 0 : index
    %c0_183 = arith.constant 0 : index
    %208 = vector.load %arg4[%c26_181, %c0_182, %c0_183] : memref<32x128x64xf32, #tpu.memory_space<vmem>>, vector<1x128x64xf32>
    %209 = vector.shape_cast %208 : vector<1x128x64xf32> to vector<128x64xf32>
    %cst_184 = arith.constant dense<0.000000e+00> : vector<16x64xf32>
    %210 = tpu.matmul %207, %209, %cst_184 {dimension_numbers = #tpu.dot_dimension_numbers<[1], [0], [0], [1], [0, 0, 1, 1], [], []>} : vector<16x128xf32>, vector<128x64xf32>, vector<16x64xf32> -> vector<16x64xf32>
    %211 = arith.addf %206, %210 : vector<16x64xf32>
    %c27 = arith.constant 27 : index
    %c0_185 = arith.constant 0 : index
    %212 = tpu.strided_load %arg13[%c27, %c0_185] {strides = array<i32: 32, 1>} : memref<512x128xf32, #tpu.memory_space<vmem>>, vector<16x128xf32>
    %c27_186 = arith.constant 27 : index
    %c0_187 = arith.constant 0 : index
    %c0_188 = arith.constant 0 : index
    %213 = vector.load %arg4[%c27_186, %c0_187, %c0_188] : memref<32x128x64xf32, #tpu.memory_space<vmem>>, vector<1x128x64xf32>
    %214 = vector.shape_cast %213 : vector<1x128x64xf32> to vector<128x64xf32>
    %cst_189 = arith.constant dense<0.000000e+00> : vector<16x64xf32>
    %215 = tpu.matmul %212, %214, %cst_189 {dimension_numbers = #tpu.dot_dimension_numbers<[1], [0], [0], [1], [0, 0, 1, 1], [], []>} : vector<16x128xf32>, vector<128x64xf32>, vector<16x64xf32> -> vector<16x64xf32>
    %216 = arith.addf %211, %215 : vector<16x64xf32>
    %c28 = arith.constant 28 : index
    %c0_190 = arith.constant 0 : index
    %217 = tpu.strided_load %arg13[%c28, %c0_190] {strides = array<i32: 32, 1>} : memref<512x128xf32, #tpu.memory_space<vmem>>, vector<16x128xf32>
    %c28_191 = arith.constant 28 : index
    %c0_192 = arith.constant 0 : index
    %c0_193 = arith.constant 0 : index
    %218 = vector.load %arg4[%c28_191, %c0_192, %c0_193] : memref<32x128x64xf32, #tpu.memory_space<vmem>>, vector<1x128x64xf32>
    %219 = vector.shape_cast %218 : vector<1x128x64xf32> to vector<128x64xf32>
    %cst_194 = arith.constant dense<0.000000e+00> : vector<16x64xf32>
    %220 = tpu.matmul %217, %219, %cst_194 {dimension_numbers = #tpu.dot_dimension_numbers<[1], [0], [0], [1], [0, 0, 1, 1], [], []>} : vector<16x128xf32>, vector<128x64xf32>, vector<16x64xf32> -> vector<16x64xf32>
    %221 = arith.addf %216, %220 : vector<16x64xf32>
    %c29 = arith.constant 29 : index
    %c0_195 = arith.constant 0 : index
    %222 = tpu.strided_load %arg13[%c29, %c0_195] {strides = array<i32: 32, 1>} : memref<512x128xf32, #tpu.memory_space<vmem>>, vector<16x128xf32>
    %c29_196 = arith.constant 29 : index
    %c0_197 = arith.constant 0 : index
    %c0_198 = arith.constant 0 : index
    %223 = vector.load %arg4[%c29_196, %c0_197, %c0_198] : memref<32x128x64xf32, #tpu.memory_space<vmem>>, vector<1x128x64xf32>
    %224 = vector.shape_cast %223 : vector<1x128x64xf32> to vector<128x64xf32>
    %cst_199 = arith.constant dense<0.000000e+00> : vector<16x64xf32>
    %225 = tpu.matmul %222, %224, %cst_199 {dimension_numbers = #tpu.dot_dimension_numbers<[1], [0], [0], [1], [0, 0, 1, 1], [], []>} : vector<16x128xf32>, vector<128x64xf32>, vector<16x64xf32> -> vector<16x64xf32>
    %226 = arith.addf %221, %225 : vector<16x64xf32>
    %c30 = arith.constant 30 : index
    %c0_200 = arith.constant 0 : index
    %227 = tpu.strided_load %arg13[%c30, %c0_200] {strides = array<i32: 32, 1>} : memref<512x128xf32, #tpu.memory_space<vmem>>, vector<16x128xf32>
    %c30_201 = arith.constant 30 : index
    %c0_202 = arith.constant 0 : index
    %c0_203 = arith.constant 0 : index
    %228 = vector.load %arg4[%c30_201, %c0_202, %c0_203] : memref<32x128x64xf32, #tpu.memory_space<vmem>>, vector<1x128x64xf32>
    %229 = vector.shape_cast %228 : vector<1x128x64xf32> to vector<128x64xf32>
    %cst_204 = arith.constant dense<0.000000e+00> : vector<16x64xf32>
    %230 = tpu.matmul %227, %229, %cst_204 {dimension_numbers = #tpu.dot_dimension_numbers<[1], [0], [0], [1], [0, 0, 1, 1], [], []>} : vector<16x128xf32>, vector<128x64xf32>, vector<16x64xf32> -> vector<16x64xf32>
    %231 = arith.addf %226, %230 : vector<16x64xf32>
    %c31 = arith.constant 31 : index
    %c0_205 = arith.constant 0 : index
    %232 = tpu.strided_load %arg13[%c31, %c0_205] {strides = array<i32: 32, 1>} : memref<512x128xf32, #tpu.memory_space<vmem>>, vector<16x128xf32>
    %c31_206 = arith.constant 31 : index
    %c0_207 = arith.constant 0 : index
    %c0_208 = arith.constant 0 : index
    %233 = vector.load %arg4[%c31_206, %c0_207, %c0_208] : memref<32x128x64xf32, #tpu.memory_space<vmem>>, vector<1x128x64xf32>
    %234 = vector.shape_cast %233 : vector<1x128x64xf32> to vector<128x64xf32>
    %cst_209 = arith.constant dense<0.000000e+00> : vector<16x64xf32>
    %235 = tpu.matmul %232, %234, %cst_209 {dimension_numbers = #tpu.dot_dimension_numbers<[1], [0], [0], [1], [0, 0, 1, 1], [], []>} : vector<16x128xf32>, vector<128x64xf32>, vector<16x64xf32> -> vector<16x64xf32>
    %236 = arith.addf %231, %235 : vector<16x64xf32>
    %c0_210 = arith.constant 0 : index
    %c0_211 = arith.constant 0 : index
    %237 = vector.load %arg5[%c0_210, %c0_211] : memref<1x64xf32, #tpu.memory_space<vmem>>, vector<1x64xf32>
    %238 = vector.broadcast %237 : vector<1x64xf32> to vector<16x64xf32>
    %239 = arith.addf %236, %238 : vector<16x64xf32>
    %cst_212 = arith.constant 0.000000e+00 : f32
    %240 = vector.broadcast %cst_212 : f32 to vector<16x64xf32>
    %241 = arith.cmpf ogt, %239, %240 : vector<16x64xf32>
    %cst_213 = arith.constant 0.00999999977 : f32
    %242 = vector.broadcast %cst_213 : f32 to vector<16x64xf32>
    %243 = arith.mulf %242, %239 : vector<16x64xf32>
    %244 = arith.select %241, %239, %243 : vector<16x64xi1>, vector<16x64xf32>
    %c0_214 = arith.constant 0 : index
    %c0_215 = arith.constant 0 : index
    %245 = vector.load %arg6[%c0_214, %c0_215] : memref<64x16xf32, #tpu.memory_space<vmem>>, vector<64x16xf32>
    %cst_216 = arith.constant dense<0.000000e+00> : vector<16x16xf32>
    %246 = tpu.matmul %244, %245, %cst_216 {dimension_numbers = #tpu.dot_dimension_numbers<[1], [0], [0], [1], [0, 0, 1, 1], [], []>} : vector<16x64xf32>, vector<64x16xf32>, vector<16x16xf32> -> vector<16x16xf32>
    %c0_217 = arith.constant 0 : index
    %c0_218 = arith.constant 0 : index
    %247 = vector.load %arg7[%c0_217, %c0_218] : memref<1x16xf32, #tpu.memory_space<vmem>>, vector<1x16xf32>
    %248 = vector.broadcast %247 : vector<1x16xf32> to vector<16x16xf32>
    %249 = arith.addf %246, %248 : vector<16x16xf32>
    %cst_219 = arith.constant 0.000000e+00 : f32
    %250 = vector.broadcast %cst_219 : f32 to vector<16x16xf32>
    %251 = arith.cmpf ogt, %249, %250 : vector<16x16xf32>
    %cst_220 = arith.constant 0.00999999977 : f32
    %252 = vector.broadcast %cst_220 : f32 to vector<16x16xf32>
    %253 = arith.mulf %252, %249 : vector<16x16xf32>
    %254 = arith.select %251, %249, %253 : vector<16x16xi1>, vector<16x16xf32>
    %c0_221 = arith.constant 0 : index
    %c0_222 = arith.constant 0 : index
    %255 = vector.load %arg8[%c0_221, %c0_222] : memref<16x8xf32, #tpu.memory_space<vmem>>, vector<16x8xf32>
    %cst_223 = arith.constant dense<0.000000e+00> : vector<16x8xf32>
    %256 = tpu.matmul %254, %255, %cst_223 {dimension_numbers = #tpu.dot_dimension_numbers<[1], [0], [0], [1], [0, 0, 1, 1], [], []>} : vector<16x16xf32>, vector<16x8xf32>, vector<16x8xf32> -> vector<16x8xf32>
    %c0_224 = arith.constant 0 : index
    %c0_225 = arith.constant 0 : index
    %257 = vector.load %arg9[%c0_224, %c0_225] : memref<1x8xf32, #tpu.memory_space<vmem>>, vector<1x8xf32>
    %258 = vector.broadcast %257 : vector<1x8xf32> to vector<16x8xf32>
    %259 = arith.addf %256, %258 : vector<16x8xf32>
    %cst_226 = arith.constant 0.000000e+00 : f32
    %260 = vector.broadcast %cst_226 : f32 to vector<16x8xf32>
    %261 = arith.cmpf ogt, %259, %260 : vector<16x8xf32>
    %cst_227 = arith.constant 0.00999999977 : f32
    %262 = vector.broadcast %cst_227 : f32 to vector<16x8xf32>
    %263 = arith.mulf %262, %259 : vector<16x8xf32>
    %264 = arith.select %261, %259, %263 : vector<16x8xi1>, vector<16x8xf32>
    %c0_228 = arith.constant 0 : index
    %c0_229 = arith.constant 0 : index
    %265 = vector.load %arg10[%c0_228, %c0_229] : memref<8x16xf32, #tpu.memory_space<vmem>>, vector<8x16xf32>
    %cst_230 = arith.constant dense<0.000000e+00> : vector<16x16xf32>
    %266 = tpu.matmul %264, %265, %cst_230 {dimension_numbers = #tpu.dot_dimension_numbers<[1], [0], [0], [1], [0, 0, 1, 1], [], []>} : vector<16x8xf32>, vector<8x16xf32>, vector<16x16xf32> -> vector<16x16xf32>
    %c0_231 = arith.constant 0 : index
    %c0_232 = arith.constant 0 : index
    %267 = vector.load %arg11[%c0_231, %c0_232] : memref<1x16xf32, #tpu.memory_space<vmem>>, vector<1x16xf32>
    %268 = vector.broadcast %267 : vector<1x16xf32> to vector<16x16xf32>
    %269 = arith.addf %266, %268 : vector<16x16xf32>
    %270 = arith.negf %269 : vector<16x16xf32>
    %271 = math.exp %270 : vector<16x16xf32>
    %cst_233 = arith.constant 1.000000e+00 : f32
    %272 = vector.broadcast %cst_233 : f32 to vector<16x16xf32>
    %273 = arith.addf %272, %271 : vector<16x16xf32>
    %274 = arith.divf %272, %273 : vector<16x16xf32>
    %275 = arith.mulf %254, %274 : vector<16x16xf32>
    %c0_234 = arith.constant 0 : index
    %c0_235 = arith.constant 0 : index
    %276 = vector.load %arg12[%c0_234, %c0_235] : memref<16x16xf32, #tpu.memory_space<vmem>>, vector<16x16xf32>
    tpu.vector_store %arg12[%c0_234, %c0_235], %275 {strides = array<i32>} : memref<16x16xf32, #tpu.memory_space<vmem>>, vector<16x16xf32>,
    return
  }
  func.func @transform_0(%arg0: i32) -> (i32, i32) {
    %c0_i32 = arith.constant 0 : i32
    %c0_i32_0 = arith.constant 0 : i32
    return %c0_i32, %arg0 : i32, i32
  }
  func.func @transform_1(%arg0: i32) -> (i32, i32) {
    %c0_i32 = arith.constant 0 : i32
    %c0_i32_0 = arith.constant 0 : i32
    %c0_i32_1 = arith.constant 0 : i32
    return %c0_i32, %c0_i32_0 : i32, i32
  }
  func.func @transform_2(%arg0: i32) -> (i32, i32) {
    %c0_i32 = arith.constant 0 : i32
    %c0_i32_0 = arith.constant 0 : i32
    %c0_i32_1 = arith.constant 0 : i32
    return %c0_i32, %c0_i32_0 : i32, i32
  }
  func.func @transform_3(%arg0: i32) -> (i32, i32, i32) {
    %c0_i32 = arith.constant 0 : i32
    %c0_i32_0 = arith.constant 0 : i32
    %c0_i32_1 = arith.constant 0 : i32
    %c0_i32_2 = arith.constant 0 : i32
    return %c0_i32, %c0_i32_0, %c0_i32_1 : i32, i32, i32
  }
  func.func @transform_4(%arg0: i32) -> (i32, i32) {
    %c0_i32 = arith.constant 0 : i32
    %c0_i32_0 = arith.constant 0 : i32
    %c0_i32_1 = arith.constant 0 : i32
    return %c0_i32, %c0_i32_0 : i32, i32
  }
  func.func @transform_5(%arg0: i32) -> (i32, i32) {
    %c0_i32 = arith.constant 0 : i32
    %c0_i32_0 = arith.constant 0 : i32
    %c0_i32_1 = arith.constant 0 : i32
    return %c0_i32, %c0_i32_0 : i32, i32
  }
  func.func @transform_6(%arg0: i32) -> (i32, i32) {
    %c0_i32 = arith.constant 0 : i32
    %c0_i32_0 = arith.constant 0 : i32
    %c0_i32_1 = arith.constant 0 : i32
    return %c0_i32, %c0_i32_0 : i32, i32
  }
  func.func @transform_7(%arg0: i32) -> (i32, i32) {
    %c0_i32 = arith.constant 0 : i32
    %c0_i32_0 = arith.constant 0 : i32
    %c0_i32_1 = arith.constant 0 : i32
    return %c0_i32, %c0_i32_0 : i32, i32
  }
  func.func @transform_8(%arg0: i32) -> (i32, i32) {
    %c0_i32 = arith.constant 0 : i32
    %c0_i32_0 = arith.constant 0 : i32
    %c0_i32_1 = arith.constant 0 : i32
    return %c0_i32, %c0_i32_0 : i32, i32
  }
  func.func @transform_9(%arg0: i32) -> (i32, i32) {
    %c0_i32 = arith.constant 0 : i32
    %c0_i32_0 = arith.constant 0 : i32
    %c0_i32_1 = arith.constant 0 : i32
    return %c0_i32, %c0_i32_0 : i32, i32
  }
  func.func @transform_10(%arg0: i32) -> (i32, i32) {
    %c0_i32 = arith.constant 0 : i32
    %c0_i32_0 = arith.constant 0 : i32
    %c0_i32_1 = arith.constant 0 : i32
    return %c0_i32, %c0_i32_0 : i32, i32
  }
  func.func @transform_11(%arg0: i32) -> (i32, i32) {
    %c0_i32 = arith.constant 0 : i32
    %c0_i32_0 = arith.constant 0 : i32
    return %arg0, %c0_i32 : i32, i32
  }
}

</mosaic_0001>

<bundles_post_ra>
// kernel: tpu_custom_call.1
= control target key start
LH: loop header
LB: loop body
LE: loop exit
PB: predicated region body
PF: predicated region fallthrough
CT: control target
= control target key end

     0   :  { %v9609_v6 = vmov 0   ;;  %vm265_vm0 = vcmask 1041408   ;;  %vm258_vm1 = vcmask 949248   ;;  %s11830_s0 = inlined_call_operand.vmem [shape: bf16[116,2048], index: 0, kind: input, shape index: {}]   ;;  %s11831_s1 = inlined_call_operand.vmem [shape: bf16[32,116], index: 1, kind: input, shape index: {}]   ;;  %s11832_s2 = inlined_call_operand.vmem [shape: f32[32,1], index: 2, kind: input, shape index: {}]   ;;  %s11833_s3 = inlined_call_operand.vmem [shape: f32[32,128,64], index: 3, kind: input, shape index: {}]   ;;  %s11834_s4 = inlined_call_operand.vmem [shape: f32[1,64], index: 4, kind: input, shape index: {}]   ;;  %s11835_s5 = inlined_call_operand.vmem [shape: f32[64,16], index: 5, kind: input, shape index: {}]   ;;  %s11836_s6 = inlined_call_operand.vmem [shape: f32[1,16], index: 6, kind: input, shape index: {}]   ;;  %s11837_s7 = inlined_call_operand.vmem [shape: f32[16,8], index: 7, kind: input, shape index: {}]   ;;  %s11838_s8 = inlined_call_operand.vmem [shape: f32[1,8], index: 8, kind: input, shape index: {}]   ;;  %s11839_s9 = inlined_call_operand.vmem [shape: f32[8,16], index: 9, kind: input, shape index: {}]   ;;  %s11840_s10 = inlined_call_operand.vmem [shape: f32[1,16], index: 10, kind: input, shape index: {}]   ;;  %s11841_s11 = inlined_call_operand.hbm [shape: f32[16,16], index: 11, kind: output, shape index: {}]  }
   0x1   :  { %v40_v0 = vld [vmem:[%s11830_s0] sm:$0xff]  ;;  %310 = vmatprep.mubr.bf16.mxu1 %v9609_v6  ;;  %9551 = vset.pattern.permute.xlu0 %v9609_v6  ;;  %v75_v26 = vld [vmem:[%s11832_s2 + $0x8] sm:$0xff]  ;;  %v76_v31 = vld [vmem:[%s11832_s2 + $0x10] sm:$0xff] }
   0x2   :  { %v42_v1 = vld [vmem:[%s11830_s0 + $0x40] sm:$0xff]  ;;  %9552 = vset.pattern.permute.xlu1 %v9609_v6  ;;  %85 = vperm.xlu0 %9551, %v75_v26   ;;  %v41_v34 = vld [vmem:[%s11830_s0 + $0x8] sm:$0xff] }
   0x3   :  { %v44_v2 = vld [vmem:[%s11830_s0 + $0x80] sm:$0xff]  ;;  %v6032_v3 = vcombine.high %v40_v0, %v42_v1  ;;  %v6031_v4 = vcombine.low %v40_v0, %v42_v1  ;;  %493 = vperm.xlu1 %9552, %v75_v26   ;;  %v43_v35 = vld [vmem:[%s11830_s0 + $0x48] sm:$0xff] }
   0x4   :  { %v46_v5 = vld [vmem:[%s11830_s0 + $0xc0] sm:$0xff]  ;;  %v6034_v38 = vcombine.high %v41_v34, %v43_v35  ;;  %v45_v39 = vld [vmem:[%s11830_s0 + $0x88] sm:$0xff]  ;;  %v6033_v41 = vcombine.low %v41_v34, %v43_v35 }
   0x5   :  { %v6036_v7 = vcombine.high %v44_v2, %v46_v5  ;;  %v48_v8 = vld [vmem:[%s11830_s0 + $0x100] sm:$0xff]  ;;  %278 = vmatprep.subr.bf16.mxu1 %v6032_v3  ;;  %v6035_v10 = vcombine.low %v44_v2, %v46_v5  ;;  %v47_v40 = vld [vmem:[%s11830_s0 + $0xc8] sm:$0xff] }
   0x6   :  { %v50_v9 = vld [vmem:[%s11830_s0 + $0x140] sm:$0xff]  ;;  %279 = vmatpush1.bf16.msra.mxu1 %v6031_v4  ;;  %899 = vperm.xlu0 %9551, %v75_v26   ;;  %v6038_v43 = vcombine.high %v45_v39, %v47_v40  ;;  %v49_v44 = vld [vmem:[%s11830_s0 + $0x108] sm:$0xff] }
   0x7   :  { %280 = vmatprep.subr.bf16.mxu1 %v6036_v7  ;;  %v6040_v11 = vcombine.high %v48_v8, %v50_v9  ;;  %v52_v12 = vld [vmem:[%s11830_s0 + $0x180] sm:$0xff]  ;;  %v6039_v14 = vcombine.low %v48_v8, %v50_v9  ;;  %1305 = vperm.xlu1 %9552, %v75_v26   ;;  %v51_v45 = vld [vmem:[%s11830_s0 + $0x148] sm:$0xff] }
   0x8   :  { %v54_v13 = vld [vmem:[%s11830_s0 + $0x1c0] sm:$0xff] }
   0x9   :  { %v6044_v15 = vcombine.high %v52_v12, %v54_v13  ;;  %v56_v16 = vld [vmem:[%s11830_s0 + $0x200] sm:$0xff]  ;;  %v6043_v18 = vcombine.low %v52_v12, %v54_v13 }
   0xa   :  { %281 = vmatpush1.bf16.msra.mxu1 %v6035_v10  ;;  %v58_v17 = vld [vmem:[%s11830_s0 + $0x240] sm:$0xff]  ;;  %90 = vperm.xlu0 %9551, %v76_v31  }
   0xb   :  { %282 = vmatprep.subr.bf16.mxu1 %v6040_v11  ;;  %v6048_v19 = vcombine.high %v56_v16, %v58_v17  ;;  %v60_v20 = vld [vmem:[%s11830_s0 + $0x280] sm:$0xff]  ;;  %v6047_v22 = vcombine.low %v56_v16, %v58_v17  ;;  %904 = vperm.xlu1 %9552, %v76_v31  }
   0xc   :  { %v62_v21 = vld [vmem:[%s11830_s0 + $0x2c0] sm:$0xff] }
   0xd   :  { %v6052_v23 = vcombine.high %v60_v20, %v62_v21  ;;  %v64_v24 = vld [vmem:[%s11830_s0 + $0x300] sm:$0xff]  ;;  %v6051_v27 = vcombine.low %v60_v20, %v62_v21 }
   0xe   :  { %283 = vmatpush1.bf16.msra.mxu1 %v6039_v14  ;;  %v66_v25 = vld [vmem:[%s11830_s0 + $0x340] sm:$0xff]  ;;  %498 = vperm.xlu0 %9551, %v76_v31  }
   0xf   :  { %284 = vmatprep.subr.bf16.mxu1 %v6044_v15  ;;  %v6056_v28 = vcombine.high %v64_v24, %v66_v25  ;;  %v68_v29 = vld [vmem:[%s11830_s0 + $0x380] sm:$0x33]  ;;  %v6055_v30 = vcombine.low %v64_v24, %v66_v25  ;;  %1310 = vperm.xlu1 %9552, %v76_v31  }
  0x10   :  { %v6060_v32 = vcombine.high %v68_v29, %v68_v29  ;;  %v6059_v33 = vcombine.low %v68_v29, %v68_v29  ;;  %v9738_v37 = vld [vmem:[%s11831_s1] sm:$0xff]  }
  0x11   :  { %v74_v42 = vld [vmem:[%s11832_s2] sm:$0xff] }
  0x12   :  { %285 = vmatpush1.bf16.msra.mxu1 %v6043_v18  ;;  %v267_v36 = vsel %vm265_vm0, %v6059_v33, 0 }
  0x13   :  { %286 = vmatprep.subr.bf16.mxu1 %v6048_v19 }
  0x16   :  { %287 = vmatpush1.bf16.msra.mxu1 %v6047_v22 }
  0x17   :  { %288 = vmatprep.subr.bf16.mxu1 %v6052_v23 }
  0x1a   :  { %289 = vmatpush1.bf16.msra.mxu1 %v6051_v27 }
  0x1b   :  { %290 = vmatprep.subr.bf16.mxu1 %v6056_v28 }
  0x1e   :  { %291 = vmatpush1.bf16.msra.mxu1 %v6055_v30 }
  0x1f   :  { %6063 = vmatprep.subr.msk.bf16.mxu1 %vm265_vm0, %v6060_v32 }
  0x22   :  { %293 = vmatpush1.bf16.msra.mxu1 %v267_v36 }
  0x23   :  { %331 = vmatprep.subr.bf16.mxu1 %v6034_v38 }
  0x24   :  { %16 = vsyncpa [#allocation4], 0  ;;  %80 = vperm.xlu0 %9551, %v74_v42   ;;  %v6037_v46 = vcombine.low %v45_v39, %v47_v40  ;;  %v6042_v47 = vcombine.high %v49_v44, %v51_v45  ;;  %894 = vperm.xlu1 %9552, %v74_v42   ;;  %v53_v48 = vld [vmem:[%s11830_s0 + $0x188] sm:$0xff]  ;;  %v6041_v51 = vcombine.low %v49_v44, %v51_v45  ;;  %v77_v52 = vld [vmem:[%s11832_s2 + $0x18] sm:$0xff] }
  0x25   :  { %6064 = vmatmul.mubr.msk.bf16.vlgmr.msra.gmra.mrb[0].mxu1 %vm258_vm1, %v9738_v37  ;;  %v55_v49 = vld [vmem:[%s11830_s0 + $0x1c8] sm:$0xff]  ;;  %v448_v7 = vld [vmem:[%s11830_s0 + $0x10] sm:$0xff]  ;;  %v449_v39 = vld [vmem:[%s11830_s0 + $0x18] sm:$0xff] }
  0x26   :  { %332 = vmatpush1.bf16.msra.mxu1 %v6033_v41  ;;  %320 = vmatprep.mubr.bf16.mxu1 %v9609_v6  ;;  %v9767_v50 = vld [vmem:[%s11831_s1 + $0x8] sm:$0xff]   ;;  %v6046_v53 = vcombine.high %v53_v48, %v55_v49  ;;  %v6045_v56 = vcombine.low %v53_v48, %v55_v49  ;;  %v450_v8 = vld [vmem:[%s11830_s0 + $0x50] sm:$0xff]  ;;  %v451_v40 = vld [vmem:[%s11830_s0 + $0x58] sm:$0xff] }
  0x27   :  { %333 = vmatprep.subr.bf16.mxu1 %v6038_v43  ;;  %v57_v54 = vld [vmem:[%s11830_s0 + $0x208] sm:$0xff]  ;;  %v6072_v10 = vcombine.high %v448_v7, %v450_v8  ;;  %v452_v11 = vld [vmem:[%s11830_s0 + $0x90] sm:$0xff]  ;;  %v6071_v13 = vcombine.low %v448_v7, %v450_v8  ;;  %v453_v43 = vld [vmem:[%s11830_s0 + $0x98] sm:$0xff] }
  0x28   :  { %488 = vperm.xlu0 %9551, %v74_v42   ;;  %1300 = vperm.xlu1 %9552, %v74_v42   ;;  %v59_v55 = vld [vmem:[%s11830_s0 + $0x248] sm:$0xff]  ;;  %v454_v12 = vld [vmem:[%s11830_s0 + $0xd0] sm:$0xff]  ;;  %v6074_v42 = vcombine.high %v449_v39, %v451_v40  ;;  %v455_v44 = vld [vmem:[%s11830_s0 + $0xd8] sm:$0xff] }
  0x29   :  { %v6050_v57 = vcombine.high %v57_v54, %v59_v55  ;;  %v61_v58 = vld [vmem:[%s11830_s0 + $0x288] sm:$0xff]  ;;  %v6049_v60 = vcombine.low %v57_v54, %v59_v55  ;;  %v6076_v14 = vcombine.high %v452_v11, %v454_v12  ;;  %v456_v15 = vld [vmem:[%s11830_s0 + $0x110] sm:$0xff]  ;;  %v6075_v17 = vcombine.low %v452_v11, %v454_v12  ;;  %v9561_v45 = vld [vmem:[%s11831_s1] sm:$0xff]  }
  0x2a   :  { %334 = vmatpush1.bf16.msra.mxu1 %v6037_v46  ;;  %v63_v59 = vld [vmem:[%s11830_s0 + $0x2c8] sm:$0xff]  ;;  %v458_v16 = vld [vmem:[%s11830_s0 + $0x150] sm:$0xff]  ;;  %v6073_v46 = vcombine.low %v449_v39, %v451_v40  ;;  %v457_v48 = vld [vmem:[%s11830_s0 + $0x118] sm:$0xff] }
  0x2b   :  { %335 = vmatprep.subr.bf16.mxu1 %v6042_v47  ;;  %v6054_v61 = vcombine.high %v61_v58, %v63_v59  ;;  %v65_v62 = vld [vmem:[%s11830_s0 + $0x308] sm:$0xff]  ;;  %v6053_v0 = vcombine.low %v61_v58, %v63_v59  ;;  %v6080_v18 = vcombine.high %v456_v15, %v458_v16  ;;  %v460_v19 = vld [vmem:[%s11830_s0 + $0x190] sm:$0xff]  ;;  %v6079_v21 = vcombine.low %v456_v15, %v458_v16  ;;  %v459_v49 = vld [vmem:[%s11830_s0 + $0x158] sm:$0xff] }
  0x2c   :  { %95 = vperm.xlu0 %9551, %v77_v52   ;;  %909 = vperm.xlu1 %9552, %v77_v52   ;;  %v67_v63 = vld [vmem:[%s11830_s0 + $0x348] sm:$0xff]  ;;  %v462_v20 = vld [vmem:[%s11830_s0 + $0x1d0] sm:$0xff]  ;;  %v6078_v47 = vcombine.high %v453_v43, %v455_v44  ;;  %v6081_v55 = vcombine.low %v457_v48, %v459_v49  ;;  %v467_v58 = vld [vmem:[%s11830_s0 + $0x258] sm:$0xff] }
  0x2d   :  { %6065 = vmatmul.mubr.msk.bf16.gmra.mrb[4].mxu1 %vm258_vm1, %v9767_v50  ;;  %v6058_v1 = vcombine.high %v65_v62, %v67_v63  ;;  %v69_v2 = vld [vmem:[%s11830_s0 + $0x388] sm:$0x33]  ;;  %v6057_v3 = vcombine.low %v65_v62, %v67_v63  ;;  %v6084_v22 = vcombine.high %v460_v19, %v462_v20  ;;  %v464_v23 = vld [vmem:[%s11830_s0 + $0x210] sm:$0xff]  ;;  %v6083_v25 = vcombine.low %v460_v19, %v462_v20  ;;  %v471_v62 = vld [vmem:[%s11830_s0 + $0x2d8] sm:$0xff] }
  0x2e   :  { %336 = vmatpush1.bf16.msra.mxu1 %v6041_v51  ;;  %363 = vmatprep.mubr.bf16.mxu1 %v9609_v6  ;;  %v6062_v4 = vcombine.high %v69_v2, %v69_v2  ;;  %v6061_v5 = vcombine.low %v69_v2, %v69_v2  ;;  %v466_v24 = vld [vmem:[%s11830_s0 + $0x250] sm:$0xff]  ;;  %v6082_v51 = vcombine.high %v457_v48, %v459_v49  ;;  %v9562_v54 = vld [vmem:[%s11831_s1 + $0x8] sm:$0xff]   ;;  %v475_v2 = vld [vmem:[%s11830_s0 + $0x358] sm:$0xff] }
  0x2f   :  { %337 = vmatprep.subr.bf16.mxu1 %v6046_v53  ;;  %v6088_v26 = vcombine.high %v464_v23, %v466_v24  ;;  %v468_v27 = vld [vmem:[%s11830_s0 + $0x290] sm:$0xff]  ;;  %v6087_v29 = vcombine.low %v464_v23, %v466_v24  ;;  %v463_v53 = vld [vmem:[%s11830_s0 + $0x1d8] sm:$0xff]  ;;  %v856_v11 = vld [vmem:[%s11830_s0 + $0x60] sm:$0xff] }
  0x30   :  { %503 = vperm.xlu0 %9551, %v77_v52   ;;  %1315 = vperm.xlu1 %9552, %v77_v52   ;;  %v273_v9 = vsel %vm265_vm0, %v6061_v5, 0  ;;  %v470_v28 = vld [vmem:[%s11830_s0 + $0x2d0] sm:$0xff]  ;;  %v461_v52 = vld [vmem:[%s11830_s0 + $0x198] sm:$0xff]  ;;  %v860_v15 = vld [vmem:[%s11830_s0 + $0xe0] sm:$0xff] }
  0x31   :  { %v6092_v30 = vcombine.high %v468_v27, %v470_v28  ;;  %v472_v31 = vld [vmem:[%s11830_s0 + $0x310] sm:$0xff]  ;;  %v6091_v33 = vcombine.low %v468_v27, %v470_v28  ;;  %v6085_v59 = vcombine.low %v461_v52, %v463_v53  ;;  %v477_v5 = vld [vmem:[%s11830_s0 + $0x398] sm:$0x33]  ;;  %v864_v19 = vld [vmem:[%s11830_s0 + $0x160] sm:$0xff] }
  0x32   :  { %338 = vmatpush1.bf16.msra.mxu1 %v6045_v56  ;;  %v474_v32 = vld [vmem:[%s11830_s0 + $0x350] sm:$0xff]  ;;  %v6086_v56 = vcombine.high %v461_v52, %v463_v53  ;;  %v6102_v8 = vcombine.high %v477_v5, %v477_v5  ;;  %v868_v23 = vld [vmem:[%s11830_s0 + $0x1e0] sm:$0xff]  ;;  %v865_v52 = vld [vmem:[%s11830_s0 + $0x168] sm:$0xff] }
  0x33   :  { %339 = vmatprep.subr.bf16.mxu1 %v6050_v57  ;;  %v6096_v34 = vcombine.high %v472_v31, %v474_v32  ;;  %v476_v35 = vld [vmem:[%s11830_s0 + $0x390] sm:$0x33]  ;;  %v6095_v36 = vcombine.low %v472_v31, %v474_v32  ;;  %v465_v57 = vld [vmem:[%s11830_s0 + $0x218] sm:$0xff]  ;;  %v872_v27 = vld [vmem:[%s11830_s0 + $0x260] sm:$0xff] }
  0x34   :  { %v6099_v38 = vcombine.low %v476_v35, %v476_v35  ;;  %v6089_v63 = vcombine.low %v465_v57, %v467_v58  ;;  %v876_v31 = vld [vmem:[%s11830_s0 + $0x2e0] sm:$0xff] }
  0x35   :  { %v9567_v48 = vld [vmem:[%s11831_s1] sm:$0xff]  }
  0x36   :  { %340 = vmatpush1.bf16.msra.mxu1 %v6049_v60  ;;  %v673_v41 = vsel %vm265_vm0, %v6099_v38, 0  ;;  %v6090_v60 = vcombine.high %v465_v57, %v467_v58  ;;  %v882_v38 = vld [vmem:[%s11830_s0 + $0x3a0] sm:$0x33]  ;;  %v9568_v57 = vld [vmem:[%s11831_s1 + $0x8] sm:$0xff]  }
  0x37   :  { %341 = vmatprep.subr.bf16.mxu1 %v6054_v61  ;;  %v469_v61 = vld [vmem:[%s11830_s0 + $0x298] sm:$0xff]  ;;  %v6140_v40 = vcombine.high %v882_v38, %v882_v38 }
  0x3a   :  { %342 = vmatpush1.bf16.msra.mxu1 %v6053_v0  ;;  %v6094_v0 = vcombine.high %v469_v61, %v471_v62 }
  0x3b   :  { %343 = vmatprep.subr.bf16.mxu1 %v6058_v1  ;;  %v473_v1 = vld [vmem:[%s11830_s0 + $0x318] sm:$0xff] }
  0x3c   :  { %v6097_v7 = vcombine.low %v473_v1, %v475_v2 }
  0x3e   :  { %344 = vmatpush1.bf16.msra.mxu1 %v6057_v3  ;;  %v6093_v3 = vcombine.low %v469_v61, %v471_v62  ;;  %v873_v61 = vld [vmem:[%s11830_s0 + $0x268] sm:$0xff] }
  0x3f   :  { %6066 = vmatprep.subr.msk.bf16.mxu1 %vm265_vm0, %v6062_v4  ;;  %v6098_v4 = vcombine.high %v473_v1, %v475_v2  ;;  %v877_v1 = vld [vmem:[%s11830_s0 + $0x2e8] sm:$0xff] }
  0x42   :  { %346 = vmatpush1.bf16.msra.mxu1 %v273_v9  ;;  %v6101_v9 = vcombine.low %v477_v5, %v477_v5  ;;  %v881_v5 = vld [vmem:[%s11830_s0 + $0x368] sm:$0xff] }
  0x43   :  { %684 = vmatprep.subr.bf16.mxu1 %v6072_v10  ;;  %v854_v10 = vld [vmem:[%s11830_s0 + $0x20] sm:$0xff] }
  0x44   :  { %v679_v12 = vsel %vm265_vm0, %v6101_v9, 0  ;;  %v6111_v16 = vcombine.low %v854_v10, %v856_v11  ;;  %v883_v9 = vld [vmem:[%s11830_s0 + $0x3a8] sm:$0x33] }
  0x45   :  { %6067 = vmatmul.mubr.msk.bf16.vlgmr.msra.gmra.mrb[8].mxu1 %vm258_vm1, %v9738_v37  ;;  %v6100_v37 = vcombine.high %v476_v35, %v476_v35  ;;  %v880_v35 = vld [vmem:[%s11830_s0 + $0x360] sm:$0xff] }
  0x46   :  { %685 = vmatpush1.bf16.msra.mxu1 %v6071_v13  ;;  %373 = vmatprep.mubr.bf16.mxu1 %v9609_v6  ;;  %v6112_v13 = vcombine.high %v854_v10, %v856_v11  ;;  %v6142_v11 = vcombine.high %v883_v9, %v883_v9 }
  0x47   :  { %686 = vmatprep.subr.bf16.mxu1 %v6076_v14  ;;  %v858_v14 = vld [vmem:[%s11830_s0 + $0xa0] sm:$0xff] }
  0x48   :  { %v6115_v20 = vcombine.low %v858_v14, %v860_v15 }
  0x4a   :  { %687 = vmatpush1.bf16.msra.mxu1 %v6075_v17  ;;  %v6116_v17 = vcombine.high %v858_v14, %v860_v15  ;;  %v1262_v14 = vld [vmem:[%s11830_s0 + $0x70] sm:$0xff] }
  0x4b   :  { %688 = vmatprep.subr.bf16.mxu1 %v6080_v18  ;;  %v862_v18 = vld [vmem:[%s11830_s0 + $0x120] sm:$0xff] }
  0x4c   :  { %v6119_v24 = vcombine.low %v862_v18, %v864_v19 }
  0x4d   :  { %6068 = vmatmul.mubr.msk.bf16.gmra.mrb[12].mxu1 %vm258_vm1, %v9767_v50  ;;  %v6077_v50 = vcombine.low %v453_v43, %v455_v44  ;;  %v857_v43 = vld [vmem:[%s11830_s0 + $0x68] sm:$0xff] }
  0x4e   :  { %689 = vmatpush1.bf16.msra.mxu1 %v6079_v21  ;;  %716 = vmatprep.mubr.bf16.mxu1 %v9609_v6  ;;  %v6120_v21 = vcombine.high %v862_v18, %v864_v19  ;;  %v1266_v18 = vld [vmem:[%s11830_s0 + $0xf0] sm:$0xff] }
  0x4f   :  { %690 = vmatprep.subr.bf16.mxu1 %v6084_v22  ;;  %v866_v22 = vld [vmem:[%s11830_s0 + $0x1a0] sm:$0xff] }
  0x50   :  { %v6123_v28 = vcombine.low %v866_v22, %v868_v23 }
  0x52   :  { %691 = vmatpush1.bf16.msra.mxu1 %v6083_v25  ;;  %v6124_v25 = vcombine.high %v866_v22, %v868_v23  ;;  %v1270_v22 = vld [vmem:[%s11830_s0 + $0x170] sm:$0xff] }
  0x53   :  { %692 = vmatprep.subr.bf16.mxu1 %v6088_v26  ;;  %v870_v26 = vld [vmem:[%s11830_s0 + $0x220] sm:$0xff] }
  0x54   :  { %v6127_v32 = vcombine.low %v870_v26, %v872_v27 }
  0x56   :  { %693 = vmatpush1.bf16.msra.mxu1 %v6087_v29  ;;  %v6128_v29 = vcombine.high %v870_v26, %v872_v27  ;;  %v1274_v26 = vld [vmem:[%s11830_s0 + $0x1f0] sm:$0xff] }
  0x57   :  { %694 = vmatprep.subr.bf16.mxu1 %v6092_v30  ;;  %v874_v30 = vld [vmem:[%s11830_s0 + $0x2a0] sm:$0xff] }
  0x5a   :  { %695 = vmatpush1.bf16.msra.mxu1 %v6091_v33  ;;  %v6132_v33 = vcombine.high %v874_v30, %v876_v31 }
  0x5b   :  { %696 = vmatprep.subr.bf16.mxu1 %v6096_v34  ;;  %v878_v34 = vld [vmem:[%s11830_s0 + $0x320] sm:$0xff] }
  0x5c   :  { %v6135_v39 = vcombine.low %v878_v34, %v880_v35 }
  0x5e   :  { %697 = vmatpush1.bf16.msra.mxu1 %v6095_v36  ;;  %v6131_v36 = vcombine.low %v874_v30, %v876_v31  ;;  %v1278_v30 = vld [vmem:[%s11830_s0 + $0x270] sm:$0xff] }
  0x5f   :  { %6103 = vmatprep.subr.msk.bf16.mxu1 %vm265_vm0, %v6100_v37  ;;  %v6136_v37 = vcombine.high %v878_v34, %v880_v35  ;;  %v1282_v34 = vld [vmem:[%s11830_s0 + $0x2f0] sm:$0xff] }
  0x62   :  { %699 = vmatpush1.bf16.msra.mxu1 %v673_v41  ;;  %v6139_v41 = vcombine.low %v882_v38, %v882_v38  ;;  %v1286_v38 = vld [vmem:[%s11830_s0 + $0x370] sm:$0xff] }
  0x63   :  { %737 = vmatprep.subr.bf16.mxu1 %v6074_v42  ;;  %v855_v42 = vld [vmem:[%s11830_s0 + $0x28] sm:$0xff] }
  0x64   :  { %v1079_v44 = vsel %vm265_vm0, %v6139_v41, 0  ;;  %v6113_v49 = vcombine.low %v855_v42, %v857_v43  ;;  %v1288_v41 = vld [vmem:[%s11830_s0 + $0x3b0] sm:$0x33] }
  0x65   :  { %6104 = vmatmul.mubr.msk.bf16.vlgmr.msra.gmra.mrb[16].mxu1 %vm258_vm1, %v9561_v45 }
  0x66   :  { %738 = vmatpush1.bf16.msra.mxu1 %v6073_v46  ;;  %726 = vmatprep.mubr.bf16.mxu1 %v9609_v6  ;;  %v859_v46 = vld [vmem:[%s11830_s0 + $0xa8] sm:$0xff] }
  0x67   :  { %739 = vmatprep.subr.bf16.mxu1 %v6078_v47  ;;  %v861_v47 = vld [vmem:[%s11830_s0 + $0xe8] sm:$0xff] }
  0x68   :  { %v6117_v53 = vcombine.low %v859_v46, %v861_v47 }
  0x6a   :  { %740 = vmatpush1.bf16.msra.mxu1 %v6077_v50  ;;  %v6118_v50 = vcombine.high %v859_v46, %v861_v47  ;;  %v1263_v46 = vld [vmem:[%s11830_s0 + $0x78] sm:$0xff] }
  0x6b   :  { %741 = vmatprep.subr.bf16.mxu1 %v6082_v51  ;;  %v863_v51 = vld [vmem:[%s11830_s0 + $0x128] sm:$0xff] }
  0x6c   :  { %v6121_v58 = vcombine.low %v863_v51, %v865_v52 }
  0x6d   :  { %6105 = vmatmul.mubr.msk.bf16.gmra.mrb[20].mxu1 %vm258_vm1, %v9562_v54 }
  0x6e   :  { %742 = vmatpush1.bf16.msra.mxu1 %v6081_v55  ;;  %769 = vmatprep.mubr.bf16.mxu1 %v9609_v6  ;;  %v867_v55 = vld [vmem:[%s11830_s0 + $0x1a8] sm:$0xff] }
  0x6f   :  { %743 = vmatprep.subr.bf16.mxu1 %v6086_v56  ;;  %v869_v56 = vld [vmem:[%s11830_s0 + $0x1e8] sm:$0xff] }
  0x70   :  { %v6125_v62 = vcombine.low %v867_v55, %v869_v56 }
  0x72   :  { %744 = vmatpush1.bf16.msra.mxu1 %v6085_v59  ;;  %v6126_v59 = vcombine.high %v867_v55, %v869_v56  ;;  %v1269_v56 = vld [vmem:[%s11830_s0 + $0x138] sm:$0xff] }
  0x73   :  { %745 = vmatprep.subr.bf16.mxu1 %v6090_v60  ;;  %v871_v60 = vld [vmem:[%s11830_s0 + $0x228] sm:$0xff] }
  0x74   :  { %v6129_v2 = vcombine.low %v871_v60, %v873_v61 }
  0x76   :  { %746 = vmatpush1.bf16.msra.mxu1 %v6089_v63  ;;  %v6130_v63 = vcombine.high %v871_v60, %v873_v61  ;;  %v1273_v60 = vld [vmem:[%s11830_s0 + $0x1b8] sm:$0xff] }
  0x77   :  { %747 = vmatprep.subr.bf16.mxu1 %v6094_v0  ;;  %v875_v0 = vld [vmem:[%s11830_s0 + $0x2a8] sm:$0xff]  ;;  %v1275_v61 = vld [vmem:[%s11830_s0 + $0x1f8] sm:$0xff] }
  0x7a   :  { %748 = vmatpush1.bf16.msra.mxu1 %v6093_v3  ;;  %v6134_v3 = vcombine.high %v875_v0, %v877_v1 }
  0x7b   :  { %749 = vmatprep.subr.bf16.mxu1 %v6098_v4  ;;  %v879_v4 = vld [vmem:[%s11830_s0 + $0x328] sm:$0xff] }
  0x7c   :  { %v6137_v10 = vcombine.low %v879_v4, %v881_v5 }
  0x7e   :  { %750 = vmatpush1.bf16.msra.mxu1 %v6097_v7  ;;  %v6133_v7 = vcombine.low %v875_v0, %v877_v1  ;;  %v6166_v1 = vcombine.high %v1273_v60, %v1275_v61 }
  0x7f   :  { %6106 = vmatprep.subr.msk.bf16.mxu1 %vm265_vm0, %v6102_v8  ;;  %v6138_v8 = vcombine.high %v879_v4, %v881_v5  ;;  %v6165_v4 = vcombine.low %v1273_v60, %v1275_v61 }
  0x81   :  { %v10071_v47 = vpop.permute.xlu0 %85 }
  0x82   :  { %752 = vmatpush1.bf16.msra.mxu1 %v679_v12  ;;  %v6141_v12 = vcombine.low %v883_v9, %v883_v9  ;;  %v1283_v9 = vld [vmem:[%s11830_s0 + $0x2f8] sm:$0xff] }
  0x83   :  { %1090 = vmatprep.subr.bf16.mxu1 %v6112_v13  ;;  %v1260_v13 = vld [vmem:[%s11830_s0 + $0x30] sm:$0xff] }
  0x84   :  { %v1085_v15 = vsel %vm265_vm0, %v6141_v12, 0  ;;  %v6151_v19 = vcombine.low %v1260_v13, %v1262_v14  ;;  %v1285_v12 = vld [vmem:[%s11830_s0 + $0x338] sm:$0xff] }
  0x85   :  { %6107 = vmatmul.mubr.msk.bf16.vlgmr.msra.gmra.mrb[24].mxu1 %vm258_vm1, %v9561_v45  ;;  %v6114_v45 = vcombine.high %v855_v42, %v857_v43  ;;  %v6180_v43 = vcombine.high %v1288_v41, %v1288_v41  ;;  %v10086_v55 = vpop.permute.xlu0 %899 }
  0x86   :  { %1091 = vmatpush1.bf16.msra.mxu1 %v6111_v16  ;;  %779 = vmatprep.mubr.bf16.mxu1 %v9609_v6  ;;  %v6152_v16 = vcombine.high %v1260_v13, %v1262_v14  ;;  %v1287_v13 = vld [vmem:[%s11830_s0 + $0x378] sm:$0xff] }
  0x87   :  { %1092 = vmatprep.subr.bf16.mxu1 %v6116_v17  ;;  %v1264_v17 = vld [vmem:[%s11830_s0 + $0xb0] sm:$0xff] }
  0x88   :  { %v6155_v23 = vcombine.low %v1264_v17, %v1266_v18 }
  0x89   :  { %v10108_v0 = vpop.permute.xlu0 %90 }
  0x8a   :  { %1093 = vmatpush1.bf16.msra.mxu1 %v6115_v20  ;;  %v6156_v20 = vcombine.high %v1264_v17, %v1266_v18  ;;  %v1289_v17 = vld [vmem:[%s11830_s0 + $0x3b8] sm:$0x33] }
  0x8b   :  { %1094 = vmatprep.subr.bf16.mxu1 %v6120_v21  ;;  %v1268_v21 = vld [vmem:[%s11830_s0 + $0x130] sm:$0xff] }
  0x8c   :  { %v6159_v27 = vcombine.low %v1268_v21, %v1270_v22 }
  0x8d   :  { %6108 = vmatmul.mubr.msk.bf16.gmra.mrb[28].mxu1 %vm258_vm1, %v9562_v54  ;;  %v6122_v54 = vcombine.high %v863_v51, %v865_v52  ;;  %v1267_v51 = vld [vmem:[%s11830_s0 + $0xf8] sm:$0xff]  ;;  %v10084_v52 = vld [vmem:[%s11831_s1] sm:$0xff]  }
  0x8e   :  { %1095 = vmatpush1.bf16.msra.mxu1 %v6119_v24  ;;  %1122 = vmatprep.mubr.bf16.mxu1 %v9609_v6  ;;  %v6160_v24 = vcombine.high %v1268_v21, %v1270_v22 }
  0x8f   :  { %1096 = vmatprep.subr.bf16.mxu1 %v6124_v25  ;;  %v1272_v25 = vld [vmem:[%s11830_s0 + $0x1b0] sm:$0xff] }
  0x90   :  { %v6163_v31 = vcombine.low %v1272_v25, %v1274_v26 }
  0x92   :  { %1097 = vmatpush1.bf16.msra.mxu1 %v6123_v28  ;;  %v6164_v28 = vcombine.high %v1272_v25, %v1274_v26 }
  0x93   :  { %1098 = vmatprep.subr.bf16.mxu1 %v6128_v29  ;;  %v1276_v29 = vld [vmem:[%s11830_s0 + $0x230] sm:$0xff] }
  0x94   :  { %v6167_v35 = vcombine.low %v1276_v29, %v1278_v30 }
  0x96   :  { %1099 = vmatpush1.bf16.msra.mxu1 %v6127_v32  ;;  %v6168_v32 = vcombine.high %v1276_v29, %v1278_v30  ;;  %v6181_v29 = vcombine.low %v1289_v17, %v1289_v17 }
  0x97   :  { %1100 = vmatprep.subr.bf16.mxu1 %v6132_v33  ;;  %v1280_v33 = vld [vmem:[%s11830_s0 + $0x2b0] sm:$0xff] }
  0x9a   :  { %1101 = vmatpush1.bf16.msra.mxu1 %v6131_v36  ;;  %v6172_v36 = vcombine.high %v1280_v33, %v1282_v34 }
  0x9b   :  { %1102 = vmatprep.subr.bf16.mxu1 %v6136_v37  ;;  %v1284_v37 = vld [vmem:[%s11830_s0 + $0x330] sm:$0xff] }
  0x9c   :  { %v6175_v42 = vcombine.low %v1284_v37, %v1286_v38 }
  0x9e   :  { %1103 = vmatpush1.bf16.msra.mxu1 %v6135_v39  ;;  %v6171_v39 = vcombine.low %v1280_v33, %v1282_v34 }
  0x9f   :  { %6143 = vmatprep.subr.msk.bf16.mxu1 %vm265_vm0, %v6140_v40  ;;  %v6176_v40 = vcombine.high %v1284_v37, %v1286_v38  ;;  %v1491_v37 = vsel %vm265_vm0, %v6181_v29, 0 }
  0xa2   :  { %1105 = vmatpush1.bf16.msra.mxu1 %v1079_v44  ;;  %v6179_v44 = vcombine.low %v1288_v41, %v1288_v41 }
  0xa3   :  { %1143 = vmatprep.subr.bf16.mxu1 %v6114_v45  ;;  %v1261_v45 = vld [vmem:[%s11830_s0 + $0x38] sm:$0xff] }
  0xa5   :  { %6144 = vmatmul.mubr.msk.bf16.vlgmr.msra.gmra.mrb[32].mxu1 %vm258_vm1, %v9567_v48 }
  0xa6   :  { %1144 = vmatpush1.bf16.msra.mxu1 %v6113_v49  ;;  %1132 = vmatprep.mubr.bf16.mxu1 %v9609_v6  ;;  %v6154_v49 = vcombine.high %v1261_v45, %v1263_v46 }
  0xa7   :  { %1145 = vmatprep.subr.bf16.mxu1 %v6118_v50  ;;  %v1265_v50 = vld [vmem:[%s11830_s0 + $0xb8] sm:$0xff] }
  0xaa   :  { %1146 = vmatpush1.bf16.msra.mxu1 %v6117_v53  ;;  %v6153_v53 = vcombine.low %v1261_v45, %v1263_v46 }
  0xab   :  { %1147 = vmatprep.subr.bf16.mxu1 %v6122_v54  ;;  %v6158_v54 = vcombine.high %v1265_v50, %v1267_v51 }
  0xad   :  { %6145 = vmatmul.mubr.msk.bf16.gmra.mrb[36].mxu1 %vm258_vm1, %v9568_v57 }
  0xae   :  { %1148 = vmatpush1.bf16.msra.mxu1 %v6121_v58  ;;  %1175 = vmatprep.mubr.bf16.mxu1 %v9609_v6  ;;  %v6157_v58 = vcombine.low %v1265_v50, %v1267_v51 }
  0xaf   :  { %1149 = vmatprep.subr.bf16.mxu1 %v6126_v59 }
  0xb2   :  { %1150 = vmatpush1.bf16.msra.mxu1 %v6125_v62  ;;  %v10106_v62 = vld [vmem:[%s11831_s1 + $0x8] sm:$0xff]  }
  0xb3   :  { %1151 = vmatprep.subr.bf16.mxu1 %v6130_v63 }
  0xb6   :  { %1152 = vmatpush1.bf16.msra.mxu1 %v6129_v2  ;;  %v1277_v2 = vld [vmem:[%s11830_s0 + $0x238] sm:$0xff] }
  0xb7   :  { %1153 = vmatprep.subr.bf16.mxu1 %v6134_v3  ;;  %v1279_v3 = vld [vmem:[%s11830_s0 + $0x278] sm:$0xff] }
  0xb8   :  { %v6170_v5 = vcombine.high %v1277_v2, %v1279_v3 }
  0xba   :  { %1154 = vmatpush1.bf16.msra.mxu1 %v6133_v7  ;;  %v10119_v7 = vpop.permute.xlu0 %498 }
  0xbb   :  { %1155 = vmatprep.subr.bf16.mxu1 %v6138_v8  ;;  %v1281_v8 = vld [vmem:[%s11830_s0 + $0x2b8] sm:$0xff] }
  0xbe   :  { %1156 = vmatpush1.bf16.msra.mxu1 %v6137_v10  ;;  %v6169_v10 = vcombine.low %v1277_v2, %v1279_v3  ;;  %v10133_v14 = vpop.permute.xlu0 %80 }
  0xbf   :  { %6146 = vmatprep.subr.msk.bf16.mxu1 %vm265_vm0, %v6142_v11  ;;  %v6174_v11 = vcombine.high %v1281_v8, %v1283_v9 }
  0xc2   :  { %1158 = vmatpush1.bf16.msra.mxu1 %v1085_v15  ;;  %v6173_v15 = vcombine.low %v1281_v8, %v1283_v9  ;;  %v10140_v25 = vpop.permute.xlu0 %488 }
  0xc3   :  { %1496 = vmatprep.subr.bf16.mxu1 %v6152_v16  ;;  %v6178_v16 = vcombine.high %v1285_v12, %v1287_v13 }
  0xc5   :  { %6147 = vmatmul.mubr.msk.bf16.vlgmr.msra.gmra.mrb[40].mxu1 %vm258_vm1, %v9567_v48  ;;  %v1485_v48 = vsel %vm265_vm0, %v6179_v44, 0 }
  0xc6   :  { %1497 = vmatpush1.bf16.msra.mxu1 %v6151_v19  ;;  %1185 = vmatprep.mubr.bf16.mxu1 %v9609_v6 }
  0xc7   :  { %1498 = vmatprep.subr.bf16.mxu1 %v6156_v20 }
  0xca   :  { %1499 = vmatpush1.bf16.msra.mxu1 %v6155_v23  ;;  %v6177_v23 = vcombine.low %v1285_v12, %v1287_v13 }
  0xcb   :  { %1500 = vmatprep.subr.bf16.mxu1 %v6160_v24  ;;  %v6182_v24 = vcombine.high %v1289_v17, %v1289_v17 }
  0xcd   :  { %6148 = vmatmul.mubr.msk.bf16.gmra.mrb[44].mxu1 %vm258_vm1, %v9568_v57  ;;  %v1271_v57 = vld [vmem:[%s11830_s0 + $0x178] sm:$0xff] }
  0xce   :  { %1501 = vmatpush1.bf16.msra.mxu1 %v6159_v27  ;;  %1528 = vmatprep.mubr.bf16.mxu1 %v9609_v6  ;;  %v6162_v59 = vcombine.high %v1269_v56, %v1271_v57  ;;  %v6161_v63 = vcombine.low %v1269_v56, %v1271_v57 }
  0xcf   :  { %1502 = vmatprep.subr.bf16.mxu1 %v6164_v28 }
  0xd2   :  { %1503 = vmatpush1.bf16.msra.mxu1 %v6163_v31 }
  0xd3   :  { %1504 = vmatprep.subr.bf16.mxu1 %v6168_v32 }
  0xd6   :  { %1505 = vmatpush1.bf16.msra.mxu1 %v6167_v35 }
  0xd7   :  { %1506 = vmatprep.subr.bf16.mxu1 %v6172_v36 }
  0xda   :  { %1507 = vmatpush1.bf16.msra.mxu1 %v6171_v39 }
  0xdb   :  { %1508 = vmatprep.subr.bf16.mxu1 %v6176_v40  ;;  %v10146_v40 = vpop.permute.xlu0 %95 }
  0xde   :  { %1509 = vmatpush1.bf16.msra.mxu1 %v6175_v42 }
  0xdf   :  { %6183 = vmatprep.subr.msk.bf16.mxu1 %vm265_vm0, %v6180_v43 }
  0xe2   :  { %1511 = vmatpush1.bf16.msra.mxu1 %v1485_v48 }
  0xe3   :  { %1549 = vmatprep.subr.bf16.mxu1 %v6154_v49 }
  0xe5   :  { %6184 = vmatmul.mubr.msk.bf16.vlgmr.msra.gmra.mrb[48].mxu1 %vm258_vm1, %v10084_v52 }
  0xe6   :  { %1550 = vmatpush1.bf16.msra.mxu1 %v6153_v53  ;;  %1538 = vmatprep.mubr.bf16.mxu1 %v9609_v6 }
  0xe7   :  { %1551 = vmatprep.subr.bf16.mxu1 %v6158_v54 }
  0xea   :  { %1552 = vmatpush1.bf16.msra.mxu1 %v6157_v58 }
  0xeb   :  { %1553 = vmatprep.subr.bf16.mxu1 %v6162_v59 }
  0xed   :  { %6185 = vmatmul.mubr.msk.bf16.gmra.mrb[52].mxu1 %vm258_vm1, %v10106_v62 }
  0xee   :  { %1554 = vmatpush1.bf16.msra.mxu1 %v6161_v63  ;;  %1581 = vmatprep.mubr.bf16.mxu1 %v9609_v6 }
  0xef   :  { %1555 = vmatprep.subr.bf16.mxu1 %v6166_v1 }
  0xf2   :  { %1556 = vmatpush1.bf16.msra.mxu1 %v6165_v4 }
  0xf3   :  { %1557 = vmatprep.subr.bf16.mxu1 %v6170_v5 }
  0xf6   :  { %1558 = vmatpush1.bf16.msra.mxu1 %v6169_v10 }
  0xf7   :  { %1559 = vmatprep.subr.bf16.mxu1 %v6174_v11 }
  0xf8   :  { %v312_v18 = vpop.f32.mrb[0].mxu1 }
  0xf9   :  { %v313_v19 = vadd.f32 %v312_v18, %v10133_v14  ;;  %v314_v20 = vpop.f32.mrb[1].mxu1 }
  0xfa   :  { %v315_v21 = vadd.f32 %v314_v20, %v10133_v14  ;;  %v316_v22 = vpop.f32.mrb[2].mxu1  ;;  %1560 = vmatpush1.bf16.msra.mxu1 %v6173_v15 }
  0xfb   :  { %vm384_vm2 = vcmp.gt.f32.partialorder %v313_v19, 0.0  ;;  %v400_v26 = vmul.f32 0.01, %v313_v19  ;;  %v317_v27 = vadd.f32 %v316_v22, %v10071_v47  ;;  %v318_v28 = vpop.f32.mrb[3].mxu1  ;;  %1561 = vmatprep.subr.bf16.mxu1 %v6178_v16 }
  0xfc   :  { %vm385_vm3 = vcmp.gt.f32.partialorder %v315_v21, 0.0  ;;  %v401_v30 = vmul.f32 0.01, %v315_v21  ;;  %v319_v31 = vadd.f32 %v318_v28, %v10071_v47  ;;  %v10165_v28 = vpop.permute.xlu1 %493 }
  0xfd   :  { %v416_v32 = vsel %vm384_vm2, %v313_v19, %v400_v26  ;;  %vm388_vm4 = vcmp.gt.f32.partialorder %v317_v27, 0.0  ;;  %v404_v33 = vmul.f32 0.01, %v317_v27 }
  0xfe   :  { %432 = vst [vmem:[#allocation2] sm:$0xff] %v416_v32  ;;  %v417_v34 = vsel %vm385_vm3, %v315_v21, %v401_v30  ;;  %vm389_vm5 = vcmp.gt.f32.partialorder %v319_v31, 0.0  ;;  %v405_v35 = vmul.f32 0.01, %v319_v31  ;;  %1562 = vmatpush1.bf16.msra.mxu1 %v6177_v23 }
  0xff   :  { %436 = vst [vmem:[#allocation2 + $0x20] sm:$0xff] %v417_v34  ;;  %v420_v36 = vsel %vm388_vm4, %v317_v27, %v404_v33  ;;  %6186 = vmatprep.subr.msk.bf16.mxu1 %vm265_vm0, %v6182_v24 }
 0x100   :  { %433 = vst [vmem:[#allocation2 + $0x8] sm:$0xff] %v420_v36  ;;  %v421_v38 = vsel %vm389_vm5, %v319_v31, %v405_v35  ;;  %v322_v39 = vpop.f32.mrb[4].mxu1 }
 0x101   :  { %437 = vst [vmem:[#allocation2 + $0x28] sm:$0xff] %v421_v38  ;;  %v323_v41 = vadd.f32 %v322_v39, %v10108_v0  ;;  %v324_v42 = vpop.f32.mrb[5].mxu1 }
 0x102   :  { %1564 = vmatpush1.bf16.msra.mxu1 %v1491_v37  ;;  %v325_v43 = vadd.f32 %v324_v42, %v10108_v0  ;;  %v326_v44 = vpop.f32.mrb[6].mxu1 }
 0x103   :  { %vm392_vm6 = vcmp.gt.f32.partialorder %v323_v41, 0.0  ;;  %v408_v45 = vmul.f32 0.01, %v323_v41  ;;  %v327_v46 = vadd.f32 %v326_v44, %v10146_v40  ;;  %v328_v48 = vpop.f32.mrb[7].mxu1 }
 0x104   :  { %vm393_vm7 = vcmp.gt.f32.partialorder %v325_v43, 0.0  ;;  %v409_v49 = vmul.f32 0.01, %v325_v43  ;;  %v329_v50 = vadd.f32 %v328_v48, %v10146_v40 }
 0x105   :  { %6187 = vmatmul.mubr.msk.bf16.vlgmr.msra.gmra.mrb[56].mxu1 %vm258_vm1, %v10084_v52  ;;  %v424_v51 = vsel %vm392_vm6, %v323_v41, %v408_v45  ;;  %vm396_vm8 = vcmp.gt.f32.partialorder %v327_v46, 0.0  ;;  %v412_v53 = vmul.f32 0.01, %v327_v46  ;;  %v10171_v45 = vpop.permute.xlu0 %503 }
 0x106   :  { %434 = vst [vmem:[#allocation2 + $0x10] sm:$0xff] %v424_v51  ;;  %1591 = vmatprep.mubr.bf16.mxu1 %v9609_v6  ;;  %v425_v54 = vsel %vm393_vm7, %v325_v43, %v409_v49  ;;  %vm397_vm9 = vcmp.gt.f32.partialorder %v329_v50, 0.0  ;;  %v413_v56 = vmul.f32 0.01, %v329_v50 }
 0x107   :  { %438 = vst [vmem:[#allocation2 + $0x30] sm:$0xff] %v425_v54  ;;  %v428_v57 = vsel %vm396_vm8, %v327_v46, %v412_v53 }
 0x108   :  { %435 = vst [vmem:[#allocation2 + $0x18] sm:$0xff] %v428_v57  ;;  %v429_v58 = vsel %vm397_vm9, %v329_v50, %v413_v56 }
 0x109   :  { %439 = vst [vmem:[#allocation2 + $0x38] sm:$0xff] %v429_v58 }
 0x10d   :  { %6188 = vmatmul.mubr.msk.bf16.gmra.mrb[60].mxu1 %vm258_vm1, %v10106_v62 }
 0x118   :  { %v365_v59 = vpop.f32.mrb[8].mxu1 }
 0x119   :  { %v366_v52 = vadd.f32 %v365_v59, %v10133_v14  ;;  %v367_v60 = vpop.f32.mrb[9].mxu1 }
 0x11a   :  { %v368_v61 = vadd.f32 %v367_v60, %v10133_v14  ;;  %v369_v63 = vpop.f32.mrb[10].mxu1 }
 0x11b   :  { %vm386_vm10 = vcmp.gt.f32.partialorder %v366_v52, 0.0  ;;  %v402_v6 = vmul.f32 0.01, %v366_v52  ;;  %v370_v1 = vadd.f32 %v369_v63, %v10071_v47  ;;  %v371_v2 = vpop.f32.mrb[11].mxu1  ;;  %v6189_v63 = vld [vmem:[%s11833_s3 + $0x80] sm:$0xff] }
 0x11c   :  { %vm387_vm11 = vcmp.gt.f32.partialorder %v368_v61, 0.0  ;;  %v403_v3 = vmul.f32 0.01, %v368_v61  ;;  %v372_v4 = vadd.f32 %v371_v2, %v10071_v47 }
 0x11d   :  { %v418_v5 = vsel %vm386_vm10, %v366_v52, %v402_v6  ;;  %vm390_vm12 = vcmp.gt.f32.partialorder %v370_v1, 0.0  ;;  %v406_v8 = vmul.f32 0.01, %v370_v1  ;;  %v6190_v6 = vld [vmem:[%s11833_s3 + $0x88] sm:$0xff] }
 0x11e   :  { %440 = vst [vmem:[#allocation2 + $0x40] sm:$0xff] %v418_v5  ;;  %v419_v62 = vsel %vm387_vm11, %v368_v61, %v403_v3  ;;  %vm391_vm13 = vcmp.gt.f32.partialorder %v372_v4, 0.0  ;;  %v407_v9 = vmul.f32 0.01, %v372_v4  ;;  %v8441_v2 = vpack.c.bf16 %v6190_v6, %v6189_v63  ;;  %v6365_v3 = vld [vmem:[%s11833_s3 + $0x600] sm:$0xff]  ;;  %v6376_v63 = vld [vmem:[%s11833_s3 + $0x658] sm:$0xff] }
 0x11f   :  { %444 = vst [vmem:[#allocation2 + $0x60] sm:$0xff] %v419_v62  ;;  %v422_v10 = vsel %vm390_vm12, %v370_v1, %v406_v8  ;;  %v6191_v8 = vld [vmem:[%s11833_s3 + $0x90] sm:$0xff]  ;;  %v6192_v62 = vld [vmem:[%s11833_s3 + $0x98] sm:$0xff] }
 0x120   :  { %441 = vst [vmem:[#allocation2 + $0x48] sm:$0xff] %v422_v10  ;;  %v423_v11 = vsel %vm391_vm13, %v372_v4, %v407_v9  ;;  %v375_v12 = vpop.f32.mrb[12].mxu1  ;;  %v6366_v4 = vld [vmem:[%s11833_s3 + $0x608] sm:$0xff]  ;;  %v6367_v9 = vld [vmem:[%s11833_s3 + $0x610] sm:$0xff]  ;;  %8442 = vmatprep.subr.bf16.mxu1 %v8441_v2  ;;  %v8445_v10 = vpack.c.bf16 %v6192_v62, %v6191_v8  ;;  %v6201_v8 = vld [vmem:[%s11833_s3 + $0xe0] sm:$0xff] }
 0x121   :  { %445 = vst [vmem:[#allocation2 + $0x68] sm:$0xff] %v423_v11  ;;  %v376_v13 = vadd.f32 %v375_v12, %v10108_v0  ;;  %v377_v14 = vpop.f32.mrb[13].mxu1  ;;  %v8825_v5 = vpack.c.bf16 %v6366_v4, %v6365_v3  ;;  %v6368_v11 = vld [vmem:[%s11833_s3 + $0x618] sm:$0xff]  ;;  %v6193_v12 = vld [vmem:[%s11833_s3 + $0xa0] sm:$0xff]  ;;  %8444 = vmatpush3.bf16.msra.mxu1 %v8441_v2  ;;  %v6202_v62 = vld [vmem:[%s11833_s3 + $0xe8] sm:$0xff] }
 0x122   :  { %v378_v15 = vadd.f32 %v377_v14, %v10108_v0  ;;  %v379_v16 = vpop.f32.mrb[14].mxu1  ;;  %v8829_v14 = vpack.c.bf16 %v6368_v11, %v6367_v9  ;;  %8446 = vmatprep.subr.bf16.mxu1 %v8445_v10  ;;  %v8465_v11 = vpack.c.bf16 %v6202_v62, %v6201_v8 }
 0x123   :  { %vm394_vm14 = vcmp.gt.f32.partialorder %v376_v13, 0.0  ;;  %v410_v47 = vmul.f32 0.01, %v376_v13  ;;  %v380_v17 = vadd.f32 %v379_v16, %v10146_v40  ;;  %v381_v18 = vpop.f32.mrb[15].mxu1  ;;  %8826 = vmatprep.subr.bf16.mxu0 %v8825_v5  ;;  %v6370_v16 = vld [vmem:[%s11833_s3 + $0x628] sm:$0xff] }
 0x124   :  { %vm395_vm15 = vcmp.gt.f32.partialorder %v378_v15, 0.0  ;;  %v411_v19 = vmul.f32 0.01, %v378_v15  ;;  %v382_v20 = vadd.f32 %v381_v18, %v10146_v40  ;;  %8828 = vmatpush3.bf16.msra.mxu0 %v8825_v5  ;;  %v6195_v18 = vld [vmem:[%s11833_s3 + $0xb0] sm:$0xff] }
 0x125   :  { %v426_v21 = vsel %vm394_vm14, %v376_v13, %v410_v47  ;;  %vm398_vm0 = vcmp.gt.f32.partialorder %v380_v17, 0.0  ;;  %v414_v22 = vmul.f32 0.01, %v380_v17  ;;  %v6194_v13 = vld [vmem:[%s11833_s3 + $0xa8] sm:$0xff]  ;;  %8830 = vmatprep.subr.bf16.mxu0 %v8829_v14  ;;  %8448 = vmatpush3.bf16.msra.mxu1 %v8445_v10 }
 0x126   :  { %442 = vst [vmem:[#allocation2 + $0x50] sm:$0xff] %v426_v21  ;;  %v427_v23 = vsel %vm395_vm15, %v378_v15, %v411_v19  ;;  %vm399_vm1 = vcmp.gt.f32.partialorder %v382_v20, 0.0  ;;  %v415_v24 = vmul.f32 0.01, %v382_v20  ;;  %v6369_v15 = vld [vmem:[%s11833_s3 + $0x620] sm:$0xff]  ;;  %v8449_v47 = vpack.c.bf16 %v6194_v13, %v6193_v12  ;;  %v6196_v19 = vld [vmem:[%s11833_s3 + $0xb8] sm:$0xff] }
 0x127   :  { %446 = vst [vmem:[#allocation2 + $0x70] sm:$0xff] %v427_v23  ;;  %v430_v26 = vsel %vm398_vm0, %v380_v17, %v414_v22  ;;  %v8833_v17 = vpack.c.bf16 %v6370_v16, %v6369_v15  ;;  %v6372_v21 = vld [vmem:[%s11833_s3 + $0x638] sm:$0xff]  ;;  %v8453_v22 = vpack.c.bf16 %v6196_v19, %v6195_v18  ;;  %v1714_v23 = vld [vmem:[#allocation2 + $0x1] ss:$32 sm:$0x1]  ;;  %v6378_v16 = vld [vmem:[%s11833_s3 + $0x668] sm:$0xff] }
 0x128   :  { %443 = vst [vmem:[#allocation2 + $0x58] sm:$0xff] %v430_v26  ;;  %v431_v0 = vsel %vm399_vm1, %v382_v20, %v415_v24  ;;  %v6371_v20 = vld [vmem:[%s11833_s3 + $0x630] sm:$0xff]  ;;  %8832 = vmatpush3.bf16.msra.mxu0 %v8829_v14  ;;  %8450 = vmatprep.subr.bf16.mxu1 %v8449_v47  ;;  %v1715_v24 = vld [vmem:[#allocation2 + $0x1] ss:$32 sm:$0x2] }
 0x129   :  { %447 = vst [vmem:[#allocation2 + $0x78] sm:$0xff] %v431_v0  ;;  %8834 = vmatprep.subr.bf16.mxu0 %v8833_v17  ;;  %v8837_v26 = vpack.c.bf16 %v6372_v21, %v6371_v20  ;;  %v3173_v0 = vld [vmem:[#allocation2 + $0xc] ss:$32 sm:$0x1]  ;;  %8452 = vmatpush3.bf16.msra.mxu1 %v8449_v47  ;;  %v6377_v15 = vld [vmem:[%s11833_s3 + $0x660] sm:$0xff] }
 0x12a   :  { %8454 = vmatprep.subr.bf16.mxu1 %v8453_v22  ;;  %v8849_v19 = vpack.c.bf16 %v6378_v16, %v6377_v15 }
 0x12c   :  { %8836 = vmatpush3.bf16.msra.mxu0 %v8833_v17 }
 0x12d   :  { %8838 = vmatprep.subr.bf16.mxu0 %v8837_v26  ;;  %8456 = vmatpush3.bf16.msra.mxu1 %v8453_v22 }
 0x130   :  { %8840 = vmatpush3.bf16.msra.mxu0 %v8837_v26 }
 0x138   :  { %v718_v27 = vpop.f32.mrb[16].mxu1 }
 0x139   :  { %v719_v29 = vadd.f32 %v718_v27, %v10140_v25  ;;  %v720_v30 = vpop.f32.mrb[17].mxu1  ;;  %v1717_v27 = vld [vmem:[#allocation2 + $0x1] ss:$32 sm:$0x4] }
 0x13a   :  { %v721_v31 = vadd.f32 %v720_v30, %v10140_v25  ;;  %v722_v32 = vpop.f32.mrb[18].mxu1  ;;  %v1716_v30 = vor.u32 %v1715_v24, %v1714_v23  ;;  %v6203_v23 = vld [vmem:[%s11833_s3 + $0xf0] sm:$0xff]  ;;  %v6204_v24 = vld [vmem:[%s11833_s3 + $0xf8] sm:$0xff] }
 0x13b   :  { %vm790_vm2 = vcmp.gt.f32.partialorder %v719_v29, 0.0  ;;  %v806_v33 = vmul.f32 0.01, %v719_v29  ;;  %v723_v34 = vadd.f32 %v722_v32, %v10165_v28  ;;  %v724_v35 = vpop.f32.mrb[19].mxu1 }
 0x13c   :  { %vm791_vm3 = vcmp.gt.f32.partialorder %v721_v31, 0.0  ;;  %v807_v36 = vmul.f32 0.01, %v721_v31  ;;  %v725_v37 = vadd.f32 %v724_v35, %v10165_v28  ;;  %v1718_v32 = vor.u32 %v1717_v27, %v1716_v30  ;;  %v6198_v35 = vld [vmem:[%s11833_s3 + $0xc8] sm:$0xff] }
 0x13d   :  { %v822_v38 = vsel %vm790_vm2, %v719_v29, %v806_v33  ;;  %vm794_vm4 = vcmp.gt.f32.partialorder %v723_v34, 0.0  ;;  %v810_v39 = vmul.f32 0.01, %v723_v34  ;;  %v3174_v29 = vld [vmem:[#allocation2 + $0xc] ss:$32 sm:$0x2] }
 0x13e   :  { %838 = vst [vmem:[#allocation2 + $0x80] sm:$0xff] %v822_v38  ;;  %v823_v40 = vsel %vm791_vm3, %v721_v31, %v807_v36  ;;  %vm795_vm5 = vcmp.gt.f32.partialorder %v725_v37, 0.0  ;;  %v811_v41 = vmul.f32 0.01, %v725_v37  ;;  %v3175_v33 = vor.u32 %v3174_v29, %v3173_v0 }
 0x13f   :  { %842 = vst [vmem:[#allocation2 + $0xa0] sm:$0xff] %v823_v40  ;;  %v826_v42 = vsel %vm794_vm4, %v723_v34, %v810_v39  ;;  %v3176_v31 = vld [vmem:[#allocation2 + $0xc] ss:$32 sm:$0x4]  ;;  %v6197_v34 = vld [vmem:[%s11833_s3 + $0xc0] sm:$0xff]  ;;  %v8469_v29 = vpack.c.bf16 %v6204_v24, %v6203_v23 }
 0x140   :  { %839 = vst [vmem:[#allocation2 + $0x88] sm:$0xff] %v826_v42  ;;  %v827_v43 = vsel %vm795_vm5, %v725_v37, %v811_v41  ;;  %v728_v44 = vpop.f32.mrb[20].mxu1  ;;  %v1719_v36 = vld [vmem:[#allocation2 + $0x1] ss:$32 sm:$0x8]  ;;  %v8457_v37 = vpack.c.bf16 %v6198_v35, %v6197_v34  ;;  %v3177_v39 = vor.u32 %v3176_v31, %v3175_v33  ;;  %v6374_v41 = vld [vmem:[%s11833_s3 + $0x648] sm:$0xff]  ;;  %v10275_v31 = vpop.permute.xlu1 %1305 }
 0x141   :  { %843 = vst [vmem:[#allocation2 + $0xa8] sm:$0xff] %v827_v43  ;;  %v729_v46 = vadd.f32 %v728_v44, %v10119_v7  ;;  %v730_v48 = vpop.f32.mrb[21].mxu1  ;;  %v6373_v40 = vld [vmem:[%s11833_s3 + $0x640] sm:$0xff]  ;;  %v3178_v44 = vld [vmem:[#allocation2 + $0xc] ss:$32 sm:$0x8] }
 0x142   :  { %v731_v49 = vadd.f32 %v730_v48, %v10119_v7  ;;  %v732_v50 = vpop.f32.mrb[22].mxu1  ;;  %8458 = vmatprep.subr.bf16.mxu1 %v8457_v37  ;;  %v6379_v33 = vld [vmem:[%s11833_s3 + $0x670] sm:$0xff]  ;;  %v6380_v34 = vld [vmem:[%s11833_s3 + $0x678] sm:$0xff] }
 0x143   :  { %vm798_vm6 = vcmp.gt.f32.partialorder %v729_v46, 0.0  ;;  %v814_v51 = vmul.f32 0.01, %v729_v46  ;;  %v733_v53 = vadd.f32 %v732_v50, %v10171_v45  ;;  %v734_v54 = vpop.f32.mrb[23].mxu1  ;;  %v1720_v50 = vor.u32 %v1719_v36, %v1718_v32  ;;  %8460 = vmatpush3.bf16.msra.mxu1 %v8457_v37 }
 0x144   :  { %vm799_vm7 = vcmp.gt.f32.partialorder %v731_v49, 0.0  ;;  %v815_v56 = vmul.f32 0.01, %v731_v49  ;;  %v735_v57 = vadd.f32 %v734_v54, %v10171_v45  ;;  %v6200_v54 = vld [vmem:[%s11833_s3 + $0xd8] sm:$0xff] }
 0x145   :  { %v830_v58 = vsel %vm798_vm6, %v729_v46, %v814_v51  ;;  %vm802_vm8 = vcmp.gt.f32.partialorder %v733_v53, 0.0  ;;  %v818_v59 = vmul.f32 0.01, %v733_v53  ;;  %v8841_v46 = vpack.c.bf16 %v6374_v41, %v6373_v40  ;;  %v1721_v51 = vld [vmem:[#allocation2 + $0x1] ss:$32 sm:$0x10] }
 0x146   :  { %840 = vst [vmem:[#allocation2 + $0x90] sm:$0xff] %v830_v58  ;;  %v831_v52 = vsel %vm799_vm7, %v731_v49, %v815_v56  ;;  %vm803_vm9 = vcmp.gt.f32.partialorder %v735_v57, 0.0  ;;  %v819_v60 = vmul.f32 0.01, %v735_v57  ;;  %v1722_v5 = vor.u32 %v1721_v51, %v1720_v50 }
 0x147   :  { %844 = vst [vmem:[#allocation2 + $0xb0] sm:$0xff] %v831_v52  ;;  %v834_v61 = vsel %vm802_vm8, %v733_v53, %v818_v59  ;;  %v6199_v53 = vld [vmem:[%s11833_s3 + $0xd0] sm:$0xff]  ;;  %8842 = vmatprep.subr.bf16.mxu0 %v8841_v46  ;;  %v3180_v2 = vld [vmem:[#allocation2 + $0xc] ss:$32 sm:$0x10] }
 0x148   :  { %841 = vst [vmem:[#allocation2 + $0x98] sm:$0xff] %v834_v61  ;;  %v835_v1 = vsel %vm803_vm9, %v735_v57, %v819_v60  ;;  %v8461_v59 = vpack.c.bf16 %v6200_v54, %v6199_v53  ;;  %v3179_v60 = vor.u32 %v3178_v44, %v3177_v39  ;;  %8844 = vmatpush3.bf16.msra.mxu0 %v8841_v46  ;;  %v6375_v61 = vld [vmem:[%s11833_s3 + $0x650] sm:$0xff]  ;;  %v1723_v10 = vld [vmem:[#allocation2 + $0x1] ss:$32 sm:$0x20]  ;;  %v1698_v46 = vld [vmem:[%s11833_s3 + $0x8] sm:$0xff] }
 0x149   :  { %845 = vst [vmem:[#allocation2 + $0xb8] sm:$0xff] %v835_v1  ;;  %v8845_v3 = vpack.c.bf16 %v6376_v63, %v6375_v61  ;;  %v3182_v18 = vld [vmem:[#allocation2 + $0xc] ss:$32 sm:$0x20]  ;;  %v1724_v22 = vor.u32 %v1723_v10, %v1722_v5  ;;  %v1697_v44 = vld [vmem:[%s11833_s3] sm:$0xff] }
 0x14a   :  { %8462 = vmatprep.subr.bf16.mxu1 %v8461_v59  ;;  %v3181_v14 = vor.u32 %v3180_v2, %v3179_v60  ;;  %v10289_v53 = vpack.c.bf16 %v1698_v46, %v1697_v44 }
 0x14b   :  { %8464 = vmatpush3.bf16.msra.mxu1 %v8461_v59  ;;  %8846 = vmatprep.subr.bf16.mxu0 %v8845_v3 }
 0x14c   :  { %8848 = vmatpush3.bf16.msra.mxu0 %v8845_v3  ;;  %8466 = vmatprep.subr.bf16.mxu1 %v8465_v11  ;;  %v3183_v32 = vor.u32 %v3182_v18, %v3181_v14 }
 0x14d   :  { %8850 = vmatprep.subr.bf16.mxu0 %v8849_v19 }
 0x14f   :  { %8468 = vmatpush3.bf16.msra.mxu1 %v8465_v11 }
 0x150   :  { %8852 = vmatpush3.bf16.msra.mxu0 %v8849_v19  ;;  %8470 = vmatprep.subr.bf16.mxu1 %v8469_v29 }
 0x153   :  { %8472 = vmatpush3.bf16.msra.mxu1 %v8469_v29 }
 0x154   :  { %8474 = vmatprep.subr.bf16.mxu1 %v10289_v53 }
 0x158   :  { %v771_v38 = vpop.f32.mrb[24].mxu1 }
 0x159   :  { %v772_v42 = vadd.f32 %v771_v38, %v10140_v25  ;;  %v773_v43 = vpop.f32.mrb[25].mxu1  ;;  %v8853_v38 = vpack.c.bf16 %v6380_v34, %v6379_v33 }
 0x15a   :  { %v774_v48 = vadd.f32 %v773_v43, %v10140_v25  ;;  %v775_v49 = vpop.f32.mrb[26].mxu1 }
 0x15b   :  { %vm792_vm10 = vcmp.gt.f32.partialorder %v772_v42, 0.0  ;;  %v808_v56 = vmul.f32 0.01, %v772_v42  ;;  %v776_v57 = vadd.f32 %v775_v49, %v10165_v28  ;;  %v777_v58 = vpop.f32.mrb[27].mxu1  ;;  %8854 = vmatprep.subr.bf16.mxu0 %v8853_v38 }
 0x15c   :  { %vm793_vm11 = vcmp.gt.f32.partialorder %v774_v48, 0.0  ;;  %v809_v25 = vmul.f32 0.01, %v774_v48  ;;  %v778_v52 = vadd.f32 %v777_v58, %v10165_v28  ;;  %8856 = vmatpush3.bf16.msra.mxu0 %v8853_v38  ;;  %v6382_v58 = vld [vmem:[%s11833_s3 + $0x688] sm:$0xff] }
 0x15d   :  { %v824_v6 = vsel %vm792_vm10, %v772_v42, %v808_v56  ;;  %vm796_vm12 = vcmp.gt.f32.partialorder %v776_v57, 0.0  ;;  %v812_v1 = vmul.f32 0.01, %v776_v57  ;;  %v10291_v56 = vpop.permute.xlu1 %904 }
 0x15e   :  { %846 = vst [vmem:[#allocation2 + $0xc0] sm:$0xff] %v824_v6  ;;  %v825_v4 = vsel %vm793_vm11, %v774_v48, %v809_v25  ;;  %vm797_vm13 = vcmp.gt.f32.partialorder %v778_v52, 0.0  ;;  %v813_v28 = vmul.f32 0.01, %v778_v52 }
 0x15f   :  { %850 = vst [vmem:[#allocation2 + $0xe0] sm:$0xff] %v825_v4  ;;  %v828_v9 = vsel %vm796_vm12, %v776_v57, %v812_v1  ;;  %v6381_v57 = vld [vmem:[%s11833_s3 + $0x680] sm:$0xff] }
 0x160   :  { %847 = vst [vmem:[#allocation2 + $0xc8] sm:$0xff] %v828_v9  ;;  %v829_v12 = vsel %vm797_vm13, %v778_v52, %v813_v28  ;;  %v781_v13 = vpop.f32.mrb[28].mxu1  ;;  %v10300_v59 = vpack.c.bf16 %v6382_v58, %v6381_v57 }
 0x161   :  { %851 = vst [vmem:[#allocation2 + $0xe8] sm:$0xff] %v829_v12  ;;  %v782_v47 = vadd.f32 %v781_v13, %v10119_v7  ;;  %v783_v17 = vpop.f32.mrb[29].mxu1  ;;  %v10303_v25 = vpop.permute.xlu1 %1310 }
 0x162   :  { %v784_v20 = vadd.f32 %v783_v17, %v10119_v7  ;;  %v785_v21 = vpop.f32.mrb[30].mxu1  ;;  %8858 = vmatprep.subr.bf16.mxu0 %v10300_v59 }
 0x163   :  { %vm800_vm14 = vcmp.gt.f32.partialorder %v782_v47, 0.0  ;;  %v816_v26 = vmul.f32 0.01, %v782_v47  ;;  %v786_v0 = vadd.f32 %v785_v21, %v10171_v45  ;;  %v787_v27 = vpop.f32.mrb[31].mxu1 }
 0x164   :  { %vm801_vm15 = vcmp.gt.f32.partialorder %v784_v20, 0.0  ;;  %v817_v7 = vmul.f32 0.01, %v784_v20  ;;  %v788_v30 = vadd.f32 %v787_v27, %v10171_v45 }
 0x165   :  { %v832_v35 = vsel %vm800_vm14, %v782_v47, %v816_v26  ;;  %vm804_vm0 = vcmp.gt.f32.partialorder %v786_v0, 0.0  ;;  %v820_v36 = vmul.f32 0.01, %v786_v0  ;;  %v1725_v37 = vld [vmem:[#allocation2 + $0x1] ss:$32 sm:$0x40]  ;;  %v895_v52 = vpop.permute.xlu1 %894 }
 0x166   :  { %848 = vst [vmem:[#allocation2 + $0xd0] sm:$0xff] %v832_v35  ;;  %v833_v45 = vsel %vm801_vm15, %v784_v20, %v817_v7  ;;  %vm805_vm1 = vcmp.gt.f32.partialorder %v788_v30, 0.0  ;;  %v821_v39 = vmul.f32 0.01, %v788_v30  ;;  %v1726_v40 = vor.u32 %v1725_v37, %v1724_v22 }
 0x167   :  { %v1727_v41 = vld [vmem:[#allocation2 + $0x1] ss:$32 sm:$0x80]  ;;  %852 = vst [vmem:[#allocation2 + $0xf0] sm:$0xff] %v833_v45  ;;  %v836_v42 = vsel %vm804_vm0, %v786_v0, %v820_v36 }
 0x168   :  { %v3184_v43 = vld [vmem:[#allocation2 + $0xc] ss:$32 sm:$0x40]  ;;  %849 = vst [vmem:[#allocation2 + $0xd8] sm:$0xff] %v836_v42  ;;  %v837_v48 = vsel %vm805_vm1, %v788_v30, %v821_v39  ;;  %v1728_v49 = vor.u32 %v1727_v41, %v1726_v40 }
 0x169   :  { %v3185_v50 = vor.u32 %v3184_v43, %v3183_v32  ;;  %v3186_v51 = vld [vmem:[#allocation2 + $0xc] ss:$32 sm:$0x80]  ;;  %853 = vst [vmem:[#allocation2 + $0xf8] sm:$0xff] %v837_v48  ;;  %v10305_v2 = vpop.permute.xlu1 %1300 }
 0x16a   :  { %7322 = vmatprep.mubr.f32.mxu1 %v1728_v49 }
 0x16b   :  { %v3187_v54 = vor.u32 %v3186_v51, %v3185_v50 }
 0x16d   :  { %7742 = vmatprep.mubr.f32.mxu0 %v3187_v54  ;;  %v910_v15 = vpop.permute.xlu1 %909 }
 0x178   :  { %v1124_v60 = vpop.f32.mrb[32].mxu1 }
 0x179   :  { %v1125_v61 = vadd.f32 %v1124_v60, %v895_v52  ;;  %v1126_v63 = vpop.f32.mrb[33].mxu1 }
 0x17a   :  { %v1127_v6 = vadd.f32 %v1126_v63, %v895_v52  ;;  %v1128_v1 = vpop.f32.mrb[34].mxu1 }
 0x17b   :  { %vm1196_vm2 = vcmp.gt.f32.partialorder %v1125_v61, 0.0  ;;  %v1212_v3 = vmul.f32 0.01, %v1125_v61  ;;  %v1129_v4 = vadd.f32 %v1128_v1, %v10086_v55  ;;  %v1130_v28 = vpop.f32.mrb[35].mxu1 }
 0x17c   :  { %vm1197_vm3 = vcmp.gt.f32.partialorder %v1127_v6, 0.0  ;;  %v1213_v5 = vmul.f32 0.01, %v1127_v6  ;;  %v1131_v8 = vadd.f32 %v1130_v28, %v10086_v55 }
 0x17d   :  { %v1228_v62 = vsel %vm1196_vm2, %v1125_v61, %v1212_v3  ;;  %vm1200_vm4 = vcmp.gt.f32.partialorder %v1129_v4, 0.0  ;;  %v1216_v9 = vmul.f32 0.01, %v1129_v4 }
 0x17e   :  { %1244 = vst [vmem:[#allocation2 + $0x100] sm:$0xff] %v1228_v62  ;;  %v1229_v10 = vsel %vm1197_vm3, %v1127_v6, %v1213_v5  ;;  %vm1201_vm5 = vcmp.gt.f32.partialorder %v1131_v8, 0.0  ;;  %v1217_v11 = vmul.f32 0.01, %v1131_v8 }
 0x17f   :  { %1248 = vst [vmem:[#allocation2 + $0x120] sm:$0xff] %v1229_v10  ;;  %v1232_v12 = vsel %vm1200_vm4, %v1129_v4, %v1216_v9 }
 0x180   :  { %1245 = vst [vmem:[#allocation2 + $0x108] sm:$0xff] %v1232_v12  ;;  %v1233_v13 = vsel %vm1201_vm5, %v1131_v8, %v1217_v11  ;;  %v1134_v14 = vpop.f32.mrb[36].mxu1 }
 0x181   :  { %1249 = vst [vmem:[#allocation2 + $0x128] sm:$0xff] %v1233_v13  ;;  %v1135_v16 = vadd.f32 %v1134_v14, %v10291_v56  ;;  %v1136_v47 = vpop.f32.mrb[37].mxu1 }
 0x182   :  { %v1137_v17 = vadd.f32 %v1136_v47, %v10291_v56  ;;  %v1138_v18 = vpop.f32.mrb[38].mxu1 }
 0x183   :  { %vm1204_vm6 = vcmp.gt.f32.partialorder %v1135_v16, 0.0  ;;  %v1220_v19 = vmul.f32 0.01, %v1135_v16  ;;  %v1139_v20 = vadd.f32 %v1138_v18, %v910_v15  ;;  %v1140_v21 = vpop.f32.mrb[39].mxu1 }
 0x184   :  { %vm1205_vm7 = vcmp.gt.f32.partialorder %v1137_v17, 0.0  ;;  %v1221_v22 = vmul.f32 0.01, %v1137_v17  ;;  %v1141_v23 = vadd.f32 %v1140_v21, %v910_v15 }
 0x185   :  { %v1236_v24 = vsel %vm1204_vm6, %v1135_v16, %v1220_v19  ;;  %vm1208_vm8 = vcmp.gt.f32.partialorder %v1139_v20, 0.0  ;;  %v1224_v26 = vmul.f32 0.01, %v1139_v20 }
 0x186   :  { %1246 = vst [vmem:[#allocation2 + $0x110] sm:$0xff] %v1236_v24  ;;  %v1237_v0 = vsel %vm1205_vm7, %v1137_v17, %v1221_v22  ;;  %vm1209_vm9 = vcmp.gt.f32.partialorder %v1141_v23, 0.0  ;;  %v1225_v27 = vmul.f32 0.01, %v1141_v23 }
 0x187   :  { %1250 = vst [vmem:[#allocation2 + $0x130] sm:$0xff] %v1237_v0  ;;  %v1240_v29 = vsel %vm1208_vm8, %v1139_v20, %v1224_v26  ;;  %v10319_v20 = vpop.permute.xlu1 %1315 }
 0x188   :  { %1247 = vst [vmem:[#allocation2 + $0x118] sm:$0xff] %v1240_v29  ;;  %v1241_v7 = vsel %vm1209_vm9, %v1141_v23, %v1225_v27 }
 0x189   :  { %1251 = vst [vmem:[#allocation2 + $0x138] sm:$0xff] %v1241_v7 }
 0x198   :  { %v1177_v30 = vpop.f32.mrb[40].mxu1 }
 0x199   :  { %v1178_v32 = vadd.f32 %v1177_v30, %v895_v52  ;;  %v1179_v33 = vpop.f32.mrb[41].mxu1 }
 0x19a   :  { %v1180_v34 = vadd.f32 %v1179_v33, %v895_v52  ;;  %v1181_v35 = vpop.f32.mrb[42].mxu1 }
 0x19b   :  { %vm1198_vm10 = vcmp.gt.f32.partialorder %v1178_v32, 0.0  ;;  %v1214_v36 = vmul.f32 0.01, %v1178_v32  ;;  %v1182_v37 = vadd.f32 %v1181_v35, %v10086_v55  ;;  %v1183_v38 = vpop.f32.mrb[43].mxu1 }
 0x19c   :  { %vm1199_vm11 = vcmp.gt.f32.partialorder %v1180_v34, 0.0  ;;  %v1215_v45 = vmul.f32 0.01, %v1180_v34  ;;  %v1184_v39 = vadd.f32 %v1183_v38, %v10086_v55  ;;  %v1667_v38 = vld [vmem:[#allocation2] ss:$32 sm:$0x2] }
 0x19d   :  { %v1230_v40 = vsel %vm1198_vm10, %v1178_v32, %v1214_v36  ;;  %vm1202_vm12 = vcmp.gt.f32.partialorder %v1182_v37, 0.0  ;;  %v1218_v41 = vmul.f32 0.01, %v1182_v37 }
 0x19e   :  { %1252 = vst [vmem:[#allocation2 + $0x140] sm:$0xff] %v1230_v40  ;;  %v1231_v42 = vsel %vm1199_vm11, %v1180_v34, %v1215_v45  ;;  %vm1203_vm13 = vcmp.gt.f32.partialorder %v1184_v39, 0.0  ;;  %v1219_v43 = vmul.f32 0.01, %v1184_v39 }
 0x19f   :  { %1256 = vst [vmem:[#allocation2 + $0x160] sm:$0xff] %v1231_v42  ;;  %v1234_v44 = vsel %vm1202_vm12, %v1182_v37, %v1218_v41  ;;  %v1666_v37 = vld [vmem:[#allocation2] ss:$32 sm:$0x1] }
 0x1a0   :  { %1253 = vst [vmem:[#allocation2 + $0x148] sm:$0xff] %v1234_v44  ;;  %v1235_v46 = vsel %vm1203_vm13, %v1184_v39, %v1219_v43  ;;  %v1187_v48 = vpop.f32.mrb[44].mxu1  ;;  %v3299_v45 = vld [vmem:[#allocation2 + $0xd] ss:$32 sm:$0x1]  ;;  %v1668_v42 = vor.u32 %v1667_v38, %v1666_v37 }
 0x1a1   :  { %1257 = vst [vmem:[#allocation2 + $0x168] sm:$0xff] %v1235_v46  ;;  %v1188_v49 = vadd.f32 %v1187_v48, %v10291_v56  ;;  %v1189_v50 = vpop.f32.mrb[45].mxu1  ;;  %v3300_v39 = vld [vmem:[#allocation2 + $0xd] ss:$32 sm:$0x2] }
 0x1a2   :  { %v1190_v51 = vadd.f32 %v1189_v50, %v10291_v56  ;;  %v1191_v54 = vpop.f32.mrb[46].mxu1  ;;  %v1669_v40 = vld [vmem:[#allocation2] ss:$32 sm:$0x4]  ;;  %v3301_v43 = vor.u32 %v3300_v39, %v3299_v45 }
 0x1a3   :  { %vm1206_vm14 = vcmp.gt.f32.partialorder %v1188_v49, 0.0  ;;  %v1222_v55 = vmul.f32 0.01, %v1188_v49  ;;  %v1192_v57 = vadd.f32 %v1191_v54, %v910_v15  ;;  %v1193_v58 = vpop.f32.mrb[47].mxu1  ;;  %v1670_v50 = vor.u32 %v1669_v40, %v1668_v42 }
 0x1a4   :  { %vm1207_vm15 = vcmp.gt.f32.partialorder %v1190_v51, 0.0  ;;  %v1223_v52 = vmul.f32 0.01, %v1190_v51  ;;  %v1194_v60 = vadd.f32 %v1193_v58, %v910_v15  ;;  %v3302_v41 = vld [vmem:[#allocation2 + $0xd] ss:$32 sm:$0x4] }
 0x1a5   :  { %v1238_v61 = vsel %vm1206_vm14, %v1188_v49, %v1222_v55  ;;  %vm1210_vm0 = vcmp.gt.f32.partialorder %v1192_v57, 0.0  ;;  %v1226_v63 = vmul.f32 0.01, %v1192_v57  ;;  %v1730_v44 = vld [vmem:[#allocation2 + $0x101] ss:$32 sm:$0x1]  ;;  %v3303_v55 = vor.u32 %v3302_v41, %v3301_v43 }
 0x1a6   :  { %1254 = vst [vmem:[#allocation2 + $0x150] sm:$0xff] %v1238_v61  ;;  %v1239_v6 = vsel %vm1207_vm15, %v1190_v51, %v1223_v52  ;;  %vm1211_vm1 = vcmp.gt.f32.partialorder %v1194_v60, 0.0  ;;  %v1227_v1 = vmul.f32 0.01, %v1194_v60 }
 0x1a7   :  { %1258 = vst [vmem:[#allocation2 + $0x170] sm:$0xff] %v1239_v6  ;;  %v1242_v3 = vsel %vm1210_vm0, %v1192_v57, %v1226_v63  ;;  %v1731_v46 = vld [vmem:[#allocation2 + $0x101] ss:$32 sm:$0x2] }
 0x1a8   :  { %1255 = vst [vmem:[#allocation2 + $0x158] sm:$0xff] %v1242_v3  ;;  %v1243_v4 = vsel %vm1211_vm1, %v1194_v60, %v1227_v1  ;;  %v1671_v48 = vld [vmem:[#allocation2] ss:$32 sm:$0x8]  ;;  %v1732_v60 = vor.u32 %v1731_v46, %v1730_v44 }
 0x1a9   :  { %1259 = vst [vmem:[#allocation2 + $0x178] sm:$0xff] %v1243_v4  ;;  %v3304_v49 = vld [vmem:[#allocation2 + $0xd] ss:$32 sm:$0x8] }
 0x1aa   :  { %v3189_v51 = vld [vmem:[#allocation2 + $0x10c] ss:$32 sm:$0x1]  ;;  %v1733_v57 = vld [vmem:[#allocation2 + $0x101] ss:$32 sm:$0x4] }
 0x1ab   :  { %v3190_v54 = vld [vmem:[#allocation2 + $0x10c] ss:$32 sm:$0x2]  ;;  %v1673_v58 = vld [vmem:[#allocation2] ss:$32 sm:$0x10] }
 0x1ac   :  { %v3192_v61 = vld [vmem:[#allocation2 + $0x10c] ss:$32 sm:$0x4]  ;;  %v3191_v1 = vor.u32 %v3190_v54, %v3189_v51  ;;  %v3306_v3 = vld [vmem:[#allocation2 + $0xd] ss:$32 sm:$0x10] }
 0x1ad   :  { %v3310_v40 = vld [vmem:[#allocation2 + $0xd] ss:$32 sm:$0x40]  ;;  %v1700_v51 = vld [vmem:[%s11833_s3 + $0x18] sm:$0xff] }
 0x1b8   :  { %v1530_v56 = vpop.f32.mrb[48].mxu1 }
 0x1b9   :  { %v1531_v28 = vadd.f32 %v1530_v56, %v10305_v2  ;;  %v1532_v5 = vpop.f32.mrb[49].mxu1 }
 0x1ba   :  { %v1533_v8 = vadd.f32 %v1532_v5, %v10305_v2  ;;  %v1534_v62 = vpop.f32.mrb[50].mxu1  ;;  %v1735_v5 = vld [vmem:[#allocation2 + $0x101] ss:$32 sm:$0x8] }
 0x1bb   :  { %vm1602_vm2 = vcmp.gt.f32.partialorder %v1531_v28, 0.0  ;;  %v1618_v9 = vmul.f32 0.01, %v1531_v28  ;;  %v1535_v10 = vadd.f32 %v1534_v62, %v10275_v31  ;;  %v1536_v11 = vpop.f32.mrb[51].mxu1  ;;  %v3305_v62 = vor.u32 %v3304_v49, %v3303_v55 }
 0x1bc   :  { %vm1603_vm3 = vcmp.gt.f32.partialorder %v1533_v8, 0.0  ;;  %v1619_v12 = vmul.f32 0.01, %v1533_v8  ;;  %v1537_v13 = vadd.f32 %v1536_v11, %v10275_v31 }
 0x1bd   :  { %v1634_v14 = vsel %vm1602_vm2, %v1531_v28, %v1618_v9  ;;  %vm1606_vm4 = vcmp.gt.f32.partialorder %v1535_v10, 0.0  ;;  %v1622_v15 = vmul.f32 0.01, %v1535_v10  ;;  %v1734_v28 = vor.u32 %v1733_v57, %v1732_v60 }
 0x1be   :  { %1650 = vst [vmem:[#allocation2 + $0x180] sm:$0xff] %v1634_v14  ;;  %v1635_v16 = vsel %vm1603_vm3, %v1533_v8, %v1619_v12  ;;  %vm1607_vm5 = vcmp.gt.f32.partialorder %v1537_v13, 0.0  ;;  %v1623_v47 = vmul.f32 0.01, %v1537_v13  ;;  %v1672_v8 = vor.u32 %v1671_v48, %v1670_v50 }
 0x1bf   :  { %1654 = vst [vmem:[#allocation2 + $0x1a0] sm:$0xff] %v1635_v16  ;;  %v1638_v17 = vsel %vm1606_vm4, %v1535_v10, %v1622_v15  ;;  %v3193_v12 = vor.u32 %v3192_v61, %v3191_v1  ;;  %v1675_v16 = vld [vmem:[#allocation2] ss:$32 sm:$0x20]  ;;  %vm5722_vm4 = vcmask 523264  }
 0x1c0   :  { %1651 = vst [vmem:[#allocation2 + $0x188] sm:$0xff] %v1638_v17  ;;  %v1639_v18 = vsel %vm1607_vm5, %v1537_v13, %v1623_v47  ;;  %v1540_v19 = vpop.f32.mrb[52].mxu1  ;;  %v1674_v15 = vor.u32 %v1673_v58, %v1672_v8  ;;  %v3194_v47 = vld [vmem:[#allocation2 + $0x10c] ss:$32 sm:$0x8] }
 0x1c1   :  { %1655 = vst [vmem:[#allocation2 + $0x1a8] sm:$0xff] %v1639_v18  ;;  %v1541_v21 = vadd.f32 %v1540_v19, %v10303_v25  ;;  %v1542_v22 = vpop.f32.mrb[53].mxu1  ;;  %v3307_v19 = vor.u32 %v3306_v3, %v3305_v62  ;;  %v1679_v50 = vld [vmem:[#allocation2] ss:$32 sm:$0x80]  ;;  %v6383_v3 = vld [vmem:[%s11833_s3 + $0x690] sm:$0xff] }
 0x1c2   :  { %v1543_v23 = vadd.f32 %v1542_v22, %v10303_v25  ;;  %v1544_v24 = vpop.f32.mrb[54].mxu1 }
 0x1c3   :  { %vm1610_vm6 = vcmp.gt.f32.partialorder %v1541_v21, 0.0  ;;  %v1626_v26 = vmul.f32 0.01, %v1541_v21  ;;  %v1545_v0 = vadd.f32 %v1544_v24, %v10319_v20  ;;  %v1546_v27 = vpop.f32.mrb[55].mxu1 }
 0x1c4   :  { %vm1611_vm7 = vcmp.gt.f32.partialorder %v1543_v23, 0.0  ;;  %v1627_v29 = vmul.f32 0.01, %v1543_v23  ;;  %v1547_v7 = vadd.f32 %v1546_v27, %v10319_v20  ;;  %v3308_v27 = vld [vmem:[#allocation2 + $0xd] ss:$32 sm:$0x20] }
 0x1c5   :  { %v1642_v30 = vsel %vm1610_vm6, %v1541_v21, %v1626_v26  ;;  %vm1614_vm8 = vcmp.gt.f32.partialorder %v1545_v0, 0.0  ;;  %v1630_v32 = vmul.f32 0.01, %v1545_v0  ;;  %v1737_v18 = vld [vmem:[#allocation2 + $0x101] ss:$32 sm:$0x10]  ;;  %v3309_v39 = vor.u32 %v3308_v27, %v3307_v19 }
 0x1c6   :  { %1652 = vst [vmem:[#allocation2 + $0x190] sm:$0xff] %v1642_v30  ;;  %v1643_v33 = vsel %vm1611_vm7, %v1543_v23, %v1627_v29  ;;  %vm1615_vm9 = vcmp.gt.f32.partialorder %v1547_v7, 0.0  ;;  %v1631_v34 = vmul.f32 0.01, %v1547_v7  ;;  %v1736_v23 = vor.u32 %v1735_v5, %v1734_v28  ;;  %v6387_v19 = vld [vmem:[%s11833_s3 + $0x6b0] sm:$0xff] }
 0x1c7   :  { %1656 = vst [vmem:[#allocation2 + $0x1b0] sm:$0xff] %v1643_v33  ;;  %v1646_v35 = vsel %vm1614_vm8, %v1545_v0, %v1630_v32  ;;  %v3196_v24 = vld [vmem:[#allocation2 + $0x10c] ss:$32 sm:$0x10]  ;;  %v3195_v0 = vor.u32 %v3194_v47, %v3193_v12  ;;  %v3311_v1 = vor.u32 %v3310_v40, %v3309_v39  ;;  %vm5819_vm7 = vcmask 130048  }
 0x1c8   :  { %1653 = vst [vmem:[#allocation2 + $0x198] sm:$0xff] %v1646_v35  ;;  %v1647_v36 = vsel %vm1615_vm9, %v1547_v7, %v1631_v34  ;;  %v1738_v7 = vor.u32 %v1737_v18, %v1736_v23  ;;  %v1677_v30 = vld [vmem:[#allocation2] ss:$32 sm:$0x40]  ;;  %v1676_v35 = vor.u32 %v1675_v16, %v1674_v15  ;;  %v1702_v12 = vld [vmem:[%s11833_s3 + $0x28] sm:$0xff] }
 0x1c9   :  { %1657 = vst [vmem:[#allocation2 + $0x1b8] sm:$0xff] %v1647_v36  ;;  %v1739_v34 = vld [vmem:[#allocation2 + $0x101] ss:$32 sm:$0x20]  ;;  %v3197_v36 = vor.u32 %v3196_v24, %v3195_v0  ;;  %v6386_v47 = vld [vmem:[%s11833_s3 + $0x6a8] sm:$0xff] }
 0x1ca   :  { %v3198_v45 = vld [vmem:[#allocation2 + $0x10c] ss:$32 sm:$0x20]  ;;  %v1678_v44 = vor.u32 %v1677_v30, %v1676_v35  ;;  %v1740_v49 = vor.u32 %v1739_v34, %v1738_v7  ;;  %v6385_v16 = vld [vmem:[%s11833_s3 + $0x6a0] sm:$0xff] }
 0x1cb   :  { %v3199_v58 = vor.u32 %v3198_v45, %v3197_v36  ;;  %v8865_v18 = vpack.c.bf16 %v6386_v47, %v6385_v16  ;;  %v1706_v23 = vld [vmem:[%s11833_s3 + $0x48] sm:$0xff]  ;;  %v1913_v27 = vld [vmem:[#allocation2 + $0x2] ss:$32 sm:$0x1] }
 0x1cc   :  { %v6390_v0 = vld [vmem:[%s11833_s3 + $0x6c8] sm:$0xff]  ;;  %v1683_v7 = vld [vmem:[#allocation2 + $0x100] ss:$32 sm:$0x2] }
 0x1cd   :  { %v3315_v34 = vld [vmem:[#allocation2 + $0x10d] ss:$32 sm:$0x1]  ;;  %v3425_v35 = vld [vmem:[#allocation2 + $0xe] ss:$32 sm:$0x1] }
 0x1ce   :  { %v1685_v36 = vld [vmem:[#allocation2 + $0x100] ss:$32 sm:$0x4]  ;;  %v1916_v39 = vld [vmem:[#allocation2 + $0x2] ss:$32 sm:$0x4] }
 0x1cf   :  { %v3426_v40 = vld [vmem:[#allocation2 + $0xe] ss:$32 sm:$0x2]  ;;  %v1691_v16 = vld [vmem:[#allocation2 + $0x100] ss:$32 sm:$0x20] }
 0x1d8   :  { %v1583_v52 = vpop.f32.mrb[56].mxu1 }
 0x1d9   :  { %v1584_v63 = vadd.f32 %v1583_v52, %v10305_v2  ;;  %v1585_v6 = vpop.f32.mrb[57].mxu1 }
 0x1da   :  { %v1586_v4 = vadd.f32 %v1585_v6, %v10305_v2  ;;  %v1587_v56 = vpop.f32.mrb[58].mxu1 }
 0x1db   :  { %vm1604_vm10 = vcmp.gt.f32.partialorder %v1584_v63, 0.0  ;;  %v1620_v9 = vmul.f32 0.01, %v1584_v63  ;;  %v1588_v10 = vadd.f32 %v1587_v56, %v10275_v31  ;;  %v1589_v11 = vpop.f32.mrb[59].mxu1 }
 0x1dc   :  { %vm1605_vm11 = vcmp.gt.f32.partialorder %v1586_v4, 0.0  ;;  %v1621_v13 = vmul.f32 0.01, %v1586_v4  ;;  %v1590_v14 = vadd.f32 %v1589_v11, %v10275_v31  ;;  %v1701_v11 = vld [vmem:[%s11833_s3 + $0x20] sm:$0xff] }
 0x1dd   :  { %v1636_v17 = vsel %vm1604_vm10, %v1584_v63, %v1620_v9  ;;  %vm1608_vm12 = vcmp.gt.f32.partialorder %v1588_v10, 0.0  ;;  %v1624_v2 = vmul.f32 0.01, %v1588_v10  ;;  %v3312_v9 = vld [vmem:[#allocation2 + $0xd] ss:$32 sm:$0x80] }
 0x1de   :  { %1658 = vst [vmem:[#allocation2 + $0x1c0] sm:$0xff] %v1636_v17  ;;  %v1637_v21 = vsel %vm1605_vm11, %v1586_v4, %v1621_v13  ;;  %vm1609_vm13 = vcmp.gt.f32.partialorder %v1590_v14, 0.0  ;;  %v1625_v22 = vmul.f32 0.01, %v1590_v14  ;;  %v6384_v4 = vld [vmem:[%s11833_s3 + $0x698] sm:$0xff]  ;;  %v3313_v15 = vor.u32 %v3312_v9, %v3311_v1 }
 0x1df   :  { %1662 = vst [vmem:[#allocation2 + $0x1e0] sm:$0xff] %v1637_v21  ;;  %v1640_v26 = vsel %vm1608_vm12, %v1588_v10, %v1624_v2  ;;  %v1680_v10 = vor.u32 %v1679_v50, %v1678_v44  ;;  %v8481_v17 = vpack.c.bf16 %v1702_v12, %v1701_v11  ;;  %v1704_v2 = vld [vmem:[%s11833_s3 + $0x38] sm:$0xff]  ;;  %v3318_v44 = vld [vmem:[#allocation2 + $0x10d] ss:$32 sm:$0x4]  ;;  %vm5915_vm10 = vcmask 64512  }
 0x1e0   :  { %1659 = vst [vmem:[#allocation2 + $0x1c8] sm:$0xff] %v1640_v26  ;;  %v1641_v31 = vsel %vm1609_vm13, %v1590_v14, %v1625_v22  ;;  %v1593_v29 = vpop.f32.mrb[60].mxu1  ;;  %v8861_v14 = vpack.c.bf16 %v6384_v4, %v6383_v3  ;;  %v1705_v22 = vld [vmem:[%s11833_s3 + $0x40] sm:$0xff]  ;;  %v3428_v50 = vld [vmem:[#allocation2 + $0xe] ss:$32 sm:$0x4] }
 0x1e1   :  { %1663 = vst [vmem:[#allocation2 + $0x1e8] sm:$0xff] %v1641_v31  ;;  %v1594_v32 = vadd.f32 %v1593_v29, %v10303_v25  ;;  %v1595_v33 = vpop.f32.mrb[61].mxu1  ;;  %v6389_v26 = vld [vmem:[%s11833_s3 + $0x6c0] sm:$0xff]  ;;  %v8489_v30 = vpack.c.bf16 %v1706_v23, %v1705_v22  ;;  %v3322_v9 = vld [vmem:[#allocation2 + $0x10d] ss:$32 sm:$0x10] }
 0x1e2   :  { %v1596_v37 = vadd.f32 %v1595_v33, %v10303_v25  ;;  %v1597_v38 = vpop.f32.mrb[62].mxu1  ;;  %v1699_v25 = vld [vmem:[%s11833_s3 + $0x10] sm:$0xff]  ;;  %v1914_v31 = vld [vmem:[#allocation2 + $0x2] ss:$32 sm:$0x2]  ;;  %v1708_v33 = vld [vmem:[%s11833_s3 + $0x58] sm:$0xff] }
 0x1e3   :  { %vm1612_vm14 = vcmp.gt.f32.partialorder %v1594_v32, 0.0  ;;  %v1628_v41 = vmul.f32 0.01, %v1594_v32  ;;  %v1598_v42 = vadd.f32 %v1597_v38, %v10319_v20  ;;  %v1599_v43 = vpop.f32.mrb[63].mxu1  ;;  %v8477_v62 = vpack.c.bf16 %v1700_v51, %v1699_v25  ;;  %v1709_v25 = vld [vmem:[%s11833_s3 + $0x60] sm:$0xff]  ;;  %v1710_v51 = vld [vmem:[%s11833_s3 + $0x68] sm:$0xff] }
 0x1e4   :  { %vm1613_vm15 = vcmp.gt.f32.partialorder %v1596_v37, 0.0  ;;  %v1629_v46 = vmul.f32 0.01, %v1596_v37  ;;  %v1600_v48 = vadd.f32 %v1599_v43, %v10319_v20  ;;  %v1682_v29 = vld [vmem:[#allocation2 + $0x100] ss:$32 sm:$0x1]  ;;  %v8873_v38 = vpack.c.bf16 %v6390_v0, %v6389_v26 }
 0x1e5   :  { %v1644_v54 = vsel %vm1612_vm14, %v1594_v32, %v1628_v41  ;;  %vm1616_vm0 = vcmp.gt.f32.partialorder %v1598_v42, 0.0  ;;  %v1632_v55 = vmul.f32 0.01, %v1598_v42  ;;  %v1741_v57 = vld [vmem:[#allocation2 + $0x101] ss:$32 sm:$0x40]  ;;  %v1684_v45 = vor.u32 %v1683_v7, %v1682_v29 }
 0x1e6   :  { %1660 = vst [vmem:[#allocation2 + $0x1d0] sm:$0xff] %v1644_v54  ;;  %v1645_v52 = vsel %vm1613_vm15, %v1596_v37, %v1629_v46  ;;  %vm1617_vm1 = vcmp.gt.f32.partialorder %v1600_v48, 0.0  ;;  %v1633_v60 = vmul.f32 0.01, %v1600_v48  ;;  %v1742_v20 = vor.u32 %v1741_v57, %v1740_v49  ;;  %v1707_v32 = vld [vmem:[%s11833_s3 + $0x50] sm:$0xff]  ;;  %v6397_v7 = vld [vmem:[%s11833_s3 + $0x700] sm:$0xff] }
 0x1e7   :  { %v1743_v61 = vld [vmem:[#allocation2 + $0x101] ss:$32 sm:$0x80]  ;;  %1664 = vst [vmem:[#allocation2 + $0x1f0] sm:$0xff] %v1645_v52  ;;  %v1648_v63 = vsel %vm1616_vm0, %v1598_v42, %v1632_v55  ;;  %v6391_v41 = vld [vmem:[%s11833_s3 + $0x6d0] sm:$0xff]  ;;  %v6392_v42 = vld [vmem:[%s11833_s3 + $0x6d8] sm:$0xff]  ;;  %v1915_v43 = vor.u32 %v1914_v31, %v1913_v27  ;;  %v8493_v46 = vpack.c.bf16 %v1708_v33, %v1707_v32  ;;  %v3427_v57 = vor.u32 %v3426_v40, %v3425_v35 }
 0x1e8   :  { %v3200_v6 = vld [vmem:[#allocation2 + $0x10c] ss:$32 sm:$0x40]  ;;  %1661 = vst [vmem:[#allocation2 + $0x1d8] sm:$0xff] %v1648_v63  ;;  %v1649_v56 = vsel %vm1617_vm1, %v1600_v48, %v1633_v60  ;;  %v1744_v28 = vor.u32 %v1743_v61, %v1742_v20  ;;  %v1686_v48 = vor.u32 %v1685_v36, %v1684_v45  ;;  %v6393_v52 = vld [vmem:[%s11833_s3 + $0x6e0] sm:$0xff]  ;;  %v8497_v3 = vpack.c.bf16 %v1710_v51, %v1709_v25  ;;  %v6207_v45 = vld [vmem:[%s11833_s3 + $0x110] sm:$0xff] }
 0x1e9   :  { %v3201_v5 = vor.u32 %v3200_v6, %v3199_v58  ;;  %v3202_v8 = vld [vmem:[#allocation2 + $0x10c] ss:$32 sm:$0x80]  ;;  %1665 = vst [vmem:[#allocation2 + $0x1f8] sm:$0xff] %v1649_v56  ;;  %v1917_v55 = vor.u32 %v1916_v39, %v1915_v43  ;;  %v8877_v58 = vpack.c.bf16 %v6392_v42, %v6391_v41  ;;  %v3429_v1 = vor.u32 %v3428_v50, %v3427_v57  ;;  %v6208_v39 = vld [vmem:[%s11833_s3 + $0x118] sm:$0xff] }
 0x1ea   :  { %7323 = vmatmul.mubr.f32.vlgmr.msra.gmra.mrb[64].mxu1 %v1744_v28  ;;  %v3316_v37 = vld [vmem:[#allocation2 + $0x10d] ss:$32 sm:$0x2]  ;;  %v1687_v54 = vld [vmem:[#allocation2 + $0x100] ss:$32 sm:$0x8]  ;;  %v8509_v25 = vpack.c.bf16 %v6208_v39, %v6207_v45 }
 0x1eb   :  { %v3203_v13 = vor.u32 %v3202_v8, %v3201_v5  ;;  %8476 = vmatpush3.bf16.msra.mxu1 %v10289_v53  ;;  %7357 = vmatprep.mubr.f32.mxu1 %v1680_v10  ;;  %v1703_v53 = vld [vmem:[%s11833_s3 + $0x30] sm:$0xff]  ;;  %v3317_v49 = vor.u32 %v3316_v37, %v3315_v34  ;;  %v6394_v60 = vld [vmem:[%s11833_s3 + $0x6e8] sm:$0xff]  ;;  %v1918_v20 = vld [vmem:[#allocation2 + $0x2] ss:$32 sm:$0x8]  ;;  %v1688_v4 = vor.u32 %v1687_v54, %v1686_v48 }
 0x1ec   :  { %8478 = vmatprep.subr.bf16.mxu1 %v8477_v62  ;;  %v8485_v21 = vpack.c.bf16 %v1704_v2, %v1703_v53  ;;  %v1689_v63 = vld [vmem:[#allocation2 + $0x100] ss:$32 sm:$0x10]  ;;  %v3320_v6 = vld [vmem:[#allocation2 + $0x10d] ss:$32 sm:$0x8]  ;;  %v8881_v10 = vpack.c.bf16 %v6394_v60, %v6393_v52 }
 0x1ed   :  { %7743 = vmatmul.mubr.f32.vlgmr.msra.gmra.mrb[0].mxu0 %v3203_v13  ;;  %v3319_v61 = vor.u32 %v3318_v44, %v3317_v49  ;;  %v1920_v56 = vld [vmem:[#allocation2 + $0x2] ss:$32 sm:$0x10]  ;;  %v3430_v28 = vld [vmem:[#allocation2 + $0xe] ss:$32 sm:$0x8]  ;;  %v1690_v11 = vor.u32 %v1689_v63, %v1688_v4 }
 0x1ee   :  { %8860 = vmatpush3.bf16.msra.mxu0 %v10300_v59  ;;  %7777 = vmatprep.mubr.f32.mxu0 %v3313_v15  ;;  %v6388_v59 = vld [vmem:[%s11833_s3 + $0x6b8] sm:$0xff]  ;;  %v1711_v5 = vld [vmem:[%s11833_s3 + $0x70] sm:$0xff]  ;;  %v3432_v13 = vld [vmem:[#allocation2 + $0xe] ss:$32 sm:$0x10] }
 0x1ef   :  { %8862 = vmatprep.subr.bf16.mxu0 %v8861_v14  ;;  %8480 = vmatpush3.bf16.msra.mxu1 %v8477_v62  ;;  %v8869_v24 = vpack.c.bf16 %v6388_v59, %v6387_v19  ;;  %v1712_v8 = vld [vmem:[%s11833_s3 + $0x78] sm:$0xff]  ;;  %v1919_v62 = vor.u32 %v1918_v20, %v1917_v55  ;;  %v3321_v12 = vor.u32 %v3320_v6, %v3319_v61  ;;  %v6205_v2 = vld [vmem:[%s11833_s3 + $0x100] sm:$0xff]  ;;  %v3324_v22 = vld [vmem:[#allocation2 + $0x10d] ss:$32 sm:$0x20] }
 0x1f0   :  { %8482 = vmatprep.subr.bf16.mxu1 %v8481_v17  ;;  %v6396_v15 = vld [vmem:[%s11833_s3 + $0x6f8] sm:$0xff]  ;;  %v8501_v53 = vpack.c.bf16 %v1712_v8, %v1711_v5  ;;  %v1922_v19 = vld [vmem:[#allocation2 + $0x2] ss:$32 sm:$0x20]  ;;  %v1692_v26 = vor.u32 %v1691_v16, %v1690_v11  ;;  %v6210_v55 = vld [vmem:[%s11833_s3 + $0x128] sm:$0xff] }
 0x1f1   :  { %v1921_v47 = vor.u32 %v1920_v56, %v1919_v62  ;;  %v3323_v59 = vor.u32 %v3322_v9, %v3321_v12  ;;  %v1924_v0 = vld [vmem:[#allocation2 + $0x2] ss:$32 sm:$0x40]  ;;  %v3434_v27 = vld [vmem:[#allocation2 + $0xe] ss:$32 sm:$0x20] }
 0x1f2   :  { %8864 = vmatpush3.bf16.msra.mxu0 %v8861_v14  ;;  %v6395_v14 = vld [vmem:[%s11833_s3 + $0x6f0] sm:$0xff]  ;;  %v3326_v29 = vld [vmem:[#allocation2 + $0x10d] ss:$32 sm:$0x40]  ;;  %v6400_v48 = vld [vmem:[%s11833_s3 + $0x718] sm:$0xff] }
 0x1f3   :  { %8866 = vmatprep.subr.bf16.mxu0 %v8865_v18  ;;  %8484 = vmatpush3.bf16.msra.mxu1 %v8481_v17  ;;  %v3431_v17 = vor.u32 %v3430_v28, %v3429_v1  ;;  %v1923_v31 = vor.u32 %v1922_v19, %v1921_v47  ;;  %v3325_v34 = vor.u32 %v3324_v22, %v3323_v59  ;;  %v3436_v35 = vld [vmem:[#allocation2 + $0xe] ss:$32 sm:$0x40]  ;;  %v1695_v36 = vld [vmem:[#allocation2 + $0x100] ss:$32 sm:$0x80] }
 0x1f4   :  { %8486 = vmatprep.subr.bf16.mxu1 %v8485_v21  ;;  %v1926_v40 = vld [vmem:[#allocation2 + $0x2] ss:$32 sm:$0x80]  ;;  %v3328_v43 = vld [vmem:[#allocation2 + $0x10d] ss:$32 sm:$0x80] }
 0x1f5   :  { %v3433_v23 = vor.u32 %v3432_v13, %v3431_v17  ;;  %v1925_v37 = vor.u32 %v1924_v0, %v1923_v31  ;;  %v3327_v41 = vor.u32 %v3326_v29, %v3325_v34  ;;  %v3438_v50 = vld [vmem:[#allocation2 + $0xe] ss:$32 sm:$0x80]  ;;  %v6209_v54 = vld [vmem:[%s11833_s3 + $0x120] sm:$0xff]  ;;  %v6211_v63 = vld [vmem:[%s11833_s3 + $0x130] sm:$0xff] }
 0x1f6   :  { %8868 = vmatpush3.bf16.msra.mxu0 %v8865_v18  ;;  %v6206_v18 = vld [vmem:[%s11833_s3 + $0x108] sm:$0xff]  ;;  %v6401_v60 = vld [vmem:[%s11833_s3 + $0x720] sm:$0xff]  ;;  %v8513_v61 = vpack.c.bf16 %v6210_v55, %v6209_v54  ;;  %v6212_v6 = vld [vmem:[%s11833_s3 + $0x138] sm:$0xff] }
 0x1f7   :  { %8870 = vmatprep.subr.bf16.mxu0 %v8869_v24  ;;  %8488 = vmatpush3.bf16.msra.mxu1 %v8485_v21  ;;  %v1693_v21 = vld [vmem:[#allocation2 + $0x100] ss:$32 sm:$0x40]  ;;  %v8505_v33 = vpack.c.bf16 %v6206_v18, %v6205_v2  ;;  %v1927_v51 = vor.u32 %v1926_v40, %v1925_v37  ;;  %v3329_v57 = vor.u32 %v3328_v43, %v3327_v41  ;;  %v6402_v20 = vld [vmem:[%s11833_s3 + $0x728] sm:$0xff]  ;;  %v6404_v4 = vld [vmem:[%s11833_s3 + $0x738] sm:$0xff] }
 0x1f8   :  { %8490 = vmatprep.subr.bf16.mxu1 %v8489_v30  ;;  %v1694_v32 = vor.u32 %v1693_v21, %v1692_v26  ;;  %v8897_v1 = vpack.c.bf16 %v6402_v20, %v6401_v60  ;;  %v8517_v56 = vpack.c.bf16 %v6212_v6, %v6211_v63  ;;  %v6213_v28 = vld [vmem:[%s11833_s3 + $0x140] sm:$0xff]  ;;  %v6214_v5 = vld [vmem:[%s11833_s3 + $0x148] sm:$0xff]  ;;  %v6215_v17 = vld [vmem:[%s11833_s3 + $0x150] sm:$0xff] }
 0x1f9   :  { %v1929_v62 = vld [vmem:[#allocation2 + $0x102] ss:$32 sm:$0x1]  ;;  %v2039_v9 = vld [vmem:[#allocation2 + $0x3] ss:$32 sm:$0x1] }
 0x1fa   :  { %8872 = vmatpush3.bf16.msra.mxu0 %v8869_v24  ;;  %v8885_v24 = vpack.c.bf16 %v6396_v15, %v6395_v14  ;;  %v1696_v49 = vor.u32 %v1695_v36, %v1694_v32  ;;  %v6405_v11 = vld [vmem:[%s11833_s3 + $0x740] sm:$0xff]  ;;  %v6406_v12 = vld [vmem:[%s11833_s3 + $0x748] sm:$0xff]  ;;  %v8521_v14 = vpack.c.bf16 %v6214_v5, %v6213_v28  ;;  %v6407_v22 = vld [vmem:[%s11833_s3 + $0x750] sm:$0xff] }
 0x1fb   :  { %8874 = vmatprep.subr.bf16.mxu0 %v8873_v38  ;;  %8492 = vmatpush3.bf16.msra.mxu1 %v8489_v30  ;;  %v6398_v30 = vld [vmem:[%s11833_s3 + $0x708] sm:$0xff]  ;;  %v1930_v13 = vld [vmem:[#allocation2 + $0x102] ss:$32 sm:$0x2]  ;;  %v8905_v18 = vpack.c.bf16 %v6406_v12, %v6405_v11 }
 0x1fc   :  { %8494 = vmatprep.subr.bf16.mxu1 %v8493_v46  ;;  %v8889_v42 = vpack.c.bf16 %v6398_v30, %v6397_v7  ;;  %v3441_v15 = vld [vmem:[#allocation2 + $0x10e] ss:$32 sm:$0x1]  ;;  %v3551_v47 = vld [vmem:[#allocation2 + $0xf] ss:$32 sm:$0x1]  ;;  %v1931_v19 = vor.u32 %v1930_v13, %v1929_v62 }
 0x1fd   :  { %v3442_v16 = vld [vmem:[#allocation2 + $0x10e] ss:$32 sm:$0x2]  ;;  %v1932_v2 = vld [vmem:[#allocation2 + $0x102] ss:$32 sm:$0x4] }
 0x1fe   :  { %8876 = vmatpush3.bf16.msra.mxu0 %v8873_v38  ;;  %v3435_v38 = vor.u32 %v3434_v27, %v3433_v23  ;;  %v2042_v59 = vld [vmem:[#allocation2 + $0x3] ss:$32 sm:$0x4]  ;;  %v3552_v21 = vld [vmem:[#allocation2 + $0xf] ss:$32 sm:$0x2]  ;;  %v1933_v27 = vor.u32 %v1932_v2, %v1931_v19  ;;  %v3443_v31 = vor.u32 %v3442_v16, %v3441_v15 }
 0x1ff   :  { %8878 = vmatprep.subr.bf16.mxu0 %v8877_v58  ;;  %8496 = vmatpush3.bf16.msra.mxu1 %v8493_v46  ;;  %v6399_v46 = vld [vmem:[%s11833_s3 + $0x710] sm:$0xff]  ;;  %v6408_v23 = vld [vmem:[%s11833_s3 + $0x758] sm:$0xff]  ;;  %v3444_v26 = vld [vmem:[#allocation2 + $0x10e] ss:$32 sm:$0x4]  ;;  %v3553_v34 = vor.u32 %v3552_v21, %v3551_v47 }
 0x200   :  { %8498 = vmatprep.subr.bf16.mxu1 %v8497_v3  ;;  %v3437_v44 = vor.u32 %v3436_v35, %v3435_v38  ;;  %v3554_v29 = vld [vmem:[#allocation2 + $0xf] ss:$32 sm:$0x4]  ;;  %v6217_v7 = vld [vmem:[%s11833_s3 + $0x160] sm:$0xff]  ;;  %v8909_v35 = vpack.c.bf16 %v6408_v23, %v6407_v22  ;;  %v3445_v45 = vor.u32 %v3444_v26, %v3443_v31  ;;  %v6223_v19 = vld [vmem:[%s11833_s3 + $0x190] sm:$0xff] }
 0x201   :  { %v6218_v30 = vld [vmem:[%s11833_s3 + $0x168] sm:$0xff]  ;;  %v1934_v32 = vld [vmem:[#allocation2 + $0x102] ss:$32 sm:$0x8]  ;;  %v3555_v41 = vor.u32 %v3554_v29, %v3553_v34 }
 0x202   :  { %8880 = vmatpush3.bf16.msra.mxu0 %v8877_v58  ;;  %v8893_v58 = vpack.c.bf16 %v6400_v48, %v6399_v46  ;;  %v3439_v52 = vor.u32 %v3438_v50, %v3437_v44  ;;  %v6409_v36 = vld [vmem:[%s11833_s3 + $0x760] sm:$0xff]  ;;  %v6410_v37 = vld [vmem:[%s11833_s3 + $0x768] sm:$0xff]  ;;  %v1935_v43 = vor.u32 %v1934_v32, %v1933_v27  ;;  %v6219_v48 = vld [vmem:[%s11833_s3 + $0x170] sm:$0xff] }
 0x203   :  { %8882 = vmatprep.subr.bf16.mxu0 %v8881_v10  ;;  %8500 = vmatpush3.bf16.msra.mxu1 %v8497_v3  ;;  %v6403_v3 = vld [vmem:[%s11833_s3 + $0x730] sm:$0xff]  ;;  %v2044_v38 = vld [vmem:[#allocation2 + $0x3] ss:$32 sm:$0x8]  ;;  %v6416_v27 = vld [vmem:[%s11833_s3 + $0x798] sm:$0xff] }
 0x204   :  { %8502 = vmatprep.subr.bf16.mxu1 %v8501_v53  ;;  %v8901_v8 = vpack.c.bf16 %v6404_v4, %v6403_v3  ;;  %v1936_v39 = vld [vmem:[#allocation2 + $0x102] ss:$32 sm:$0x10]  ;;  %v3446_v40 = vld [vmem:[#allocation2 + $0x10e] ss:$32 sm:$0x8] }
 0x205   :  { %v2046_v44 = vld [vmem:[#allocation2 + $0x3] ss:$32 sm:$0x10]  ;;  %v3556_v46 = vld [vmem:[#allocation2 + $0xf] ss:$32 sm:$0x8]  ;;  %v1937_v54 = vor.u32 %v1936_v39, %v1935_v43  ;;  %v3447_v55 = vor.u32 %v3446_v40, %v3445_v45 }
 0x206   :  { %8884 = vmatpush3.bf16.msra.mxu0 %v8881_v10  ;;  %v2040_v10 = vld [vmem:[#allocation2 + $0x3] ss:$32 sm:$0x2]  ;;  %v1938_v60 = vld [vmem:[#allocation2 + $0x102] ss:$32 sm:$0x20] }
 0x207   :  { %8886 = vmatprep.subr.bf16.mxu0 %v8885_v24  ;;  %8504 = vmatpush3.bf16.msra.mxu1 %v8501_v53  ;;  %v6216_v53 = vld [vmem:[%s11833_s3 + $0x158] sm:$0xff]  ;;  %v6221_v6 = vld [vmem:[%s11833_s3 + $0x180] sm:$0xff]  ;;  %v3450_v28 = vld [vmem:[#allocation2 + $0x10e] ss:$32 sm:$0x20]  ;;  %v1939_v62 = vor.u32 %v1938_v60, %v1937_v54 }
 0x208   :  { %8506 = vmatprep.subr.bf16.mxu1 %v8505_v33  ;;  %v8525_v0 = vpack.c.bf16 %v6216_v53, %v6215_v17  ;;  %v2048_v3 = vld [vmem:[#allocation2 + $0x3] ss:$32 sm:$0x20]  ;;  %v3452_v12 = vld [vmem:[#allocation2 + $0x10e] ss:$32 sm:$0x40] }
 0x209   :  { %v6413_v13 = vld [vmem:[%s11833_s3 + $0x780] sm:$0xff]  ;;  %v3562_v17 = vld [vmem:[#allocation2 + $0xf] ss:$32 sm:$0x40]  ;;  %v6227_v39 = vld [vmem:[%s11833_s3 + $0x1b0] sm:$0xff] }
 0x20a   :  { %8888 = vmatpush3.bf16.msra.mxu0 %v8885_v24  ;;  %7358 = vmatmul.mubr.f32.vlgmr.msra.gmra.mrb[64].mxu1 %v1696_v49  ;;  %v2041_v24 = vor.u32 %v2040_v10, %v2039_v9  ;;  %v6220_v49 = vld [vmem:[%s11833_s3 + $0x178] sm:$0xff]  ;;  %v2050_v9 = vld [vmem:[#allocation2 + $0x3] ss:$32 sm:$0x40] }
 0x20b   :  { %8890 = vmatprep.subr.bf16.mxu0 %v8889_v42  ;;  %8508 = vmatpush3.bf16.msra.mxu1 %v8505_v33  ;;  %v8533_v63 = vpack.c.bf16 %v6220_v49, %v6219_v48  ;;  %v3560_v10 = vld [vmem:[#allocation2 + $0xf] ss:$32 sm:$0x20]  ;;  %v1942_v53 = vld [vmem:[#allocation2 + $0x102] ss:$32 sm:$0x80] }
 0x20c   :  { %7392 = vmatprep.mubr.f32.mxu1 %v1927_v51  ;;  %8510 = vmatprep.subr.bf16.mxu1 %v8509_v25  ;;  %v2043_v33 = vor.u32 %v2042_v59, %v2041_v24  ;;  %v8913_v51 = vpack.c.bf16 %v6410_v37, %v6409_v36  ;;  %v6224_v59 = vld [vmem:[%s11833_s3 + $0x198] sm:$0xff]  ;;  %v2052_v21 = vld [vmem:[#allocation2 + $0x3] ss:$32 sm:$0x80]  ;;  %v6230_v48 = vld [vmem:[%s11833_s3 + $0x1c8] sm:$0xff] }
 0x20d   :  { %7778 = vmatmul.mubr.f32.vlgmr.msra.gmra.mrb[0].mxu0 %v3329_v57  ;;  %v3558_v57 = vld [vmem:[#allocation2 + $0xf] ss:$32 sm:$0x10]  ;;  %v3454_v24 = vld [vmem:[#allocation2 + $0x10e] ss:$32 sm:$0x80] }
 0x20e   :  { %8892 = vmatpush3.bf16.msra.mxu0 %v8889_v42  ;;  %7812 = vmatprep.mubr.f32.mxu0 %v3439_v52  ;;  %v8529_v42 = vpack.c.bf16 %v6218_v30, %v6217_v7  ;;  %v2045_v50 = vor.u32 %v2044_v38, %v2043_v33  ;;  %v6412_v52 = vld [vmem:[%s11833_s3 + $0x778] sm:$0xff]  ;;  %v3564_v29 = vld [vmem:[#allocation2 + $0xf] ss:$32 sm:$0x80]  ;;  %v8541_v7 = vpack.c.bf16 %v6224_v59, %v6223_v19  ;;  %v6225_v32 = vld [vmem:[%s11833_s3 + $0x1a0] sm:$0xff] }
 0x20f   :  { %8894 = vmatprep.subr.bf16.mxu0 %v8893_v58  ;;  %8512 = vmatpush3.bf16.msra.mxu1 %v8509_v25  ;;  %v3448_v25 = vld [vmem:[#allocation2 + $0x10e] ss:$32 sm:$0x10]  ;;  %v6417_v37 = vld [vmem:[%s11833_s3 + $0x7a0] sm:$0xff]  ;;  %v6228_v40 = vld [vmem:[%s11833_s3 + $0x1b8] sm:$0xff] }
 0x210   :  { %8514 = vmatprep.subr.bf16.mxu1 %v8513_v61  ;;  %v2047_v20 = vor.u32 %v2046_v44, %v2045_v50  ;;  %v3449_v4 = vor.u32 %v3448_v25, %v3447_v55  ;;  %v6226_v33 = vld [vmem:[%s11833_s3 + $0x1a8] sm:$0xff]  ;;  %v6420_v43 = vld [vmem:[%s11833_s3 + $0x7b8] sm:$0xff]  ;;  %v8549_v44 = vpack.c.bf16 %v6228_v40, %v6227_v39  ;;  %v2055_v50 = vld [vmem:[#allocation2 + $0x103] ss:$32 sm:$0x1] }
 0x211   :  { %v6418_v38 = vld [vmem:[%s11833_s3 + $0x7a8] sm:$0xff]  ;;  %v8545_v45 = vpack.c.bf16 %v6226_v33, %v6225_v32  ;;  %v2165_v25 = vld [vmem:[#allocation2 + $0x4] ss:$32 sm:$0x1] }
 0x212   :  { %8896 = vmatpush3.bf16.msra.mxu0 %v8893_v58  ;;  %v6411_v58 = vld [vmem:[%s11833_s3 + $0x770] sm:$0xff]  ;;  %v2049_v11 = vor.u32 %v2048_v3, %v2047_v20  ;;  %v3451_v47 = vor.u32 %v3450_v28, %v3449_v4  ;;  %v6421_v54 = vld [vmem:[%s11833_s3 + $0x7c0] sm:$0xff]  ;;  %v6422_v55 = vld [vmem:[%s11833_s3 + $0x7c8] sm:$0xff] }
 0x213   :  { %8898 = vmatprep.subr.bf16.mxu0 %v8897_v1  ;;  %8516 = vmatpush3.bf16.msra.mxu1 %v8513_v61  ;;  %v3557_v61 = vor.u32 %v3556_v46, %v3555_v41  ;;  %v8929_v41 = vpack.c.bf16 %v6418_v38, %v6417_v37  ;;  %v6229_v46 = vld [vmem:[%s11833_s3 + $0x1c0] sm:$0xff]  ;;  %v3568_v60 = vld [vmem:[#allocation2 + $0x10f] ss:$32 sm:$0x2]  ;;  %v6423_v28 = vld [vmem:[%s11833_s3 + $0x7d0] sm:$0xff] }
 0x214   :  { %8518 = vmatprep.subr.bf16.mxu1 %v8517_v56  ;;  %v2051_v2 = vor.u32 %v2050_v9, %v2049_v11  ;;  %v3453_v22 = vor.u32 %v3452_v12, %v3451_v47  ;;  %v3677_v20 = vld [vmem:[#allocation2 + $0x10] ss:$32 sm:$0x1]  ;;  %v2168_v4 = vld [vmem:[#allocation2 + $0x4] ss:$32 sm:$0x4] }
 0x215   :  { %v3559_v5 = vor.u32 %v3558_v57, %v3557_v61  ;;  %v2056_v57 = vld [vmem:[#allocation2 + $0x103] ss:$32 sm:$0x2]  ;;  %v6231_v61 = vld [vmem:[%s11833_s3 + $0x1d0] sm:$0xff]  ;;  %v6426_v59 = vld [vmem:[%s11833_s3 + $0x7e8] sm:$0xff] }
 0x216   :  { %8900 = vmatpush3.bf16.msra.mxu0 %v8897_v1  ;;  %v6222_v1 = vld [vmem:[%s11833_s3 + $0x188] sm:$0xff]  ;;  %v2053_v30 = vor.u32 %v2052_v21, %v2051_v2  ;;  %v3455_v34 = vor.u32 %v3454_v24, %v3453_v22  ;;  %v2057_v3 = vor.u32 %v2056_v57, %v2055_v50  ;;  %v3680_v12 = vld [vmem:[#allocation2 + $0x10] ss:$32 sm:$0x4]  ;;  %v6425_v19 = vld [vmem:[%s11833_s3 + $0x7e0] sm:$0xff] }
 0x217   :  { %8902 = vmatprep.subr.bf16.mxu0 %v8901_v8  ;;  %8520 = vmatpush3.bf16.msra.mxu1 %v8517_v56  ;;  %v1940_v56 = vld [vmem:[#allocation2 + $0x102] ss:$32 sm:$0x40]  ;;  %v8537_v16 = vpack.c.bf16 %v6222_v1, %v6221_v6  ;;  %v2058_v6 = vld [vmem:[#allocation2 + $0x103] ss:$32 sm:$0x4]  ;;  %v8937_v1 = vpack.c.bf16 %v6422_v55, %v6421_v54 }
 0x218   :  { %8522 = vmatprep.subr.bf16.mxu1 %v8521_v14  ;;  %v1941_v15 = vor.u32 %v1940_v56, %v1939_v62  ;;  %v3678_v56 = vld [vmem:[#allocation2 + $0x10] ss:$32 sm:$0x2]  ;;  %v3570_v62 = vld [vmem:[#allocation2 + $0x10f] ss:$32 sm:$0x4] }
 0x219   :  { %v3679_v47 = vor.u32 %v3678_v56, %v3677_v20  ;;  %v2062_v21 = vld [vmem:[#allocation2 + $0x103] ss:$32 sm:$0x10]  ;;  %v3578_v55 = vld [vmem:[#allocation2 + $0x10f] ss:$32 sm:$0x40] }
 0x21a   :  { %8904 = vmatpush3.bf16.msra.mxu0 %v8901_v8  ;;  %v8917_v8 = vpack.c.bf16 %v6412_v52, %v6411_v58  ;;  %v1943_v31 = vor.u32 %v1942_v53, %v1941_v15  ;;  %v8553_v58 = vpack.c.bf16 %v6230_v48, %v6229_v46  ;;  %v3567_v52 = vld [vmem:[#allocation2 + $0x10f] ss:$32 sm:$0x1]  ;;  %v2060_v15 = vld [vmem:[#allocation2 + $0x103] ss:$32 sm:$0x8] }
 0x21b   :  { %8906 = vmatprep.subr.bf16.mxu0 %v8905_v18  ;;  %8524 = vmatpush3.bf16.msra.mxu1 %v8521_v14  ;;  %v6414_v14 = vld [vmem:[%s11833_s3 + $0x788] sm:$0xff]  ;;  %v3569_v11 = vor.u32 %v3568_v60, %v3567_v52  ;;  %v2170_v53 = vld [vmem:[#allocation2 + $0x4] ss:$32 sm:$0x8]  ;;  %v3681_v22 = vor.u32 %v3680_v12, %v3679_v47 }
 0x21c   :  { %8526 = vmatprep.subr.bf16.mxu1 %v8525_v0  ;;  %v8921_v23 = vpack.c.bf16 %v6414_v14, %v6413_v13  ;;  %v6233_v13 = vld [vmem:[%s11833_s3 + $0x1e0] sm:$0xff]  ;;  %v6234_v14 = vld [vmem:[%s11833_s3 + $0x1e8] sm:$0xff]  ;;  %v3690_v12 = vld [vmem:[#allocation2 + $0x10] ss:$32 sm:$0x80] }
 0x21d   :  { %v3571_v2 = vor.u32 %v3570_v62, %v3569_v11  ;;  %v2064_v37 = vld [vmem:[#allocation2 + $0x103] ss:$32 sm:$0x20]  ;;  %v3576_v46 = vld [vmem:[#allocation2 + $0x10f] ss:$32 sm:$0x20] }
 0x21e   :  { %8908 = vmatpush3.bf16.msra.mxu0 %v8905_v18  ;;  %v3561_v18 = vor.u32 %v3560_v10, %v3559_v5  ;;  %v6424_v5 = vld [vmem:[%s11833_s3 + $0x7d8] sm:$0xff]  ;;  %v2059_v10 = vor.u32 %v2058_v6, %v2057_v3  ;;  %v6237_v40 = vld [vmem:[%s11833_s3 + $0x200] sm:$0xff]  ;;  %v6239_v3 = vld [vmem:[%s11833_s3 + $0x210] sm:$0xff] }
 0x21f   :  { %8910 = vmatprep.subr.bf16.mxu0 %v8909_v35  ;;  %8528 = vmatpush3.bf16.msra.mxu1 %v8525_v0  ;;  %v6415_v0 = vld [vmem:[%s11833_s3 + $0x790] sm:$0xff]  ;;  %v6429_v57 = vld [vmem:[%s11833_s3 + $0x800] sm:$0xff] }
 0x220   :  { %8530 = vmatprep.subr.bf16.mxu1 %v8529_v42  ;;  %v3563_v26 = vor.u32 %v3562_v17, %v3561_v18  ;;  %v8941_v17 = vpack.c.bf16 %v6424_v5, %v6423_v28  ;;  %v3572_v18 = vld [vmem:[#allocation2 + $0x10f] ss:$32 sm:$0x8]  ;;  %v2061_v24 = vor.u32 %v2060_v15, %v2059_v10  ;;  %v2178_v56 = vld [vmem:[#allocation2 + $0x4] ss:$32 sm:$0x80] }
 0x221   :  { %v3573_v33 = vor.u32 %v3572_v18, %v3571_v2  ;;  %v6432_v10 = vld [vmem:[%s11833_s3 + $0x818] sm:$0xff]  ;;  %v6241_v15 = vld [vmem:[%s11833_s3 + $0x220] sm:$0xff]  ;;  %v6434_v18 = vld [vmem:[%s11833_s3 + $0x828] sm:$0xff] }
 0x222   :  { %8912 = vmatpush3.bf16.msra.mxu0 %v8909_v35  ;;  %v8925_v35 = vpack.c.bf16 %v6416_v27, %v6415_v0  ;;  %v3565_v36 = vor.u32 %v3564_v29, %v3563_v26  ;;  %v2172_v26 = vld [vmem:[#allocation2 + $0x4] ss:$32 sm:$0x10]  ;;  %v3682_v0 = vld [vmem:[#allocation2 + $0x10] ss:$32 sm:$0x8]  ;;  %v2063_v32 = vor.u32 %v2062_v21, %v2061_v24 }
 0x223   :  { %8914 = vmatprep.subr.bf16.mxu0 %v8913_v51  ;;  %8532 = vmatpush3.bf16.msra.mxu1 %v8529_v42  ;;  %v6419_v42 = vld [vmem:[%s11833_s3 + $0x7b0] sm:$0xff]  ;;  %v6433_v2 = vld [vmem:[%s11833_s3 + $0x820] sm:$0xff]  ;;  %v6244_v21 = vld [vmem:[%s11833_s3 + $0x238] sm:$0xff] }
 0x224   :  { %8534 = vmatprep.subr.bf16.mxu1 %v8533_v63  ;;  %v8933_v49 = vpack.c.bf16 %v6420_v43, %v6419_v42  ;;  %v6235_v27 = vld [vmem:[%s11833_s3 + $0x1f0] sm:$0xff]  ;;  %v2174_v42 = vld [vmem:[#allocation2 + $0x4] ss:$32 sm:$0x20]  ;;  %v2065_v50 = vor.u32 %v2064_v37, %v2063_v32  ;;  %v6436_v24 = vld [vmem:[%s11833_s3 + $0x838] sm:$0xff] }
 0x225   :  { %v6437_v32 = vld [vmem:[%s11833_s3 + $0x840] sm:$0xff]  ;;  %v3694_v37 = vld [vmem:[#allocation2 + $0x110] ss:$32 sm:$0x2] }
 0x226   :  { %8916 = vmatpush3.bf16.msra.mxu0 %v8913_v51  ;;  %v2166_v51 = vld [vmem:[#allocation2 + $0x4] ss:$32 sm:$0x2] }
 0x227   :  { %8918 = vmatprep.subr.bf16.mxu0 %v8917_v8  ;;  %8536 = vmatpush3.bf16.msra.mxu1 %v8533_v63  ;;  %v6232_v63 = vld [vmem:[%s11833_s3 + $0x1d8] sm:$0xff] }
 0x228   :  { %8538 = vmatprep.subr.bf16.mxu1 %v8537_v16  ;;  %v8557_v9 = vpack.c.bf16 %v6232_v63, %v6231_v61  ;;  %v3688_v61 = vld [vmem:[#allocation2 + $0x10] ss:$32 sm:$0x40]  ;;  %v2068_v63 = vld [vmem:[#allocation2 + $0x103] ss:$32 sm:$0x80] }
 0x22a   :  { %8920 = vmatpush3.bf16.msra.mxu0 %v8917_v8  ;;  %7393 = vmatmul.mubr.f32.vlgmr.msra.gmra.mrb[64].mxu1 %v1943_v31  ;;  %v2167_v8 = vor.u32 %v2166_v51, %v2165_v25  ;;  %v6236_v31 = vld [vmem:[%s11833_s3 + $0x1f8] sm:$0xff]  ;;  %v2176_v25 = vld [vmem:[#allocation2 + $0x4] ss:$32 sm:$0x40] }
 0x22b   :  { %8922 = vmatprep.subr.bf16.mxu0 %v8921_v23  ;;  %8540 = vmatpush3.bf16.msra.mxu1 %v8537_v16  ;;  %v8565_v39 = vpack.c.bf16 %v6236_v31, %v6235_v27  ;;  %v3686_v51 = vld [vmem:[#allocation2 + $0x10] ss:$32 sm:$0x20]  ;;  %v6246_v27 = vld [vmem:[%s11833_s3 + $0x248] sm:$0xff] }
 0x22c   :  { %7427 = vmatprep.mubr.f32.mxu1 %v2053_v30  ;;  %8542 = vmatprep.subr.bf16.mxu1 %v8541_v7  ;;  %v2169_v16 = vor.u32 %v2168_v4, %v2167_v8  ;;  %v8945_v30 = vpack.c.bf16 %v6426_v59, %v6425_v19  ;;  %v6240_v4 = vld [vmem:[%s11833_s3 + $0x218] sm:$0xff]  ;;  %v3580_v8 = vld [vmem:[#allocation2 + $0x10f] ss:$32 sm:$0x80]  ;;  %v6243_v59 = vld [vmem:[%s11833_s3 + $0x230] sm:$0xff] }
 0x22d   :  { %7813 = vmatmul.mubr.f32.vlgmr.msra.gmra.mrb[0].mxu0 %v3455_v34  ;;  %v3684_v34 = vld [vmem:[#allocation2 + $0x10] ss:$32 sm:$0x10] }
 0x22e   :  { %8924 = vmatpush3.bf16.msra.mxu0 %v8921_v23  ;;  %7847 = vmatprep.mubr.f32.mxu0 %v3565_v36  ;;  %v8561_v23 = vpack.c.bf16 %v6234_v14, %v6233_v13  ;;  %v2171_v29 = vor.u32 %v2170_v53, %v2169_v16  ;;  %v6428_v36 = vld [vmem:[%s11833_s3 + $0x7f8] sm:$0xff]  ;;  %v8573_v13 = vpack.c.bf16 %v6240_v4, %v6239_v3  ;;  %v6242_v16 = vld [vmem:[%s11833_s3 + $0x228] sm:$0xff]  ;;  %v6441_v3 = vld [vmem:[%s11833_s3 + $0x860] sm:$0xff] }
 0x22f   :  { %8926 = vmatprep.subr.bf16.mxu0 %v8925_v35  ;;  %8544 = vmatpush3.bf16.msra.mxu1 %v8541_v7  ;;  %v3574_v7 = vld [vmem:[#allocation2 + $0x10f] ss:$32 sm:$0x10]  ;;  %v8577_v19 = vpack.c.bf16 %v6242_v16, %v6241_v15 }
 0x230   :  { %8546 = vmatprep.subr.bf16.mxu1 %v8545_v45  ;;  %v2173_v38 = vor.u32 %v2172_v26, %v2171_v29  ;;  %v3575_v43 = vor.u32 %v3574_v7, %v3573_v33  ;;  %v8581_v26 = vpack.c.bf16 %v6244_v21, %v6243_v59  ;;  %v2181_v29 = vld [vmem:[#allocation2 + $0x104] ss:$32 sm:$0x1]  ;;  %v2291_v7 = vld [vmem:[#allocation2 + $0x5] ss:$32 sm:$0x1] }
 0x231   :  { %v6438_v33 = vld [vmem:[%s11833_s3 + $0x848] sm:$0xff]  ;;  %v2300_v21 = vld [vmem:[#allocation2 + $0x5] ss:$32 sm:$0x20] }
 0x232   :  { %8928 = vmatpush3.bf16.msra.mxu0 %v8925_v35  ;;  %v6427_v35 = vld [vmem:[%s11833_s3 + $0x7f0] sm:$0xff]  ;;  %v2175_v54 = vor.u32 %v2174_v42, %v2173_v38  ;;  %v3577_v20 = vor.u32 %v3576_v46, %v3575_v43  ;;  %v2294_v43 = vld [vmem:[#allocation2 + $0x5] ss:$32 sm:$0x4]  ;;  %v6442_v4 = vld [vmem:[%s11833_s3 + $0x868] sm:$0xff] }
 0x233   :  { %8930 = vmatprep.subr.bf16.mxu0 %v8929_v41  ;;  %8548 = vmatpush3.bf16.msra.mxu1 %v8545_v45  ;;  %v3683_v45 = vor.u32 %v3682_v0, %v3681_v22  ;;  %v8961_v22 = vpack.c.bf16 %v6434_v18, %v6433_v2  ;;  %v6245_v0 = vld [vmem:[%s11833_s3 + $0x240] sm:$0xff]  ;;  %v3803_v38 = vld [vmem:[#allocation2 + $0x11] ss:$32 sm:$0x1] }
 0x234   :  { %8550 = vmatprep.subr.bf16.mxu1 %v8549_v44  ;;  %v2177_v6 = vor.u32 %v2176_v25, %v2175_v54  ;;  %v3579_v28 = vor.u32 %v3578_v55, %v3577_v20  ;;  %v6439_v46 = vld [vmem:[%s11833_s3 + $0x850] sm:$0xff]  ;;  %v2190_v2 = vld [vmem:[#allocation2 + $0x104] ss:$32 sm:$0x20] }
 0x235   :  { %v3685_v48 = vor.u32 %v3684_v34, %v3683_v45  ;;  %v2182_v34 = vld [vmem:[#allocation2 + $0x104] ss:$32 sm:$0x2]  ;;  %v6247_v45 = vld [vmem:[%s11833_s3 + $0x250] sm:$0xff] }
 0x236   :  { %8932 = vmatpush3.bf16.msra.mxu0 %v8929_v41  ;;  %v6238_v41 = vld [vmem:[%s11833_s3 + $0x208] sm:$0xff]  ;;  %v2179_v14 = vor.u32 %v2178_v56, %v2177_v6  ;;  %v3581_v47 = vor.u32 %v3580_v8, %v3579_v28  ;;  %v2183_v42 = vor.u32 %v2182_v34, %v2181_v29  ;;  %v3806_v55 = vld [vmem:[#allocation2 + $0x11] ss:$32 sm:$0x4]  ;;  %v6445_v34 = vld [vmem:[%s11833_s3 + $0x880] sm:$0xff] }
 0x237   :  { %8934 = vmatprep.subr.bf16.mxu0 %v8933_v49  ;;  %8552 = vmatpush3.bf16.msra.mxu1 %v8549_v44  ;;  %v2066_v44 = vld [vmem:[#allocation2 + $0x103] ss:$32 sm:$0x40]  ;;  %v8569_v60 = vpack.c.bf16 %v6238_v41, %v6237_v40  ;;  %v2184_v40 = vld [vmem:[#allocation2 + $0x104] ss:$32 sm:$0x4]  ;;  %v8969_v41 = vpack.c.bf16 %v6438_v33, %v6437_v32 }
 0x238   :  { %8554 = vmatprep.subr.bf16.mxu1 %v8553_v58  ;;  %v2067_v52 = vor.u32 %v2066_v44, %v2065_v50  ;;  %v3804_v44 = vld [vmem:[#allocation2 + $0x11] ss:$32 sm:$0x2]  ;;  %v3696_v50 = vld [vmem:[#allocation2 + $0x110] ss:$32 sm:$0x4] }
 0x239   :  { %v3805_v20 = vor.u32 %v3804_v44, %v3803_v38  ;;  %v2188_v56 = vld [vmem:[#allocation2 + $0x104] ss:$32 sm:$0x10]  ;;  %v3704_v33 = vld [vmem:[#allocation2 + $0x110] ss:$32 sm:$0x40] }
 0x23a   :  { %8936 = vmatpush3.bf16.msra.mxu0 %v8933_v49  ;;  %v8949_v49 = vpack.c.bf16 %v6428_v36, %v6427_v35  ;;  %v2069_v11 = vor.u32 %v2068_v63, %v2067_v52  ;;  %v8585_v35 = vpack.c.bf16 %v6246_v27, %v6245_v0  ;;  %v3693_v36 = vld [vmem:[#allocation2 + $0x110] ss:$32 sm:$0x1]  ;;  %v2186_v52 = vld [vmem:[#allocation2 + $0x104] ss:$32 sm:$0x8] }
 0x23b   :  { %8938 = vmatprep.subr.bf16.mxu0 %v8937_v1  ;;  %8556 = vmatpush3.bf16.msra.mxu1 %v8553_v58  ;;  %v6430_v58 = vld [vmem:[%s11833_s3 + $0x808] sm:$0xff]  ;;  %v3695_v54 = vor.u32 %v3694_v37, %v3693_v36  ;;  %v2296_v63 = vld [vmem:[#allocation2 + $0x5] ss:$32 sm:$0x8]  ;;  %v3807_v28 = vor.u32 %v3806_v55, %v3805_v20 }
 0x23c   :  { %8558 = vmatprep.subr.bf16.mxu1 %v8557_v9  ;;  %v8953_v5 = vpack.c.bf16 %v6430_v58, %v6429_v57  ;;  %v6249_v57 = vld [vmem:[%s11833_s3 + $0x260] sm:$0xff]  ;;  %v6250_v58 = vld [vmem:[%s11833_s3 + $0x268] sm:$0xff]  ;;  %v3816_v55 = vld [vmem:[#allocation2 + $0x11] ss:$32 sm:$0x80] }
 0x23d   :  { %v3697_v6 = vor.u32 %v3696_v50, %v3695_v54  ;;  %v6254_v0 = vld [vmem:[%s11833_s3 + $0x288] sm:$0xff]  ;;  %v2304_v44 = vld [vmem:[#allocation2 + $0x5] ss:$32 sm:$0x80] }
 0x23e   :  { %8940 = vmatpush3.bf16.msra.mxu0 %v8937_v1  ;;  %v3687_v1 = vor.u32 %v3686_v51, %v3685_v48  ;;  %v6440_v48 = vld [vmem:[%s11833_s3 + $0x858] sm:$0xff]  ;;  %v2185_v51 = vor.u32 %v2184_v40, %v2183_v42  ;;  %v6255_v42 = vld [vmem:[%s11833_s3 + $0x290] sm:$0xff] }
 0x23f   :  { %8942 = vmatprep.subr.bf16.mxu0 %v8941_v17  ;;  %8560 = vmatpush3.bf16.msra.mxu1 %v8557_v9  ;;  %v6431_v9 = vld [vmem:[%s11833_s3 + $0x810] sm:$0xff] }
 0x240   :  { %8562 = vmatprep.subr.bf16.mxu1 %v8561_v23  ;;  %v3689_v62 = vor.u32 %v3688_v61, %v3687_v1  ;;  %v8973_v61 = vpack.c.bf16 %v6440_v48, %v6439_v46  ;;  %v3698_v1 = vld [vmem:[#allocation2 + $0x110] ss:$32 sm:$0x8]  ;;  %v2187_v8 = vor.u32 %v2186_v52, %v2185_v51  ;;  %v6448_v51 = vld [vmem:[%s11833_s3 + $0x898] sm:$0xff]  ;;  %v6257_v52 = vld [vmem:[%s11833_s3 + $0x2a0] sm:$0xff] }
 0x241   :  { %v3699_v16 = vor.u32 %v3698_v1, %v3697_v6  ;;  %v6449_v6 = vld [vmem:[%s11833_s3 + $0x8a0] sm:$0xff]  ;;  %v6450_v1 = vld [vmem:[%s11833_s3 + $0x8a8] sm:$0xff] }
 0x242   :  { %8944 = vmatpush3.bf16.msra.mxu0 %v8941_v17  ;;  %v8957_v17 = vpack.c.bf16 %v6432_v10, %v6431_v9  ;;  %v3691_v53 = vor.u32 %v3690_v12, %v3689_v62  ;;  %v2298_v62 = vld [vmem:[#allocation2 + $0x5] ss:$32 sm:$0x10]  ;;  %v3808_v9 = vld [vmem:[#allocation2 + $0x11] ss:$32 sm:$0x8]  ;;  %v2189_v15 = vor.u32 %v2188_v56, %v2187_v8 }
 0x243   :  { %8946 = vmatprep.subr.bf16.mxu0 %v8945_v30  ;;  %8564 = vmatpush3.bf16.msra.mxu1 %v8561_v23  ;;  %v6435_v23 = vld [vmem:[%s11833_s3 + $0x830] sm:$0xff]  ;;  %v6260_v56 = vld [vmem:[%s11833_s3 + $0x2b8] sm:$0xff] }
 0x244   :  { %8566 = vmatprep.subr.bf16.mxu1 %v8565_v39  ;;  %v8965_v31 = vpack.c.bf16 %v6436_v24, %v6435_v23  ;;  %v6251_v10 = vld [vmem:[%s11833_s3 + $0x270] sm:$0xff]  ;;  %v2192_v24 = vld [vmem:[#allocation2 + $0x104] ss:$32 sm:$0x40]  ;;  %v2191_v29 = vor.u32 %v2190_v2, %v2189_v15  ;;  %v6452_v8 = vld [vmem:[%s11833_s3 + $0x8b8] sm:$0xff] }
 0x245   :  { %v3702_v23 = vld [vmem:[#allocation2 + $0x110] ss:$32 sm:$0x20]  ;;  %v6453_v15 = vld [vmem:[%s11833_s3 + $0x8c0] sm:$0xff] }
 0x246   :  { %8948 = vmatpush3.bf16.msra.mxu0 %v8945_v30  ;;  %v2292_v30 = vld [vmem:[#allocation2 + $0x5] ss:$32 sm:$0x2]  ;;  %v2193_v36 = vor.u32 %v2192_v24, %v2191_v29  ;;  %v3820_v2 = vld [vmem:[#allocation2 + $0x111] ss:$32 sm:$0x2] }
 0x247   :  { %8950 = vmatprep.subr.bf16.mxu0 %v8949_v49  ;;  %8568 = vmatpush3.bf16.msra.mxu1 %v8565_v39  ;;  %v6248_v39 = vld [vmem:[%s11833_s3 + $0x258] sm:$0xff]  ;;  %v2420_v24 = vld [vmem:[#allocation2 + $0x6] ss:$32 sm:$0x4] }
 0x248   :  { %8570 = vmatprep.subr.bf16.mxu1 %v8569_v60  ;;  %v8589_v25 = vpack.c.bf16 %v6248_v39, %v6247_v45  ;;  %v3814_v45 = vld [vmem:[#allocation2 + $0x11] ss:$32 sm:$0x40]  ;;  %v2194_v39 = vld [vmem:[#allocation2 + $0x104] ss:$32 sm:$0x80] }
 0x249   :  { %v2195_v54 = vor.u32 %v2194_v39, %v2193_v36  ;;  %v3822_v29 = vld [vmem:[#allocation2 + $0x111] ss:$32 sm:$0x4]  ;;  %v2312_v36 = vld [vmem:[#allocation2 + $0x105] ss:$32 sm:$0x8] }
 0x24a   :  { %8952 = vmatpush3.bf16.msra.mxu0 %v8949_v49  ;;  %7428 = vmatmul.mubr.f32.vlgmr.msra.gmra.mrb[64].mxu1 %v2069_v11  ;;  %v2293_v49 = vor.u32 %v2292_v30, %v2291_v7  ;;  %v6252_v11 = vld [vmem:[%s11833_s3 + $0x278] sm:$0xff]  ;;  %v2302_v7 = vld [vmem:[#allocation2 + $0x5] ss:$32 sm:$0x40] }
 0x24b   :  { %8954 = vmatprep.subr.bf16.mxu0 %v8953_v5  ;;  %8572 = vmatpush3.bf16.msra.mxu1 %v8569_v60  ;;  %v8597_v59 = vpack.c.bf16 %v6252_v11, %v6251_v10  ;;  %v3812_v30 = vld [vmem:[#allocation2 + $0x11] ss:$32 sm:$0x20]  ;;  %v6262_v10 = vld [vmem:[%s11833_s3 + $0x2c8] sm:$0xff] }
 0x24c   :  { %7462 = vmatprep.mubr.f32.mxu1 %v2179_v14  ;;  %8574 = vmatprep.subr.bf16.mxu1 %v8573_v13  ;;  %v2295_v60 = vor.u32 %v2294_v43, %v2293_v49  ;;  %v8977_v14 = vpack.c.bf16 %v6442_v4, %v6441_v3  ;;  %v6256_v43 = vld [vmem:[%s11833_s3 + $0x298] sm:$0xff]  ;;  %v3706_v49 = vld [vmem:[#allocation2 + $0x110] ss:$32 sm:$0x80] }
 0x24d   :  { %7848 = vmatmul.mubr.f32.vlgmr.msra.gmra.mrb[0].mxu0 %v3581_v47  ;;  %v3810_v47 = vld [vmem:[#allocation2 + $0x11] ss:$32 sm:$0x10]  ;;  %v2422_v39 = vld [vmem:[#allocation2 + $0x6] ss:$32 sm:$0x8] }
 0x24e   :  { %8956 = vmatpush3.bf16.msra.mxu0 %v8953_v5  ;;  %7882 = vmatprep.mubr.f32.mxu0 %v3691_v53  ;;  %v8593_v5 = vpack.c.bf16 %v6250_v58, %v6249_v57  ;;  %v2297_v12 = vor.u32 %v2296_v63, %v2295_v60  ;;  %v6444_v53 = vld [vmem:[%s11833_s3 + $0x878] sm:$0xff]  ;;  %v8605_v57 = vpack.c.bf16 %v6256_v43, %v6255_v42  ;;  %v6258_v60 = vld [vmem:[%s11833_s3 + $0x2a8] sm:$0xff]  ;;  %v6259_v4 = vld [vmem:[%s11833_s3 + $0x2b0] sm:$0xff] }
 0x24f   :  { %8958 = vmatprep.subr.bf16.mxu0 %v8957_v17  ;;  %8576 = vmatpush3.bf16.msra.mxu1 %v8573_v13  ;;  %v3700_v13 = vld [vmem:[#allocation2 + $0x110] ss:$32 sm:$0x10]  ;;  %v8609_v3 = vpack.c.bf16 %v6258_v60, %v6257_v52  ;;  %v6457_v42 = vld [vmem:[%s11833_s3 + $0x8e0] sm:$0xff]  ;;  %v6458_v43 = vld [vmem:[%s11833_s3 + $0x8e8] sm:$0xff] }
 0x250   :  { %8578 = vmatprep.subr.bf16.mxu1 %v8577_v19  ;;  %v2299_v18 = vor.u32 %v2298_v62, %v2297_v12  ;;  %v8613_v62 = vpack.c.bf16 %v6260_v56, %v6259_v4  ;;  %v2307_v12 = vld [vmem:[#allocation2 + $0x105] ss:$32 sm:$0x1]  ;;  %v2426_v56 = vld [vmem:[#allocation2 + $0x6] ss:$32 sm:$0x20] }
 0x252   :  { %8960 = vmatpush3.bf16.msra.mxu0 %v8957_v17  ;;  %v6443_v17 = vld [vmem:[%s11833_s3 + $0x870] sm:$0xff]  ;;  %v2301_v32 = vor.u32 %v2300_v21, %v2299_v18  ;;  %v2310_v21 = vld [vmem:[#allocation2 + $0x105] ss:$32 sm:$0x4] }
 0x253   :  { %8962 = vmatprep.subr.bf16.mxu0 %v8961_v22  ;;  %8580 = vmatpush3.bf16.msra.mxu1 %v8577_v19  ;;  %v3809_v19 = vor.u32 %v3808_v9, %v3807_v28  ;;  %v8993_v28 = vpack.c.bf16 %v6450_v1, %v6449_v6  ;;  %v6261_v9 = vld [vmem:[%s11833_s3 + $0x2c0] sm:$0xff]  ;;  %v3929_v18 = vld [vmem:[#allocation2 + $0x12] ss:$32 sm:$0x1] }
 0x254   :  { %8582 = vmatprep.subr.bf16.mxu1 %v8581_v26  ;;  %v2303_v40 = vor.u32 %v2302_v7, %v2301_v32  ;;  %v2316_v6 = vld [vmem:[#allocation2 + $0x105] ss:$32 sm:$0x20] }
 0x255   :  { %v3811_v27 = vor.u32 %v3810_v47, %v3809_v19  ;;  %v2308_v47 = vld [vmem:[#allocation2 + $0x105] ss:$32 sm:$0x2]  ;;  %v6263_v19 = vld [vmem:[%s11833_s3 + $0x2d0] sm:$0xff] }
 0x256   :  { %8964 = vmatpush3.bf16.msra.mxu0 %v8961_v22  ;;  %v3701_v22 = vor.u32 %v3700_v13, %v3699_v16  ;;  %v2305_v58 = vor.u32 %v2304_v44, %v2303_v40  ;;  %v2417_v13 = vld [vmem:[#allocation2 + $0x6] ss:$32 sm:$0x1]  ;;  %v6454_v16 = vld [vmem:[%s11833_s3 + $0x8c8] sm:$0xff] }
 0x257   :  { %8966 = vmatprep.subr.bf16.mxu0 %v8965_v31  ;;  %8584 = vmatpush3.bf16.msra.mxu1 %v8581_v26  ;;  %v6253_v26 = vld [vmem:[%s11833_s3 + $0x280] sm:$0xff] }
 0x258   :  { %8586 = vmatprep.subr.bf16.mxu1 %v8585_v35  ;;  %v8601_v37 = vpack.c.bf16 %v6254_v0, %v6253_v26  ;;  %v3703_v38 = vor.u32 %v3702_v23, %v3701_v22  ;;  %v9001_v22 = vpack.c.bf16 %v6454_v16, %v6453_v15  ;;  %v2309_v23 = vor.u32 %v2308_v47, %v2307_v12  ;;  %v3930_v26 = vld [vmem:[#allocation2 + $0x12] ss:$32 sm:$0x2]  ;;  %v2314_v44 = vld [vmem:[#allocation2 + $0x105] ss:$32 sm:$0x10] }
 0x259   :  { %v6455_v0 = vld [vmem:[%s11833_s3 + $0x8d0] sm:$0xff]  ;;  %v6461_v47 = vld [vmem:[%s11833_s3 + $0x900] sm:$0xff] }
 0x25a   :  { %8968 = vmatpush3.bf16.msra.mxu0 %v8965_v31  ;;  %v8981_v31 = vpack.c.bf16 %v6444_v53, %v6443_v17  ;;  %v3705_v46 = vor.u32 %v3704_v33, %v3703_v38  ;;  %v8617_v17 = vpack.c.bf16 %v6262_v10, %v6261_v9  ;;  %v3819_v53 = vld [vmem:[#allocation2 + $0x111] ss:$32 sm:$0x1]  ;;  %v3932_v33 = vld [vmem:[#allocation2 + $0x12] ss:$32 sm:$0x4]  ;;  %v3931_v38 = vor.u32 %v3930_v26, %v3929_v18 }
 0x25b   :  { %8970 = vmatprep.subr.bf16.mxu0 %v8969_v41  ;;  %8588 = vmatpush3.bf16.msra.mxu1 %v8585_v35  ;;  %v6446_v35 = vld [vmem:[%s11833_s3 + $0x888] sm:$0xff]  ;;  %v3821_v32 = vor.u32 %v3820_v2, %v3819_v53  ;;  %v3830_v16 = vld [vmem:[#allocation2 + $0x111] ss:$32 sm:$0x40] }
 0x25c   :  { %8590 = vmatprep.subr.bf16.mxu1 %v8589_v25  ;;  %v8985_v48 = vpack.c.bf16 %v6446_v35, %v6445_v34  ;;  %v3707_v20 = vor.u32 %v3706_v49, %v3705_v46  ;;  %v6265_v34 = vld [vmem:[%s11833_s3 + $0x2e0] sm:$0xff]  ;;  %v6266_v35 = vld [vmem:[%s11833_s3 + $0x2e8] sm:$0xff]  ;;  %v3933_v46 = vor.u32 %v3932_v33, %v3931_v38  ;;  %v3942_v33 = vld [vmem:[#allocation2 + $0x12] ss:$32 sm:$0x80] }
 0x25d   :  { %v3823_v40 = vor.u32 %v3822_v29, %v3821_v32  ;;  %v6270_v9 = vld [vmem:[%s11833_s3 + $0x308] sm:$0xff]  ;;  %v2430_v26 = vld [vmem:[#allocation2 + $0x6] ss:$32 sm:$0x80] }
 0x25e   :  { %8972 = vmatpush3.bf16.msra.mxu0 %v8969_v41  ;;  %v3813_v41 = vor.u32 %v3812_v30, %v3811_v27  ;;  %v6456_v27 = vld [vmem:[%s11833_s3 + $0x8d8] sm:$0xff]  ;;  %v2311_v30 = vor.u32 %v2310_v21, %v2309_v23  ;;  %v6271_v23 = vld [vmem:[%s11833_s3 + $0x310] sm:$0xff] }
 0x25f   :  { %8974 = vmatprep.subr.bf16.mxu0 %v8973_v61  ;;  %8592 = vmatpush3.bf16.msra.mxu1 %v8589_v25  ;;  %v6447_v25 = vld [vmem:[%s11833_s3 + $0x890] sm:$0xff] }
 0x260   :  { %8594 = vmatprep.subr.bf16.mxu1 %v8593_v5  ;;  %v3815_v50 = vor.u32 %v3814_v45, %v3813_v41  ;;  %v9005_v45 = vpack.c.bf16 %v6456_v27, %v6455_v0  ;;  %v3824_v41 = vld [vmem:[#allocation2 + $0x111] ss:$32 sm:$0x8]  ;;  %v2313_v49 = vor.u32 %v2312_v36, %v2311_v30  ;;  %v6464_v30 = vld [vmem:[%s11833_s3 + $0x918] sm:$0xff]  ;;  %v6273_v36 = vld [vmem:[%s11833_s3 + $0x320] sm:$0xff] }
 0x261   :  { %v3825_v60 = vor.u32 %v3824_v41, %v3823_v40  ;;  %v6465_v40 = vld [vmem:[%s11833_s3 + $0x920] sm:$0xff]  ;;  %v6466_v41 = vld [vmem:[%s11833_s3 + $0x928] sm:$0xff] }
 0x262   :  { %8976 = vmatpush3.bf16.msra.mxu0 %v8973_v61  ;;  %v8989_v61 = vpack.c.bf16 %v6448_v51, %v6447_v25  ;;  %v3817_v63 = vor.u32 %v3816_v55, %v3815_v50  ;;  %v2424_v50 = vld [vmem:[#allocation2 + $0x6] ss:$32 sm:$0x10]  ;;  %v3934_v25 = vld [vmem:[#allocation2 + $0x12] ss:$32 sm:$0x8]  ;;  %v2315_v52 = vor.u32 %v2314_v44, %v2313_v49 }
 0x263   :  { %8978 = vmatprep.subr.bf16.mxu0 %v8977_v14  ;;  %8596 = vmatpush3.bf16.msra.mxu1 %v8593_v5  ;;  %v6451_v5 = vld [vmem:[%s11833_s3 + $0x8b0] sm:$0xff]  ;;  %v6276_v44 = vld [vmem:[%s11833_s3 + $0x338] sm:$0xff] }
 0x264   :  { %8598 = vmatprep.subr.bf16.mxu1 %v8597_v59  ;;  %v8997_v11 = vpack.c.bf16 %v6452_v8, %v6451_v5  ;;  %v6267_v51 = vld [vmem:[%s11833_s3 + $0x2f0] sm:$0xff]  ;;  %v2318_v8 = vld [vmem:[#allocation2 + $0x105] ss:$32 sm:$0x40]  ;;  %v2317_v12 = vor.u32 %v2316_v6, %v2315_v52  ;;  %v6468_v49 = vld [vmem:[%s11833_s3 + $0x938] sm:$0xff] }
 0x265   :  { %v3828_v5 = vld [vmem:[#allocation2 + $0x111] ss:$32 sm:$0x20]  ;;  %v6469_v52 = vld [vmem:[%s11833_s3 + $0x940] sm:$0xff] }
 0x266   :  { %8980 = vmatpush3.bf16.msra.mxu0 %v8977_v14  ;;  %v2418_v14 = vld [vmem:[#allocation2 + $0x6] ss:$32 sm:$0x2]  ;;  %v2319_v53 = vor.u32 %v2318_v8, %v2317_v12  ;;  %v3946_v6 = vld [vmem:[#allocation2 + $0x112] ss:$32 sm:$0x2] }
 0x267   :  { %8982 = vmatprep.subr.bf16.mxu0 %v8981_v31  ;;  %8600 = vmatpush3.bf16.msra.mxu1 %v8597_v59  ;;  %v6264_v59 = vld [vmem:[%s11833_s3 + $0x2d8] sm:$0xff]  ;;  %v2546_v8 = vld [vmem:[#allocation2 + $0x7] ss:$32 sm:$0x4] }
 0x268   :  { %8602 = vmatprep.subr.bf16.mxu1 %v8601_v37  ;;  %v8621_v7 = vpack.c.bf16 %v6264_v59, %v6263_v19  ;;  %v3940_v19 = vld [vmem:[#allocation2 + $0x12] ss:$32 sm:$0x40]  ;;  %v2320_v59 = vld [vmem:[#allocation2 + $0x105] ss:$32 sm:$0x80] }
 0x269   :  { %v2321_v32 = vor.u32 %v2320_v59, %v2319_v53  ;;  %v3948_v12 = vld [vmem:[#allocation2 + $0x112] ss:$32 sm:$0x4]  ;;  %v2438_v53 = vld [vmem:[#allocation2 + $0x106] ss:$32 sm:$0x8] }
 0x26a   :  { %8984 = vmatpush3.bf16.msra.mxu0 %v8981_v31  ;;  %7463 = vmatmul.mubr.f32.vlgmr.msra.gmra.mrb[64].mxu1 %v2195_v54  ;;  %v2419_v31 = vor.u32 %v2418_v14, %v2417_v13  ;;  %v6268_v54 = vld [vmem:[%s11833_s3 + $0x2f8] sm:$0xff]  ;;  %v2428_v13 = vld [vmem:[#allocation2 + $0x6] ss:$32 sm:$0x40] }
 0x26b   :  { %8986 = vmatprep.subr.bf16.mxu0 %v8985_v48  ;;  %8604 = vmatpush3.bf16.msra.mxu1 %v8601_v37  ;;  %v8629_v4 = vpack.c.bf16 %v6268_v54, %v6267_v51  ;;  %v3938_v14 = vld [vmem:[#allocation2 + $0x12] ss:$32 sm:$0x20]  ;;  %v6278_v51 = vld [vmem:[%s11833_s3 + $0x348] sm:$0xff] }
 0x26c   :  { %7497 = vmatprep.mubr.f32.mxu1 %v2305_v58  ;;  %8606 = vmatprep.subr.bf16.mxu1 %v8605_v57  ;;  %v2421_v37 = vor.u32 %v2420_v24, %v2419_v31  ;;  %v9009_v58 = vpack.c.bf16 %v6458_v43, %v6457_v42  ;;  %v6272_v24 = vld [vmem:[%s11833_s3 + $0x318] sm:$0xff]  ;;  %v3832_v31 = vld [vmem:[#allocation2 + $0x111] ss:$32 sm:$0x80] }
 0x26d   :  { %7883 = vmatmul.mubr.f32.vlgmr.msra.gmra.mrb[0].mxu0 %v3707_v20  ;;  %v3936_v20 = vld [vmem:[#allocation2 + $0x12] ss:$32 sm:$0x10]  ;;  %v2548_v59 = vld [vmem:[#allocation2 + $0x7] ss:$32 sm:$0x8] }
 0x26e   :  { %8988 = vmatpush3.bf16.msra.mxu0 %v8985_v48  ;;  %7917 = vmatprep.mubr.f32.mxu0 %v3817_v63  ;;  %v8625_v48 = vpack.c.bf16 %v6266_v35, %v6265_v34  ;;  %v2423_v55 = vor.u32 %v2422_v39, %v2421_v37  ;;  %v6460_v63 = vld [vmem:[%s11833_s3 + $0x8f8] sm:$0xff]  ;;  %v8637_v34 = vpack.c.bf16 %v6272_v24, %v6271_v23  ;;  %v6274_v37 = vld [vmem:[%s11833_s3 + $0x328] sm:$0xff]  ;;  %v6275_v43 = vld [vmem:[%s11833_s3 + $0x330] sm:$0xff] }
 0x26f   :  { %8990 = vmatprep.subr.bf16.mxu0 %v8989_v61  ;;  %8608 = vmatpush3.bf16.msra.mxu1 %v8605_v57  ;;  %v3826_v57 = vld [vmem:[#allocation2 + $0x111] ss:$32 sm:$0x10]  ;;  %v8641_v42 = vpack.c.bf16 %v6274_v37, %v6273_v36  ;;  %v6473_v23 = vld [vmem:[%s11833_s3 + $0x960] sm:$0xff]  ;;  %v6474_v24 = vld [vmem:[%s11833_s3 + $0x968] sm:$0xff] }
 0x270   :  { %8610 = vmatprep.subr.bf16.mxu1 %v8609_v3  ;;  %v2425_v1 = vor.u32 %v2424_v50, %v2423_v55  ;;  %v8645_v50 = vpack.c.bf16 %v6276_v44, %v6275_v43  ;;  %v2433_v55 = vld [vmem:[#allocation2 + $0x106] ss:$32 sm:$0x1]  ;;  %v2552_v44 = vld [vmem:[#allocation2 + $0x7] ss:$32 sm:$0x20] }
 0x272   :  { %8992 = vmatpush3.bf16.msra.mxu0 %v8989_v61  ;;  %v6459_v61 = vld [vmem:[%s11833_s3 + $0x8f0] sm:$0xff]  ;;  %v2427_v15 = vor.u32 %v2426_v56, %v2425_v1  ;;  %v2436_v56 = vld [vmem:[#allocation2 + $0x106] ss:$32 sm:$0x4] }
 0x273   :  { %8994 = vmatprep.subr.bf16.mxu0 %v8993_v28  ;;  %8612 = vmatpush3.bf16.msra.mxu1 %v8609_v3  ;;  %v3935_v3 = vor.u32 %v3934_v25, %v3933_v46  ;;  %v9025_v46 = vpack.c.bf16 %v6466_v41, %v6465_v40  ;;  %v6277_v25 = vld [vmem:[%s11833_s3 + $0x340] sm:$0xff]  ;;  %v4055_v1 = vld [vmem:[#allocation2 + $0x13] ss:$32 sm:$0x1] }
 0x274   :  { %8614 = vmatprep.subr.bf16.mxu1 %v8613_v62  ;;  %v2429_v21 = vor.u32 %v2428_v13, %v2427_v15  ;;  %v2442_v40 = vld [vmem:[#allocation2 + $0x106] ss:$32 sm:$0x20] }
 0x275   :  { %v3937_v10 = vor.u32 %v3936_v20, %v3935_v3  ;;  %v2434_v20 = vld [vmem:[#allocation2 + $0x106] ss:$32 sm:$0x2]  ;;  %v6279_v3 = vld [vmem:[%s11833_s3 + $0x350] sm:$0xff] }
 0x276   :  { %8996 = vmatpush3.bf16.msra.mxu0 %v8993_v28  ;;  %v3827_v28 = vor.u32 %v3826_v57, %v3825_v60  ;;  %v2431_v35 = vor.u32 %v2430_v26, %v2429_v21  ;;  %v2543_v57 = vld [vmem:[#allocation2 + $0x7] ss:$32 sm:$0x1]  ;;  %v6470_v60 = vld [vmem:[%s11833_s3 + $0x948] sm:$0xff] }
 0x277   :  { %8998 = vmatprep.subr.bf16.mxu0 %v8997_v11  ;;  %8616 = vmatpush3.bf16.msra.mxu1 %v8613_v62  ;;  %v6269_v62 = vld [vmem:[%s11833_s3 + $0x300] sm:$0xff] }
 0x278   :  { %8618 = vmatprep.subr.bf16.mxu1 %v8617_v17  ;;  %v8633_v2 = vpack.c.bf16 %v6270_v9, %v6269_v62  ;;  %v3829_v18 = vor.u32 %v3828_v5, %v3827_v28  ;;  %v9033_v28 = vpack.c.bf16 %v6470_v60, %v6469_v52  ;;  %v2435_v5 = vor.u32 %v2434_v20, %v2433_v55  ;;  %v4056_v62 = vld [vmem:[#allocation2 + $0x13] ss:$32 sm:$0x2]  ;;  %v2440_v26 = vld [vmem:[#allocation2 + $0x106] ss:$32 sm:$0x10] }
 0x279   :  { %v6471_v9 = vld [vmem:[%s11833_s3 + $0x950] sm:$0xff]  ;;  %v6477_v20 = vld [vmem:[%s11833_s3 + $0x980] sm:$0xff] }
 0x27a   :  { %9000 = vmatpush3.bf16.msra.mxu0 %v8997_v11  ;;  %v9013_v11 = vpack.c.bf16 %v6460_v63, %v6459_v61  ;;  %v3831_v0 = vor.u32 %v3830_v16, %v3829_v18  ;;  %v8649_v61 = vpack.c.bf16 %v6278_v51, %v6277_v25  ;;  %v3945_v63 = vld [vmem:[#allocation2 + $0x112] ss:$32 sm:$0x1]  ;;  %v4058_v16 = vld [vmem:[#allocation2 + $0x13] ss:$32 sm:$0x4]  ;;  %v4057_v18 = vor.u32 %v4056_v62, %v4055_v1 }
 0x27b   :  { %9002 = vmatprep.subr.bf16.mxu0 %v9001_v22  ;;  %8620 = vmatpush3.bf16.msra.mxu1 %v8617_v17  ;;  %v6462_v17 = vld [vmem:[%s11833_s3 + $0x908] sm:$0xff]  ;;  %v3947_v15 = vor.u32 %v3946_v6, %v3945_v63  ;;  %v3956_v60 = vld [vmem:[#allocation2 + $0x112] ss:$32 sm:$0x40] }
 0x27c   :  { %8622 = vmatprep.subr.bf16.mxu1 %v8621_v7  ;;  %v9017_v27 = vpack.c.bf16 %v6462_v17, %v6461_v47  ;;  %v3833_v38 = vor.u32 %v3832_v31, %v3831_v0  ;;  %v6281_v47 = vld [vmem:[%s11833_s3 + $0x360] sm:$0xff]  ;;  %v6282_v17 = vld [vmem:[%s11833_s3 + $0x368] sm:$0xff]  ;;  %v4059_v0 = vor.u32 %v4058_v16, %v4057_v18  ;;  %v4068_v16 = vld [vmem:[#allocation2 + $0x13] ss:$32 sm:$0x80] }
 0x27d   :  { %v3949_v21 = vor.u32 %v3948_v12, %v3947_v15  ;;  %v6286_v25 = vld [vmem:[%s11833_s3 + $0x388] sm:$0xff]  ;;  %v2556_v62 = vld [vmem:[#allocation2 + $0x7] ss:$32 sm:$0x80] }
 0x27e   :  { %9004 = vmatpush3.bf16.msra.mxu0 %v9001_v22  ;;  %v3939_v22 = vor.u32 %v3938_v14, %v3937_v10  ;;  %v6472_v10 = vld [vmem:[%s11833_s3 + $0x958] sm:$0xff]  ;;  %v2437_v14 = vor.u32 %v2436_v56, %v2435_v5  ;;  %v6287_v5 = vld [vmem:[%s11833_s3 + $0x390] sm:$0xff] }
 0x27f   :  { %9006 = vmatprep.subr.bf16.mxu0 %v9005_v45  ;;  %8624 = vmatpush3.bf16.msra.mxu1 %v8621_v7  ;;  %v6463_v7 = vld [vmem:[%s11833_s3 + $0x910] sm:$0xff] }
 0x280   :  { %8626 = vmatprep.subr.bf16.mxu1 %v8625_v48  ;;  %v3941_v29 = vor.u32 %v3940_v19, %v3939_v22  ;;  %v9037_v19 = vpack.c.bf16 %v6472_v10, %v6471_v9  ;;  %v3950_v22 = vld [vmem:[#allocation2 + $0x112] ss:$32 sm:$0x8]  ;;  %v2439_v31 = vor.u32 %v2438_v53, %v2437_v14  ;;  %v6480_v14 = vld [vmem:[%s11833_s3 + $0x998] sm:$0xff]  ;;  %v6289_v53 = vld [vmem:[%s11833_s3 + $0x3a0] sm:$0xff] }
 0x281   :  { %v3951_v37 = vor.u32 %v3950_v22, %v3949_v21  ;;  %v6481_v21 = vld [vmem:[%s11833_s3 + $0x9a0] sm:$0xff]  ;;  %v6482_v22 = vld [vmem:[%s11833_s3 + $0x9a8] sm:$0xff] }
 0x282   :  { %9008 = vmatpush3.bf16.msra.mxu0 %v9005_v45  ;;  %v9021_v45 = vpack.c.bf16 %v6464_v30, %v6463_v7  ;;  %v3943_v39 = vor.u32 %v3942_v33, %v3941_v29  ;;  %v2550_v29 = vld [vmem:[#allocation2 + $0x7] ss:$32 sm:$0x10]  ;;  %v4060_v7 = vld [vmem:[#allocation2 + $0x13] ss:$32 sm:$0x8]  ;;  %v2441_v36 = vor.u32 %v2440_v26, %v2439_v31 }
 0x283   :  { %9010 = vmatprep.subr.bf16.mxu0 %v9009_v58  ;;  %8628 = vmatpush3.bf16.msra.mxu1 %v8625_v48  ;;  %v6467_v48 = vld [vmem:[%s11833_s3 + $0x930] sm:$0xff]  ;;  %v6292_v26 = vld [vmem:[%s11833_s3 + $0x3b8] sm:$0xff] }
 0x284   :  { %8630 = vmatprep.subr.bf16.mxu1 %v8629_v4  ;;  %v9029_v54 = vpack.c.bf16 %v6468_v49, %v6467_v48  ;;  %v6283_v30 = vld [vmem:[%s11833_s3 + $0x370] sm:$0xff]  ;;  %v2444_v49 = vld [vmem:[#allocation2 + $0x106] ss:$32 sm:$0x40]  ;;  %v2443_v55 = vor.u32 %v2442_v40, %v2441_v36  ;;  %v6484_v31 = vld [vmem:[%s11833_s3 + $0x9b8] sm:$0xff] }
 0x285   :  { %v3954_v48 = vld [vmem:[#allocation2 + $0x112] ss:$32 sm:$0x20]  ;;  %v6485_v36 = vld [vmem:[%s11833_s3 + $0x9c0] sm:$0xff] }
 0x286   :  { %9012 = vmatpush3.bf16.msra.mxu0 %v9009_v58  ;;  %v2544_v58 = vld [vmem:[#allocation2 + $0x7] ss:$32 sm:$0x2]  ;;  %v2445_v63 = vor.u32 %v2444_v49, %v2443_v55  ;;  %v4072_v40 = vld [vmem:[#allocation2 + $0x113] ss:$32 sm:$0x2] }
 0x287   :  { %9014 = vmatprep.subr.bf16.mxu0 %v9013_v11  ;;  %8632 = vmatpush3.bf16.msra.mxu1 %v8629_v4  ;;  %v6280_v4 = vld [vmem:[%s11833_s3 + $0x358] sm:$0xff]  ;;  %v2672_v49 = vld [vmem:[#allocation2 + $0x8] ss:$32 sm:$0x4] }
 0x288   :  { %8634 = vmatprep.subr.bf16.mxu1 %v8633_v2  ;;  %v8653_v13 = vpack.c.bf16 %v6280_v4, %v6279_v3  ;;  %v4066_v3 = vld [vmem:[#allocation2 + $0x13] ss:$32 sm:$0x40]  ;;  %v2446_v4 = vld [vmem:[#allocation2 + $0x106] ss:$32 sm:$0x80] }
 0x289   :  { %v2447_v15 = vor.u32 %v2446_v4, %v2445_v63  ;;  %v4074_v55 = vld [vmem:[#allocation2 + $0x113] ss:$32 sm:$0x4]  ;;  %v2564_v63 = vld [vmem:[#allocation2 + $0x107] ss:$32 sm:$0x8] }
 0x28a   :  { %9016 = vmatpush3.bf16.msra.mxu0 %v9013_v11  ;;  %7498 = vmatmul.mubr.f32.vlgmr.msra.gmra.mrb[64].mxu1 %v2321_v32  ;;  %v2545_v11 = vor.u32 %v2544_v58, %v2543_v57  ;;  %v6284_v32 = vld [vmem:[%s11833_s3 + $0x378] sm:$0xff]  ;;  %v2554_v57 = vld [vmem:[#allocation2 + $0x7] ss:$32 sm:$0x40] }
 0x28b   :  { %9018 = vmatprep.subr.bf16.mxu0 %v9017_v27  ;;  %8636 = vmatpush3.bf16.msra.mxu1 %v8633_v2  ;;  %v8661_v43 = vpack.c.bf16 %v6284_v32, %v6283_v30  ;;  %v4064_v58 = vld [vmem:[#allocation2 + $0x13] ss:$32 sm:$0x20]  ;;  %v6294_v30 = vld [vmem:[%s11833_s3 + $0x3c8] sm:$0xff] }
 0x28c   :  { %7532 = vmatprep.mubr.f32.mxu1 %v2431_v35  ;;  %8638 = vmatprep.subr.bf16.mxu1 %v8637_v34  ;;  %v2547_v2 = vor.u32 %v2546_v8, %v2545_v11  ;;  %v9041_v35 = vpack.c.bf16 %v6474_v24, %v6473_v23  ;;  %v6288_v8 = vld [vmem:[%s11833_s3 + $0x398] sm:$0xff]  ;;  %v3958_v11 = vld [vmem:[#allocation2 + $0x112] ss:$32 sm:$0x80] }
 0x28d   :  { %7918 = vmatmul.mubr.f32.vlgmr.msra.gmra.mrb[0].mxu0 %v3833_v38  ;;  %v4062_v38 = vld [vmem:[#allocation2 + $0x13] ss:$32 sm:$0x10]  ;;  %v2674_v4 = vld [vmem:[#allocation2 + $0x8] ss:$32 sm:$0x8] }
 0x28e   :  { %9020 = vmatpush3.bf16.msra.mxu0 %v9017_v27  ;;  %7952 = vmatprep.mubr.f32.mxu0 %v3943_v39  ;;  %v8657_v27 = vpack.c.bf16 %v6282_v17, %v6281_v47  ;;  %v2549_v33 = vor.u32 %v2548_v59, %v2547_v2  ;;  %v6476_v39 = vld [vmem:[%s11833_s3 + $0x978] sm:$0xff]  ;;  %v8669_v47 = vpack.c.bf16 %v6288_v8, %v6287_v5  ;;  %v6290_v2 = vld [vmem:[%s11833_s3 + $0x3a8] sm:$0xff]  ;;  %v6291_v24 = vld [vmem:[%s11833_s3 + $0x3b0] sm:$0xff] }
 0x28f   :  { %9022 = vmatprep.subr.bf16.mxu0 %v9021_v45  ;;  %8640 = vmatpush3.bf16.msra.mxu1 %v8637_v34  ;;  %v3952_v34 = vld [vmem:[#allocation2 + $0x112] ss:$32 sm:$0x10]  ;;  %v8673_v23 = vpack.c.bf16 %v6290_v2, %v6289_v53  ;;  %v6489_v5 = vld [vmem:[%s11833_s3 + $0x9e0] sm:$0xff]  ;;  %v6490_v8 = vld [vmem:[%s11833_s3 + $0x9e8] sm:$0xff] }
 0x290   :  { %8642 = vmatprep.subr.bf16.mxu1 %v8641_v42  ;;  %v2551_v41 = vor.u32 %v2550_v29, %v2549_v33  ;;  %v8677_v29 = vpack.c.bf16 %v6292_v26, %v6291_v24  ;;  %v2559_v33 = vld [vmem:[#allocation2 + $0x107] ss:$32 sm:$0x1]  ;;  %v2678_v26 = vld [vmem:[#allocation2 + $0x8] ss:$32 sm:$0x20] }
 0x292   :  { %9024 = vmatpush3.bf16.msra.mxu0 %v9021_v45  ;;  %v6475_v45 = vld [vmem:[%s11833_s3 + $0x970] sm:$0xff]  ;;  %v2553_v52 = vor.u32 %v2552_v44, %v2551_v41  ;;  %v2562_v44 = vld [vmem:[#allocation2 + $0x107] ss:$32 sm:$0x4] }
 0x293   :  { %9026 = vmatprep.subr.bf16.mxu0 %v9025_v46  ;;  %8644 = vmatpush3.bf16.msra.mxu1 %v8641_v42  ;;  %v4061_v42 = vor.u32 %v4060_v7, %v4059_v0  ;;  %v9057_v0 = vpack.c.bf16 %v6482_v22, %v6481_v21  ;;  %v6293_v7 = vld [vmem:[%s11833_s3 + $0x3c0] sm:$0xff]  ;;  %v4181_v41 = vld [vmem:[#allocation2 + $0x14] ss:$32 sm:$0x1] }
 0x294   :  { %8646 = vmatprep.subr.bf16.mxu1 %v8645_v50  ;;  %v2555_v56 = vor.u32 %v2554_v57, %v2553_v52  ;;  %v2568_v21 = vld [vmem:[#allocation2 + $0x107] ss:$32 sm:$0x20] }
 0x295   :  { %v4063_v51 = vor.u32 %v4062_v38, %v4061_v42  ;;  %v2560_v38 = vld [vmem:[#allocation2 + $0x107] ss:$32 sm:$0x2]  ;;  %v6295_v42 = vld [vmem:[%s11833_s3 + $0x3d0] sm:$0xff] }
 0x296   :  { %9028 = vmatpush3.bf16.msra.mxu0 %v9025_v46  ;;  %v3953_v46 = vor.u32 %v3952_v34, %v3951_v37  ;;  %v2557_v17 = vor.u32 %v2556_v62, %v2555_v56  ;;  %v2669_v34 = vld [vmem:[#allocation2 + $0x8] ss:$32 sm:$0x1]  ;;  %v2566_v62 = vld [vmem:[#allocation2 + $0x107] ss:$32 sm:$0x10] }
 0x297   :  { %9030 = vmatprep.subr.bf16.mxu0 %v9029_v54  ;;  %8648 = vmatpush3.bf16.msra.mxu1 %v8645_v50  ;;  %v6285_v50 = vld [vmem:[%s11833_s3 + $0x380] sm:$0xff]  ;;  %v6486_v37 = vld [vmem:[%s11833_s3 + $0x9c8] sm:$0xff] }
 0x298   :  { %8650 = vmatprep.subr.bf16.mxu1 %v8649_v61  ;;  %v8665_v6 = vpack.c.bf16 %v6286_v25, %v6285_v50  ;;  %v3955_v1 = vor.u32 %v3954_v48, %v3953_v46  ;;  %v9065_v46 = vpack.c.bf16 %v6486_v37, %v6485_v36  ;;  %v2561_v48 = vor.u32 %v2560_v38, %v2559_v33  ;;  %v4182_v50 = vld [vmem:[#allocation2 + $0x14] ss:$32 sm:$0x2]  ;;  %v4082_v37 = vld [vmem:[#allocation2 + $0x113] ss:$32 sm:$0x40] }
 0x299   :  { %v6487_v25 = vld [vmem:[%s11833_s3 + $0x9d0] sm:$0xff]  ;;  %v6493_v38 = vld [vmem:[%s11833_s3 + $0xa00] sm:$0xff] }
 0x29a   :  { %9032 = vmatpush3.bf16.msra.mxu0 %v9029_v54  ;;  %v9045_v54 = vpack.c.bf16 %v6476_v39, %v6475_v45  ;;  %v3957_v9 = vor.u32 %v3956_v60, %v3955_v1  ;;  %v8681_v45 = vpack.c.bf16 %v6294_v30, %v6293_v7  ;;  %v4071_v39 = vld [vmem:[#allocation2 + $0x113] ss:$32 sm:$0x1]  ;;  %v4184_v60 = vld [vmem:[#allocation2 + $0x14] ss:$32 sm:$0x4]  ;;  %v4183_v1 = vor.u32 %v4182_v50, %v4181_v41 }
 0x29b   :  { %9034 = vmatprep.subr.bf16.mxu0 %v9033_v28  ;;  %8652 = vmatpush3.bf16.msra.mxu1 %v8649_v61  ;;  %v6478_v61 = vld [vmem:[%s11833_s3 + $0x988] sm:$0xff]  ;;  %v4073_v52 = vor.u32 %v4072_v40, %v4071_v39 }
 0x29c   :  { %8654 = vmatprep.subr.bf16.mxu1 %v8653_v13  ;;  %v9049_v10 = vpack.c.bf16 %v6478_v61, %v6477_v20  ;;  %v3959_v18 = vor.u32 %v3958_v11, %v3957_v9  ;;  %v6297_v20 = vld [vmem:[%s11833_s3 + $0x3e0] sm:$0xff]  ;;  %v6298_v61 = vld [vmem:[%s11833_s3 + $0x3e8] sm:$0xff]  ;;  %v4185_v9 = vor.u32 %v4184_v60, %v4183_v1  ;;  %v4194_v60 = vld [vmem:[#allocation2 + $0x14] ss:$32 sm:$0x80] }
 0x29d   :  { %v4075_v56 = vor.u32 %v4074_v55, %v4073_v52  ;;  %v6302_v7 = vld [vmem:[%s11833_s3 + $0x408] sm:$0xff] }
 0x29e   :  { %9036 = vmatpush3.bf16.msra.mxu0 %v9033_v28  ;;  %v4065_v28 = vor.u32 %v4064_v58, %v4063_v51  ;;  %v6488_v51 = vld [vmem:[%s11833_s3 + $0x9d8] sm:$0xff]  ;;  %v2563_v58 = vor.u32 %v2562_v44, %v2561_v48  ;;  %v6303_v48 = vld [vmem:[%s11833_s3 + $0x410] sm:$0xff]  ;;  %v2682_v50 = vld [vmem:[#allocation2 + $0x8] ss:$32 sm:$0x80] }
 0x29f   :  { %9038 = vmatprep.subr.bf16.mxu0 %v9037_v19  ;;  %8656 = vmatpush3.bf16.msra.mxu1 %v8653_v13  ;;  %v6479_v13 = vld [vmem:[%s11833_s3 + $0x990] sm:$0xff] }
 0x2a0   :  { %8658 = vmatprep.subr.bf16.mxu1 %v8657_v27  ;;  %v4067_v12 = vor.u32 %v4066_v3, %v4065_v28  ;;  %v9069_v3 = vpack.c.bf16 %v6488_v51, %v6487_v25  ;;  %v4076_v28 = vld [vmem:[#allocation2 + $0x113] ss:$32 sm:$0x8]  ;;  %v2565_v11 = vor.u32 %v2564_v63, %v2563_v58  ;;  %v6496_v58 = vld [vmem:[%s11833_s3 + $0xa18] sm:$0xff]  ;;  %v6305_v63 = vld [vmem:[%s11833_s3 + $0x420] sm:$0xff] }
 0x2a1   :  { %v4077_v2 = vor.u32 %v4076_v28, %v4075_v56  ;;  %v6497_v56 = vld [vmem:[%s11833_s3 + $0xa20] sm:$0xff]  ;;  %v6498_v28 = vld [vmem:[%s11833_s3 + $0xa28] sm:$0xff] }
 0x2a2   :  { %9040 = vmatpush3.bf16.msra.mxu0 %v9037_v19  ;;  %v9053_v19 = vpack.c.bf16 %v6480_v14, %v6479_v13  ;;  %v4069_v59 = vor.u32 %v4068_v16, %v4067_v12  ;;  %v2676_v12 = vld [vmem:[#allocation2 + $0x8] ss:$32 sm:$0x10]  ;;  %v4186_v13 = vld [vmem:[#allocation2 + $0x14] ss:$32 sm:$0x8]  ;;  %v2567_v53 = vor.u32 %v2566_v62, %v2565_v11 }
 0x2a3   :  { %9042 = vmatprep.subr.bf16.mxu0 %v9041_v35  ;;  %8660 = vmatpush3.bf16.msra.mxu1 %v8657_v27  ;;  %v6483_v27 = vld [vmem:[%s11833_s3 + $0x9b0] sm:$0xff]  ;;  %v6308_v62 = vld [vmem:[%s11833_s3 + $0x438] sm:$0xff] }
 0x2a4   :  { %8662 = vmatprep.subr.bf16.mxu1 %v8661_v43  ;;  %v9061_v32 = vpack.c.bf16 %v6484_v31, %v6483_v27  ;;  %v6299_v14 = vld [vmem:[%s11833_s3 + $0x3f0] sm:$0xff]  ;;  %v2570_v31 = vld [vmem:[#allocation2 + $0x107] ss:$32 sm:$0x40]  ;;  %v2569_v33 = vor.u32 %v2568_v21, %v2567_v53  ;;  %v6500_v11 = vld [vmem:[%s11833_s3 + $0xa38] sm:$0xff] }
 0x2a5   :  { %v4080_v27 = vld [vmem:[#allocation2 + $0x113] ss:$32 sm:$0x20]  ;;  %v6501_v53 = vld [vmem:[%s11833_s3 + $0xa40] sm:$0xff] }
 0x2a6   :  { %9044 = vmatpush3.bf16.msra.mxu0 %v9041_v35  ;;  %v2670_v35 = vld [vmem:[#allocation2 + $0x8] ss:$32 sm:$0x2]  ;;  %v2571_v39 = vor.u32 %v2570_v31, %v2569_v33  ;;  %v2798_v21 = vld [vmem:[#allocation2 + $0x9] ss:$32 sm:$0x4] }
 0x2a7   :  { %9046 = vmatprep.subr.bf16.mxu0 %v9045_v54  ;;  %8664 = vmatpush3.bf16.msra.mxu1 %v8661_v43  ;;  %v6296_v43 = vld [vmem:[%s11833_s3 + $0x3d8] sm:$0xff]  ;;  %v4307_v31 = vld [vmem:[#allocation2 + $0x15] ss:$32 sm:$0x1] }
 0x2a8   :  { %8666 = vmatprep.subr.bf16.mxu1 %v8665_v6  ;;  %v8685_v57 = vpack.c.bf16 %v6296_v43, %v6295_v42  ;;  %v4192_v42 = vld [vmem:[#allocation2 + $0x14] ss:$32 sm:$0x40]  ;;  %v2572_v43 = vld [vmem:[#allocation2 + $0x107] ss:$32 sm:$0x80] }
 0x2a9   :  { %v2573_v52 = vor.u32 %v2572_v43, %v2571_v39  ;;  %v4200_v33 = vld [vmem:[#allocation2 + $0x114] ss:$32 sm:$0x4]  ;;  %v2690_v39 = vld [vmem:[#allocation2 + $0x108] ss:$32 sm:$0x8] }
 0x2aa   :  { %9048 = vmatpush3.bf16.msra.mxu0 %v9045_v54  ;;  %7533 = vmatmul.mubr.f32.vlgmr.msra.gmra.mrb[64].mxu1 %v2447_v15  ;;  %v2671_v54 = vor.u32 %v2670_v35, %v2669_v34  ;;  %v6300_v15 = vld [vmem:[%s11833_s3 + $0x3f8] sm:$0xff]  ;;  %v2680_v34 = vld [vmem:[#allocation2 + $0x8] ss:$32 sm:$0x40] }
 0x2ab   :  { %9050 = vmatprep.subr.bf16.mxu0 %v9049_v10  ;;  %8668 = vmatpush3.bf16.msra.mxu1 %v8665_v6  ;;  %v8693_v24 = vpack.c.bf16 %v6300_v15, %v6299_v14  ;;  %v4190_v35 = vld [vmem:[#allocation2 + $0x14] ss:$32 sm:$0x20]  ;;  %v6310_v14 = vld [vmem:[%s11833_s3 + $0x448] sm:$0xff] }
 0x2ac   :  { %7567 = vmatprep.mubr.f32.mxu1 %v2557_v17  ;;  %8670 = vmatprep.subr.bf16.mxu1 %v8669_v47  ;;  %v2673_v6 = vor.u32 %v2672_v49, %v2671_v54  ;;  %v9073_v17 = vpack.c.bf16 %v6490_v8, %v6489_v5  ;;  %v6304_v49 = vld [vmem:[%s11833_s3 + $0x418] sm:$0xff]  ;;  %v4084_v54 = vld [vmem:[#allocation2 + $0x113] ss:$32 sm:$0x80] }
 0x2ad   :  { %7953 = vmatmul.mubr.f32.vlgmr.msra.gmra.mrb[0].mxu0 %v3959_v18  ;;  %v4188_v18 = vld [vmem:[#allocation2 + $0x14] ss:$32 sm:$0x10]  ;;  %v2692_v43 = vld [vmem:[#allocation2 + $0x108] ss:$32 sm:$0x10] }
 0x2ae   :  { %9052 = vmatpush3.bf16.msra.mxu0 %v9049_v10  ;;  %7987 = vmatprep.mubr.f32.mxu0 %v4069_v59  ;;  %v8689_v10 = vpack.c.bf16 %v6298_v61, %v6297_v20  ;;  %v2675_v16 = vor.u32 %v2674_v4, %v2673_v6  ;;  %v6492_v59 = vld [vmem:[%s11833_s3 + $0x9f8] sm:$0xff]  ;;  %v8701_v20 = vpack.c.bf16 %v6304_v49, %v6303_v48  ;;  %v6306_v6 = vld [vmem:[%s11833_s3 + $0x428] sm:$0xff]  ;;  %v6307_v8 = vld [vmem:[%s11833_s3 + $0x430] sm:$0xff] }
 0x2af   :  { %9054 = vmatprep.subr.bf16.mxu0 %v9053_v19  ;;  %8672 = vmatpush3.bf16.msra.mxu1 %v8669_v47  ;;  %v4078_v47 = vld [vmem:[#allocation2 + $0x113] ss:$32 sm:$0x10]  ;;  %v8705_v5 = vpack.c.bf16 %v6306_v6, %v6305_v63  ;;  %v6505_v48 = vld [vmem:[%s11833_s3 + $0xa60] sm:$0xff]  ;;  %v6506_v49 = vld [vmem:[%s11833_s3 + $0xa68] sm:$0xff] }
 0x2b0   :  { %8674 = vmatprep.subr.bf16.mxu1 %v8673_v23  ;;  %v2677_v22 = vor.u32 %v2676_v12, %v2675_v16  ;;  %v8709_v12 = vpack.c.bf16 %v6308_v62, %v6307_v8  ;;  %v2685_v16 = vld [vmem:[#allocation2 + $0x108] ss:$32 sm:$0x1] }
 0x2b1   :  { %v2696_v62 = vld [vmem:[#allocation2 + $0x108] ss:$32 sm:$0x40] }
 0x2b2   :  { %9056 = vmatpush3.bf16.msra.mxu0 %v9053_v19  ;;  %v6491_v19 = vld [vmem:[%s11833_s3 + $0x9f0] sm:$0xff]  ;;  %v2679_v36 = vor.u32 %v2678_v26, %v2677_v22 }
 0x2b3   :  { %9058 = vmatprep.subr.bf16.mxu0 %v9057_v0  ;;  %8676 = vmatpush3.bf16.msra.mxu1 %v8673_v23  ;;  %v4187_v23 = vor.u32 %v4186_v13, %v4185_v9  ;;  %v9089_v9 = vpack.c.bf16 %v6498_v28, %v6497_v56  ;;  %v6309_v13 = vld [vmem:[%s11833_s3 + $0x440] sm:$0xff]  ;;  %v4197_v22 = vld [vmem:[#allocation2 + $0x114] ss:$32 sm:$0x1] }
 0x2b4   :  { %8678 = vmatprep.subr.bf16.mxu1 %v8677_v29  ;;  %v2681_v44 = vor.u32 %v2680_v34, %v2679_v36  ;;  %v4198_v26 = vld [vmem:[#allocation2 + $0x114] ss:$32 sm:$0x2]  ;;  %v2694_v56 = vld [vmem:[#allocation2 + $0x108] ss:$32 sm:$0x20] }
 0x2b5   :  { %v4189_v30 = vor.u32 %v4188_v18, %v4187_v23  ;;  %v2686_v18 = vld [vmem:[#allocation2 + $0x108] ss:$32 sm:$0x2]  ;;  %v6311_v23 = vld [vmem:[%s11833_s3 + $0x450] sm:$0xff]  ;;  %v4199_v36 = vor.u32 %v4198_v26, %v4197_v22 }
 0x2b6   :  { %9060 = vmatpush3.bf16.msra.mxu0 %v9057_v0  ;;  %v4079_v0 = vor.u32 %v4078_v47, %v4077_v2  ;;  %v2683_v61 = vor.u32 %v2682_v50, %v2681_v44  ;;  %v2795_v47 = vld [vmem:[#allocation2 + $0x9] ss:$32 sm:$0x1]  ;;  %v4202_v50 = vld [vmem:[#allocation2 + $0x114] ss:$32 sm:$0x8] }
 0x2b7   :  { %9062 = vmatprep.subr.bf16.mxu0 %v9061_v32  ;;  %8680 = vmatpush3.bf16.msra.mxu1 %v8677_v29  ;;  %v6301_v29 = vld [vmem:[%s11833_s3 + $0x400] sm:$0xff]  ;;  %v6502_v2 = vld [vmem:[%s11833_s3 + $0xa48] sm:$0xff] }
 0x2b8   :  { %8682 = vmatprep.subr.bf16.mxu1 %v8681_v45  ;;  %v8697_v40 = vpack.c.bf16 %v6302_v7, %v6301_v29  ;;  %v4081_v41 = vor.u32 %v4080_v27, %v4079_v0  ;;  %v9097_v0 = vpack.c.bf16 %v6502_v2, %v6501_v53  ;;  %v2687_v27 = vor.u32 %v2686_v18, %v2685_v16  ;;  %v4308_v29 = vld [vmem:[#allocation2 + $0x15] ss:$32 sm:$0x2]  ;;  %v2800_v44 = vld [vmem:[#allocation2 + $0x9] ss:$32 sm:$0x8] }
 0x2b9   :  { %v6503_v7 = vld [vmem:[%s11833_s3 + $0xa50] sm:$0xff]  ;;  %v6509_v18 = vld [vmem:[%s11833_s3 + $0xa80] sm:$0xff] }
 0x2ba   :  { %9064 = vmatpush3.bf16.msra.mxu0 %v9061_v32  ;;  %v9077_v32 = vpack.c.bf16 %v6492_v59, %v6491_v19  ;;  %v4083_v25 = vor.u32 %v4082_v37, %v4081_v41  ;;  %v8713_v19 = vpack.c.bf16 %v6310_v14, %v6309_v13  ;;  %v2688_v59 = vld [vmem:[#allocation2 + $0x108] ss:$32 sm:$0x4]  ;;  %v4310_v37 = vld [vmem:[#allocation2 + $0x15] ss:$32 sm:$0x4]  ;;  %v4309_v41 = vor.u32 %v4308_v29, %v4307_v31 }
 0x2bb   :  { %9066 = vmatprep.subr.bf16.mxu0 %v9065_v46  ;;  %8684 = vmatpush3.bf16.msra.mxu1 %v8681_v45  ;;  %v6494_v45 = vld [vmem:[%s11833_s3 + $0xa08] sm:$0xff]  ;;  %v4206_v13 = vld [vmem:[#allocation2 + $0x114] ss:$32 sm:$0x20]  ;;  %v6320_v31 = vld [vmem:[%s11833_s3 + $0x498] sm:$0xff] }
 0x2bc   :  { %8686 = vmatprep.subr.bf16.mxu1 %v8685_v57  ;;  %v9081_v51 = vpack.c.bf16 %v6494_v45, %v6493_v38  ;;  %v4085_v1 = vor.u32 %v4084_v54, %v4083_v25  ;;  %v6313_v38 = vld [vmem:[%s11833_s3 + $0x460] sm:$0xff]  ;;  %v6314_v45 = vld [vmem:[%s11833_s3 + $0x468] sm:$0xff]  ;;  %v4311_v25 = vor.u32 %v4310_v37, %v4309_v41  ;;  %v4208_v2 = vld [vmem:[#allocation2 + $0x114] ss:$32 sm:$0x40] }
 0x2bd   :  { %v2808_v29 = vld [vmem:[#allocation2 + $0x9] ss:$32 sm:$0x80]  ;;  %v4320_v37 = vld [vmem:[#allocation2 + $0x15] ss:$32 sm:$0x80] }
 0x2be   :  { %9068 = vmatpush3.bf16.msra.mxu0 %v9065_v46  ;;  %v4191_v46 = vor.u32 %v4190_v35, %v4189_v30  ;;  %v6504_v30 = vld [vmem:[%s11833_s3 + $0xa58] sm:$0xff]  ;;  %v2689_v35 = vor.u32 %v2688_v59, %v2687_v27  ;;  %v6319_v27 = vld [vmem:[%s11833_s3 + $0x490] sm:$0xff] }
 0x2bf   :  { %9070 = vmatprep.subr.bf16.mxu0 %v9069_v3  ;;  %8688 = vmatpush3.bf16.msra.mxu1 %v8685_v57  ;;  %v6495_v57 = vld [vmem:[%s11833_s3 + $0xa10] sm:$0xff] }
 0x2c0   :  { %8690 = vmatprep.subr.bf16.mxu1 %v8689_v10  ;;  %v4193_v55 = vor.u32 %v4192_v42, %v4191_v46  ;;  %v9101_v42 = vpack.c.bf16 %v6504_v30, %v6503_v7  ;;  %v4201_v46 = vor.u32 %v4200_v33, %v4199_v36  ;;  %v2691_v54 = vor.u32 %v2690_v39, %v2689_v35  ;;  %v6512_v35 = vld [vmem:[%s11833_s3 + $0xa98] sm:$0xff]  ;;  %v6321_v39 = vld [vmem:[%s11833_s3 + $0x4a0] sm:$0xff] }
 0x2c2   :  { %9072 = vmatpush3.bf16.msra.mxu0 %v9069_v3  ;;  %v9085_v3 = vpack.c.bf16 %v6496_v58, %v6495_v57  ;;  %v4195_v4 = vor.u32 %v4194_v60, %v4193_v55  ;;  %v2802_v55 = vld [vmem:[#allocation2 + $0x9] ss:$32 sm:$0x10]  ;;  %v4312_v57 = vld [vmem:[#allocation2 + $0x15] ss:$32 sm:$0x8]  ;;  %v2693_v63 = vor.u32 %v2692_v43, %v2691_v54  ;;  %v4203_v6 = vor.u32 %v4202_v50, %v4201_v46 }
 0x2c3   :  { %9074 = vmatprep.subr.bf16.mxu0 %v9073_v17  ;;  %8692 = vmatpush3.bf16.msra.mxu1 %v8689_v10  ;;  %v6499_v10 = vld [vmem:[%s11833_s3 + $0xa30] sm:$0xff]  ;;  %v6514_v46 = vld [vmem:[%s11833_s3 + $0xaa8] sm:$0xff]  ;;  %v6324_v50 = vld [vmem:[%s11833_s3 + $0x4b8] sm:$0xff] }
 0x2c4   :  { %8694 = vmatprep.subr.bf16.mxu1 %v8693_v24  ;;  %v9093_v15 = vpack.c.bf16 %v6500_v11, %v6499_v10  ;;  %v6315_v58 = vld [vmem:[%s11833_s3 + $0x470] sm:$0xff]  ;;  %v6317_v11 = vld [vmem:[%s11833_s3 + $0x480] sm:$0xff]  ;;  %v2695_v16 = vor.u32 %v2694_v56, %v2693_v63  ;;  %v6516_v54 = vld [vmem:[%s11833_s3 + $0xab8] sm:$0xff] }
 0x2c5   :  { %v6517_v63 = vld [vmem:[%s11833_s3 + $0xac0] sm:$0xff]  ;;  %v2924_v56 = vld [vmem:[#allocation2 + $0xa] ss:$32 sm:$0x4] }
 0x2c6   :  { %9076 = vmatpush3.bf16.msra.mxu0 %v9073_v17  ;;  %v2796_v17 = vld [vmem:[#allocation2 + $0x9] ss:$32 sm:$0x2]  ;;  %v2697_v59 = vor.u32 %v2696_v62, %v2695_v16  ;;  %v4324_v62 = vld [vmem:[#allocation2 + $0x115] ss:$32 sm:$0x2] }
 0x2c7   :  { %9078 = vmatprep.subr.bf16.mxu0 %v9077_v32  ;;  %8696 = vmatpush3.bf16.msra.mxu1 %v8693_v24  ;;  %v6312_v24 = vld [vmem:[%s11833_s3 + $0x458] sm:$0xff]  ;;  %v4326_v16 = vld [vmem:[#allocation2 + $0x115] ss:$32 sm:$0x4] }
 0x2c8   :  { %8698 = vmatprep.subr.bf16.mxu1 %v8697_v40  ;;  %v8717_v34 = vpack.c.bf16 %v6312_v24, %v6311_v23  ;;  %v4318_v23 = vld [vmem:[#allocation2 + $0x15] ss:$32 sm:$0x40]  ;;  %v2698_v24 = vld [vmem:[#allocation2 + $0x108] ss:$32 sm:$0x80] }
 0x2c9   :  { %v2699_v36 = vor.u32 %v2698_v24, %v2697_v59  ;;  %v2816_v59 = vld [vmem:[#allocation2 + $0x109] ss:$32 sm:$0x8] }
 0x2ca   :  { %9080 = vmatpush3.bf16.msra.mxu0 %v9077_v32  ;;  %7568 = vmatmul.mubr.f32.vlgmr.msra.gmra.mrb[64].mxu1 %v2573_v52  ;;  %v2797_v32 = vor.u32 %v2796_v17, %v2795_v47  ;;  %v6316_v52 = vld [vmem:[%s11833_s3 + $0x478] sm:$0xff]  ;;  %v2806_v47 = vld [vmem:[#allocation2 + $0x9] ss:$32 sm:$0x40] }
 0x2cb   :  { %9082 = vmatprep.subr.bf16.mxu0 %v9081_v51  ;;  %8700 = vmatpush3.bf16.msra.mxu1 %v8697_v40  ;;  %v8725_v8 = vpack.c.bf16 %v6316_v52, %v6315_v58  ;;  %v4316_v17 = vld [vmem:[#allocation2 + $0x15] ss:$32 sm:$0x20]  ;;  %v6326_v58 = vld [vmem:[%s11833_s3 + $0x4c8] sm:$0xff] }
 0x2cc   :  { %7602 = vmatprep.mubr.f32.mxu1 %v2683_v61  ;;  %8702 = vmatprep.subr.bf16.mxu1 %v8701_v20  ;;  %v2799_v40 = vor.u32 %v2798_v21, %v2797_v32  ;;  %v9105_v61 = vpack.c.bf16 %v6506_v49, %v6505_v48  ;;  %v4210_v32 = vld [vmem:[#allocation2 + $0x114] ss:$32 sm:$0x80]  ;;  %v2811_v52 = vld [vmem:[#allocation2 + $0x109] ss:$32 sm:$0x1] }
 0x2cd   :  { %7988 = vmatmul.mubr.f32.vlgmr.msra.gmra.mrb[0].mxu0 %v4085_v1  ;;  %v4314_v1 = vld [vmem:[#allocation2 + $0x15] ss:$32 sm:$0x10]  ;;  %v2818_v24 = vld [vmem:[#allocation2 + $0x109] ss:$32 sm:$0x10] }
 0x2ce   :  { %9084 = vmatpush3.bf16.msra.mxu0 %v9081_v51  ;;  %8022 = vmatprep.mubr.f32.mxu0 %v4195_v4  ;;  %v8721_v51 = vpack.c.bf16 %v6314_v45, %v6313_v38  ;;  %v2801_v60 = vor.u32 %v2800_v44, %v2799_v40  ;;  %v6508_v4 = vld [vmem:[%s11833_s3 + $0xa78] sm:$0xff]  ;;  %v8733_v38 = vpack.c.bf16 %v6320_v31, %v6319_v27  ;;  %v6322_v40 = vld [vmem:[%s11833_s3 + $0x4a8] sm:$0xff]  ;;  %v6513_v44 = vld [vmem:[%s11833_s3 + $0xaa0] sm:$0xff] }
 0x2cf   :  { %9086 = vmatprep.subr.bf16.mxu0 %v9085_v3  ;;  %8704 = vmatpush3.bf16.msra.mxu1 %v8701_v20  ;;  %v4204_v20 = vld [vmem:[#allocation2 + $0x114] ss:$32 sm:$0x10]  ;;  %v8737_v48 = vpack.c.bf16 %v6322_v40, %v6321_v39  ;;  %v6521_v27 = vld [vmem:[%s11833_s3 + $0xae0] sm:$0xff]  ;;  %v6522_v31 = vld [vmem:[%s11833_s3 + $0xae8] sm:$0xff] }
 0x2d0   :  { %8706 = vmatprep.subr.bf16.mxu1 %v8705_v5  ;;  %v2803_v28 = vor.u32 %v2802_v55, %v2801_v60  ;;  %v4205_v10 = vor.u32 %v4204_v20, %v4203_v6  ;;  %v6323_v49 = vld [vmem:[%s11833_s3 + $0x4b0] sm:$0xff]  ;;  %v2812_v20 = vld [vmem:[#allocation2 + $0x109] ss:$32 sm:$0x2] }
 0x2d1   :  { %v8741_v55 = vpack.c.bf16 %v6324_v50, %v6323_v49  ;;  %v6518_v6 = vld [vmem:[%s11833_s3 + $0xac8] sm:$0xff] }
 0x2d2   :  { %9088 = vmatpush3.bf16.msra.mxu0 %v9085_v3  ;;  %v6507_v3 = vld [vmem:[%s11833_s3 + $0xa70] sm:$0xff]  ;;  %v4207_v22 = vor.u32 %v4206_v13, %v4205_v10  ;;  %v2813_v10 = vor.u32 %v2812_v20, %v2811_v52  ;;  %v2822_v50 = vld [vmem:[#allocation2 + $0x109] ss:$32 sm:$0x40] }
 0x2d3   :  { %9090 = vmatprep.subr.bf16.mxu0 %v9089_v9  ;;  %8708 = vmatpush3.bf16.msra.mxu1 %v8705_v5  ;;  %v4313_v5 = vor.u32 %v4312_v57, %v4311_v25  ;;  %v9121_v25 = vpack.c.bf16 %v6514_v46, %v6513_v44  ;;  %v6325_v57 = vld [vmem:[%s11833_s3 + $0x4c0] sm:$0xff]  ;;  %v6519_v13 = vld [vmem:[%s11833_s3 + $0xad0] sm:$0xff]  ;;  %v2820_v44 = vld [vmem:[#allocation2 + $0x109] ss:$32 sm:$0x20] }
 0x2d4   :  { %8710 = vmatprep.subr.bf16.mxu1 %v8709_v12  ;;  %v4209_v7 = vor.u32 %v4208_v2, %v4207_v22  ;;  %v4436_v2 = vld [vmem:[#allocation2 + $0x16] ss:$32 sm:$0x4]  ;;  %v2932_v20 = vld [vmem:[#allocation2 + $0xa] ss:$32 sm:$0x40] }
 0x2d5   :  { %v4315_v14 = vor.u32 %v4314_v1, %v4313_v5  ;;  %v2814_v1 = vld [vmem:[#allocation2 + $0x109] ss:$32 sm:$0x4]  ;;  %v6327_v5 = vld [vmem:[%s11833_s3 + $0x4d0] sm:$0xff] }
 0x2d6   :  { %9092 = vmatpush3.bf16.msra.mxu0 %v9089_v9  ;;  %v2804_v9 = vld [vmem:[#allocation2 + $0x9] ss:$32 sm:$0x20]  ;;  %v4211_v41 = vor.u32 %v4210_v32, %v4209_v7 }
 0x2d7   :  { %9094 = vmatprep.subr.bf16.mxu0 %v9093_v15  ;;  %8712 = vmatpush3.bf16.msra.mxu1 %v8709_v12  ;;  %v6318_v12 = vld [vmem:[%s11833_s3 + $0x488] sm:$0xff]  ;;  %v2805_v53 = vor.u32 %v2804_v9, %v2803_v28  ;;  %v4323_v28 = vld [vmem:[#allocation2 + $0x115] ss:$32 sm:$0x1]  ;;  %v9129_v9 = vpack.c.bf16 %v6518_v6, %v6517_v63 }
 0x2d8   :  { %8714 = vmatprep.subr.bf16.mxu1 %v8713_v19  ;;  %v8729_v21 = vpack.c.bf16 %v6318_v12, %v6317_v11  ;;  %v4433_v11 = vld [vmem:[#allocation2 + $0x16] ss:$32 sm:$0x1]  ;;  %v4334_v6 = vld [vmem:[#allocation2 + $0x115] ss:$32 sm:$0x40] }
 0x2d9   :  { %v2807_v26 = vor.u32 %v2806_v47, %v2805_v53  ;;  %v4434_v12 = vld [vmem:[#allocation2 + $0x16] ss:$32 sm:$0x2]  ;;  %v4325_v53 = vor.u32 %v4324_v62, %v4323_v28 }
 0x2da   :  { %9096 = vmatpush3.bf16.msra.mxu0 %v9093_v15  ;;  %v9109_v15 = vpack.c.bf16 %v6508_v4, %v6507_v3  ;;  %v2922_v3 = vld [vmem:[#allocation2 + $0xa] ss:$32 sm:$0x2]  ;;  %v8745_v4 = vpack.c.bf16 %v6326_v58, %v6325_v57  ;;  %v4435_v22 = vor.u32 %v4434_v12, %v4433_v11  ;;  %v4332_v57 = vld [vmem:[#allocation2 + $0x115] ss:$32 sm:$0x20] }
 0x2db   :  { %9098 = vmatprep.subr.bf16.mxu0 %v9097_v0  ;;  %8716 = vmatpush3.bf16.msra.mxu1 %v8713_v19  ;;  %v6510_v19 = vld [vmem:[%s11833_s3 + $0xa88] sm:$0xff]  ;;  %v2809_v45 = vor.u32 %v2808_v29, %v2807_v26  ;;  %v4328_v29 = vld [vmem:[#allocation2 + $0x115] ss:$32 sm:$0x8]  ;;  %v6336_v11 = vld [vmem:[%s11833_s3 + $0x518] sm:$0xff] }
 0x2dc   :  { %8718 = vmatprep.subr.bf16.mxu1 %v8717_v34  ;;  %v9113_v30 = vpack.c.bf16 %v6510_v19, %v6509_v18  ;;  %v6329_v18 = vld [vmem:[%s11833_s3 + $0x4e0] sm:$0xff]  ;;  %v6330_v19 = vld [vmem:[%s11833_s3 + $0x4e8] sm:$0xff]  ;;  %v4437_v7 = vor.u32 %v4436_v2, %v4435_v22  ;;  %v4446_v2 = vld [vmem:[#allocation2 + $0x16] ss:$32 sm:$0x80] }
 0x2dd   :  { %v2926_v26 = vld [vmem:[#allocation2 + $0xa] ss:$32 sm:$0x8] }
 0x2de   :  { %9100 = vmatpush3.bf16.msra.mxu0 %v9097_v0  ;;  %v4317_v0 = vor.u32 %v4316_v17, %v4315_v14  ;;  %v6520_v14 = vld [vmem:[%s11833_s3 + $0xad8] sm:$0xff]  ;;  %v2815_v17 = vor.u32 %v2814_v1, %v2813_v10  ;;  %v6525_v1 = vld [vmem:[%s11833_s3 + $0xb00] sm:$0xff]  ;;  %v6335_v10 = vld [vmem:[%s11833_s3 + $0x510] sm:$0xff] }
 0x2df   :  { %9102 = vmatprep.subr.bf16.mxu0 %v9101_v42  ;;  %8720 = vmatpush3.bf16.msra.mxu1 %v8717_v34  ;;  %v6511_v34 = vld [vmem:[%s11833_s3 + $0xa90] sm:$0xff]  ;;  %v2934_v12 = vld [vmem:[#allocation2 + $0xa] ss:$32 sm:$0x80] }
 0x2e0   :  { %8722 = vmatprep.subr.bf16.mxu1 %v8721_v51  ;;  %v4319_v33 = vor.u32 %v4318_v23, %v4317_v0  ;;  %v9133_v23 = vpack.c.bf16 %v6520_v14, %v6519_v13  ;;  %v4327_v0 = vor.u32 %v4326_v16, %v4325_v53  ;;  %v2817_v32 = vor.u32 %v2816_v59, %v2815_v17  ;;  %v6528_v17 = vld [vmem:[%s11833_s3 + $0xb18] sm:$0xff]  ;;  %v6337_v59 = vld [vmem:[%s11833_s3 + $0x520] sm:$0xff] }
 0x2e2   :  { %9104 = vmatpush3.bf16.msra.mxu0 %v9101_v42  ;;  %v9117_v42 = vpack.c.bf16 %v6512_v35, %v6511_v34  ;;  %v4321_v43 = vor.u32 %v4320_v37, %v4319_v33  ;;  %v2928_v33 = vld [vmem:[#allocation2 + $0xa] ss:$32 sm:$0x10]  ;;  %v4438_v34 = vld [vmem:[#allocation2 + $0x16] ss:$32 sm:$0x8]  ;;  %v2819_v39 = vor.u32 %v2818_v24, %v2817_v32  ;;  %v4329_v40 = vor.u32 %v4328_v29, %v4327_v0 }
 0x2e3   :  { %9106 = vmatprep.subr.bf16.mxu0 %v9105_v61  ;;  %8724 = vmatpush3.bf16.msra.mxu1 %v8721_v51  ;;  %v6515_v51 = vld [vmem:[%s11833_s3 + $0xab0] sm:$0xff]  ;;  %v6530_v0 = vld [vmem:[%s11833_s3 + $0xb28] sm:$0xff]  ;;  %v6340_v29 = vld [vmem:[%s11833_s3 + $0x538] sm:$0xff] }
 0x2e4   :  { %8726 = vmatprep.subr.bf16.mxu1 %v8725_v8  ;;  %v9125_v60 = vpack.c.bf16 %v6516_v54, %v6515_v51  ;;  %v6331_v35 = vld [vmem:[%s11833_s3 + $0x4f0] sm:$0xff]  ;;  %v6333_v54 = vld [vmem:[%s11833_s3 + $0x500] sm:$0xff]  ;;  %v6532_v32 = vld [vmem:[%s11833_s3 + $0xb38] sm:$0xff] }
 0x2e6   :  { %9108 = vmatpush3.bf16.msra.mxu0 %v9105_v61  ;;  %v2921_v61 = vld [vmem:[#allocation2 + $0xa] ss:$32 sm:$0x1] }
 0x2e7   :  { %9110 = vmatprep.subr.bf16.mxu0 %v9109_v15  ;;  %8728 = vmatpush3.bf16.msra.mxu1 %v8725_v8  ;;  %v6328_v8 = vld [vmem:[%s11833_s3 + $0x4d8] sm:$0xff] }
 0x2e8   :  { %8730 = vmatprep.subr.bf16.mxu1 %v8729_v21  ;;  %v8749_v47 = vpack.c.bf16 %v6328_v8, %v6327_v5  ;;  %v4444_v5 = vld [vmem:[#allocation2 + $0x16] ss:$32 sm:$0x40]  ;;  %v2824_v8 = vld [vmem:[#allocation2 + $0x109] ss:$32 sm:$0x80] }
 0x2ea   :  { %9112 = vmatpush3.bf16.msra.mxu0 %v9109_v15  ;;  %7603 = vmatmul.mubr.f32.vlgmr.msra.gmra.mrb[64].mxu1 %v2699_v36  ;;  %v2923_v15 = vor.u32 %v2922_v3, %v2921_v61  ;;  %v6332_v36 = vld [vmem:[%s11833_s3 + $0x4f8] sm:$0xff]  ;;  %v4442_v61 = vld [vmem:[#allocation2 + $0x16] ss:$32 sm:$0x20]  ;;  %v6526_v3 = vld [vmem:[%s11833_s3 + $0xb08] sm:$0xff] }
 0x2eb   :  { %9114 = vmatprep.subr.bf16.mxu0 %v9113_v30  ;;  %8732 = vmatpush3.bf16.msra.mxu1 %v8729_v21  ;;  %v8757_v49 = vpack.c.bf16 %v6332_v36, %v6331_v35  ;;  %v9145_v14 = vpack.c.bf16 %v6526_v3, %v6525_v1  ;;  %v6342_v35 = vld [vmem:[%s11833_s3 + $0x548] sm:$0xff]  ;;  %v6345_v1 = vld [vmem:[%s11833_s3 + $0x560] sm:$0xff] }
 0x2ec   :  { %7637 = vmatprep.mubr.f32.mxu1 %v2809_v45  ;;  %8734 = vmatprep.subr.bf16.mxu1 %v8733_v38  ;;  %v2925_v21 = vor.u32 %v2924_v56, %v2923_v15  ;;  %v9137_v45 = vpack.c.bf16 %v6522_v31, %v6521_v27  ;;  %v4336_v15 = vld [vmem:[#allocation2 + $0x115] ss:$32 sm:$0x80]  ;;  %v2937_v36 = vld [vmem:[#allocation2 + $0x10a] ss:$32 sm:$0x1] }
 0x2ed   :  { %8023 = vmatmul.mubr.f32.vlgmr.msra.gmra.mrb[0].mxu0 %v4211_v41  ;;  %v4440_v41 = vld [vmem:[#allocation2 + $0x16] ss:$32 sm:$0x10]  ;;  %v6346_v3 = vld [vmem:[%s11833_s3 + $0x568] sm:$0xff] }
 0x2ee   :  { %9116 = vmatpush3.bf16.msra.mxu0 %v9113_v30  ;;  %8057 = vmatprep.mubr.f32.mxu0 %v4321_v43  ;;  %v8753_v30 = vpack.c.bf16 %v6330_v19, %v6329_v18  ;;  %v2927_v37 = vor.u32 %v2926_v26, %v2925_v21  ;;  %v6524_v43 = vld [vmem:[%s11833_s3 + $0xaf8] sm:$0xff]  ;;  %v8765_v18 = vpack.c.bf16 %v6336_v11, %v6335_v10  ;;  %v6338_v21 = vld [vmem:[%s11833_s3 + $0x528] sm:$0xff]  ;;  %v6529_v26 = vld [vmem:[%s11833_s3 + $0xb20] sm:$0xff] }
 0x2ef   :  { %9118 = vmatprep.subr.bf16.mxu0 %v9117_v42  ;;  %8736 = vmatpush3.bf16.msra.mxu1 %v8733_v38  ;;  %v4330_v38 = vld [vmem:[#allocation2 + $0x115] ss:$32 sm:$0x10]  ;;  %v8769_v27 = vpack.c.bf16 %v6338_v21, %v6337_v59  ;;  %v6537_v10 = vld [vmem:[%s11833_s3 + $0xb60] sm:$0xff]  ;;  %v6538_v11 = vld [vmem:[%s11833_s3 + $0xb68] sm:$0xff] }
 0x2f0   :  { %8738 = vmatprep.subr.bf16.mxu1 %v8737_v48  ;;  %v2929_v46 = vor.u32 %v2928_v33, %v2927_v37  ;;  %v4331_v51 = vor.u32 %v4330_v38, %v4329_v40  ;;  %v6339_v31 = vld [vmem:[%s11833_s3 + $0x530] sm:$0xff]  ;;  %v2938_v38 = vld [vmem:[#allocation2 + $0x10a] ss:$32 sm:$0x2] }
 0x2f1   :  { %v8773_v33 = vpack.c.bf16 %v6340_v29, %v6339_v31  ;;  %v6534_v40 = vld [vmem:[%s11833_s3 + $0xb48] sm:$0xff] }
 0x2f2   :  { %9120 = vmatpush3.bf16.msra.mxu0 %v9117_v42  ;;  %v6523_v42 = vld [vmem:[%s11833_s3 + $0xaf0] sm:$0xff]  ;;  %v4333_v28 = vor.u32 %v4332_v57, %v4331_v51  ;;  %v2939_v51 = vor.u32 %v2938_v38, %v2937_v36  ;;  %v3056_v29 = vld [vmem:[#allocation2 + $0xb] ss:$32 sm:$0x20] }
 0x2f3   :  { %9122 = vmatprep.subr.bf16.mxu0 %v9121_v25  ;;  %8740 = vmatpush3.bf16.msra.mxu1 %v8737_v48  ;;  %v4439_v48 = vor.u32 %v4438_v34, %v4437_v7  ;;  %v9141_v52 = vpack.c.bf16 %v6524_v43, %v6523_v42  ;;  %v9153_v7 = vpack.c.bf16 %v6530_v0, %v6529_v26  ;;  %v6341_v34 = vld [vmem:[%s11833_s3 + $0x540] sm:$0xff]  ;;  %v2940_v43 = vld [vmem:[#allocation2 + $0x10a] ss:$32 sm:$0x4]  ;;  %v6535_v57 = vld [vmem:[%s11833_s3 + $0xb50] sm:$0xff] }
 0x2f4   :  { %8742 = vmatprep.subr.bf16.mxu1 %v8741_v55  ;;  %v4335_v13 = vor.u32 %v4334_v6, %v4333_v28  ;;  %v8777_v42 = vpack.c.bf16 %v6342_v35, %v6341_v34  ;;  %v4562_v6 = vld [vmem:[#allocation2 + $0x17] ss:$32 sm:$0x4]  ;;  %v2946_v26 = vld [vmem:[#allocation2 + $0x10a] ss:$32 sm:$0x20] }
 0x2f5   :  { %v4441_v58 = vor.u32 %v4440_v41, %v4439_v48  ;;  %v3048_v41 = vld [vmem:[#allocation2 + $0xb] ss:$32 sm:$0x2]  ;;  %v6343_v48 = vld [vmem:[%s11833_s3 + $0x550] sm:$0xff] }
 0x2f6   :  { %9124 = vmatpush3.bf16.msra.mxu0 %v9121_v25  ;;  %v2930_v25 = vld [vmem:[#allocation2 + $0xa] ss:$32 sm:$0x20]  ;;  %v4337_v22 = vor.u32 %v4336_v15, %v4335_v13  ;;  %v3058_v38 = vld [vmem:[#allocation2 + $0xb] ss:$32 sm:$0x40] }
 0x2f7   :  { %9126 = vmatprep.subr.bf16.mxu0 %v9125_v60  ;;  %8744 = vmatpush3.bf16.msra.mxu1 %v8741_v55  ;;  %v6334_v55 = vld [vmem:[%s11833_s3 + $0x508] sm:$0xff]  ;;  %v2931_v63 = vor.u32 %v2930_v25, %v2929_v46  ;;  %v4449_v46 = vld [vmem:[#allocation2 + $0x116] ss:$32 sm:$0x1] }
 0x2f8   :  { %8746 = vmatprep.subr.bf16.mxu1 %v8745_v4  ;;  %v8761_v56 = vpack.c.bf16 %v6334_v55, %v6333_v54  ;;  %v4559_v54 = vld [vmem:[#allocation2 + $0x17] ss:$32 sm:$0x1]  ;;  %v6350_v34 = vld [vmem:[%s11833_s3 + $0x588] sm:$0xff] }
 0x2f9   :  { %v2933_v62 = vor.u32 %v2932_v20, %v2931_v63  ;;  %v4560_v55 = vld [vmem:[#allocation2 + $0x17] ss:$32 sm:$0x2] }
 0x2fa   :  { %9128 = vmatpush3.bf16.msra.mxu0 %v9125_v60  ;;  %v2821_v60 = vor.u32 %v2820_v44, %v2819_v39  ;;  %v6533_v39 = vld [vmem:[%s11833_s3 + $0xb40] sm:$0xff]  ;;  %v3050_v44 = vld [vmem:[#allocation2 + $0xb] ss:$32 sm:$0x4]  ;;  %v4561_v28 = vor.u32 %v4560_v55, %v4559_v54  ;;  %v6352_v54 = vld [vmem:[%s11833_s3 + $0x598] sm:$0xff] }
 0x2fb   :  { %9130 = vmatprep.subr.bf16.mxu0 %v9129_v9  ;;  %8748 = vmatpush3.bf16.msra.mxu1 %v8745_v4  ;;  %v2935_v19 = vor.u32 %v2934_v12, %v2933_v62  ;;  %v9161_v25 = vpack.c.bf16 %v6534_v40, %v6533_v39  ;;  %v2944_v12 = vld [vmem:[#allocation2 + $0x10a] ss:$32 sm:$0x10]  ;;  %v4460_v40 = vld [vmem:[#allocation2 + $0x116] ss:$32 sm:$0x40] }
 0x2fc   :  { %8750 = vmatprep.subr.bf16.mxu1 %v8749_v47  ;;  %v2823_v4 = vor.u32 %v2822_v50, %v2821_v60  ;;  %v4450_v50 = vld [vmem:[#allocation2 + $0x116] ss:$32 sm:$0x2]  ;;  %v4563_v13 = vor.u32 %v4562_v6, %v4561_v28  ;;  %v3060_v55 = vld [vmem:[#allocation2 + $0xb] ss:$32 sm:$0x80] }
 0x2fd   :  { %v4452_v60 = vld [vmem:[#allocation2 + $0x116] ss:$32 sm:$0x4]  ;;  %v4451_v63 = vor.u32 %v4450_v50, %v4449_v46  ;;  %v4572_v6 = vld [vmem:[#allocation2 + $0x17] ss:$32 sm:$0x80] }
 0x2fe   :  { %9132 = vmatpush3.bf16.msra.mxu0 %v9129_v9  ;;  %v4443_v9 = vor.u32 %v4442_v61, %v4441_v58  ;;  %v2825_v53 = vor.u32 %v2824_v8, %v2823_v4  ;;  %v6536_v58 = vld [vmem:[%s11833_s3 + $0xb58] sm:$0xff]  ;;  %v2941_v61 = vor.u32 %v2940_v43, %v2939_v51  ;;  %v2942_v4 = vld [vmem:[#allocation2 + $0x10a] ss:$32 sm:$0x8]  ;;  %v6351_v51 = vld [vmem:[%s11833_s3 + $0x590] sm:$0xff] }
 0x2ff   :  { %9134 = vmatprep.subr.bf16.mxu0 %v9133_v23  ;;  %8752 = vmatpush3.bf16.msra.mxu1 %v8749_v47  ;;  %v6527_v47 = vld [vmem:[%s11833_s3 + $0xb10] sm:$0xff]  ;;  %v3052_v8 = vld [vmem:[#allocation2 + $0xb] ss:$32 sm:$0x8]  ;;  %v4453_v62 = vor.u32 %v4452_v60, %v4451_v63 }
 0x300   :  { %8754 = vmatprep.subr.bf16.mxu1 %v8753_v30  ;;  %v4445_v16 = vor.u32 %v4444_v5, %v4443_v9  ;;  %v9165_v5 = vpack.c.bf16 %v6536_v58, %v6535_v57  ;;  %v4454_v9 = vld [vmem:[#allocation2 + $0x116] ss:$32 sm:$0x8]  ;;  %v2943_v15 = vor.u32 %v2942_v4, %v2941_v61  ;;  %v6544_v61 = vld [vmem:[%s11833_s3 + $0xb98] sm:$0xff]  ;;  %v6353_v4 = vld [vmem:[%s11833_s3 + $0x5a0] sm:$0xff] }
 0x301   :  { %v4455_v21 = vor.u32 %v4454_v9, %v4453_v62  ;;  %v6545_v62 = vld [vmem:[%s11833_s3 + $0xba0] sm:$0xff]  ;;  %v6546_v9 = vld [vmem:[%s11833_s3 + $0xba8] sm:$0xff] }
 0x302   :  { %9136 = vmatpush3.bf16.msra.mxu0 %v9133_v23  ;;  %v9149_v23 = vpack.c.bf16 %v6528_v17, %v6527_v47  ;;  %v4447_v24 = vor.u32 %v4446_v2, %v4445_v16  ;;  %v3054_v16 = vld [vmem:[#allocation2 + $0xb] ss:$32 sm:$0x10]  ;;  %v4564_v47 = vld [vmem:[#allocation2 + $0x17] ss:$32 sm:$0x8]  ;;  %v2945_v59 = vor.u32 %v2944_v12, %v2943_v15 }
 0x303   :  { %9138 = vmatprep.subr.bf16.mxu0 %v9137_v45  ;;  %8756 = vmatpush3.bf16.msra.mxu1 %v8753_v30  ;;  %v6531_v30 = vld [vmem:[%s11833_s3 + $0xb30] sm:$0xff]  ;;  %v6356_v12 = vld [vmem:[%s11833_s3 + $0x5b8] sm:$0xff] }
 0x304   :  { %8758 = vmatprep.subr.bf16.mxu1 %v8757_v49  ;;  %v9157_v37 = vpack.c.bf16 %v6532_v32, %v6531_v30  ;;  %v6347_v17 = vld [vmem:[%s11833_s3 + $0x570] sm:$0xff]  ;;  %v2948_v32 = vld [vmem:[#allocation2 + $0x10a] ss:$32 sm:$0x40]  ;;  %v6548_v15 = vld [vmem:[%s11833_s3 + $0xbb8] sm:$0xff] }
 0x305   :  { %v4458_v30 = vld [vmem:[#allocation2 + $0x116] ss:$32 sm:$0x20] }
 0x306   :  { %9140 = vmatpush3.bf16.msra.mxu0 %v9137_v45  ;;  %v3047_v45 = vld [vmem:[#allocation2 + $0xb] ss:$32 sm:$0x1] }
 0x307   :  { %9142 = vmatprep.subr.bf16.mxu0 %v9141_v52  ;;  %8760 = vmatpush3.bf16.msra.mxu1 %v8757_v49  ;;  %v6344_v49 = vld [vmem:[%s11833_s3 + $0x558] sm:$0xff] }
 0x308   :  { %8762 = vmatprep.subr.bf16.mxu1 %v8761_v56  ;;  %v8781_v20 = vpack.c.bf16 %v6344_v49, %v6343_v48  ;;  %v4570_v48 = vld [vmem:[#allocation2 + $0x17] ss:$32 sm:$0x40]  ;;  %v2950_v49 = vld [vmem:[#allocation2 + $0x10a] ss:$32 sm:$0x80] }
 0x30a   :  { %9144 = vmatpush3.bf16.msra.mxu0 %v9141_v52  ;;  %7638 = vmatmul.mubr.f32.vlgmr.msra.gmra.mrb[64].mxu1 %v2825_v53  ;;  %v3049_v52 = vor.u32 %v3048_v41, %v3047_v45  ;;  %v6348_v53 = vld [vmem:[%s11833_s3 + $0x578] sm:$0xff]  ;;  %v4568_v45 = vld [vmem:[#allocation2 + $0x17] ss:$32 sm:$0x20]  ;;  %v6541_v41 = vld [vmem:[%s11833_s3 + $0xb80] sm:$0xff] }
 0x30b   :  { %9146 = vmatprep.subr.bf16.mxu0 %v9145_v14  ;;  %8764 = vmatpush3.bf16.msra.mxu1 %v8761_v56  ;;  %v8789_v31 = vpack.c.bf16 %v6348_v53, %v6347_v17  ;;  %v6358_v17 = vld [vmem:[%s11833_s3 + $0x5c8] sm:$0xff] }
 0x30c   :  { %7672 = vmatprep.mubr.f32.mxu1 %v2935_v19  ;;  %8766 = vmatprep.subr.bf16.mxu1 %v8765_v18  ;;  %v3051_v56 = vor.u32 %v3050_v44, %v3049_v52  ;;  %v9169_v19 = vpack.c.bf16 %v6538_v11, %v6537_v10  ;;  %v4462_v52 = vld [vmem:[#allocation2 + $0x116] ss:$32 sm:$0x80] }
 0x30d   :  { %8058 = vmatmul.mubr.f32.vlgmr.msra.gmra.mrb[0].mxu0 %v4337_v22  ;;  %v4566_v22 = vld [vmem:[#allocation2 + $0x17] ss:$32 sm:$0x10] }
 0x30e   :  { %9148 = vmatpush3.bf16.msra.mxu0 %v9145_v14  ;;  %8092 = vmatprep.mubr.f32.mxu0 %v4447_v24  ;;  %v8785_v14 = vpack.c.bf16 %v6346_v3, %v6345_v1  ;;  %v3053_v2 = vor.u32 %v3052_v8, %v3051_v56  ;;  %v6540_v24 = vld [vmem:[%s11833_s3 + $0xb78] sm:$0xff]  ;;  %v8797_v1 = vpack.c.bf16 %v6352_v54, %v6351_v51  ;;  %v6354_v56 = vld [vmem:[%s11833_s3 + $0x5a8] sm:$0xff]  ;;  %v6355_v11 = vld [vmem:[%s11833_s3 + $0x5b0] sm:$0xff] }
 0x30f   :  { %9150 = vmatprep.subr.bf16.mxu0 %v9149_v23  ;;  %8768 = vmatpush3.bf16.msra.mxu1 %v8765_v18  ;;  %v4456_v18 = vld [vmem:[#allocation2 + $0x116] ss:$32 sm:$0x10]  ;;  %v8801_v10 = vpack.c.bf16 %v6354_v56, %v6353_v4  ;;  %v4690_v51 = vld [vmem:[#allocation2 + $0x18] ss:$32 sm:$0x8] }
 0x310   :  { %8770 = vmatprep.subr.bf16.mxu1 %v8769_v27  ;;  %v3055_v0 = vor.u32 %v3054_v16, %v3053_v2  ;;  %v8805_v16 = vpack.c.bf16 %v6356_v12, %v6355_v11  ;;  %v3063_v2 = vld [vmem:[#allocation2 + $0x10b] ss:$32 sm:$0x1]  ;;  %v6363_v54 = vld [vmem:[%s11833_s3 + $0x5f0] sm:$0xff]  ;;  %v6557_v11 = vld [vmem:[%s11833_s3 + $0xc00] sm:$0xff] }
 0x311   :  { %v3074_v56 = vld [vmem:[#allocation2 + $0x10b] ss:$32 sm:$0x40] }
 0x312   :  { %9152 = vmatpush3.bf16.msra.mxu0 %v9149_v23  ;;  %v6539_v23 = vld [vmem:[%s11833_s3 + $0xb70] sm:$0xff]  ;;  %v3057_v39 = vor.u32 %v3056_v29, %v3055_v0  ;;  %v3066_v0 = vld [vmem:[#allocation2 + $0x10b] ss:$32 sm:$0x4] }
 0x313   :  { %9154 = vmatprep.subr.bf16.mxu0 %v9153_v7  ;;  %8772 = vmatpush3.bf16.msra.mxu1 %v8769_v27  ;;  %v4565_v27 = vor.u32 %v4564_v47, %v4563_v13  ;;  %v9173_v36 = vpack.c.bf16 %v6540_v24, %v6539_v23  ;;  %v9185_v13 = vpack.c.bf16 %v6546_v9, %v6545_v62  ;;  %v6357_v47 = vld [vmem:[%s11833_s3 + $0x5c0] sm:$0xff]  ;;  %v4576_v23 = vld [vmem:[#allocation2 + $0x117] ss:$32 sm:$0x2]  ;;  %v6558_v12 = vld [vmem:[%s11833_s3 + $0xc08] sm:$0xff] }
 0x314   :  { %8774 = vmatprep.subr.bf16.mxu1 %v8773_v33  ;;  %v3059_v50 = vor.u32 %v3058_v38, %v3057_v39  ;;  %v6359_v24 = vld [vmem:[%s11833_s3 + $0x5d0] sm:$0xff]  ;;  %v4685_v29 = vld [vmem:[#allocation2 + $0x18] ss:$32 sm:$0x1]  ;;  %v6361_v38 = vld [vmem:[%s11833_s3 + $0x5e0] sm:$0xff] }
 0x315   :  { %v4567_v35 = vor.u32 %v4566_v22, %v4565_v27  ;;  %v4575_v22 = vld [vmem:[#allocation2 + $0x117] ss:$32 sm:$0x1]  ;;  %v3068_v39 = vld [vmem:[#allocation2 + $0x10b] ss:$32 sm:$0x8] }
 0x316   :  { %9156 = vmatpush3.bf16.msra.mxu0 %v9153_v7  ;;  %v4457_v7 = vor.u32 %v4456_v18, %v4455_v21  ;;  %v3061_v3 = vor.u32 %v3060_v55, %v3059_v50  ;;  %v6549_v18 = vld [vmem:[%s11833_s3 + $0xbc0] sm:$0xff]  ;;  %v8809_v21 = vpack.c.bf16 %v6358_v17, %v6357_v47  ;;  %v6364_v55 = vld [vmem:[%s11833_s3 + $0x5f8] sm:$0xff] }
 0x317   :  { %9158 = vmatprep.subr.bf16.mxu0 %v9157_v37  ;;  %8776 = vmatpush3.bf16.msra.mxu1 %v8773_v33  ;;  %v6349_v33 = vld [vmem:[%s11833_s3 + $0x580] sm:$0xff]  ;;  %v4694_v9 = vld [vmem:[#allocation2 + $0x18] ss:$32 sm:$0x20] }
 0x318   :  { %8778 = vmatprep.subr.bf16.mxu1 %v8777_v42  ;;  %v8793_v44 = vpack.c.bf16 %v6350_v34, %v6349_v33  ;;  %v4459_v46 = vor.u32 %v4458_v30, %v4457_v7  ;;  %v4686_v7 = vld [vmem:[#allocation2 + $0x18] ss:$32 sm:$0x2]  ;;  %v6551_v30 = vld [vmem:[%s11833_s3 + $0xbd0] sm:$0xff] }
 0x319   :  { %v4578_v33 = vld [vmem:[#allocation2 + $0x117] ss:$32 sm:$0x4] }
 0x31a   :  { %9160 = vmatpush3.bf16.msra.mxu0 %v9157_v37  ;;  %v2947_v37 = vor.u32 %v2946_v26, %v2945_v59  ;;  %v4461_v57 = vor.u32 %v4460_v40, %v4459_v46  ;;  %v3064_v59 = vld [vmem:[#allocation2 + $0x10b] ss:$32 sm:$0x2]  ;;  %v6360_v26 = vld [vmem:[%s11833_s3 + $0x5d8] sm:$0xff]  ;;  %v4687_v40 = vor.u32 %v4686_v7, %v4685_v29  ;;  %v6563_v29 = vld [vmem:[%s11833_s3 + $0xc30] sm:$0xff] }
 0x31b   :  { %9162 = vmatprep.subr.bf16.mxu0 %v9161_v25  ;;  %8780 = vmatpush3.bf16.msra.mxu1 %v8777_v42  ;;  %v6542_v42 = vld [vmem:[%s11833_s3 + $0xb88] sm:$0xff]  ;;  %v8813_v34 = vpack.c.bf16 %v6360_v26, %v6359_v24  ;;  %v6564_v7 = vld [vmem:[%s11833_s3 + $0xc38] sm:$0xff] }
 0x31c   :  { %8782 = vmatprep.subr.bf16.mxu1 %v8781_v20  ;;  %v2949_v43 = vor.u32 %v2948_v32, %v2947_v37  ;;  %v9177_v58 = vpack.c.bf16 %v6542_v42, %v6541_v41  ;;  %v4463_v28 = vor.u32 %v4462_v52, %v4461_v57  ;;  %v6552_v32 = vld [vmem:[%s11833_s3 + $0xbd8] sm:$0xff]  ;;  %v6554_v46 = vld [vmem:[%s11833_s3 + $0xbe8] sm:$0xff]  ;;  %v4582_v57 = vld [vmem:[#allocation2 + $0x117] ss:$32 sm:$0x10] }
 0x31d   :  { %v4688_v37 = vld [vmem:[#allocation2 + $0x18] ss:$32 sm:$0x4]  ;;  %v9197_v41 = vpack.c.bf16 %v6552_v32, %v6551_v30  ;;  %v9221_v30 = vpack.c.bf16 %v6564_v7, %v6563_v29  ;;  %v6565_v32 = vld [vmem:[%s11833_s3 + $0xc40] sm:$0xff]  ;;  %v6583_v29 = vld [vmem:[%s11833_s3 + $0xcd0] sm:$0xff] }
 0x31e   :  { %9164 = vmatpush3.bf16.msra.mxu0 %v9161_v25  ;;  %v4569_v25 = vor.u32 %v4568_v45, %v4567_v35  ;;  %v2951_v63 = vor.u32 %v2950_v49, %v2949_v43  ;;  %v6362_v45 = vld [vmem:[%s11833_s3 + $0x5e8] sm:$0xff]  ;;  %v4580_v43 = vld [vmem:[#allocation2 + $0x117] ss:$32 sm:$0x8]  ;;  %v4689_v49 = vor.u32 %v4688_v37, %v4687_v40  ;;  %v6584_v7 = vld [vmem:[%s11833_s3 + $0xcd8] sm:$0xff] }
 0x31f   :  { %9166 = vmatprep.subr.bf16.mxu0 %v9165_v5  ;;  %8784 = vmatpush3.bf16.msra.mxu1 %v8781_v20  ;;  %v6543_v20 = vld [vmem:[%s11833_s3 + $0xb90] sm:$0xff]  ;;  %v8817_v50 = vpack.c.bf16 %v6362_v45, %v6361_v38  ;;  %v4811_v37 = vld [vmem:[#allocation2 + $0x19] ss:$32 sm:$0x1] }
 0x320   :  { %8786 = vmatprep.subr.bf16.mxu1 %v8785_v14  ;;  %v4571_v60 = vor.u32 %v4570_v48, %v4569_v25  ;;  %v3070_v48 = vld [vmem:[#allocation2 + $0x10b] ss:$32 sm:$0x10]  ;;  %v4812_v38 = vld [vmem:[#allocation2 + $0x19] ss:$32 sm:$0x2] }
 0x321   :  { %v6567_v45 = vld [vmem:[%s11833_s3 + $0xc50] sm:$0xff]  ;;  %v4704_v40 = vld [vmem:[#allocation2 + $0x118] ss:$32 sm:$0x4] }
 0x322   :  { %9168 = vmatpush3.bf16.msra.mxu0 %v9165_v5  ;;  %v9181_v5 = vpack.c.bf16 %v6544_v61, %v6543_v20  ;;  %v4573_v8 = vor.u32 %v4572_v6, %v4571_v60  ;;  %v4692_v20 = vld [vmem:[#allocation2 + $0x18] ss:$32 sm:$0x10]  ;;  %v6555_v61 = vld [vmem:[%s11833_s3 + $0xbf0] sm:$0xff] }
 0x323   :  { %9170 = vmatprep.subr.bf16.mxu0 %v9169_v19  ;;  %8788 = vmatpush3.bf16.msra.mxu1 %v8785_v14  ;;  %v6547_v14 = vld [vmem:[%s11833_s3 + $0xbb0] sm:$0xff]  ;;  %v3072_v6 = vld [vmem:[#allocation2 + $0x10b] ss:$32 sm:$0x20] }
 0x324   :  { %8790 = vmatprep.subr.bf16.mxu1 %v8789_v31  ;;  %v9189_v53 = vpack.c.bf16 %v6548_v15, %v6547_v14  ;;  %v4696_v15 = vld [vmem:[#allocation2 + $0x18] ss:$32 sm:$0x40] }
 0x326   :  { %9172 = vmatpush3.bf16.msra.mxu0 %v9169_v19  ;;  %v6550_v19 = vld [vmem:[%s11833_s3 + $0xbc8] sm:$0xff] }
 0x327   :  { %9174 = vmatprep.subr.bf16.mxu0 %v9173_v36  ;;  %8792 = vmatpush3.bf16.msra.mxu1 %v8789_v31  ;;  %v9193_v27 = vpack.c.bf16 %v6550_v19, %v6549_v18  ;;  %v3065_v31 = vor.u32 %v3064_v59, %v3063_v2  ;;  %v4588_v2 = vld [vmem:[#allocation2 + $0x117] ss:$32 sm:$0x80]  ;;  %v6560_v59 = vld [vmem:[%s11833_s3 + $0xc18] sm:$0xff] }
 0x328   :  { %8794 = vmatprep.subr.bf16.mxu1 %v8793_v44  ;;  %v6559_v19 = vld [vmem:[%s11833_s3 + $0xc10] sm:$0xff] }
 0x329   :  { %v3067_v35 = vor.u32 %v3066_v0, %v3065_v31  ;;  %v9213_v24 = vpack.c.bf16 %v6560_v59, %v6559_v19  ;;  %v6561_v0 = vld [vmem:[%s11833_s3 + $0xc20] sm:$0xff]  ;;  %v6579_v19 = vld [vmem:[%s11833_s3 + $0xcb0] sm:$0xff]  ;;  %v6580_v59 = vld [vmem:[%s11833_s3 + $0xcb8] sm:$0xff] }
 0x32a   :  { %9176 = vmatpush3.bf16.msra.mxu0 %v9173_v36  ;;  %7673 = vmatmul.mubr.f32.vlgmr.msra.gmra.mrb[64].mxu1 %v2951_v63  ;;  %v4577_v36 = vor.u32 %v4576_v23, %v4575_v22  ;;  %v6556_v63 = vld [vmem:[%s11833_s3 + $0xbf8] sm:$0xff] }
 0x32b   :  { %9178 = vmatprep.subr.bf16.mxu0 %v9177_v58  ;;  %8796 = vmatpush3.bf16.msra.mxu1 %v8793_v44  ;;  %v6553_v44 = vld [vmem:[%s11833_s3 + $0xbe0] sm:$0xff]  ;;  %v3069_v25 = vor.u32 %v3068_v39, %v3067_v35  ;;  %v4698_v22 = vld [vmem:[#allocation2 + $0x18] ss:$32 sm:$0x80] }
 0x32c   :  { %7707 = vmatprep.mubr.f32.mxu1 %v3061_v3  ;;  %8798 = vmatprep.subr.bf16.mxu1 %v8797_v1  ;;  %v4579_v42 = vor.u32 %v4578_v33, %v4577_v36  ;;  %v8821_v3 = vpack.c.bf16 %v6364_v55, %v6363_v54  ;;  %v6566_v33 = vld [vmem:[%s11833_s3 + $0xc48] sm:$0xff]  ;;  %v4702_v35 = vld [vmem:[#allocation2 + $0x118] ss:$32 sm:$0x2] }
 0x32d   :  { %8093 = vmatmul.mubr.f32.vlgmr.msra.gmra.mrb[0].mxu0 %v4463_v28  ;;  %v3071_v52 = vor.u32 %v3070_v48, %v3069_v25  ;;  %v4584_v28 = vld [vmem:[#allocation2 + $0x117] ss:$32 sm:$0x20]  ;;  %v9225_v36 = vpack.c.bf16 %v6566_v33, %v6565_v32  ;;  %v6568_v39 = vld [vmem:[%s11833_s3 + $0xc58] sm:$0xff]  ;;  %v6569_v48 = vld [vmem:[%s11833_s3 + $0xc60] sm:$0xff] }
 0x32e   :  { %9180 = vmatpush3.bf16.msra.mxu0 %v9177_v58  ;;  %8127 = vmatprep.mubr.f32.mxu0 %v4573_v8  ;;  %v9201_v58 = vpack.c.bf16 %v6554_v46, %v6553_v44  ;;  %v4581_v60 = vor.u32 %v4580_v43, %v4579_v42  ;;  %v9205_v8 = vpack.c.bf16 %v6556_v63, %v6555_v61  ;;  %v4814_v42 = vld [vmem:[#allocation2 + $0x19] ss:$32 sm:$0x4]  ;;  %v4708_v54 = vld [vmem:[#allocation2 + $0x118] ss:$32 sm:$0x10] }
 0x32f   :  { %9182 = vmatprep.subr.bf16.mxu0 %v9181_v5  ;;  %8800 = vmatpush3.bf16.msra.mxu1 %v8797_v1  ;;  %v4691_v1 = vor.u32 %v4690_v51, %v4689_v49  ;;  %v3073_v62 = vor.u32 %v3072_v6, %v3071_v52  ;;  %v4813_v43 = vor.u32 %v4812_v38, %v4811_v37  ;;  %v6570_v49 = vld [vmem:[%s11833_s3 + $0xc68] sm:$0xff]  ;;  %v4816_v51 = vld [vmem:[#allocation2 + $0x19] ss:$32 sm:$0x8]  ;;  %v6571_v52 = vld [vmem:[%s11833_s3 + $0xc70] sm:$0xff] }
 0x330   :  { %8802 = vmatprep.subr.bf16.mxu1 %v8801_v10  ;;  %v4583_v4 = vor.u32 %v4582_v57, %v4581_v60  ;;  %v9229_v44 = vpack.c.bf16 %v6568_v39, %v6567_v45  ;;  %v9233_v55 = vpack.c.bf16 %v6570_v49, %v6569_v48  ;;  %v6572_v60 = vld [vmem:[%s11833_s3 + $0xc78] sm:$0xff]  ;;  %v6585_v37 = vld [vmem:[%s11833_s3 + $0xce0] sm:$0xff]  ;;  %v6586_v38 = vld [vmem:[%s11833_s3 + $0xce8] sm:$0xff] }
 0x331   :  { %v4815_v25 = vor.u32 %v4814_v42, %v4813_v43  ;;  %v4710_v63 = vld [vmem:[#allocation2 + $0x118] ss:$32 sm:$0x20]  ;;  %v4940_v33 = vld [vmem:[#allocation2 + $0x1a] ss:$32 sm:$0x4]  ;;  %v9265_v42 = vpack.c.bf16 %v6586_v38, %v6585_v37 }
 0x332   :  { %9184 = vmatpush3.bf16.msra.mxu0 %v9181_v5  ;;  %v4693_v5 = vor.u32 %v4692_v20, %v4691_v1  ;;  %v4585_v14 = vor.u32 %v4584_v28, %v4583_v4  ;;  %v9237_v1 = vpack.c.bf16 %v6572_v60, %v6571_v52  ;;  %v4712_v4 = vld [vmem:[#allocation2 + $0x118] ss:$32 sm:$0x40]  ;;  %v6574_v28 = vld [vmem:[%s11833_s3 + $0xc88] sm:$0xff] }
 0x333   :  { %9186 = vmatprep.subr.bf16.mxu0 %v9185_v13  ;;  %8804 = vmatpush3.bf16.msra.mxu1 %v8801_v10  ;;  %v4586_v10 = vld [vmem:[#allocation2 + $0x117] ss:$32 sm:$0x40]  ;;  %v4817_v20 = vor.u32 %v4816_v51, %v4815_v25  ;;  %v4832_v45 = vld [vmem:[#allocation2 + $0x119] ss:$32 sm:$0x8] }
 0x334   :  { %8806 = vmatprep.subr.bf16.mxu1 %v8805_v16  ;;  %v4695_v47 = vor.u32 %v4694_v9, %v4693_v5  ;;  %v4587_v17 = vor.u32 %v4586_v10, %v4585_v14  ;;  %v6576_v14 = vld [vmem:[%s11833_s3 + $0xc98] sm:$0xff]  ;;  %v6590_v52 = vld [vmem:[%s11833_s3 + $0xd08] sm:$0xff] }
 0x335   :  { %v6588_v48 = vld [vmem:[%s11833_s3 + $0xcf8] sm:$0xff] }
 0x336   :  { %9188 = vmatpush3.bf16.msra.mxu0 %v9185_v13  ;;  %v3075_v13 = vor.u32 %v3074_v56, %v3073_v62  ;;  %v4697_v18 = vor.u32 %v4696_v15, %v4695_v47  ;;  %v4589_v23 = vor.u32 %v4588_v2, %v4587_v17  ;;  %v6573_v56 = vld [vmem:[%s11833_s3 + $0xc80] sm:$0xff]  ;;  %v4824_v15 = vld [vmem:[#allocation2 + $0x19] ss:$32 sm:$0x80]  ;;  %v6578_v2 = vld [vmem:[%s11833_s3 + $0xca8] sm:$0xff] }
 0x337   :  { %9190 = vmatprep.subr.bf16.mxu0 %v9189_v53  ;;  %8808 = vmatpush3.bf16.msra.mxu1 %v8805_v16  ;;  %v3076_v16 = vld [vmem:[#allocation2 + $0x10b] ss:$32 sm:$0x80]  ;;  %v9241_v10 = vpack.c.bf16 %v6574_v28, %v6573_v56  ;;  %v4836_v25 = vld [vmem:[#allocation2 + $0x119] ss:$32 sm:$0x20] }
 0x338   :  { %8810 = vmatprep.subr.bf16.mxu1 %v8809_v21  ;;  %v4699_v26 = vor.u32 %v4698_v22, %v4697_v18  ;;  %v6581_v22 = vld [vmem:[%s11833_s3 + $0xcc0] sm:$0xff]  ;;  %v6592_v56 = vld [vmem:[%s11833_s3 + $0xd18] sm:$0xff] }
 0x339   :  { %v4950_v28 = vld [vmem:[#allocation2 + $0x1a] ss:$32 sm:$0x80] }
 0x33a   :  { %9192 = vmatpush3.bf16.msra.mxu0 %v9189_v53  ;;  %v9209_v53 = vpack.c.bf16 %v6558_v12, %v6557_v11  ;;  %v4714_v11 = vld [vmem:[#allocation2 + $0x118] ss:$32 sm:$0x80] }
 0x33b   :  { %9194 = vmatprep.subr.bf16.mxu0 %v9193_v27  ;;  %8812 = vmatpush3.bf16.msra.mxu1 %v8809_v21  ;;  %v3077_v21 = vor.u32 %v3076_v16, %v3075_v13  ;;  %v6575_v13 = vld [vmem:[%s11833_s3 + $0xc90] sm:$0xff]  ;;  %v6604_v37 = vld [vmem:[%s11833_s3 + $0xd78] sm:$0xff] }
 0x33c   :  { %8814 = vmatprep.subr.bf16.mxu1 %v8813_v34  ;;  %v9245_v47 = vpack.c.bf16 %v6576_v14, %v6575_v13  ;;  %v6596_v13 = vld [vmem:[%s11833_s3 + $0xd38] sm:$0xff] }
 0x33e   :  { %9196 = vmatpush3.bf16.msra.mxu0 %v9193_v27  ;;  %v6562_v27 = vld [vmem:[%s11833_s3 + $0xc28] sm:$0xff] }
 0x33f   :  { %9198 = vmatprep.subr.bf16.mxu0 %v9197_v41  ;;  %8816 = vmatpush3.bf16.msra.mxu1 %v8813_v34  ;;  %v9217_v31 = vpack.c.bf16 %v6562_v27, %v6561_v0  ;;  %v4701_v34 = vld [vmem:[#allocation2 + $0x118] ss:$32 sm:$0x1]  ;;  %v4937_v27 = vld [vmem:[#allocation2 + $0x1a] ss:$32 sm:$0x1] }
 0x340   :  { %8818 = vmatprep.subr.bf16.mxu1 %v8817_v50 }
 0x342   :  { %9200 = vmatpush3.bf16.msra.mxu0 %v9197_v41  ;;  %v4703_v41 = vor.u32 %v4702_v35, %v4701_v34  ;;  %v9261_v35 = vpack.c.bf16 %v6584_v7, %v6583_v29  ;;  %v4958_v29 = vld [vmem:[#allocation2 + $0x11a] ss:$32 sm:$0x8] }
 0x343   :  { %9202 = vmatprep.subr.bf16.mxu0 %v9201_v58  ;;  %8820 = vmatpush3.bf16.msra.mxu1 %v8817_v50  ;;  %v4706_v50 = vld [vmem:[#allocation2 + $0x118] ss:$32 sm:$0x8] }
 0x344   :  { %8822 = vmatprep.subr.bf16.mxu1 %v8821_v3  ;;  %v4705_v46 = vor.u32 %v4704_v40, %v4703_v41  ;;  %v4942_v40 = vld [vmem:[#allocation2 + $0x1a] ss:$32 sm:$0x8]  ;;  %v4834_v41 = vld [vmem:[#allocation2 + $0x119] ss:$32 sm:$0x10] }
 0x346   :  { %9204 = vmatpush3.bf16.msra.mxu0 %v9201_v58  ;;  %v4707_v57 = vor.u32 %v4706_v50, %v4705_v46  ;;  %v4818_v58 = vld [vmem:[#allocation2 + $0x19] ss:$32 sm:$0x10]  ;;  %v6587_v46 = vld [vmem:[%s11833_s3 + $0xcf0] sm:$0xff] }
 0x347   :  { %9206 = vmatprep.subr.bf16.mxu0 %v9205_v8  ;;  %8824 = vmatpush3.bf16.msra.mxu1 %v8821_v3  ;;  %v4819_v6 = vor.u32 %v4818_v58, %v4817_v20  ;;  %v4820_v3 = vld [vmem:[#allocation2 + $0x19] ss:$32 sm:$0x20]  ;;  %v6589_v58 = vld [vmem:[%s11833_s3 + $0xd00] sm:$0xff] }
 0x348   :  { %v4709_v61 = vor.u32 %v4708_v54, %v4707_v57  ;;  %v9269_v54 = vpack.c.bf16 %v6588_v48, %v6587_v46  ;;  %v4838_v57 = vld [vmem:[#allocation2 + $0x119] ss:$32 sm:$0x40]  ;;  %v4948_v20 = vld [vmem:[#allocation2 + $0x1a] ss:$32 sm:$0x40] }
 0x349   :  { %v4821_v62 = vor.u32 %v4820_v3, %v4819_v6  ;;  %v9273_v6 = vpack.c.bf16 %v6590_v52, %v6589_v58  ;;  %v6606_v46 = vld [vmem:[%s11833_s3 + $0xd88] sm:$0xff]  ;;  %v6608_v58 = vld [vmem:[%s11833_s3 + $0xd98] sm:$0xff] }
 0x34a   :  { %9208 = vmatpush3.bf16.msra.mxu0 %v9205_v8  ;;  %7708 = vmatmul.mubr.f32.vlgmr.msra.gmra.mrb[64].mxu1 %v3077_v21  ;;  %v4711_v5 = vor.u32 %v4710_v63, %v4709_v61  ;;  %v4822_v8 = vld [vmem:[#allocation2 + $0x19] ss:$32 sm:$0x40]  ;;  %v9253_v21 = vpack.c.bf16 %v6580_v59, %v6579_v19  ;;  %v6599_v19 = vld [vmem:[%s11833_s3 + $0xd50] sm:$0xff] }
 0x34b   :  { %9210 = vmatprep.subr.bf16.mxu0 %v9209_v53  ;;  %v4823_v12 = vor.u32 %v4822_v8, %v4821_v62  ;;  %v6600_v59 = vld [vmem:[%s11833_s3 + $0xd58] sm:$0xff] }
 0x34c   :  { %v4713_v9 = vor.u32 %v4712_v4, %v4711_v5  ;;  %v6591_v4 = vld [vmem:[%s11833_s3 + $0xd10] sm:$0xff]  ;;  %v5076_v52 = vld [vmem:[#allocation2 + $0x1b] ss:$32 sm:$0x80] }
 0x34d   :  { %8128 = vmatmul.mubr.f32.vlgmr.msra.gmra.mrb[0].mxu0 %v4589_v23  ;;  %v4825_v17 = vor.u32 %v4824_v15, %v4823_v12  ;;  %v6582_v23 = vld [vmem:[%s11833_s3 + $0xcc8] sm:$0xff]  ;;  %v9277_v8 = vpack.c.bf16 %v6592_v56, %v6591_v4  ;;  %v6595_v12 = vld [vmem:[%s11833_s3 + $0xd30] sm:$0xff]  ;;  %v6597_v15 = vld [vmem:[%s11833_s3 + $0xd40] sm:$0xff] }
 0x34e   :  { %9212 = vmatpush3.bf16.msra.mxu0 %v9209_v53  ;;  %8162 = vmatprep.mubr.f32.mxu0 %v4699_v26  ;;  %v4715_v16 = vor.u32 %v4714_v11, %v4713_v9  ;;  %v6577_v53 = vld [vmem:[%s11833_s3 + $0xca0] sm:$0xff]  ;;  %v4828_v26 = vld [vmem:[#allocation2 + $0x119] ss:$32 sm:$0x2]  ;;  %v9257_v0 = vpack.c.bf16 %v6582_v23, %v6581_v22  ;;  %v9285_v14 = vpack.c.bf16 %v6596_v13, %v6595_v12  ;;  %v6615_v12 = vld [vmem:[%s11833_s3 + $0xdd0] sm:$0xff] }
 0x34f   :  { %9214 = vmatprep.subr.bf16.mxu0 %v9213_v24  ;;  %v9249_v18 = vpack.c.bf16 %v6578_v2, %v6577_v53  ;;  %v6593_v9 = vld [vmem:[%s11833_s3 + $0xd20] sm:$0xff]  ;;  %v5063_v2 = vld [vmem:[#allocation2 + $0x1b] ss:$32 sm:$0x1] }
 0x350   :  { %v5066_v23 = vld [vmem:[#allocation2 + $0x1b] ss:$32 sm:$0x4] }
 0x351   :  { %v6612_v4 = vld [vmem:[%s11833_s3 + $0xdb8] sm:$0xff] }
 0x352   :  { %9216 = vmatpush3.bf16.msra.mxu0 %v9213_v24  ;;  %v4827_v24 = vld [vmem:[#allocation2 + $0x119] ss:$32 sm:$0x1] }
 0x353   :  { %9218 = vmatprep.subr.bf16.mxu0 %v9217_v31  ;;  %v4829_v32 = vor.u32 %v4828_v26, %v4827_v24  ;;  %v9293_v26 = vpack.c.bf16 %v6600_v59, %v6599_v19  ;;  %v6616_v13 = vld [vmem:[%s11833_s3 + $0xdd8] sm:$0xff] }
 0x354   :  { %v5084_v19 = vld [vmem:[#allocation2 + $0x11b] ss:$32 sm:$0x8] }
 0x356   :  { %9220 = vmatpush3.bf16.msra.mxu0 %v9217_v31  ;;  %v4938_v31 = vld [vmem:[#allocation2 + $0x1a] ss:$32 sm:$0x2] }
 0x357   :  { %9222 = vmatprep.subr.bf16.mxu0 %v9221_v30  ;;  %v4939_v34 = vor.u32 %v4938_v31, %v4937_v27  ;;  %v6601_v27 = vld [vmem:[%s11833_s3 + $0xd60] sm:$0xff]  ;;  %v6602_v31 = vld [vmem:[%s11833_s3 + $0xd68] sm:$0xff] }
 0x359   :  { %v4941_v39 = vor.u32 %v4940_v33, %v4939_v34  ;;  %v9297_v33 = vpack.c.bf16 %v6602_v31, %v6601_v27  ;;  %v6620_v27 = vld [vmem:[%s11833_s3 + $0xdf8] sm:$0xff] }
 0x35a   :  { %9224 = vmatpush3.bf16.msra.mxu0 %v9221_v30  ;;  %v4830_v30 = vld [vmem:[#allocation2 + $0x119] ss:$32 sm:$0x4] }
 0x35b   :  { %9226 = vmatprep.subr.bf16.mxu0 %v9225_v36  ;;  %v4943_v49 = vor.u32 %v4942_v40, %v4941_v39  ;;  %v4962_v39 = vld [vmem:[#allocation2 + $0x11a] ss:$32 sm:$0x20] }
 0x35e   :  { %9228 = vmatpush3.bf16.msra.mxu0 %v9225_v36  ;;  %v4831_v36 = vor.u32 %v4830_v30, %v4829_v32  ;;  %v5068_v30 = vld [vmem:[#allocation2 + $0x1b] ss:$32 sm:$0x8]  ;;  %v4960_v32 = vld [vmem:[#allocation2 + $0x11a] ss:$32 sm:$0x10] }
 0x35f   :  { %9230 = vmatprep.subr.bf16.mxu0 %v9229_v44 }
 0x360   :  { %v4833_v43 = vor.u32 %v4832_v45, %v4831_v36  ;;  %v6603_v36 = vld [vmem:[%s11833_s3 + $0xd70] sm:$0xff] }
 0x362   :  { %9232 = vmatpush3.bf16.msra.mxu0 %v9229_v44  ;;  %v4944_v44 = vld [vmem:[#allocation2 + $0x1a] ss:$32 sm:$0x10]  ;;  %v4835_v50 = vor.u32 %v4834_v41, %v4833_v43  ;;  %v9301_v41 = vpack.c.bf16 %v6604_v37, %v6603_v36  ;;  %v6622_v36 = vld [vmem:[%s11833_s3 + $0xe08] sm:$0xff] }
 0x363   :  { %9234 = vmatprep.subr.bf16.mxu0 %v9233_v55  ;;  %v4945_v51 = vor.u32 %v4944_v44, %v4943_v49  ;;  %v4964_v43 = vld [vmem:[#allocation2 + $0x11a] ss:$32 sm:$0x40]  ;;  %v6605_v44 = vld [vmem:[%s11833_s3 + $0xd80] sm:$0xff] }
 0x364   :  { %v4837_v60 = vor.u32 %v4836_v25, %v4835_v50  ;;  %v5074_v49 = vld [vmem:[#allocation2 + $0x1b] ss:$32 sm:$0x40] }
 0x366   :  { %9236 = vmatpush3.bf16.msra.mxu0 %v9233_v55  ;;  %v4946_v55 = vld [vmem:[#allocation2 + $0x1a] ss:$32 sm:$0x20]  ;;  %v4839_v63 = vor.u32 %v4838_v57, %v4837_v60  ;;  %v6607_v57 = vld [vmem:[%s11833_s3 + $0xd90] sm:$0xff] }
 0x367   :  { %9238 = vmatprep.subr.bf16.mxu0 %v9237_v1  ;;  %v4947_v61 = vor.u32 %v4946_v55, %v4945_v51  ;;  %v9305_v51 = vpack.c.bf16 %v6606_v46, %v6605_v44  ;;  %v6624_v44 = vld [vmem:[%s11833_s3 + $0xe18] sm:$0xff] }
 0x368   :  { %v5202_v46 = vld [vmem:[#allocation2 + $0x1c] ss:$32 sm:$0x80] }
 0x369   :  { %v4949_v3 = vor.u32 %v4948_v20, %v4947_v61  ;;  %v9309_v20 = vpack.c.bf16 %v6608_v58, %v6607_v57  ;;  %v6628_v57 = vld [vmem:[%s11833_s3 + $0xe38] sm:$0xff] }
 0x36a   :  { %9240 = vmatpush3.bf16.msra.mxu0 %v9237_v1  ;;  %v4840_v1 = vld [vmem:[#allocation2 + $0x119] ss:$32 sm:$0x80] }
 0x36b   :  { %9242 = vmatprep.subr.bf16.mxu0 %v9241_v10  ;;  %v4841_v5 = vor.u32 %v4840_v1, %v4839_v63  ;;  %v4951_v62 = vor.u32 %v4950_v28, %v4949_v3  ;;  %v6609_v63 = vld [vmem:[%s11833_s3 + $0xda0] sm:$0xff]  ;;  %v6611_v3 = vld [vmem:[%s11833_s3 + $0xdb0] sm:$0xff] }
 0x36c   :  { %v9317_v56 = vpack.c.bf16 %v6612_v4, %v6611_v3  ;;  %v6613_v28 = vld [vmem:[%s11833_s3 + $0xdc0] sm:$0xff]  ;;  %v6631_v3 = vld [vmem:[%s11833_s3 + $0xe50] sm:$0xff]  ;;  %v6632_v4 = vld [vmem:[%s11833_s3 + $0xe58] sm:$0xff] }
 0x36d   :  { %8163 = vmatmul.mubr.f32.vlgmr.msra.gmra.mrb[0].mxu0 %v4715_v16  ;;  %v6598_v16 = vld [vmem:[%s11833_s3 + $0xd48] sm:$0xff] }
 0x36e   :  { %9244 = vmatpush3.bf16.msra.mxu0 %v9241_v10  ;;  %8197 = vmatprep.mubr.f32.mxu0 %v4825_v17  ;;  %v6594_v10 = vld [vmem:[%s11833_s3 + $0xd28] sm:$0xff]  ;;  %v4954_v17 = vld [vmem:[#allocation2 + $0x11a] ss:$32 sm:$0x2]  ;;  %v9289_v53 = vpack.c.bf16 %v6598_v16, %v6597_v15 }
 0x36f   :  { %9246 = vmatprep.subr.bf16.mxu0 %v9245_v47  ;;  %v9281_v11 = vpack.c.bf16 %v6594_v10, %v6593_v9  ;;  %v5189_v10 = vld [vmem:[#allocation2 + $0x1c] ss:$32 sm:$0x1] }
 0x370   :  { %v5192_v16 = vld [vmem:[#allocation2 + $0x1c] ss:$32 sm:$0x4] }
 0x372   :  { %9248 = vmatpush3.bf16.msra.mxu0 %v9245_v47  ;;  %v4953_v47 = vld [vmem:[#allocation2 + $0x11a] ss:$32 sm:$0x1] }
 0x373   :  { %9250 = vmatprep.subr.bf16.mxu0 %v9249_v18  ;;  %v4955_v22 = vor.u32 %v4954_v17, %v4953_v47  ;;  %v9325_v17 = vpack.c.bf16 %v6616_v13, %v6615_v12  ;;  %v5210_v12 = vld [vmem:[#allocation2 + $0x11c] ss:$32 sm:$0x8] }
 0x376   :  { %9252 = vmatpush3.bf16.msra.mxu0 %v9249_v18  ;;  %v5064_v18 = vld [vmem:[#allocation2 + $0x1b] ss:$32 sm:$0x2] }
 0x377   :  { %9254 = vmatprep.subr.bf16.mxu0 %v9253_v21  ;;  %v5065_v24 = vor.u32 %v5064_v18, %v5063_v2  ;;  %v6617_v2 = vld [vmem:[%s11833_s3 + $0xde0] sm:$0xff]  ;;  %v6618_v18 = vld [vmem:[%s11833_s3 + $0xde8] sm:$0xff] }
 0x379   :  { %v5067_v7 = vor.u32 %v5066_v23, %v5065_v24  ;;  %v9329_v23 = vpack.c.bf16 %v6618_v18, %v6617_v2  ;;  %v6636_v2 = vld [vmem:[%s11833_s3 + $0xe78] sm:$0xff] }
 0x37a   :  { %9256 = vmatpush3.bf16.msra.mxu0 %v9253_v21  ;;  %v4956_v21 = vld [vmem:[#allocation2 + $0x11a] ss:$32 sm:$0x4] }
 0x37b   :  { %9258 = vmatprep.subr.bf16.mxu0 %v9257_v0  ;;  %v5069_v38 = vor.u32 %v5068_v30, %v5067_v7  ;;  %v5088_v7 = vld [vmem:[#allocation2 + $0x11b] ss:$32 sm:$0x20] }
 0x37e   :  { %9260 = vmatpush3.bf16.msra.mxu0 %v9257_v0  ;;  %v4957_v0 = vor.u32 %v4956_v21, %v4955_v22  ;;  %v5194_v21 = vld [vmem:[#allocation2 + $0x1c] ss:$32 sm:$0x8]  ;;  %v5086_v22 = vld [vmem:[#allocation2 + $0x11b] ss:$32 sm:$0x10] }
 0x37f   :  { %9262 = vmatprep.subr.bf16.mxu0 %v9261_v35 }
 0x380   :  { %v4959_v34 = vor.u32 %v4958_v29, %v4957_v0  ;;  %v6619_v0 = vld [vmem:[%s11833_s3 + $0xdf0] sm:$0xff] }
 0x382   :  { %9264 = vmatpush3.bf16.msra.mxu0 %v9261_v35  ;;  %v5070_v35 = vld [vmem:[#allocation2 + $0x1b] ss:$32 sm:$0x10]  ;;  %v4961_v45 = vor.u32 %v4960_v32, %v4959_v34  ;;  %v9333_v32 = vpack.c.bf16 %v6620_v27, %v6619_v0  ;;  %v6638_v0 = vld [vmem:[%s11833_s3 + $0xe88] sm:$0xff] }
 0x383   :  { %9266 = vmatprep.subr.bf16.mxu0 %v9265_v42  ;;  %v5071_v40 = vor.u32 %v5070_v35, %v5069_v38  ;;  %v5090_v34 = vld [vmem:[#allocation2 + $0x11b] ss:$32 sm:$0x40]  ;;  %v6621_v35 = vld [vmem:[%s11833_s3 + $0xe00] sm:$0xff] }
 0x384   :  { %v4963_v48 = vor.u32 %v4962_v39, %v4961_v45  ;;  %v5200_v38 = vld [vmem:[#allocation2 + $0x1c] ss:$32 sm:$0x40] }
 0x386   :  { %9268 = vmatpush3.bf16.msra.mxu0 %v9265_v42  ;;  %v5072_v42 = vld [vmem:[#allocation2 + $0x1b] ss:$32 sm:$0x20]  ;;  %v4965_v25 = vor.u32 %v4964_v43, %v4963_v48  ;;  %v6623_v43 = vld [vmem:[%s11833_s3 + $0xe10] sm:$0xff] }
 0x387   :  { %9270 = vmatprep.subr.bf16.mxu0 %v9269_v54  ;;  %v5073_v50 = vor.u32 %v5072_v42, %v5071_v40  ;;  %v9337_v40 = vpack.c.bf16 %v6622_v36, %v6621_v35  ;;  %v6640_v35 = vld [vmem:[%s11833_s3 + $0xe98] sm:$0xff] }
 0x388   :  { %v5328_v36 = vld [vmem:[#allocation2 + $0x1d] ss:$32 sm:$0x80] }
 0x389   :  { %v5075_v55 = vor.u32 %v5074_v49, %v5073_v50  ;;  %v9341_v49 = vpack.c.bf16 %v6624_v44, %v6623_v43  ;;  %v6644_v43 = vld [vmem:[%s11833_s3 + $0xeb8] sm:$0xff] }
 0x38a   :  { %9272 = vmatpush3.bf16.msra.mxu0 %v9269_v54  ;;  %v4966_v54 = vld [vmem:[#allocation2 + $0x11a] ss:$32 sm:$0x80] }
 0x38b   :  { %9274 = vmatprep.subr.bf16.mxu0 %v9273_v6  ;;  %v4967_v60 = vor.u32 %v4966_v54, %v4965_v25  ;;  %v5077_v61 = vor.u32 %v5076_v52, %v5075_v55  ;;  %v6625_v25 = vld [vmem:[%s11833_s3 + $0xe20] sm:$0xff]  ;;  %v6627_v55 = vld [vmem:[%s11833_s3 + $0xe30] sm:$0xff] }
 0x38c   :  { %v9349_v58 = vpack.c.bf16 %v6628_v57, %v6627_v55  ;;  %v6629_v52 = vld [vmem:[%s11833_s3 + $0xe40] sm:$0xff]  ;;  %v6647_v55 = vld [vmem:[%s11833_s3 + $0xed0] sm:$0xff]  ;;  %v6648_v57 = vld [vmem:[%s11833_s3 + $0xed8] sm:$0xff] }
 0x38d   :  { %8198 = vmatmul.mubr.f32.vlgmr.msra.gmra.mrb[0].mxu0 %v4841_v5  ;;  %v6614_v5 = vld [vmem:[%s11833_s3 + $0xdc8] sm:$0xff] }
 0x38e   :  { %9276 = vmatpush3.bf16.msra.mxu0 %v9273_v6  ;;  %8232 = vmatprep.mubr.f32.mxu0 %v4951_v62  ;;  %v6610_v6 = vld [vmem:[%s11833_s3 + $0xda8] sm:$0xff]  ;;  %v5080_v62 = vld [vmem:[#allocation2 + $0x11b] ss:$32 sm:$0x2]  ;;  %v9321_v9 = vpack.c.bf16 %v6614_v5, %v6613_v28 }
 0x38f   :  { %9278 = vmatprep.subr.bf16.mxu0 %v9277_v8  ;;  %v9313_v1 = vpack.c.bf16 %v6610_v6, %v6609_v63  ;;  %v5315_v6 = vld [vmem:[#allocation2 + $0x1d] ss:$32 sm:$0x1] }
 0x390   :  { %v5318_v5 = vld [vmem:[#allocation2 + $0x1d] ss:$32 sm:$0x4] }
 0x392   :  { %9280 = vmatpush3.bf16.msra.mxu0 %v9277_v8  ;;  %v5079_v8 = vld [vmem:[#allocation2 + $0x11b] ss:$32 sm:$0x1] }
 0x393   :  { %9282 = vmatprep.subr.bf16.mxu0 %v9281_v11  ;;  %v5081_v15 = vor.u32 %v5080_v62, %v5079_v8  ;;  %v9357_v62 = vpack.c.bf16 %v6632_v4, %v6631_v3  ;;  %v5336_v3 = vld [vmem:[#allocation2 + $0x11d] ss:$32 sm:$0x8] }
 0x396   :  { %9284 = vmatpush3.bf16.msra.mxu0 %v9281_v11  ;;  %v5190_v11 = vld [vmem:[#allocation2 + $0x1c] ss:$32 sm:$0x2] }
 0x397   :  { %9286 = vmatprep.subr.bf16.mxu0 %v9285_v14  ;;  %v5191_v47 = vor.u32 %v5190_v11, %v5189_v10  ;;  %v6633_v10 = vld [vmem:[%s11833_s3 + $0xe60] sm:$0xff]  ;;  %v6634_v11 = vld [vmem:[%s11833_s3 + $0xe68] sm:$0xff] }
 0x399   :  { %v5193_v59 = vor.u32 %v5192_v16, %v5191_v47  ;;  %v9361_v16 = vpack.c.bf16 %v6634_v11, %v6633_v10  ;;  %v6652_v10 = vld [vmem:[%s11833_s3 + $0xef8] sm:$0xff] }
 0x39a   :  { %9288 = vmatpush3.bf16.msra.mxu0 %v9285_v14  ;;  %v5082_v14 = vld [vmem:[#allocation2 + $0x11b] ss:$32 sm:$0x4] }
 0x39b   :  { %9290 = vmatprep.subr.bf16.mxu0 %v9289_v53  ;;  %v5195_v31 = vor.u32 %v5194_v21, %v5193_v59  ;;  %v5214_v59 = vld [vmem:[#allocation2 + $0x11c] ss:$32 sm:$0x20] }
 0x39e   :  { %9292 = vmatpush3.bf16.msra.mxu0 %v9289_v53  ;;  %v5083_v53 = vor.u32 %v5082_v14, %v5081_v15  ;;  %v5320_v14 = vld [vmem:[#allocation2 + $0x1d] ss:$32 sm:$0x8]  ;;  %v5212_v15 = vld [vmem:[#allocation2 + $0x11c] ss:$32 sm:$0x10] }
 0x39f   :  { %9294 = vmatprep.subr.bf16.mxu0 %v9293_v26 }
 0x3a0   :  { %v5085_v24 = vor.u32 %v5084_v19, %v5083_v53  ;;  %v6635_v53 = vld [vmem:[%s11833_s3 + $0xe70] sm:$0xff] }
 0x3a2   :  { %9296 = vmatpush3.bf16.msra.mxu0 %v9293_v26  ;;  %v5196_v26 = vld [vmem:[#allocation2 + $0x1c] ss:$32 sm:$0x10]  ;;  %v5087_v29 = vor.u32 %v5086_v22, %v5085_v24  ;;  %v9365_v22 = vpack.c.bf16 %v6636_v2, %v6635_v53  ;;  %v6654_v53 = vld [vmem:[%s11833_s3 + $0xf08] sm:$0xff] }
 0x3a3   :  { %9298 = vmatprep.subr.bf16.mxu0 %v9297_v33  ;;  %v5197_v30 = vor.u32 %v5196_v26, %v5195_v31  ;;  %v5216_v24 = vld [vmem:[#allocation2 + $0x11c] ss:$32 sm:$0x40]  ;;  %v6637_v26 = vld [vmem:[%s11833_s3 + $0xe80] sm:$0xff] }
 0x3a4   :  { %v5089_v37 = vor.u32 %v5088_v7, %v5087_v29  ;;  %v5326_v31 = vld [vmem:[#allocation2 + $0x1d] ss:$32 sm:$0x40] }
 0x3a6   :  { %9300 = vmatpush3.bf16.msra.mxu0 %v9297_v33  ;;  %v5198_v33 = vld [vmem:[#allocation2 + $0x1c] ss:$32 sm:$0x20]  ;;  %v5091_v39 = vor.u32 %v5090_v34, %v5089_v37  ;;  %v6639_v34 = vld [vmem:[%s11833_s3 + $0xe90] sm:$0xff] }
 0x3a7   :  { %9302 = vmatprep.subr.bf16.mxu0 %v9301_v41  ;;  %v5199_v45 = vor.u32 %v5198_v33, %v5197_v30  ;;  %v9369_v30 = vpack.c.bf16 %v6638_v0, %v6637_v26  ;;  %v6656_v26 = vld [vmem:[%s11833_s3 + $0xf18] sm:$0xff] }
 0x3a8   :  { %v5454_v0 = vld [vmem:[#allocation2 + $0x1e] ss:$32 sm:$0x80] }
 0x3a9   :  { %v5201_v42 = vor.u32 %v5200_v38, %v5199_v45  ;;  %v9373_v38 = vpack.c.bf16 %v6640_v35, %v6639_v34  ;;  %v6660_v34 = vld [vmem:[%s11833_s3 + $0xf38] sm:$0xff] }
 0x3aa   :  { %9304 = vmatpush3.bf16.msra.mxu0 %v9301_v41  ;;  %v5092_v41 = vld [vmem:[#allocation2 + $0x11b] ss:$32 sm:$0x80] }
 0x3ab   :  { %9306 = vmatprep.subr.bf16.mxu0 %v9305_v51  ;;  %v5093_v48 = vor.u32 %v5092_v41, %v5091_v39  ;;  %v5203_v50 = vor.u32 %v5202_v46, %v5201_v42  ;;  %v6641_v39 = vld [vmem:[%s11833_s3 + $0xea0] sm:$0xff]  ;;  %v6643_v42 = vld [vmem:[%s11833_s3 + $0xeb0] sm:$0xff] }
 0x3ac   :  { %v9381_v44 = vpack.c.bf16 %v6644_v43, %v6643_v42  ;;  %v6645_v46 = vld [vmem:[%s11833_s3 + $0xec0] sm:$0xff]  ;;  %v6663_v42 = vld [vmem:[%s11833_s3 + $0xf50] sm:$0xff]  ;;  %v6664_v43 = vld [vmem:[%s11833_s3 + $0xf58] sm:$0xff] }
 0x3ad   :  { %8233 = vmatmul.mubr.f32.vlgmr.msra.gmra.mrb[0].mxu0 %v4967_v60  ;;  %v6630_v60 = vld [vmem:[%s11833_s3 + $0xe48] sm:$0xff] }
 0x3ae   :  { %9308 = vmatpush3.bf16.msra.mxu0 %v9305_v51  ;;  %8267 = vmatprep.mubr.f32.mxu0 %v5077_v61  ;;  %v6626_v51 = vld [vmem:[%s11833_s3 + $0xe28] sm:$0xff]  ;;  %v5206_v61 = vld [vmem:[#allocation2 + $0x11c] ss:$32 sm:$0x2]  ;;  %v9353_v63 = vpack.c.bf16 %v6630_v60, %v6629_v52 }
 0x3af   :  { %9310 = vmatprep.subr.bf16.mxu0 %v9309_v20  ;;  %v9345_v54 = vpack.c.bf16 %v6626_v51, %v6625_v25  ;;  %v5441_v51 = vld [vmem:[#allocation2 + $0x1e] ss:$32 sm:$0x1] }
 0x3b0   :  { %v5444_v60 = vld [vmem:[#allocation2 + $0x1e] ss:$32 sm:$0x4] }
 0x3b2   :  { %9312 = vmatpush3.bf16.msra.mxu0 %v9309_v20  ;;  %v5205_v20 = vld [vmem:[#allocation2 + $0x11c] ss:$32 sm:$0x1] }
 0x3b3   :  { %9314 = vmatprep.subr.bf16.mxu0 %v9313_v1  ;;  %v5207_v28 = vor.u32 %v5206_v61, %v5205_v20  ;;  %v9389_v61 = vpack.c.bf16 %v6648_v57, %v6647_v55  ;;  %v5462_v55 = vld [vmem:[#allocation2 + $0x11e] ss:$32 sm:$0x8] }
 0x3b6   :  { %9316 = vmatpush3.bf16.msra.mxu0 %v9313_v1  ;;  %v5316_v1 = vld [vmem:[#allocation2 + $0x1d] ss:$32 sm:$0x2] }
 0x3b7   :  { %9318 = vmatprep.subr.bf16.mxu0 %v9317_v56  ;;  %v5317_v8 = vor.u32 %v5316_v1, %v5315_v6  ;;  %v6649_v6 = vld [vmem:[%s11833_s3 + $0xee0] sm:$0xff]  ;;  %v6650_v1 = vld [vmem:[%s11833_s3 + $0xee8] sm:$0xff] }
 0x3b9   :  { %v5319_v13 = vor.u32 %v5318_v5, %v5317_v8  ;;  %v9393_v5 = vpack.c.bf16 %v6650_v1, %v6649_v6  ;;  %v5574_v6 = vld [vmem:[#allocation2 + $0x1f] ss:$32 sm:$0x10]  ;;  %v6667_v1 = vld [vmem:[%s11833_s3 + $0xf70] sm:$0xff] }
 0x3ba   :  { %9320 = vmatpush3.bf16.msra.mxu0 %v9317_v56  ;;  %v5208_v56 = vld [vmem:[#allocation2 + $0x11c] ss:$32 sm:$0x4] }
 0x3bb   :  { %9322 = vmatprep.subr.bf16.mxu0 %v9321_v9  ;;  %v5321_v18 = vor.u32 %v5320_v14, %v5319_v13  ;;  %v5340_v13 = vld [vmem:[#allocation2 + $0x11d] ss:$32 sm:$0x20] }
 0x3be   :  { %9324 = vmatpush3.bf16.msra.mxu0 %v9321_v9  ;;  %v5209_v9 = vor.u32 %v5208_v56, %v5207_v28  ;;  %v5446_v56 = vld [vmem:[#allocation2 + $0x1e] ss:$32 sm:$0x8]  ;;  %v5338_v28 = vld [vmem:[#allocation2 + $0x11d] ss:$32 sm:$0x10] }
 0x3bf   :  { %9326 = vmatprep.subr.bf16.mxu0 %v9325_v17 }
 0x3c0   :  { %v5211_v47 = vor.u32 %v5210_v12, %v5209_v9  ;;  %v6651_v9 = vld [vmem:[%s11833_s3 + $0xef0] sm:$0xff] }
 0x3c2   :  { %9328 = vmatpush3.bf16.msra.mxu0 %v9325_v17  ;;  %v5322_v17 = vld [vmem:[#allocation2 + $0x1d] ss:$32 sm:$0x10]  ;;  %v5213_v19 = vor.u32 %v5212_v15, %v5211_v47  ;;  %v9397_v15 = vpack.c.bf16 %v6652_v10, %v6651_v9  ;;  %v5468_v9 = vld [vmem:[#allocation2 + $0x11e] ss:$32 sm:$0x40] }
 0x3c3   :  { %9330 = vmatprep.subr.bf16.mxu0 %v9329_v23  ;;  %v5323_v21 = vor.u32 %v5322_v17, %v5321_v18  ;;  %v5342_v47 = vld [vmem:[#allocation2 + $0x11d] ss:$32 sm:$0x40]  ;;  %v6653_v17 = vld [vmem:[%s11833_s3 + $0xf00] sm:$0xff] }
 0x3c4   :  { %v5215_v27 = vor.u32 %v5214_v59, %v5213_v19  ;;  %v5452_v18 = vld [vmem:[#allocation2 + $0x1e] ss:$32 sm:$0x40]  ;;  %v6669_v10 = vld [vmem:[%s11833_s3 + $0xf80] sm:$0xff] }
 0x3c6   :  { %9332 = vmatpush3.bf16.msra.mxu0 %v9329_v23  ;;  %v5324_v23 = vld [vmem:[#allocation2 + $0x1d] ss:$32 sm:$0x20]  ;;  %v5217_v7 = vor.u32 %v5216_v24, %v5215_v27  ;;  %v6655_v24 = vld [vmem:[%s11833_s3 + $0xf10] sm:$0xff] }
 0x3c7   :  { %9334 = vmatprep.subr.bf16.mxu0 %v9333_v32  ;;  %v5325_v29 = vor.u32 %v5324_v23, %v5323_v21  ;;  %v9401_v21 = vpack.c.bf16 %v6654_v53, %v6653_v17  ;;  %v6671_v53 = vld [vmem:[%s11833_s3 + $0xf90] sm:$0xff] }
 0x3c9   :  { %v5327_v33 = vor.u32 %v5326_v31, %v5325_v29  ;;  %v9405_v31 = vpack.c.bf16 %v6656_v26, %v6655_v24  ;;  %v6675_v26 = vld [vmem:[%s11833_s3 + $0xfb0] sm:$0xff] }
 0x3ca   :  { %9336 = vmatpush3.bf16.msra.mxu0 %v9333_v32  ;;  %v5218_v32 = vld [vmem:[#allocation2 + $0x11c] ss:$32 sm:$0x80] }
 0x3cb   :  { %9338 = vmatprep.subr.bf16.mxu0 %v9337_v40  ;;  %v5219_v37 = vor.u32 %v5218_v32, %v5217_v7  ;;  %v5329_v45 = vor.u32 %v5328_v36, %v5327_v33  ;;  %v6657_v7 = vld [vmem:[%s11833_s3 + $0xf20] sm:$0xff]  ;;  %v6659_v33 = vld [vmem:[%s11833_s3 + $0xf30] sm:$0xff] }
 0x3cc   :  { %v9413_v35 = vpack.c.bf16 %v6660_v34, %v6659_v33  ;;  %v6661_v36 = vld [vmem:[%s11833_s3 + $0xf40] sm:$0xff]  ;;  %v6679_v33 = vld [vmem:[%s11833_s3 + $0xfd0] sm:$0xff]  ;;  %v6680_v34 = vld [vmem:[%s11833_s3 + $0xfd8] sm:$0xff] }
 0x3cd   :  { %8268 = vmatmul.mubr.f32.vlgmr.msra.gmra.mrb[0].mxu0 %v5093_v48  ;;  %v6646_v48 = vld [vmem:[%s11833_s3 + $0xec8] sm:$0xff] }
 0x3ce   :  { %9340 = vmatpush3.bf16.msra.mxu0 %v9337_v40  ;;  %8302 = vmatprep.mubr.f32.mxu0 %v5203_v50  ;;  %v6642_v40 = vld [vmem:[%s11833_s3 + $0xea8] sm:$0xff]  ;;  %v5332_v50 = vld [vmem:[#allocation2 + $0x11d] ss:$32 sm:$0x2]  ;;  %v9385_v25 = vpack.c.bf16 %v6646_v48, %v6645_v46 }
 0x3cf   :  { %9342 = vmatprep.subr.bf16.mxu0 %v9341_v49  ;;  %v9377_v41 = vpack.c.bf16 %v6642_v40, %v6641_v39  ;;  %v5567_v40 = vld [vmem:[#allocation2 + $0x1f] ss:$32 sm:$0x1] }
 0x3d0   :  { %v5570_v48 = vld [vmem:[#allocation2 + $0x1f] ss:$32 sm:$0x4] }
 0x3d2   :  { %9344 = vmatpush3.bf16.msra.mxu0 %v9341_v49  ;;  %v5331_v49 = vld [vmem:[#allocation2 + $0x11d] ss:$32 sm:$0x1] }
 0x3d3   :  { %9346 = vmatprep.subr.bf16.mxu0 %v9345_v54  ;;  %v5333_v52 = vor.u32 %v5332_v50, %v5331_v49  ;;  %v9421_v50 = vpack.c.bf16 %v6664_v43, %v6663_v42 }
 0x3d6   :  { %9348 = vmatpush3.bf16.msra.mxu0 %v9345_v54  ;;  %v5442_v54 = vld [vmem:[#allocation2 + $0x1e] ss:$32 sm:$0x2] }
 0x3d7   :  { %9350 = vmatprep.subr.bf16.mxu0 %v9349_v58  ;;  %v5443_v20 = vor.u32 %v5442_v54, %v5441_v51  ;;  %v6665_v51 = vld [vmem:[%s11833_s3 + $0xf60] sm:$0xff]  ;;  %v6666_v54 = vld [vmem:[%s11833_s3 + $0xf68] sm:$0xff] }
 0x3d9   :  { %v5445_v4 = vor.u32 %v5444_v60, %v5443_v20  ;;  %v5464_v60 = vld [vmem:[#allocation2 + $0x11e] ss:$32 sm:$0x10] }
 0x3da   :  { %9352 = vmatpush3.bf16.msra.mxu0 %v9349_v58  ;;  %v5334_v58 = vld [vmem:[#allocation2 + $0x11d] ss:$32 sm:$0x4] }
 0x3db   :  { %9354 = vmatprep.subr.bf16.mxu0 %v9353_v63  ;;  %v5447_v11 = vor.u32 %v5446_v56, %v5445_v4 }
 0x3de   :  { %9356 = vmatpush3.bf16.msra.mxu0 %v9353_v63  ;;  %v5335_v63 = vor.u32 %v5334_v58, %v5333_v52  ;;  %v5572_v58 = vld [vmem:[#allocation2 + $0x1f] ss:$32 sm:$0x8] }
 0x3df   :  { %9358 = vmatprep.subr.bf16.mxu0 %v9357_v62 }
 0x3e0   :  { %v5337_v8 = vor.u32 %v5336_v3, %v5335_v63  ;;  %v6668_v3 = vld [vmem:[%s11833_s3 + $0xf78] sm:$0xff] }
 0x3e2   :  { %9360 = vmatpush3.bf16.msra.mxu0 %v9357_v62  ;;  %v5448_v62 = vld [vmem:[#allocation2 + $0x1e] ss:$32 sm:$0x10]  ;;  %v5339_v12 = vor.u32 %v5338_v28, %v5337_v8  ;;  %v9429_v8 = vpack.c.bf16 %v6668_v3, %v6667_v1  ;;  %v5711_v3 = vld [vmem:[%s11835_s5 + $0x20] sm:$0xff] }
 0x3e3   :  { %9362 = vmatprep.subr.bf16.mxu0 %v9361_v16  ;;  %v5449_v14 = vor.u32 %v5448_v62, %v5447_v11  ;;  %v5466_v28 = vld [vmem:[#allocation2 + $0x11e] ss:$32 sm:$0x20]  ;;  %v5576_v62 = vld [vmem:[#allocation2 + $0x1f] ss:$32 sm:$0x20] }
 0x3e4   :  { %v5341_v2 = vor.u32 %v5340_v13, %v5339_v12  ;;  %v6670_v11 = vld [vmem:[%s11833_s3 + $0xf88] sm:$0xff]  ;;  %v5578_v13 = vld [vmem:[#allocation2 + $0x1f] ss:$32 sm:$0x40] }
 0x3e6   :  { %9364 = vmatpush3.bf16.msra.mxu0 %v9361_v16  ;;  %v5450_v16 = vld [vmem:[#allocation2 + $0x1e] ss:$32 sm:$0x20]  ;;  %v5343_v59 = vor.u32 %v5342_v47, %v5341_v2 }
 0x3e7   :  { %9366 = vmatprep.subr.bf16.mxu0 %v9365_v22  ;;  %v5451_v19 = vor.u32 %v5450_v16, %v5449_v14  ;;  %v9433_v16 = vpack.c.bf16 %v6670_v11, %v6669_v10  ;;  %v5470_v47 = vld [vmem:[#allocation2 + $0x11e] ss:$32 sm:$0x80] }
 0x3e8   :  { %v6672_v2 = vld [vmem:[%s11833_s3 + $0xf98] sm:$0xff] }
 0x3e9   :  { %v5453_v23 = vor.u32 %v5452_v18, %v5451_v19  ;;  %v5580_v18 = vld [vmem:[#allocation2 + $0x1f] ss:$32 sm:$0x80] }
 0x3ea   :  { %9368 = vmatpush3.bf16.msra.mxu0 %v9365_v22  ;;  %v5344_v22 = vld [vmem:[#allocation2 + $0x11d] ss:$32 sm:$0x80] }
 0x3eb   :  { %9370 = vmatprep.subr.bf16.mxu0 %v9369_v30  ;;  %v5345_v27 = vor.u32 %v5344_v22, %v5343_v59  ;;  %v5455_v29 = vor.u32 %v5454_v0, %v5453_v23  ;;  %v9437_v59 = vpack.c.bf16 %v6672_v2, %v6671_v53  ;;  %v6673_v22 = vld [vmem:[%s11833_s3 + $0xfa0] sm:$0xff]  ;;  %v6674_v23 = vld [vmem:[%s11833_s3 + $0xfa8] sm:$0xff]  ;;  %v6676_v0 = vld [vmem:[%s11833_s3 + $0xfb8] sm:$0xff] }
 0x3ec   :  { %v9441_v24 = vpack.c.bf16 %v6674_v23, %v6673_v22  ;;  %v5810_v53 = vld [vmem:[%s11837_s7] sm:$0xff] }
 0x3ed   :  { %8303 = vmatmul.mubr.f32.vlgmr.msra.gmra.mrb[0].mxu0 %v5219_v37  ;;  %v6662_v37 = vld [vmem:[%s11833_s3 + $0xf48] sm:$0xff]  ;;  %v6686_v2 = vld [vmem:[%s11836_s6] ss:$0 sm:$0xff] }
 0x3ee   :  { %9372 = vmatpush3.bf16.msra.mxu0 %v9369_v30  ;;  %8337 = vmatprep.mubr.f32.mxu0 %v5329_v45  ;;  %v6658_v30 = vld [vmem:[%s11833_s3 + $0xf28] sm:$0xff]  ;;  %v5458_v45 = vld [vmem:[#allocation2 + $0x11e] ss:$32 sm:$0x2]  ;;  %v9417_v39 = vpack.c.bf16 %v6662_v37, %v6661_v36  ;;  %v9453_v37 = vpack.c.bf16 %v6680_v34, %v6679_v33 }
 0x3ef   :  { %9374 = vmatprep.subr.bf16.mxu0 %v9373_v38  ;;  %v9409_v32 = vpack.c.bf16 %v6658_v30, %v6657_v7  ;;  %v5583_v7 = vld [vmem:[#allocation2 + $0x11f] ss:$32 sm:$0x1] }
 0x3f0   :  { %v5584_v30 = vld [vmem:[#allocation2 + $0x11f] ss:$32 sm:$0x2] }
 0x3f1   :  { %v5585_v36 = vor.u32 %v5584_v30, %v5583_v7 }
 0x3f2   :  { %9376 = vmatpush3.bf16.msra.mxu0 %v9373_v38  ;;  %v5457_v38 = vld [vmem:[#allocation2 + $0x11e] ss:$32 sm:$0x1] }
 0x3f3   :  { %9378 = vmatprep.subr.bf16.mxu0 %v9377_v41  ;;  %v5459_v46 = vor.u32 %v5458_v45, %v5457_v38  ;;  %v6681_v45 = vld [vmem:[%s11833_s3 + $0xfe0] sm:$0xff] }
 0x3f6   :  { %9380 = vmatpush3.bf16.msra.mxu0 %v9377_v41  ;;  %v5568_v41 = vld [vmem:[#allocation2 + $0x1f] ss:$32 sm:$0x2] }
 0x3f7   :  { %9382 = vmatprep.subr.bf16.mxu0 %v9381_v44  ;;  %v5569_v49 = vor.u32 %v5568_v41, %v5567_v40  ;;  %v5588_v40 = vld [vmem:[#allocation2 + $0x11f] ss:$32 sm:$0x8] }
 0x3f8   :  { %v5590_v41 = vld [vmem:[#allocation2 + $0x11f] ss:$32 sm:$0x10] }
 0x3f9   :  { %v5571_v57 = vor.u32 %v5570_v48, %v5569_v49  ;;  %v5592_v49 = vld [vmem:[#allocation2 + $0x11f] ss:$32 sm:$0x20] }
 0x3fa   :  { %9384 = vmatpush3.bf16.msra.mxu0 %v9381_v44  ;;  %v5460_v44 = vld [vmem:[#allocation2 + $0x11e] ss:$32 sm:$0x4] }
 0x3fb   :  { %9386 = vmatprep.subr.bf16.mxu0 %v9385_v25  ;;  %v5573_v4 = vor.u32 %v5572_v58, %v5571_v57 }
 0x3fe   :  { %9388 = vmatpush3.bf16.msra.mxu0 %v9385_v25  ;;  %v5461_v25 = vor.u32 %v5460_v44, %v5459_v46  ;;  %v6683_v44 = vld [vmem:[%s11833_s3 + $0xff0] sm:$0xff]  ;;  %v6684_v46 = vld [vmem:[%s11833_s3 + $0xff8] sm:$0xff] }
 0x3ff   :  { %9390 = vmatprep.subr.bf16.mxu0 %v9389_v61 }
 0x400   :  { %v5463_v63 = vor.u32 %v5462_v55, %v5461_v25  ;;  %v5594_v25 = vld [vmem:[#allocation2 + $0x11f] ss:$32 sm:$0x40] }
 0x402   :  { %9392 = vmatpush3.bf16.msra.mxu0 %v9389_v61  ;;  %v9425_v61 = vpack.c.bf16 %v6666_v54, %v6665_v51  ;;  %v5465_v56 = vor.u32 %v5464_v60, %v5463_v63  ;;  %v5707_v51 = vld [vmem:[%s11835_s5] sm:$0xff]  ;;  %v5708_v54 = vld [vmem:[%s11835_s5 + $0x8] sm:$0xff]  ;;  %v5596_v60 = vld [vmem:[#allocation2 + $0x11f] ss:$32 sm:$0x80] }
 0x403   :  { %9394 = vmatprep.subr.bf16.mxu0 %v9393_v5  ;;  %v9465_v58 = vpack.c.bf16 %v5708_v54, %v5707_v51  ;;  %v5710_v63 = vld [vmem:[%s11835_s5 + $0x18] sm:$0xff] }
 0x404   :  { %v5467_v12 = vor.u32 %v5466_v28, %v5465_v56  ;;  %v5713_v56 = vld [vmem:[%s11835_s5 + $0x30] sm:$0xff] }
 0x406   :  { %9396 = vmatpush3.bf16.msra.mxu0 %v9393_v5  ;;  %v5575_v5 = vor.u32 %v5574_v6, %v5573_v4  ;;  %v5712_v4 = vld [vmem:[%s11835_s5 + $0x28] sm:$0xff] }
 0x407   :  { %9398 = vmatprep.subr.bf16.mxu0 %v9397_v15  ;;  %v9473_v28 = vpack.c.bf16 %v5712_v4, %v5711_v3 }
 0x408   :  { %v5577_v14 = vor.u32 %v5576_v62, %v5575_v5  ;;  %v5714_v5 = vld [vmem:[%s11835_s5 + $0x38] sm:$0xff] }
 0x40a   :  { %9400 = vmatpush3.bf16.msra.mxu0 %v9397_v15  ;;  %v5469_v15 = vor.u32 %v5468_v9, %v5467_v12  ;;  %v5579_v17 = vor.u32 %v5578_v13, %v5577_v14  ;;  %v6685_v9 = vld [vmem:[%s11834_s4] ss:$0 sm:$0xff] }
 0x40b   :  { %9402 = vmatprep.subr.bf16.mxu0 %v9401_v21 }
 0x40c   :  { %v5471_v19 = vor.u32 %v5470_v47, %v5469_v15 }
 0x40d   :  { %8338 = vmatmul.mubr.f32.vlgmr.msra.gmra.mrb[0].mxu0 %v5345_v27  ;;  %v9445_v27 = vpack.c.bf16 %v6676_v0, %v6675_v26  ;;  %v5907_v0 = vld [vmem:[%s11839_s9] sm:$0xff] }
 0x40e   :  { %9404 = vmatpush3.bf16.msra.mxu0 %v9401_v21  ;;  %8372 = vmatprep.mubr.f32.mxu0 %v5455_v29  ;;  %v5581_v21 = vor.u32 %v5580_v18, %v5579_v17  ;;  %v6678_v29 = vld [vmem:[%s11833_s3 + $0xfc8] sm:$0xff] }
 0x40f   :  { %9406 = vmatprep.subr.bf16.mxu0 %v9405_v31 }
 0x412   :  { %9408 = vmatpush3.bf16.msra.mxu0 %v9405_v31  ;;  %v6677_v31 = vld [vmem:[%s11833_s3 + $0xfc0] sm:$0xff] }
 0x413   :  { %9410 = vmatprep.subr.bf16.mxu0 %v9409_v32 }
 0x416   :  { %9412 = vmatpush3.bf16.msra.mxu0 %v9409_v32  ;;  %v9449_v32 = vpack.c.bf16 %v6678_v29, %v6677_v31 }
 0x417   :  { %9414 = vmatprep.subr.bf16.mxu0 %v9413_v35 }
 0x41a   :  { %9416 = vmatpush3.bf16.msra.mxu0 %v9413_v35  ;;  %v5586_v35 = vld [vmem:[#allocation2 + $0x11f] ss:$32 sm:$0x4] }
 0x41b   :  { %9418 = vmatprep.subr.bf16.mxu0 %v9417_v39  ;;  %v5587_v38 = vor.u32 %v5586_v35, %v5585_v36  ;;  %v6692_v36 = vld [vmem:[%s11840_s10] ss:$0 sm:$0xff] }
 0x41d   :  { %v11709_v52 = vpop.f32.mrb[64].mxu1  ;;  %v5589_v43 = vor.u32 %v5588_v40, %v5587_v38 }
 0x41e   :  { %9420 = vmatpush3.bf16.msra.mxu0 %v9417_v39  ;;  %v11711_v20 = vpop.f32.mrb[65].mxu1  ;;  %v6682_v39 = vld [vmem:[%s11833_s3 + $0xfe8] sm:$0xff] }
 0x41f   :  { %9422 = vmatprep.subr.bf16.mxu0 %v9421_v50  ;;  %v9457_v42 = vpack.c.bf16 %v6682_v39, %v6681_v45  ;;  %v5591_v48 = vor.u32 %v5590_v41, %v5589_v43 }
 0x421   :  { %v5593_v55 = vor.u32 %v5592_v49, %v5591_v48 }
 0x422   :  { %9424 = vmatpush3.bf16.msra.mxu0 %v9421_v50  ;;  %v9461_v50 = vpack.c.bf16 %v6684_v46, %v6683_v44 }
 0x423   :  { %9426 = vmatprep.subr.bf16.mxu0 %v9425_v61  ;;  %v5595_v57 = vor.u32 %v5594_v25, %v5593_v55 }
 0x425   :  { %v5597_v6 = vor.u32 %v5596_v60, %v5595_v57 }
 0x426   :  { %9428 = vmatpush3.bf16.msra.mxu0 %v9425_v61  ;;  %v5709_v61 = vld [vmem:[%s11835_s5 + $0x10] sm:$0xff] }
 0x427   :  { %9430 = vmatprep.subr.bf16.mxu0 %v9429_v8  ;;  %v9469_v1 = vpack.c.bf16 %v5710_v63, %v5709_v61 }
 0x42a   :  { %9432 = vmatpush3.bf16.msra.mxu0 %v9429_v8  ;;  %v9477_v8 = vpack.c.bf16 %v5714_v5, %v5713_v56 }
 0x42b   :  { %9434 = vmatprep.subr.bf16.mxu0 %v9433_v16 }
 0x42d   :  { %8373 = vmatmul.mubr.f32.vlgmr.msra.gmra.mrb[0].mxu0 %v5471_v19 }
 0x42e   :  { %9436 = vmatpush3.bf16.msra.mxu0 %v9433_v16  ;;  %8407 = vmatprep.mubr.f32.mxu0 %v5581_v21 }
 0x42f   :  { %9438 = vmatprep.subr.bf16.mxu0 %v9437_v59 }
 0x432   :  { %9440 = vmatpush3.bf16.msra.mxu0 %v9437_v59 }
 0x433   :  { %9442 = vmatprep.subr.bf16.mxu0 %v9441_v24 }
 0x436   :  { %9444 = vmatpush3.bf16.msra.mxu0 %v9441_v24 }
 0x437   :  { %9446 = vmatprep.subr.bf16.mxu0 %v9445_v27 }
 0x43a   :  { %9448 = vmatpush3.bf16.msra.mxu0 %v9445_v27  ;;  %v6689_v27 = vld [vmem:[%s11838_s8] ss:$0 sm:$0xff]  ;;  %s9610_s8 = smov [#allocation3]  }
 0x43b   :  { %9450 = vmatprep.subr.bf16.mxu0 %v9449_v32  ;;  %s6018_s15 = sshll.u32 %s9610_s8, 4  ;;  %s6019_s15 = int_to_ptr.vmem [resolvable:$true] %s6018_s15 }
 0x43c   :  { %s9585_s10 = scalar_lea.vmem %s6019_s15, 256  ;;  %p9590_p1 = scmp.lt.s32.totalorder %s6019_s15, %s6019_s15 }
 0x43d   :  { %p9586_p0 = scmp.ne.s32.totalorder %s6019_s15, %s9585_s10  ;;  %p9591_p2 = scmp.lt.s32.totalorder %s9585_s10, %s9585_s10 }
 0x43e   :  { %9452 = vmatpush3.bf16.msra.mxu0 %v9449_v32 }
 0x43f   :  { %9454 = vmatprep.subr.bf16.mxu0 %v9453_v37  ;;  %p9592_p3 = por %p9591_p2, %p9590_p1 }
 0x441   :  { %p9593_p4 = pnand %p9592_p3, %p9586_p0 }
 0x442   :  { %9456 = vmatpush3.bf16.msra.mxu0 %v9453_v37 }
 0x443   :  { %9458 = vmatprep.subr.bf16.mxu0 %v9457_v42 }
 0x446   :  { %9460 = vmatpush3.bf16.msra.mxu0 %v9457_v42 }
 0x447   :  { %9462 = vmatprep.subr.bf16.mxu0 %v9461_v50 }
 0x44a   :  { %9464 = vmatpush3.bf16.msra.mxu0 %v9461_v50 }
 0x44b   :  { %9466 = vmatprep.subr.bf16.mxu0 %v9465_v58 }
 0x44d   :  { %8408 = vmatmul.mubr.f32.vlgmr.msra.gmra.mrb[0].mxu0 %v5597_v6 }
 0x44e   :  { %9468 = vmatpush3.bf16.msra.mxu0 %v9465_v58 }
 0x44f   :  { %9470 = vmatprep.subr.bf16.mxu0 %v9469_v1 }
 0x452   :  { %9472 = vmatpush3.bf16.msra.mxu0 %v9469_v1 }
 0x453   :  { %9474 = vmatprep.subr.bf16.mxu0 %v9473_v28 }
 0x456   :  { %9476 = vmatpush3.bf16.msra.mxu0 %v9473_v28 }
 0x457   :  { %9478 = vmatprep.subr.bf16.mxu0 %v9477_v8 }
 0x45a   :  { %9480 = vmatpush3.bf16.msra.mxu0 %v9477_v8 }
 0x520   :  { %v8409_v62 = vpop.f32.mrb[0].mxu0 }
 0x521   :  { %v9485_v10 = vadd.f32 %v8409_v62, %v11709_v52  ;;  %v5681_v11 = vpop.f32.mrb[1].mxu0  ;;  %v5811_v52 = vld [vmem:[%s11837_s7 + $0x8] sm:$0xff] }
 0x522   :  { %v9486_v12 = vadd.f32 %v5681_v11, %v11711_v20  ;;  %v9481_v20 = vpack.c.bf16 %v5811_v52, %v5810_v53 }
 0x523   :  { %v5700_v13 = vadd.f32 %v9485_v10, %v6685_v9 }
 0x524   :  { %v5699_v14 = vadd.f32 %v9486_v12, %v6685_v9  ;;  %9482 = vmatprep.subr.bf16.mxu1 %v9481_v20 }
 0x525   :  { %v5704_v15 = vmul.f32 0.01, %v5700_v13  ;;  %vm5702_vm2 = vcmp.gt.f32.partialorder %v5700_v13, 0.0  ;;  %9484 = vmatpush3.bf16.msra.mxu1 %v9481_v20 }
 0x526   :  { %v5703_v16 = vmul.f32 0.01, %v5699_v14  ;;  %vm5701_vm3 = vcmp.gt.f32.partialorder %v5699_v14, 0.0  ;;  %8436 = vmatprep.subr.mxu1 %v5907_v0 }
 0x527   :  { %v5706_v17 = vsel %vm5702_vm2, %v5700_v13, %v5704_v15 }
 0x528   :  { %v5705_v47 = vsel %vm5701_vm3, %v5699_v14, %v5703_v16 }
 0x529   :  { %8426 = vmatprep.mubr.msk.f32.mxu0 %vm5722_vm4, %v5705_v47 }
 0x52a   :  { %8427 = vmatmul.mubr.msk.f32.vlgmr.msra.gmra.mrb[2].mxu0 %vm5722_vm4, %v5706_v17 }
 0x5fd   :  { %v8428_v18 = vpop.f32.mrb[2].mxu0 }
 0x5fe   :  { %v5801_v19 = vadd.f32 %v8428_v18, %v6686_v2  ;;  %v5795_v59 = vpop.f32.mrb[3].mxu0 }
 0x5ff   :  { %v5796_v21 = vadd.f32 %v6686_v2, %v5795_v59 }
 0x600   :  { %v5807_v22 = vmul.f32 0.01, %v5801_v19  ;;  %vm5805_vm5 = vcmp.gt.f32.partialorder %v5801_v19, 0.0 }
 0x601   :  { %vm5804_vm6 = vcmp.gt.f32.partialorder %v5796_v21, 0.0  ;;  %v5806_v23 = vmul.f32 0.01, %v5796_v21 }
 0x602   :  { %v5809_v26 = vsel %vm5805_vm5, %v5801_v19, %v5807_v22 }
 0x603   :  { %v5808_v24 = vsel %vm5804_vm6, %v5796_v21, %v5806_v23 }
 0x604   :  { %8433 = vmatprep.mubr.msk.f32.mxu1 %vm5819_vm7, %v5808_v24 }
 0x605   :  { %8434 = vmatmul.mubr.msk.f32.vlgmr.msra.gmra.mrb[66].mxu1 %vm5819_vm7, %v5809_v26 }
 0x606   :  { %8437 = vmatpush3.msra.mxu1 %v5907_v0 }
 0x6d8   :  { %v8435_v31 = vpop.f32.mrb[66].mxu1 }
 0x6d9   :  { %v5898_v29 = vadd.f32 %v8435_v31, %v6689_v27  ;;  %v5892_v7 = vpop.f32.mrb[67].mxu1 }
 0x6da   :  { %v5893_v30 = vadd.f32 %v6689_v27, %v5892_v7 }
 0x6db   :  { %v5904_v32 = vmul.f32 0.01, %v5898_v29  ;;  %vm5902_vm8 = vcmp.gt.f32.partialorder %v5898_v29, 0.0 }
 0x6dc   :  { %vm5901_vm9 = vcmp.gt.f32.partialorder %v5893_v30, 0.0  ;;  %v5903_v33 = vmul.f32 0.01, %v5893_v30 }
 0x6dd   :  { %v5906_v35 = vsel %vm5902_vm8, %v5898_v29, %v5904_v32 }
 0x6de   :  { %v5905_v34 = vsel %vm5901_vm9, %v5893_v30, %v5903_v33 }
 0x6df   :  { %8438 = vmatprep.mubr.msk.f32.mxu1 %vm5915_vm10, %v5905_v34 }
 0x6e0   :  { %8439 = vmatmul.mubr.msk.f32.vlgmr.msra.gmra.mrb[68].mxu1 %vm5915_vm10, %v5906_v35 }
 0x7b3   :  { %v8440_v37 = vpop.f32.mrb[68].mxu1 }
 0x7b4   :  { %v5994_v38 = vadd.f32 %v8440_v37, %v6692_v36  ;;  %v5988_v45 = vpop.f32.mrb[69].mxu1 }
 0x7b5   :  { %v5989_v39 = vadd.f32 %v6692_v36, %v5988_v45 }
 0x7b6   :  { %v6696_v40 = vmul.f32 -1.442695, %v5994_v38 }
 0x7b7   :  { %v6695_v41 = vmul.f32 -1.442695, %v5989_v39 }
 0x7b8   :  { %9577 = vpow2.f32 %v6696_v40 }
 0x7b9   :  { %9579 = vpow2.f32 %v6695_v41 }
 0x7c2   :  { %v9578_v42 = vpop.eup %9577 }
 0x7c3   :  { %v9580_v43 = vpop.eup %9579  ;;  %v6004_v44 = vadd.f32 1.0, %v9578_v42 }
 0x7c4   :  { %v6003_v46 = vadd.f32 1.0, %v9580_v43 }
 0x7c5   :  { %9581 = vrcp.f32 %v6004_v44 }
 0x7c6   :  { %9583 = vrcp.f32 %v6003_v46 }
 0x7cf   :  { %v9582_v48 = vpop.eup %9581 }
 0x7d0   :  { %v9584_v49 = vpop.eup %9583  ;;  %v6010_v50 = vmul.f32 %v9582_v48, %v5809_v26 }
 0x7d1   :  { %v6009_v25 = vmul.f32 %v9584_v49, %v5808_v24 }
 0x7d2   :  { %6012 = vst.msk [vmem:[#allocation3 + $0x8] sm:$0xff] %vm5819_vm7, %v6010_v50 }
 0x7d3   :  { %6011 = vst.msk [vmem:[#allocation3] sm:$0xff] %vm5819_vm7, %v6009_v25 }
 0x7d4   :  { %9596 = shalt.err (!%p9593_p4)
}
 0x7d5   :  { %s9597_s17 = scalar_lea.hbm %s11841_s11, 256 }
 0x7d6   :  { %p9598_p5 = scmp.ne.s32.totalorder %s11841_s11, %s9597_s17  ;;  %p9601_p6 = scmp.lt.u32.totalorder %s9597_s17, %s11841_s11 }
 0x7d8   :  { %p9603_p7 = pnand %p9601_p6, %p9598_p5 }
 0x7da   :  { %9606 = shalt.err (!%p9603_p7)
}
 0x7db   :  { %s9611_s2 = smov 128   ;;  %s9612_s0 = smov 8  }
 0x7dc   :  { %6024 = dma.vmem_to_hbm [thread:$0]  %s6019_s15, 256, %s11841_s11, [#allocation4], %s9611_s2, %s9611_s2, %s9612_s0  }
 0x7dd   :  { %9607 = dma.done.wait [#allocation4], 256  }
 0x7de   :  { %9608 = vsyncadd [#allocation4], 4294967040 }
 0x7df   :  { %6028 = vsyncpa [#allocation4], 1 }

</bundles_post_ra>
